<compile_context>
chip_gen: v6e
topology: v6e:2x2x1
jax: 0.10.0
libtpu: 0.0.40
codegen_flags: <defaults>
</compile_context>

<pallas_src>
import math
from functools import partial

import jax
import jax.numpy as jnp
from jax import lax
from jax.experimental import pallas as pl
from jax.experimental.pallas import tpu as pltpu

D_MODEL = 512
N_HEAD = 8
HEAD_DIM = D_MODEL // N_HEAD
D_FF = 2048
N_ENC = 6
N_DEC = 6
LN_EPS = 1e-5
NEG_INF = -1e30                       # large-negative additive mask (finite in f32)
VMEM_LIMIT = 32 * 1024 * 1024         # sized against v7x's 64 MiB physical VMEM


# ----------------------------------------------------------------------------
# In-kernel helpers
# ----------------------------------------------------------------------------
def _ln(x, g, b):
    mean = jnp.mean(x, axis=-1, keepdims=True)
    xc = x - mean
    var = jnp.mean(xc * xc, axis=-1, keepdims=True)
    return xc * lax.rsqrt(var + LN_EPS) * g + b


# ----------------------------------------------------------------------------
# Pallas kernels
# ----------------------------------------------------------------------------
def _ln_linear_kernel(x_ref, g_ref, bln_ref, w_ref, b_ref, o_ref):
    # y = LayerNorm(x) @ W + b   (W is bf16; accumulate in f32)
    h = _ln(x_ref[...], g_ref[...], bln_ref[...])
    o_ref[...] = (jnp.dot(h.astype(jnp.bfloat16), w_ref[...],
                          preferred_element_type=jnp.float32) + b_ref[...])


def pallas_ln_linear(x, g, b_ln, w, b, tn=512):
    M, K = x.shape
    N = w.shape[1]
    tn = min(tn, N)
    assert N % tn == 0 and tn % 128 == 0
    return pl.pallas_call(
        _ln_linear_kernel,
        out_shape=jax.ShapeDtypeStruct((M, N), jnp.float32),
        grid=(N // tn,),
        in_specs=[
            pl.BlockSpec((M, K), lambda j: (0, 0)),
            pl.BlockSpec((1, K), lambda j: (0, 0)),
            pl.BlockSpec((1, K), lambda j: (0, 0)),
            pl.BlockSpec((K, tn), lambda j: (0, j)),
            pl.BlockSpec((1, tn), lambda j: (0, j)),
        ],
        out_specs=pl.BlockSpec((M, tn), lambda j: (0, j)),
        compiler_params=pltpu.CompilerParams(
            dimension_semantics=("parallel",), vmem_limit_bytes=VMEM_LIMIT),
    )(x, g.reshape(1, K), b_ln.reshape(1, K), w, b.reshape(1, N))


def _linear_kernel(x_ref, w_ref, b_ref, o_ref):
    o_ref[...] = (jnp.dot(x_ref[...].astype(jnp.bfloat16), w_ref[...],
                          preferred_element_type=jnp.float32) + b_ref[...])


def pallas_linear(x, w, b, tn=512):
    M, K = x.shape
    N = w.shape[1]
    tn = min(tn, N)
    assert N % tn == 0 and tn % 128 == 0
    return pl.pallas_call(
        _linear_kernel,
        out_shape=jax.ShapeDtypeStruct((M, N), jnp.float32),
        grid=(N // tn,),
        in_specs=[
            pl.BlockSpec((M, K), lambda j: (0, 0)),
            pl.BlockSpec((K, tn), lambda j: (0, j)),
            pl.BlockSpec((1, tn), lambda j: (0, j)),
        ],
        out_specs=pl.BlockSpec((M, tn), lambda j: (0, j)),
        compiler_params=pltpu.CompilerParams(
            dimension_semantics=("parallel",), vmem_limit_bytes=VMEM_LIMIT),
    )(x, w, b.reshape(1, N))


def _linear_residual_kernel(x_ref, w_ref, b_ref, res_ref, o_ref):
    # y = residual + x @ W + b   (residual add fused into the epilogue)
    o_ref[...] = (res_ref[...]
                  + jnp.dot(x_ref[...].astype(jnp.bfloat16), w_ref[...],
                            preferred_element_type=jnp.float32)
                  + b_ref[...])


def pallas_linear_residual(x, w, b, res, tn=512):
    M, K = x.shape
    N = w.shape[1]
    tn = min(tn, N)
    assert N % tn == 0 and tn % 128 == 0
    return pl.pallas_call(
        _linear_residual_kernel,
        out_shape=jax.ShapeDtypeStruct((M, N), jnp.float32),
        grid=(N // tn,),
        in_specs=[
            pl.BlockSpec((M, K), lambda j: (0, 0)),
            pl.BlockSpec((K, tn), lambda j: (0, j)),
            pl.BlockSpec((1, tn), lambda j: (0, j)),
            pl.BlockSpec((M, tn), lambda j: (0, j)),
        ],
        out_specs=pl.BlockSpec((M, tn), lambda j: (0, j)),
        compiler_params=pltpu.CompilerParams(
            dimension_semantics=("parallel",), vmem_limit_bytes=VMEM_LIMIT),
    )(x, w, b.reshape(1, N), res)


def _ln_ffn_kernel(x_ref, g_ref, bln_ref, w1_ref, b1_ref, w2_ref, b2_ref,
                   o_ref, h_ref, acc_ref):
    # x + relu(LN(x) @ W1 + b1) @ W2 + b2, streaming W1/W2 over D_FF chunks.
    kf = pl.program_id(0)

    @pl.when(kf == 0)
    def _():
        h_ref[...] = _ln(x_ref[...], g_ref[...], bln_ref[...]).astype(jnp.bfloat16)
        acc_ref[...] = jnp.zeros_like(acc_ref)

    h1 = jnp.maximum(
        jnp.dot(h_ref[...], w1_ref[...], preferred_element_type=jnp.float32)
        + b1_ref[...], 0.0)
    acc_ref[...] += jnp.dot(h1.astype(jnp.bfloat16), w2_ref[...],
                            preferred_element_type=jnp.float32)

    @pl.when(kf == pl.num_programs(0) - 1)
    def _():
        o_ref[...] = x_ref[...] + acc_ref[...] + b2_ref[...]


def pallas_ln_ffn(x, g, b_ln, w1, b1, w2, b2, tf=512):
    M, K = x.shape            # K = D_MODEL
    F = w1.shape[1]           # D_FF
    assert F % tf == 0
    return pl.pallas_call(
        _ln_ffn_kernel,
        out_shape=jax.ShapeDtypeStruct((M, K), jnp.float32),
        grid=(F // tf,),
        in_specs=[
            pl.BlockSpec((M, K), lambda k: (0, 0)),
            pl.BlockSpec((1, K), lambda k: (0, 0)),
            pl.BlockSpec((1, K), lambda k: (0, 0)),
            pl.BlockSpec((K, tf), lambda k: (0, k)),
            pl.BlockSpec((1, tf), lambda k: (0, k)),
            pl.BlockSpec((tf, K), lambda k: (k, 0)),
            pl.BlockSpec((1, K), lambda k: (0, 0)),
        ],
        out_specs=pl.BlockSpec((M, K), lambda k: (0, 0)),
        scratch_shapes=[pltpu.VMEM((M, K), jnp.bfloat16),   # LN(x) cached across chunks
                        pltpu.VMEM((M, K), jnp.float32)],   # f32 accumulator
        compiler_params=pltpu.CompilerParams(
            dimension_semantics=("arbitrary",), vmem_limit_bytes=VMEM_LIMIT),
    )(x, g.reshape(1, K), b_ln.reshape(1, K),
      w1, b1.reshape(1, F), w2, b2.reshape(1, K))


def _attention_kernel(kpm_ref, la_ref, q_ref, k_ref, v_ref, o_ref, *, scale):
    # One batch element per grid step; all heads processed in one batched einsum.
    q = q_ref[0]                                    # (H, Sq, Dh) bf16
    k = k_ref[0]                                    # (H, Sk, Dh) bf16
    v = v_ref[0]                                    # (H, Sk, Dh) bf16
    bias = kpm_ref[0] + la_ref[0]                   # (1,Sk) + (Sq,Sk) -> (Sq,Sk) f32
    s = jnp.einsum('hqd,hkd->hqk', q, k,
                   preferred_element_type=jnp.float32) * scale
    s = s + bias[None, :, :]
    m = jnp.max(s, axis=-1, keepdims=True)
    p = jnp.exp(s - m)
    p = p * pl.reciprocal(jnp.sum(p, axis=-1, keepdims=True), approx=True)
    o_ref[0] = jnp.einsum('hqk,hkd->hqd', p.astype(jnp.bfloat16), v,
                          preferred_element_type=jnp.float32)


def pallas_attention(q, k, v, kpm_bias, la_bias):
    """q: (B,H,Sq,Dh) bf16, k/v: (B,H,Sk,Dh) bf16,
       kpm_bias: (B,1,Sk) f32 additive, la_bias: (1,Sq,Sk) f32 additive -> (B,H,Sq,Dh) f32."""
    B, H, Sq, Dh = q.shape
    Sk = k.shape[2]
    scale = 1.0 / math.sqrt(Dh)
    return pl.pallas_call(
        partial(_attention_kernel, scale=scale),
        out_shape=jax.ShapeDtypeStruct((B, H, Sq, Dh), jnp.float32),
        grid=(B,),
        in_specs=[
            pl.BlockSpec((1, 1, Sk), lambda b: (b, 0, 0)),
            pl.BlockSpec((1, Sq, Sk), lambda b: (0, 0, 0)),
            pl.BlockSpec((1, H, Sq, Dh), lambda b: (b, 0, 0, 0)),
            pl.BlockSpec((1, H, Sk, Dh), lambda b: (b, 0, 0, 0)),
            pl.BlockSpec((1, H, Sk, Dh), lambda b: (b, 0, 0, 0)),
        ],
        out_specs=pl.BlockSpec((1, H, Sq, Dh), lambda b: (b, 0, 0, 0)),
        compiler_params=pltpu.CompilerParams(
            dimension_semantics=("parallel",), vmem_limit_bytes=VMEM_LIMIT),
    )(kpm_bias, la_bias, q, k, v)


def _layernorm_kernel(x_ref, g_ref, b_ref, o_ref):
    o_ref[...] = _ln(x_ref[...], g_ref[...], b_ref[...])


def pallas_layernorm(x, g, b):
    M, D = x.shape
    return pl.pallas_call(
        _layernorm_kernel,
        out_shape=jax.ShapeDtypeStruct((M, D), jnp.float32),
        grid=(1,),
        in_specs=[
            pl.BlockSpec((M, D), lambda i: (0, 0)),
            pl.BlockSpec((1, D), lambda i: (0, 0)),
            pl.BlockSpec((1, D), lambda i: (0, 0)),
        ],
        out_specs=pl.BlockSpec((M, D), lambda i: (0, 0)),
        compiler_params=pltpu.CompilerParams(
            dimension_semantics=("arbitrary",), vmem_limit_bytes=VMEM_LIMIT),
    )(x, g.reshape(1, D), b.reshape(1, D))


# ----------------------------------------------------------------------------
# Transformer built from the Pallas kernels
# ----------------------------------------------------------------------------
# TODO(synk): head split/merge transposes stay in XLA; folding them into the attention
# kernel would need in-kernel lane reshapes (risky lowering) for negligible gain here.
def _split_heads(t, B, S):
    return (t.astype(jnp.bfloat16)
             .reshape(B, S, N_HEAD, HEAD_DIM)
             .transpose(0, 2, 1, 3))                # (B, H, S, Dh) bf16


def _merge_heads(o, B, S):
    return o.transpose(0, 2, 1, 3).reshape(B * S, D_MODEL)   # (B*S, D) f32


def self_attn_sublayer(x, p_attn, p_norm, kpm_bias, la_bias):
    B, S, D = x.shape
    x2 = x.reshape(B * S, D)
    # fused pre-LN + packed QKV projection (one 512x1536 matmul)
    qkv = pallas_ln_linear(x2, p_norm["g"], p_norm["b"], p_attn["in_w"], p_attn["in_b"])
    q = _split_heads(qkv[:, :D], B, S)
    k = _split_heads(qkv[:, D:2 * D], B, S)
    v = _split_heads(qkv[:, 2 * D:], B, S)
    o = pallas_attention(q, k, v, kpm_bias, la_bias)
    o2 = _merge_heads(o, B, S)
    out = pallas_linear_residual(o2, p_attn["out_w"], p_attn["out_b"], x2)
    return out.reshape(B, S, D)


def cross_attn_sublayer(x, mem, p_attn, p_norm, kpm_bias):
    B, Sq, D = x.shape
    Sk = mem.shape[1]
    x2 = x.reshape(B * Sq, D)
    q = pallas_ln_linear(x2, p_norm["g"], p_norm["b"], p_attn["q_w"], p_attn["q_b"])
    kv = pallas_linear(mem.reshape(B * Sk, D), p_attn["kv_w"], p_attn["kv_b"])
    qh = _split_heads(q, B, Sq)
    kh = _split_heads(kv[:, :D], B, Sk)
    vh = _split_heads(kv[:, D:], B, Sk)
    la0 = jnp.zeros((1, Sq, Sk), jnp.float32)
    o = pallas_attention(qh, kh, vh, kpm_bias, la0)
    o2 = _merge_heads(o, B, Sq)
    out = pallas_linear_residual(o2, p_attn["out_w"], p_attn["out_b"], x2)
    return out.reshape(B, Sq, D)


def ff_sublayer(x, p, p_norm):
    B, S, D = x.shape
    x2 = x.reshape(B * S, D)
    out = pallas_ln_ffn(x2, p_norm["g"], p_norm["b"],
                        p["lin1_w"], p["lin1_b"], p["lin2_w"], p["lin2_b"])
    return out.reshape(B, S, D)


def encoder_layer(x, p, src_kpm_bias, la0_src):
    x = self_attn_sublayer(x, p["self_attn"], p["norm1"], src_kpm_bias, la0_src)
    x = ff_sublayer(x, p, p["norm2"])
    return x


def decoder_layer(x, p, mem, tgt_kpm_bias, mem_kpm_bias, la_bias):
    x = self_attn_sublayer(x, p["self_attn"], p["norm1"], tgt_kpm_bias, la_bias)
    x = cross_attn_sublayer(x, mem, p["cross_attn"], p["norm2"], mem_kpm_bias)
    x = ff_sublayer(x, p, p["norm3"])
    return x


def transformer2_forward(params, pe_table, x_tokens, y_tokens, *, out_vocab):
    B, S_src = x_tokens.shape
    S_tgt = y_tokens.shape[1]

    # masks() from the reference module, as tiny additive bias rows expanded in-kernel
    src_kpm_bias = jnp.where(x_tokens == 1, NEG_INF, 0.0).astype(jnp.float32)[:, None, :]
    tgt_kpm_bias = jnp.where(y_tokens == 1, NEG_INF, 0.0).astype(jnp.float32)[:, None, :]
    la_bias = jnp.where(jnp.triu(jnp.ones((S_tgt, S_tgt), jnp.bool_), k=1),
                        NEG_INF, 0.0).astype(jnp.float32)[None]
    la0_src = jnp.zeros((1, S_src, S_src), jnp.float32)

    # TODO(synk): embedding gather + sinusoidal PE stay in XLA (no useful Pallas win).
    xe = jnp.take(params["emb1"], x_tokens, axis=0) + pe_table[:S_src][None]
    ye = jnp.take(params["emb2"], y_tokens, axis=0) + pe_table[:S_tgt][None]

    mem = xe
    for lp in params["enc"]:
        mem = encoder_layer(mem, lp, src_kpm_bias, la0_src)
    mem = pallas_layernorm(mem.reshape(B * S_src, D_MODEL),
                           params["enc_norm"]["g"], params["enc_norm"]["b"]
                           ).reshape(B, S_src, D_MODEL)

    out = ye
    for lp in params["dec"]:
        out = decoder_layer(out, lp, mem, tgt_kpm_bias, src_kpm_bias, la_bias)

    # dec_norm fused with the 128-lane-padded final projection; slice back to out_vocab.
    logits = pallas_ln_linear(out.reshape(B * S_tgt, D_MODEL),
                              params["dec_norm"]["g"], params["dec_norm"]["b"],
                              params["final_w"], params["final_b"])
    return logits[:, :out_vocab].reshape(B, S_tgt, out_vocab)


# ----------------------------------------------------------------------------
# Deterministic parameter init + sinusoidal PE
# ----------------------------------------------------------------------------
def sinusoidal_pe(max_len, d):
    pos = jnp.arange(max_len, dtype=jnp.float32)[:, None]
    div = jnp.exp(jnp.arange(0, d, 2, dtype=jnp.float32) * (-math.log(10000.0) / d))
    pe = jnp.zeros((max_len, d), jnp.float32)
    pe = pe.at[:, 0::2].set(jnp.sin(pos * div))
    pe = pe.at[:, 1::2].set(jnp.cos(pos * div))
    return pe


def init_params(key, in_vocab, out_vocab):
    keys = iter(jax.random.split(key, 512))

    def nrm(shape, std=0.02, dtype=jnp.bfloat16):
        return (jax.random.normal(next(keys), shape, jnp.float32) * std).astype(dtype)

    def ln_p():
        return dict(g=jnp.ones((D_MODEL,), jnp.float32), b=jnp.zeros((D_MODEL,), jnp.float32))

    def self_attn_p():
        # torch in_proj_weight is (3D, D) packed q|k|v; stored here transposed as (D, 3D)
        return dict(in_w=nrm((D_MODEL, 3 * D_MODEL)),
                    in_b=jnp.zeros((3 * D_MODEL,), jnp.float32),
                    out_w=nrm((D_MODEL, D_MODEL)),
                    out_b=jnp.zeros((D_MODEL,), jnp.float32))

    def cross_attn_p():
        # q from decoder stream, k/v from encoder memory -> stored as separate blocks
        return dict(q_w=nrm((D_MODEL, D_MODEL)), q_b=jnp.zeros((D_MODEL,), jnp.float32),
                    kv_w=nrm((D_MODEL, 2 * D_MODEL)), kv_b=jnp.zeros((2 * D_MODEL,), jnp.float32),
                    out_w=nrm((D_MODEL, D_MODEL)), out_b=jnp.zeros((D_MODEL,), jnp.float32))

    def enc_layer_p():
        return dict(self_attn=self_attn_p(),
                    lin1_w=nrm((D_MODEL, D_FF)), lin1_b=jnp.zeros((D_FF,), jnp.float32),
                    lin2_w=nrm((D_FF, D_MODEL)), lin2_b=jnp.zeros((D_MODEL,), jnp.float32),
                    norm1=ln_p(), norm2=ln_p())

    def dec_layer_p():
        return dict(self_attn=self_attn_p(), cross_attn=cross_attn_p(),
                    lin1_w=nrm((D_MODEL, D_FF)), lin1_b=jnp.zeros((D_FF,), jnp.float32),
                    lin2_w=nrm((D_FF, D_MODEL)), lin2_b=jnp.zeros((D_MODEL,), jnp.float32),
                    norm1=ln_p(), norm2=ln_p(), norm3=ln_p())

    out_pad = ((out_vocab + 127) // 128) * 128   # lane-dense final projection
    return dict(
        emb1=nrm((in_vocab, D_MODEL), 1.0, jnp.float32),
        emb2=nrm((out_vocab, D_MODEL), 1.0, jnp.float32),
        enc=[enc_layer_p() for _ in range(N_ENC)],
        dec=[dec_layer_p() for _ in range(N_DEC)],
        enc_norm=ln_p(), dec_norm=ln_p(),
        final_w=nrm((D_MODEL, out_pad)),
        final_b=jnp.zeros((out_pad,), jnp.float32),
    )


# ----------------------------------------------------------------------------
if __name__ == "__main__":
    IN_VOCAB, OUT_VOCAB = 64, 96
    B, S_SRC, S_TGT = 2, 8, 8

    root = jax.random.PRNGKey(0)
    k_params, k_x, k_y = jax.random.split(root, 3)

    params = init_params(k_params, IN_VOCAB, OUT_VOCAB)
    pe_table = sinusoidal_pe(200, D_MODEL)

    # tokens in [2, vocab); last position of each sequence is padding token 1
    x_tokens = jax.random.randint(k_x, (B, S_SRC), 2, IN_VOCAB, dtype=jnp.int32)
    y_tokens = jax.random.randint(k_y, (B, S_TGT), 2, OUT_VOCAB, dtype=jnp.int32)
    x_tokens = x_tokens.at[:, -1].set(1)
    y_tokens = y_tokens.at[:, -1].set(1)

    fwd = jax.jit(partial(transformer2_forward, out_vocab=OUT_VOCAB))
    logits = fwd(params, pe_table, x_tokens, y_tokens)
    jax.block_until_ready(logits)

    assert logits.shape == (B, S_TGT, OUT_VOCAB)
    assert bool(jnp.all(jnp.isfinite(logits)))
    print("KERNEL_OK")
</pallas_src>

<mosaic_0001>
module attributes {stable_mosaic.version = 11 : i64} {
  func.func @_ln_linear_kernel(%arg0: i32, %arg1: memref<16x512xf32, #tpu.memory_space<vmem>>, %arg2: memref<1x512xf32, #tpu.memory_space<vmem>>, %arg3: memref<1x512xf32, #tpu.memory_space<vmem>>, %arg4: memref<512x512xbf16, #tpu.memory_space<vmem>>, %arg5: memref<1x512xf32, #tpu.memory_space<vmem>>, %arg6: memref<16x512xf32, #tpu.memory_space<vmem>>) attributes {dimension_semantics = [#tpu.dimension_semantics<parallel>], iteration_bounds = array<i64: 3>, scalar_prefetch = 0 : i64, scratch_operands = 0 : i64, tpu.core_type = #tpu.core_type<tc>, window_params = [{pipeline_mode = #tpu.pipeline_mode<synchronous>, transform_indices = @transform_0, window_bounds = array<i64: 16, 512>}, {pipeline_mode = #tpu.pipeline_mode<synchronous>, transform_indices = @transform_1, window_bounds = array<i64: 1, 512>}, {pipeline_mode = #tpu.pipeline_mode<synchronous>, transform_indices = @transform_2, window_bounds = array<i64: 1, 512>}, {transform_indices = @transform_3, window_bounds = array<i64: 512, 512>}, {transform_indices = @transform_4, window_bounds = array<i64: 1, 512>}, {transform_indices = @transform_5, window_bounds = array<i64: 16, 512>}]} {
    %c0 = arith.constant 0 : index
    %c0_0 = arith.constant 0 : index
    %0 = vector.load %arg1[%c0, %c0_0] : memref<16x512xf32, #tpu.memory_space<vmem>>, vector<16x512xf32>
    %c0_1 = arith.constant 0 : index
    %c0_2 = arith.constant 0 : index
    %1 = vector.load %arg2[%c0_1, %c0_2] : memref<1x512xf32, #tpu.memory_space<vmem>>, vector<1x512xf32>
    %c0_3 = arith.constant 0 : index
    %c0_4 = arith.constant 0 : index
    %2 = vector.load %arg3[%c0_3, %c0_4] : memref<1x512xf32, #tpu.memory_space<vmem>>, vector<1x512xf32>
    %cst = arith.constant dense<0.000000e+00> : vector<16xf32>
    %3 = vector.multi_reduction <add>, %0, %cst [1] : vector<16x512xf32> to vector<16xf32>
    %4 = vector.shape_cast %3 : vector<16xf32> to vector<16x1xf32>
    %cst_5 = arith.constant 5.120000e+02 : f32
    %5 = vector.broadcast %cst_5 : f32 to vector<16x1xf32>
    %6 = arith.divf %4, %5 : vector<16x1xf32>
    %7 = vector.broadcast %6 : vector<16x1xf32> to vector<16x512xf32>
    %8 = arith.subf %0, %7 : vector<16x512xf32>
    %9 = arith.mulf %8, %8 : vector<16x512xf32>
    %cst_6 = arith.constant dense<0.000000e+00> : vector<16xf32>
    %10 = vector.multi_reduction <add>, %9, %cst_6 [1] : vector<16x512xf32> to vector<16xf32>
    %11 = vector.shape_cast %10 : vector<16xf32> to vector<16x1xf32>
    %cst_7 = arith.constant 5.120000e+02 : f32
    %12 = vector.broadcast %cst_7 : f32 to vector<16x1xf32>
    %13 = arith.divf %11, %12 : vector<16x1xf32>
    %cst_8 = arith.constant 9.99999974E-6 : f32
    %14 = vector.broadcast %cst_8 : f32 to vector<16x1xf32>
    %15 = arith.addf %13, %14 : vector<16x1xf32>
    %16 = math.rsqrt %15 : vector<16x1xf32>
    %17 = vector.broadcast %16 : vector<16x1xf32> to vector<16x512xf32>
    %18 = arith.mulf %8, %17 : vector<16x512xf32>
    %19 = vector.broadcast %1 : vector<1x512xf32> to vector<16x512xf32>
    %20 = arith.mulf %18, %19 : vector<16x512xf32>
    %21 = vector.broadcast %2 : vector<1x512xf32> to vector<16x512xf32>
    %22 = arith.addf %20, %21 : vector<16x512xf32>
    %23 = arith.truncf %22 : vector<16x512xf32> to vector<16x512xbf16>
    %c0_9 = arith.constant 0 : index
    %c0_10 = arith.constant 0 : index
    %24 = vector.load %arg4[%c0_9, %c0_10] : memref<512x512xbf16, #tpu.memory_space<vmem>>, vector<512x512xbf16>
    %cst_11 = arith.constant dense<0.000000e+00> : vector<16x512xf32>
    %25 = tpu.matmul %23, %24, %cst_11 {dimension_numbers = #tpu.dot_dimension_numbers<[1], [0], [0], [1], [0, 0, 1, 1], [], []>} : vector<16x512xbf16>, vector<512x512xbf16>, vector<16x512xf32> -> vector<16x512xf32>
    %c0_12 = arith.constant 0 : index
    %c0_13 = arith.constant 0 : index
    %26 = vector.load %arg5[%c0_12, %c0_13] : memref<1x512xf32, #tpu.memory_space<vmem>>, vector<1x512xf32>
    %27 = vector.broadcast %26 : vector<1x512xf32> to vector<16x512xf32>
    %28 = arith.addf %25, %27 : vector<16x512xf32>
    %c0_14 = arith.constant 0 : index
    %c0_15 = arith.constant 0 : index
    %29 = vector.load %arg6[%c0_14, %c0_15] : memref<16x512xf32, #tpu.memory_space<vmem>>, vector<16x512xf32>
    tpu.vector_store %arg6[%c0_14, %c0_15], %28 {strides = array<i32>} : memref<16x512xf32, #tpu.memory_space<vmem>>, vector<16x512xf32>,
    return
  }
  func.func @transform_0(%arg0: i32) -> (i32, i32) {
    %c0_i32 = arith.constant 0 : i32
    %c0_i32_0 = arith.constant 0 : i32
    %c0_i32_1 = arith.constant 0 : i32
    return %c0_i32, %c0_i32_0 : i32, i32
  }
  func.func @transform_1(%arg0: i32) -> (i32, i32) {
    %c0_i32 = arith.constant 0 : i32
    %c0_i32_0 = arith.constant 0 : i32
    %c0_i32_1 = arith.constant 0 : i32
    return %c0_i32, %c0_i32_0 : i32, i32
  }
  func.func @transform_2(%arg0: i32) -> (i32, i32) {
    %c0_i32 = arith.constant 0 : i32
    %c0_i32_0 = arith.constant 0 : i32
    %c0_i32_1 = arith.constant 0 : i32
    return %c0_i32, %c0_i32_0 : i32, i32
  }
  func.func @transform_3(%arg0: i32) -> (i32, i32) {
    %c0_i32 = arith.constant 0 : i32
    %c0_i32_0 = arith.constant 0 : i32
    return %c0_i32, %arg0 : i32, i32
  }
  func.func @transform_4(%arg0: i32) -> (i32, i32) {
    %c0_i32 = arith.constant 0 : i32
    %c0_i32_0 = arith.constant 0 : i32
    return %c0_i32, %arg0 : i32, i32
  }
  func.func @transform_5(%arg0: i32) -> (i32, i32) {
    %c0_i32 = arith.constant 0 : i32
    %c0_i32_0 = arith.constant 0 : i32
    return %c0_i32, %arg0 : i32, i32
  }
}

module attributes {stable_mosaic.version = 11 : i64} {
  func.func @_attention_kernel(%arg0: i32, %arg1: memref<1x1x8xf32, #tpu.memory_space<vmem>>, %arg2: memref<1x8x8xf32, #tpu.memory_space<vmem>>, %arg3: memref<1x8x8x64xbf16, #tpu.memory_space<vmem>>, %arg4: memref<1x8x8x64xbf16, #tpu.memory_space<vmem>>, %arg5: memref<1x8x8x64xbf16, #tpu.memory_space<vmem>>, %arg6: memref<1x8x8x64xf32, #tpu.memory_space<vmem>>) attributes {dimension_semantics = [#tpu.dimension_semantics<parallel>], iteration_bounds = array<i64: 2>, scalar_prefetch = 0 : i64, scratch_operands = 0 : i64, tpu.core_type = #tpu.core_type<tc>, window_params = [{transform_indices = @transform_0, window_bounds = array<i64: 1, 1, 8>}, {pipeline_mode = #tpu.pipeline_mode<synchronous>, transform_indices = @transform_1, window_bounds = array<i64: 1, 8, 8>}, {transform_indices = @transform_2, window_bounds = array<i64: 1, 8, 8, 64>}, {transform_indices = @transform_3, window_bounds = array<i64: 1, 8, 8, 64>}, {transform_indices = @transform_4, window_bounds = array<i64: 1, 8, 8, 64>}, {transform_indices = @transform_5, window_bounds = array<i64: 1, 8, 8, 64>}]} {
    %c0 = arith.constant 0 : index
    %c0_0 = arith.constant 0 : index
    %c0_1 = arith.constant 0 : index
    %c0_2 = arith.constant 0 : index
    %0 = vector.load %arg3[%c0, %c0_0, %c0_1, %c0_2] : memref<1x8x8x64xbf16, #tpu.memory_space<vmem>>, vector<1x8x8x64xbf16>
    %1 = vector.shape_cast %0 : vector<1x8x8x64xbf16> to vector<8x8x64xbf16>
    %c0_3 = arith.constant 0 : index
    %c0_4 = arith.constant 0 : index
    %c0_5 = arith.constant 0 : index
    %c0_6 = arith.constant 0 : index
    %2 = vector.load %arg4[%c0_3, %c0_4, %c0_5, %c0_6] : memref<1x8x8x64xbf16, #tpu.memory_space<vmem>>, vector<1x8x8x64xbf16>
    %3 = vector.shape_cast %2 : vector<1x8x8x64xbf16> to vector<8x8x64xbf16>
    %c0_7 = arith.constant 0 : index
    %c0_8 = arith.constant 0 : index
    %c0_9 = arith.constant 0 : index
    %c0_10 = arith.constant 0 : index
    %4 = vector.load %arg5[%c0_7, %c0_8, %c0_9, %c0_10] : memref<1x8x8x64xbf16, #tpu.memory_space<vmem>>, vector<1x8x8x64xbf16>
    %5 = vector.shape_cast %4 : vector<1x8x8x64xbf16> to vector<8x8x64xbf16>
    %c0_11 = arith.constant 0 : index
    %c0_12 = arith.constant 0 : index
    %c0_13 = arith.constant 0 : index
    %6 = vector.load %arg1[%c0_11, %c0_12, %c0_13] : memref<1x1x8xf32, #tpu.memory_space<vmem>>, vector<1x1x8xf32>
    %7 = vector.shape_cast %6 : vector<1x1x8xf32> to vector<1x8xf32>
    %c0_14 = arith.constant 0 : index
    %c0_15 = arith.constant 0 : index
    %c0_16 = arith.constant 0 : index
    %8 = vector.load %arg2[%c0_14, %c0_15, %c0_16] : memref<1x8x8xf32, #tpu.memory_space<vmem>>, vector<1x8x8xf32>
    %9 = vector.shape_cast %8 : vector<1x8x8xf32> to vector<8x8xf32>
    %10 = vector.broadcast %7 : vector<1x8xf32> to vector<8x8xf32>
    %11 = arith.addf %10, %9 : vector<8x8xf32>
    "tpu.trace_start"() <{level = 10 : i32, message = "hqd,hkd->hqk"}> : () -> ()
    %cst = arith.constant dense<0.000000e+00> : vector<8x8x8xf32>
    %12 = tpu.matmul %1, %3, %cst {dimension_numbers = #tpu.dot_dimension_numbers<[2], [2], [1], [1], [0, 0, 0, 1, 1, 1], [0], [0]>} : vector<8x8x64xbf16>, vector<8x8x64xbf16>, vector<8x8x8xf32> -> vector<8x8x8xf32>
    "tpu.trace_stop"() : () -> ()
    %cst_17 = arith.constant 1.250000e-01 : f32
    %13 = vector.broadcast %cst_17 : f32 to vector<8x8x8xf32>
    %14 = arith.mulf %12, %13 : vector<8x8x8xf32>
    %15 = vector.shape_cast %11 : vector<8x8xf32> to vector<1x8x8xf32>
    %16 = vector.broadcast %15 : vector<1x8x8xf32> to vector<8x8x8xf32>
    %17 = arith.addf %14, %16 : vector<8x8x8xf32>
    %cst_18 = arith.constant dense<0xFF800000> : vector<8x8xf32>
    %18 = vector.multi_reduction <maximumf>, %17, %cst_18 [2] : vector<8x8x8xf32> to vector<8x8xf32>
    %19 = vector.shape_cast %18 : vector<8x8xf32> to vector<8x8x1xf32>
    %20 = vector.broadcast %19 : vector<8x8x1xf32> to vector<8x8x8xf32>
    %21 = arith.subf %17, %20 : vector<8x8x8xf32>
    %22 = math.exp %21 : vector<8x8x8xf32>
    %cst_19 = arith.constant dense<0.000000e+00> : vector<8x8xf32>
    %23 = vector.multi_reduction <add>, %22, %cst_19 [2] : vector<8x8x8xf32> to vector<8x8xf32>
    %24 = vector.shape_cast %23 : vector<8x8xf32> to vector<8x8x1xf32>
    %25 = tpu.reciprocal %24 {approx = true} : vector<8x8x1xf32> -> vector<8x8x1xf32>
    %26 = vector.broadcast %25 : vector<8x8x1xf32> to vector<8x8x8xf32>
    %27 = arith.mulf %22, %26 : vector<8x8x8xf32>
    %28 = arith.truncf %27 : vector<8x8x8xf32> to vector<8x8x8xbf16>
    "tpu.trace_start"() <{level = 10 : i32, message = "hqk,hkd->hqd"}> : () -> ()
    %cst_20 = arith.constant dense<0.000000e+00> : vector<8x8x64xf32>
    %29 = tpu.matmul %28, %5, %cst_20 {dimension_numbers = #tpu.dot_dimension_numbers<[2], [1], [1], [2], [0, 0, 0, 1, 1, 2], [0], [0]>} : vector<8x8x8xbf16>, vector<8x8x64xbf16>, vector<8x8x64xf32> -> vector<8x8x64xf32>
    "tpu.trace_stop"() : () -> ()
    %c0_21 = arith.constant 0 : index
    %c0_22 = arith.constant 0 : index
    %c0_23 = arith.constant 0 : index
    %c0_24 = arith.constant 0 : index
    %30 = vector.load %arg6[%c0_21, %c0_22, %c0_23, %c0_24] : memref<1x8x8x64xf32, #tpu.memory_space<vmem>>, vector<1x8x8x64xf32>
    %31 = vector.shape_cast %30 : vector<1x8x8x64xf32> to vector<8x8x64xf32>
    %32 = vector.shape_cast %29 : vector<8x8x64xf32> to vector<1x8x8x64xf32>
    tpu.vector_store %arg6[%c0_21, %c0_22, %c0_23, %c0_24], %32 {strides = array<i32>} : memref<1x8x8x64xf32, #tpu.memory_space<vmem>>, vector<1x8x8x64xf32>,
    return
  }
  func.func @transform_0(%arg0: i32) -> (i32, i32, i32) {
    %c0_i32 = arith.constant 0 : i32
    %c0_i32_0 = arith.constant 0 : i32
    %c0_i32_1 = arith.constant 0 : i32
    return %arg0, %c0_i32, %c0_i32_0 : i32, i32, i32
  }
  func.func @transform_1(%arg0: i32) -> (i32, i32, i32) {
    %c0_i32 = arith.constant 0 : i32
    %c0_i32_0 = arith.constant 0 : i32
    %c0_i32_1 = arith.constant 0 : i32
    %c0_i32_2 = arith.constant 0 : i32
    return %c0_i32, %c0_i32_0, %c0_i32_1 : i32, i32, i32
  }
  func.func @transform_2(%arg0: i32) -> (i32, i32, i32, i32) {
    %c0_i32 = arith.constant 0 : i32
    %c0_i32_0 = arith.constant 0 : i32
    %c0_i32_1 = arith.constant 0 : i32
    %c0_i32_2 = arith.constant 0 : i32
    return %arg0, %c0_i32, %c0_i32_0, %c0_i32_1 : i32, i32, i32, i32
  }
  func.func @transform_3(%arg0: i32) -> (i32, i32, i32, i32) {
    %c0_i32 = arith.constant 0 : i32
    %c0_i32_0 = arith.constant 0 : i32
    %c0_i32_1 = arith.constant 0 : i32
    %c0_i32_2 = arith.constant 0 : i32
    return %arg0, %c0_i32, %c0_i32_0, %c0_i32_1 : i32, i32, i32, i32
  }
  func.func @transform_4(%arg0: i32) -> (i32, i32, i32, i32) {
    %c0_i32 = arith.constant 0 : i32
    %c0_i32_0 = arith.constant 0 : i32
    %c0_i32_1 = arith.constant 0 : i32
    %c0_i32_2 = arith.constant 0 : i32
    return %arg0, %c0_i32, %c0_i32_0, %c0_i32_1 : i32, i32, i32, i32
  }
  func.func @transform_5(%arg0: i32) -> (i32, i32, i32, i32) {
    %c0_i32 = arith.constant 0 : i32
    %c0_i32_0 = arith.constant 0 : i32
    %c0_i32_1 = arith.constant 0 : i32
    %c0_i32_2 = arith.constant 0 : i32
    return %arg0, %c0_i32, %c0_i32_0, %c0_i32_1 : i32, i32, i32, i32
  }
}

module attributes {stable_mosaic.version = 11 : i64} {
  func.func @_ln_linear_kernel(%arg0: i32, %arg1: memref<16x512xf32, #tpu.memory_space<vmem>>, %arg2: memref<1x512xf32, #tpu.memory_space<vmem>>, %arg3: memref<1x512xf32, #tpu.memory_space<vmem>>, %arg4: memref<512x512xbf16, #tpu.memory_space<vmem>>, %arg5: memref<1x512xf32, #tpu.memory_space<vmem>>, %arg6: memref<16x512xf32, #tpu.memory_space<vmem>>) attributes {dimension_semantics = [#tpu.dimension_semantics<parallel>], iteration_bounds = array<i64: 1>, scalar_prefetch = 0 : i64, scratch_operands = 0 : i64, tpu.core_type = #tpu.core_type<tc>, window_params = [{pipeline_mode = #tpu.pipeline_mode<synchronous>, transform_indices = @transform_0, window_bounds = array<i64: 16, 512>}, {pipeline_mode = #tpu.pipeline_mode<synchronous>, transform_indices = @transform_1, window_bounds = array<i64: 1, 512>}, {pipeline_mode = #tpu.pipeline_mode<synchronous>, transform_indices = @transform_2, window_bounds = array<i64: 1, 512>}, {transform_indices = @transform_3, window_bounds = array<i64: 512, 512>}, {transform_indices = @transform_4, window_bounds = array<i64: 1, 512>}, {transform_indices = @transform_5, window_bounds = array<i64: 16, 512>}]} {
    %c0 = arith.constant 0 : index
    %c0_0 = arith.constant 0 : index
    %0 = vector.load %arg1[%c0, %c0_0] : memref<16x512xf32, #tpu.memory_space<vmem>>, vector<16x512xf32>
    %c0_1 = arith.constant 0 : index
    %c0_2 = arith.constant 0 : index
    %1 = vector.load %arg2[%c0_1, %c0_2] : memref<1x512xf32, #tpu.memory_space<vmem>>, vector<1x512xf32>
    %c0_3 = arith.constant 0 : index
    %c0_4 = arith.constant 0 : index
    %2 = vector.load %arg3[%c0_3, %c0_4] : memref<1x512xf32, #tpu.memory_space<vmem>>, vector<1x512xf32>
    %cst = arith.constant dense<0.000000e+00> : vector<16xf32>
    %3 = vector.multi_reduction <add>, %0, %cst [1] : vector<16x512xf32> to vector<16xf32>
    %4 = vector.shape_cast %3 : vector<16xf32> to vector<16x1xf32>
    %cst_5 = arith.constant 5.120000e+02 : f32
    %5 = vector.broadcast %cst_5 : f32 to vector<16x1xf32>
    %6 = arith.divf %4, %5 : vector<16x1xf32>
    %7 = vector.broadcast %6 : vector<16x1xf32> to vector<16x512xf32>
    %8 = arith.subf %0, %7 : vector<16x512xf32>
    %9 = arith.mulf %8, %8 : vector<16x512xf32>
    %cst_6 = arith.constant dense<0.000000e+00> : vector<16xf32>
    %10 = vector.multi_reduction <add>, %9, %cst_6 [1] : vector<16x512xf32> to vector<16xf32>
    %11 = vector.shape_cast %10 : vector<16xf32> to vector<16x1xf32>
    %cst_7 = arith.constant 5.120000e+02 : f32
    %12 = vector.broadcast %cst_7 : f32 to vector<16x1xf32>
    %13 = arith.divf %11, %12 : vector<16x1xf32>
    %cst_8 = arith.constant 9.99999974E-6 : f32
    %14 = vector.broadcast %cst_8 : f32 to vector<16x1xf32>
    %15 = arith.addf %13, %14 : vector<16x1xf32>
    %16 = math.rsqrt %15 : vector<16x1xf32>
    %17 = vector.broadcast %16 : vector<16x1xf32> to vector<16x512xf32>
    %18 = arith.mulf %8, %17 : vector<16x512xf32>
    %19 = vector.broadcast %1 : vector<1x512xf32> to vector<16x512xf32>
    %20 = arith.mulf %18, %19 : vector<16x512xf32>
    %21 = vector.broadcast %2 : vector<1x512xf32> to vector<16x512xf32>
    %22 = arith.addf %20, %21 : vector<16x512xf32>
    %23 = arith.truncf %22 : vector<16x512xf32> to vector<16x512xbf16>
    %c0_9 = arith.constant 0 : index
    %c0_10 = arith.constant 0 : index
    %24 = vector.load %arg4[%c0_9, %c0_10] : memref<512x512xbf16, #tpu.memory_space<vmem>>, vector<512x512xbf16>
    %cst_11 = arith.constant dense<0.000000e+00> : vector<16x512xf32>
    %25 = tpu.matmul %23, %24, %cst_11 {dimension_numbers = #tpu.dot_dimension_numbers<[1], [0], [0], [1], [0, 0, 1, 1], [], []>} : vector<16x512xbf16>, vector<512x512xbf16>, vector<16x512xf32> -> vector<16x512xf32>
    %c0_12 = arith.constant 0 : index
    %c0_13 = arith.constant 0 : index
    %26 = vector.load %arg5[%c0_12, %c0_13] : memref<1x512xf32, #tpu.memory_space<vmem>>, vector<1x512xf32>
    %27 = vector.broadcast %26 : vector<1x512xf32> to vector<16x512xf32>
    %28 = arith.addf %25, %27 : vector<16x512xf32>
    %c0_14 = arith.constant 0 : index
    %c0_15 = arith.constant 0 : index
    %29 = vector.load %arg6[%c0_14, %c0_15] : memref<16x512xf32, #tpu.memory_space<vmem>>, vector<16x512xf32>
    tpu.vector_store %arg6[%c0_14, %c0_15], %28 {strides = array<i32>} : memref<16x512xf32, #tpu.memory_space<vmem>>, vector<16x512xf32>,
    return
  }
  func.func @transform_0(%arg0: i32) -> (i32, i32) {
    %c0_i32 = arith.constant 0 : i32
    %c0_i32_0 = arith.constant 0 : i32
    %c0_i32_1 = arith.constant 0 : i32
    return %c0_i32, %c0_i32_0 : i32, i32
  }
  func.func @transform_1(%arg0: i32) -> (i32, i32) {
    %c0_i32 = arith.constant 0 : i32
    %c0_i32_0 = arith.constant 0 : i32
    %c0_i32_1 = arith.constant 0 : i32
    return %c0_i32, %c0_i32_0 : i32, i32
  }
  func.func @transform_2(%arg0: i32) -> (i32, i32) {
    %c0_i32 = arith.constant 0 : i32
    %c0_i32_0 = arith.constant 0 : i32
    %c0_i32_1 = arith.constant 0 : i32
    return %c0_i32, %c0_i32_0 : i32, i32
  }
  func.func @transform_3(%arg0: i32) -> (i32, i32) {
    %c0_i32 = arith.constant 0 : i32
    %c0_i32_0 = arith.constant 0 : i32
    return %c0_i32, %arg0 : i32, i32
  }
  func.func @transform_4(%arg0: i32) -> (i32, i32) {
    %c0_i32 = arith.constant 0 : i32
    %c0_i32_0 = arith.constant 0 : i32
    return %c0_i32, %arg0 : i32, i32
  }
  func.func @transform_5(%arg0: i32) -> (i32, i32) {
    %c0_i32 = arith.constant 0 : i32
    %c0_i32_0 = arith.constant 0 : i32
    return %c0_i32, %arg0 : i32, i32
  }
}

module attributes {stable_mosaic.version = 11 : i64} {
  func.func @_linear_residual_kernel(%arg0: i32, %arg1: memref<16x512xf32, #tpu.memory_space<vmem>>, %arg2: memref<512x512xbf16, #tpu.memory_space<vmem>>, %arg3: memref<1x512xf32, #tpu.memory_space<vmem>>, %arg4: memref<16x512xf32, #tpu.memory_space<vmem>>, %arg5: memref<16x512xf32, #tpu.memory_space<vmem>>) attributes {dimension_semantics = [#tpu.dimension_semantics<parallel>], iteration_bounds = array<i64: 1>, scalar_prefetch = 0 : i64, scratch_operands = 0 : i64, tpu.core_type = #tpu.core_type<tc>, window_params = [{pipeline_mode = #tpu.pipeline_mode<synchronous>, transform_indices = @transform_0, window_bounds = array<i64: 16, 512>}, {transform_indices = @transform_1, window_bounds = array<i64: 512, 512>}, {transform_indices = @transform_2, window_bounds = array<i64: 1, 512>}, {transform_indices = @transform_3, window_bounds = array<i64: 16, 512>}, {transform_indices = @transform_4, window_bounds = array<i64: 16, 512>}]} {
    %c0 = arith.constant 0 : index
    %c0_0 = arith.constant 0 : index
    %0 = vector.load %arg4[%c0, %c0_0] : memref<16x512xf32, #tpu.memory_space<vmem>>, vector<16x512xf32>
    %c0_1 = arith.constant 0 : index
    %c0_2 = arith.constant 0 : index
    %1 = vector.load %arg1[%c0_1, %c0_2] : memref<16x512xf32, #tpu.memory_space<vmem>>, vector<16x512xf32>
    %2 = arith.truncf %1 : vector<16x512xf32> to vector<16x512xbf16>
    %c0_3 = arith.constant 0 : index
    %c0_4 = arith.constant 0 : index
    %3 = vector.load %arg2[%c0_3, %c0_4] : memref<512x512xbf16, #tpu.memory_space<vmem>>, vector<512x512xbf16>
    %cst = arith.constant dense<0.000000e+00> : vector<16x512xf32>
    %4 = tpu.matmul %2, %3, %cst {dimension_numbers = #tpu.dot_dimension_numbers<[1], [0], [0], [1], [0, 0, 1, 1], [], []>} : vector<16x512xbf16>, vector<512x512xbf16>, vector<16x512xf32> -> vector<16x512xf32>
    %5 = arith.addf %0, %4 : vector<16x512xf32>
    %c0_5 = arith.constant 0 : index
    %c0_6 = arith.constant 0 : index
    %6 = vector.load %arg3[%c0_5, %c0_6] : memref<1x512xf32, #tpu.memory_space<vmem>>, vector<1x512xf32>
    %7 = vector.broadcast %6 : vector<1x512xf32> to vector<16x512xf32>
    %8 = arith.addf %5, %7 : vector<16x512xf32>
    %c0_7 = arith.constant 0 : index
    %c0_8 = arith.constant 0 : index
    %9 = vector.load %arg5[%c0_7, %c0_8] : memref<16x512xf32, #tpu.memory_space<vmem>>, vector<16x512xf32>
    tpu.vector_store %arg5[%c0_7, %c0_8], %8 {strides = array<i32>} : memref<16x512xf32, #tpu.memory_space<vmem>>, vector<16x512xf32>,
    return
  }
  func.func @transform_0(%arg0: i32) -> (i32, i32) {
    %c0_i32 = arith.constant 0 : i32
    %c0_i32_0 = arith.constant 0 : i32
    %c0_i32_1 = arith.constant 0 : i32
    return %c0_i32, %c0_i32_0 : i32, i32
  }
  func.func @transform_1(%arg0: i32) -> (i32, i32) {
    %c0_i32 = arith.constant 0 : i32
    %c0_i32_0 = arith.constant 0 : i32
    return %c0_i32, %arg0 : i32, i32
  }
  func.func @transform_2(%arg0: i32) -> (i32, i32) {
    %c0_i32 = arith.constant 0 : i32
    %c0_i32_0 = arith.constant 0 : i32
    return %c0_i32, %arg0 : i32, i32
  }
  func.func @transform_3(%arg0: i32) -> (i32, i32) {
    %c0_i32 = arith.constant 0 : i32
    %c0_i32_0 = arith.constant 0 : i32
    return %c0_i32, %arg0 : i32, i32
  }
  func.func @transform_4(%arg0: i32) -> (i32, i32) {
    %c0_i32 = arith.constant 0 : i32
    %c0_i32_0 = arith.constant 0 : i32
    return %c0_i32, %arg0 : i32, i32
  }
}

module attributes {stable_mosaic.version = 11 : i64} {
  func.func @_ln_linear_kernel(%arg0: i32, %arg1: memref<16x512xf32, #tpu.memory_space<vmem>>, %arg2: memref<1x512xf32, #tpu.memory_space<vmem>>, %arg3: memref<1x512xf32, #tpu.memory_space<vmem>>, %arg4: memref<512x512xbf16, #tpu.memory_space<vmem>>, %arg5: memref<1x512xf32, #tpu.memory_space<vmem>>, %arg6: memref<16x512xf32, #tpu.memory_space<vmem>>) attributes {dimension_semantics = [#tpu.dimension_semantics<parallel>], iteration_bounds = array<i64: 3>, scalar_prefetch = 0 : i64, scratch_operands = 0 : i64, tpu.core_type = #tpu.core_type<tc>, window_params = [{pipeline_mode = #tpu.pipeline_mode<synchronous>, transform_indices = @transform_0, window_bounds = array<i64: 16, 512>}, {pipeline_mode = #tpu.pipeline_mode<synchronous>, transform_indices = @transform_1, window_bounds = array<i64: 1, 512>}, {pipeline_mode = #tpu.pipeline_mode<synchronous>, transform_indices = @transform_2, window_bounds = array<i64: 1, 512>}, {transform_indices = @transform_3, window_bounds = array<i64: 512, 512>}, {transform_indices = @transform_4, window_bounds = array<i64: 1, 512>}, {transform_indices = @transform_5, window_bounds = array<i64: 16, 512>}]} {
    %c0 = arith.constant 0 : index
    %c0_0 = arith.constant 0 : index
    %0 = vector.load %arg1[%c0, %c0_0] : memref<16x512xf32, #tpu.memory_space<vmem>>, vector<16x512xf32>
    %c0_1 = arith.constant 0 : index
    %c0_2 = arith.constant 0 : index
    %1 = vector.load %arg2[%c0_1, %c0_2] : memref<1x512xf32, #tpu.memory_space<vmem>>, vector<1x512xf32>
    %c0_3 = arith.constant 0 : index
    %c0_4 = arith.constant 0 : index
    %2 = vector.load %arg3[%c0_3, %c0_4] : memref<1x512xf32, #tpu.memory_space<vmem>>, vector<1x512xf32>
    %cst = arith.constant dense<0.000000e+00> : vector<16xf32>
    %3 = vector.multi_reduction <add>, %0, %cst [1] : vector<16x512xf32> to vector<16xf32>
    %4 = vector.shape_cast %3 : vector<16xf32> to vector<16x1xf32>
    %cst_5 = arith.constant 5.120000e+02 : f32
    %5 = vector.broadcast %cst_5 : f32 to vector<16x1xf32>
    %6 = arith.divf %4, %5 : vector<16x1xf32>
    %7 = vector.broadcast %6 : vector<16x1xf32> to vector<16x512xf32>
    %8 = arith.subf %0, %7 : vector<16x512xf32>
    %9 = arith.mulf %8, %8 : vector<16x512xf32>
    %cst_6 = arith.constant dense<0.000000e+00> : vector<16xf32>
    %10 = vector.multi_reduction <add>, %9, %cst_6 [1] : vector<16x512xf32> to vector<16xf32>
    %11 = vector.shape_cast %10 : vector<16xf32> to vector<16x1xf32>
    %cst_7 = arith.constant 5.120000e+02 : f32
    %12 = vector.broadcast %cst_7 : f32 to vector<16x1xf32>
    %13 = arith.divf %11, %12 : vector<16x1xf32>
    %cst_8 = arith.constant 9.99999974E-6 : f32
    %14 = vector.broadcast %cst_8 : f32 to vector<16x1xf32>
    %15 = arith.addf %13, %14 : vector<16x1xf32>
    %16 = math.rsqrt %15 : vector<16x1xf32>
    %17 = vector.broadcast %16 : vector<16x1xf32> to vector<16x512xf32>
    %18 = arith.mulf %8, %17 : vector<16x512xf32>
    %19 = vector.broadcast %1 : vector<1x512xf32> to vector<16x512xf32>
    %20 = arith.mulf %18, %19 : vector<16x512xf32>
    %21 = vector.broadcast %2 : vector<1x512xf32> to vector<16x512xf32>
    %22 = arith.addf %20, %21 : vector<16x512xf32>
    %23 = arith.truncf %22 : vector<16x512xf32> to vector<16x512xbf16>
    %c0_9 = arith.constant 0 : index
    %c0_10 = arith.constant 0 : index
    %24 = vector.load %arg4[%c0_9, %c0_10] : memref<512x512xbf16, #tpu.memory_space<vmem>>, vector<512x512xbf16>
    %cst_11 = arith.constant dense<0.000000e+00> : vector<16x512xf32>
    %25 = tpu.matmul %23, %24, %cst_11 {dimension_numbers = #tpu.dot_dimension_numbers<[1], [0], [0], [1], [0, 0, 1, 1], [], []>} : vector<16x512xbf16>, vector<512x512xbf16>, vector<16x512xf32> -> vector<16x512xf32>
    %c0_12 = arith.constant 0 : index
    %c0_13 = arith.constant 0 : index
    %26 = vector.load %arg5[%c0_12, %c0_13] : memref<1x512xf32, #tpu.memory_space<vmem>>, vector<1x512xf32>
    %27 = vector.broadcast %26 : vector<1x512xf32> to vector<16x512xf32>
    %28 = arith.addf %25, %27 : vector<16x512xf32>
    %c0_14 = arith.constant 0 : index
    %c0_15 = arith.constant 0 : index
    %29 = vector.load %arg6[%c0_14, %c0_15] : memref<16x512xf32, #tpu.memory_space<vmem>>, vector<16x512xf32>
    tpu.vector_store %arg6[%c0_14, %c0_15], %28 {strides = array<i32>} : memref<16x512xf32, #tpu.memory_space<vmem>>, vector<16x512xf32>,
    return
  }
  func.func @transform_0(%arg0: i32) -> (i32, i32) {
    %c0_i32 = arith.constant 0 : i32
    %c0_i32_0 = arith.constant 0 : i32
    %c0_i32_1 = arith.constant 0 : i32
    return %c0_i32, %c0_i32_0 : i32, i32
  }
  func.func @transform_1(%arg0: i32) -> (i32, i32) {
    %c0_i32 = arith.constant 0 : i32
    %c0_i32_0 = arith.constant 0 : i32
    %c0_i32_1 = arith.constant 0 : i32
    return %c0_i32, %c0_i32_0 : i32, i32
  }
  func.func @transform_2(%arg0: i32) -> (i32, i32) {
    %c0_i32 = arith.constant 0 : i32
    %c0_i32_0 = arith.constant 0 : i32
    %c0_i32_1 = arith.constant 0 : i32
    return %c0_i32, %c0_i32_0 : i32, i32
  }
  func.func @transform_3(%arg0: i32) -> (i32, i32) {
    %c0_i32 = arith.constant 0 : i32
    %c0_i32_0 = arith.constant 0 : i32
    return %c0_i32, %arg0 : i32, i32
  }
  func.func @transform_4(%arg0: i32) -> (i32, i32) {
    %c0_i32 = arith.constant 0 : i32
    %c0_i32_0 = arith.constant 0 : i32
    return %c0_i32, %arg0 : i32, i32
  }
  func.func @transform_5(%arg0: i32) -> (i32, i32) {
    %c0_i32 = arith.constant 0 : i32
    %c0_i32_0 = arith.constant 0 : i32
    return %c0_i32, %arg0 : i32, i32
  }
}

module attributes {stable_mosaic.version = 11 : i64} {
  func.func @_ln_ffn_kernel(%arg0: i32, %arg1: memref<16x512xf32, #tpu.memory_space<vmem>>, %arg2: memref<1x512xf32, #tpu.memory_space<vmem>>, %arg3: memref<1x512xf32, #tpu.memory_space<vmem>>, %arg4: memref<512x512xbf16, #tpu.memory_space<vmem>>, %arg5: memref<1x512xf32, #tpu.memory_space<vmem>>, %arg6: memref<512x512xbf16, #tpu.memory_space<vmem>>, %arg7: memref<1x512xf32, #tpu.memory_space<vmem>>, %arg8: memref<16x512xf32, #tpu.memory_space<vmem>>, %arg9: memref<16x512xbf16, #tpu.memory_space<vmem>>, %arg10: memref<16x512xf32, #tpu.memory_space<vmem>>) attributes {dimension_semantics = [#tpu.dimension_semantics<arbitrary>], iteration_bounds = array<i64: 4>, scalar_prefetch = 0 : i64, scratch_operands = 2 : i64, tpu.core_type = #tpu.core_type<tc>, window_params = [{pipeline_mode = #tpu.pipeline_mode<synchronous>, transform_indices = @transform_0, window_bounds = array<i64: 16, 512>}, {pipeline_mode = #tpu.pipeline_mode<synchronous>, transform_indices = @transform_1, window_bounds = array<i64: 1, 512>}, {pipeline_mode = #tpu.pipeline_mode<synchronous>, transform_indices = @transform_2, window_bounds = array<i64: 1, 512>}, {transform_indices = @transform_3, window_bounds = array<i64: 512, 512>}, {transform_indices = @transform_4, window_bounds = array<i64: 1, 512>}, {transform_indices = @transform_5, window_bounds = array<i64: 512, 512>}, {pipeline_mode = #tpu.pipeline_mode<synchronous>, transform_indices = @transform_6, window_bounds = array<i64: 1, 512>}, {pipeline_mode = #tpu.pipeline_mode<synchronous>, transform_indices = @transform_7, window_bounds = array<i64: 16, 512>}]} {
    %c0_i32 = arith.constant 0 : i32
    %0 = arith.cmpi eq, %arg0, %c0_i32 : i32
    %1 = arith.extui %0 : i1 to i32
    %c0_i32_0 = arith.constant 0 : i32
    %2 = arith.cmpi ne, %1, %c0_i32_0 : i32
    scf.if %2 {
      %c0_15 = arith.constant 0 : index
      %c0_16 = arith.constant 0 : index
      %20 = vector.load %arg1[%c0_15, %c0_16] : memref<16x512xf32, #tpu.memory_space<vmem>>, vector<16x512xf32>
      %c0_17 = arith.constant 0 : index
      %c0_18 = arith.constant 0 : index
      %21 = vector.load %arg2[%c0_17, %c0_18] : memref<1x512xf32, #tpu.memory_space<vmem>>, vector<1x512xf32>
      %c0_19 = arith.constant 0 : index
      %c0_20 = arith.constant 0 : index
      %22 = vector.load %arg3[%c0_19, %c0_20] : memref<1x512xf32, #tpu.memory_space<vmem>>, vector<1x512xf32>
      %cst_21 = arith.constant dense<0.000000e+00> : vector<16xf32>
      %23 = vector.multi_reduction <add>, %20, %cst_21 [1] : vector<16x512xf32> to vector<16xf32>
      %24 = vector.shape_cast %23 : vector<16xf32> to vector<16x1xf32>
      %cst_22 = arith.constant 5.120000e+02 : f32
      %25 = vector.broadcast %cst_22 : f32 to vector<16x1xf32>
      %26 = arith.divf %24, %25 : vector<16x1xf32>
      %27 = vector.broadcast %26 : vector<16x1xf32> to vector<16x512xf32>
      %28 = arith.subf %20, %27 : vector<16x512xf32>
      %29 = arith.mulf %28, %28 : vector<16x512xf32>
      %cst_23 = arith.constant dense<0.000000e+00> : vector<16xf32>
      %30 = vector.multi_reduction <add>, %29, %cst_23 [1] : vector<16x512xf32> to vector<16xf32>
      %31 = vector.shape_cast %30 : vector<16xf32> to vector<16x1xf32>
      %cst_24 = arith.constant 5.120000e+02 : f32
      %32 = vector.broadcast %cst_24 : f32 to vector<16x1xf32>
      %33 = arith.divf %31, %32 : vector<16x1xf32>
      %cst_25 = arith.constant 9.99999974E-6 : f32
      %34 = vector.broadcast %cst_25 : f32 to vector<16x1xf32>
      %35 = arith.addf %33, %34 : vector<16x1xf32>
      %36 = math.rsqrt %35 : vector<16x1xf32>
      %37 = vector.broadcast %36 : vector<16x1xf32> to vector<16x512xf32>
      %38 = arith.mulf %28, %37 : vector<16x512xf32>
      %39 = vector.broadcast %21 : vector<1x512xf32> to vector<16x512xf32>
      %40 = arith.mulf %38, %39 : vector<16x512xf32>
      %41 = vector.broadcast %22 : vector<1x512xf32> to vector<16x512xf32>
      %42 = arith.addf %40, %41 : vector<16x512xf32>
      %43 = arith.truncf %42 : vector<16x512xf32> to vector<16x512xbf16>
      %c0_26 = arith.constant 0 : index
      %c0_27 = arith.constant 0 : index
      %44 = vector.load %arg9[%c0_26, %c0_27] : memref<16x512xbf16, #tpu.memory_space<vmem>>, vector<16x512xbf16>
      tpu.vector_store %arg9[%c0_26, %c0_27], %43 {strides = array<i32>} : memref<16x512xbf16, #tpu.memory_space<vmem>>, vector<16x512xbf16>,
      %cst_28 = arith.constant 0.000000e+00 : f32
      %45 = vector.broadcast %cst_28 : f32 to vector<16x512xf32>
      %c0_29 = arith.constant 0 : index
      %c0_30 = arith.constant 0 : index
      %46 = vector.load %arg10[%c0_29, %c0_30] : memref<16x512xf32, #tpu.memory_space<vmem>>, vector<16x512xf32>
      tpu.vector_store %arg10[%c0_29, %c0_30], %45 {strides = array<i32>} : memref<16x512xf32, #tpu.memory_space<vmem>>, vector<16x512xf32>,
    } else {
    }
    %c0 = arith.constant 0 : index
    %c0_1 = arith.constant 0 : index
    %3 = vector.load %arg9[%c0, %c0_1] : memref<16x512xbf16, #tpu.memory_space<vmem>>, vector<16x512xbf16>
    %c0_2 = arith.constant 0 : index
    %c0_3 = arith.constant 0 : index
    %4 = vector.load %arg4[%c0_2, %c0_3] : memref<512x512xbf16, #tpu.memory_space<vmem>>, vector<512x512xbf16>
    %cst = arith.constant dense<0.000000e+00> : vector<16x512xf32>
    %5 = tpu.matmul %3, %4, %cst {dimension_numbers = #tpu.dot_dimension_numbers<[1], [0], [0], [1], [0, 0, 1, 1], [], []>} : vector<16x512xbf16>, vector<512x512xbf16>, vector<16x512xf32> -> vector<16x512xf32>
    %c0_4 = arith.constant 0 : index
    %c0_5 = arith.constant 0 : index
    %6 = vector.load %arg5[%c0_4, %c0_5] : memref<1x512xf32, #tpu.memory_space<vmem>>, vector<1x512xf32>
    %7 = vector.broadcast %6 : vector<1x512xf32> to vector<16x512xf32>
    %8 = arith.addf %5, %7 : vector<16x512xf32>
    %cst_6 = arith.constant 0.000000e+00 : f32
    %9 = vector.broadcast %cst_6 : f32 to vector<16x512xf32>
    %10 = arith.maximumf %8, %9 : vector<16x512xf32>
    %c0_7 = arith.constant 0 : index
    %c0_8 = arith.constant 0 : index
    %11 = vector.load %arg10[%c0_7, %c0_8] : memref<16x512xf32, #tpu.memory_space<vmem>>, vector<16x512xf32>
    %12 = arith.truncf %10 : vector<16x512xf32> to vector<16x512xbf16>
    %c0_9 = arith.constant 0 : index
    %c0_10 = arith.constant 0 : index
    %13 = vector.load %arg6[%c0_9, %c0_10] : memref<512x512xbf16, #tpu.memory_space<vmem>>, vector<512x512xbf16>
    %cst_11 = arith.constant dense<0.000000e+00> : vector<16x512xf32>
    %14 = tpu.matmul %12, %13, %cst_11 {dimension_numbers = #tpu.dot_dimension_numbers<[1], [0], [0], [1], [0, 0, 1, 1], [], []>} : vector<16x512xbf16>, vector<512x512xbf16>, vector<16x512xf32> -> vector<16x512xf32>
    %15 = arith.addf %11, %14 : vector<16x512xf32>
    %c0_12 = arith.constant 0 : index
    %c0_13 = arith.constant 0 : index
    %16 = vector.load %arg10[%c0_12, %c0_13] : memref<16x512xf32, #tpu.memory_space<vmem>>, vector<16x512xf32>
    tpu.vector_store %arg10[%c0_12, %c0_13], %15 {strides = array<i32>} : memref<16x512xf32, #tpu.memory_space<vmem>>, vector<16x512xf32>,
    %c3_i32 = arith.constant 3 : i32
    %17 = arith.cmpi eq, %arg0, %c3_i32 : i32
    %18 = arith.extui %17 : i1 to i32
    %c0_i32_14 = arith.constant 0 : i32
    %19 = arith.cmpi ne, %18, %c0_i32_14 : i32
    scf.if %19 {
      %c0_15 = arith.constant 0 : index
      %c0_16 = arith.constant 0 : index
      %20 = vector.load %arg1[%c0_15, %c0_16] : memref<16x512xf32, #tpu.memory_space<vmem>>, vector<16x512xf32>
      %c0_17 = arith.constant 0 : index
      %c0_18 = arith.constant 0 : index
      %21 = vector.load %arg10[%c0_17, %c0_18] : memref<16x512xf32, #tpu.memory_space<vmem>>, vector<16x512xf32>
      %22 = arith.addf %20, %21 : vector<16x512xf32>
      %c0_19 = arith.constant 0 : index
      %c0_20 = arith.constant 0 : index
      %23 = vector.load %arg7[%c0_19, %c0_20] : memref<1x512xf32, #tpu.memory_space<vmem>>, vector<1x512xf32>
      %24 = vector.broadcast %23 : vector<1x512xf32> to vector<16x512xf32>
      %25 = arith.addf %22, %24 : vector<16x512xf32>
      %c0_21 = arith.constant 0 : index
      %c0_22 = arith.constant 0 : index
      %26 = vector.load %arg8[%c0_21, %c0_22] : memref<16x512xf32, #tpu.memory_space<vmem>>, vector<16x512xf32>
      tpu.vector_store %arg8[%c0_21, %c0_22], %25 {strides = array<i32>} : memref<16x512xf32, #tpu.memory_space<vmem>>, vector<16x512xf32>,
    } else {
    }
    return
  }
  func.func @transform_0(%arg0: i32) -> (i32, i32) {
    %c0_i32 = arith.constant 0 : i32
    %c0_i32_0 = arith.constant 0 : i32
    %c0_i32_1 = arith.constant 0 : i32
    return %c0_i32, %c0_i32_0 : i32, i32
  }
  func.func @transform_1(%arg0: i32) -> (i32, i32) {
    %c0_i32 = arith.constant 0 : i32
    %c0_i32_0 = arith.constant 0 : i32
    %c0_i32_1 = arith.constant 0 : i32
    return %c0_i32, %c0_i32_0 : i32, i32
  }
  func.func @transform_2(%arg0: i32) -> (i32, i32) {
    %c0_i32 = arith.constant 0 : i32
    %c0_i32_0 = arith.constant 0 : i32
    %c0_i32_1 = arith.constant 0 : i32
    return %c0_i32, %c0_i32_0 : i32, i32
  }
  func.func @transform_3(%arg0: i32) -> (i32, i32) {
    %c0_i32 = arith.constant 0 : i32
    %c0_i32_0 = arith.constant 0 : i32
    return %c0_i32, %arg0 : i32, i32
  }
  func.func @transform_4(%arg0: i32) -> (i32, i32) {
    %c0_i32 = arith.constant 0 : i32
    %c0_i32_0 = arith.constant 0 : i32
    return %c0_i32, %arg0 : i32, i32
  }
  func.func @transform_5(%arg0: i32) -> (i32, i32) {
    %c0_i32 = arith.constant 0 : i32
    %c0_i32_0 = arith.constant 0 : i32
    return %arg0, %c0_i32 : i32, i32
  }
  func.func @transform_6(%arg0: i32) -> (i32, i32) {
    %c0_i32 = arith.constant 0 : i32
    %c0_i32_0 = arith.constant 0 : i32
    %c0_i32_1 = arith.constant 0 : i32
    return %c0_i32, %c0_i32_0 : i32, i32
  }
  func.func @transform_7(%arg0: i32) -> (i32, i32) {
    %c0_i32 = arith.constant 0 : i32
    %c0_i32_0 = arith.constant 0 : i32
    %c0_i32_1 = arith.constant 0 : i32
    return %c0_i32, %c0_i32_0 : i32, i32
  }
}

module attributes {stable_mosaic.version = 11 : i64} {
  func.func @_linear_kernel(%arg0: i32, %arg1: memref<16x512xf32, #tpu.memory_space<vmem>>, %arg2: memref<512x512xbf16, #tpu.memory_space<vmem>>, %arg3: memref<1x512xf32, #tpu.memory_space<vmem>>, %arg4: memref<16x512xf32, #tpu.memory_space<vmem>>) attributes {dimension_semantics = [#tpu.dimension_semantics<parallel>], iteration_bounds = array<i64: 2>, scalar_prefetch = 0 : i64, scratch_operands = 0 : i64, tpu.core_type = #tpu.core_type<tc>, window_params = [{pipeline_mode = #tpu.pipeline_mode<synchronous>, transform_indices = @transform_0, window_bounds = array<i64: 16, 512>}, {transform_indices = @transform_1, window_bounds = array<i64: 512, 512>}, {transform_indices = @transform_2, window_bounds = array<i64: 1, 512>}, {transform_indices = @transform_3, window_bounds = array<i64: 16, 512>}]} {
    %c0 = arith.constant 0 : index
    %c0_0 = arith.constant 0 : index
    %0 = vector.load %arg1[%c0, %c0_0] : memref<16x512xf32, #tpu.memory_space<vmem>>, vector<16x512xf32>
    %1 = arith.truncf %0 : vector<16x512xf32> to vector<16x512xbf16>
    %c0_1 = arith.constant 0 : index
    %c0_2 = arith.constant 0 : index
    %2 = vector.load %arg2[%c0_1, %c0_2] : memref<512x512xbf16, #tpu.memory_space<vmem>>, vector<512x512xbf16>
    %cst = arith.constant dense<0.000000e+00> : vector<16x512xf32>
    %3 = tpu.matmul %1, %2, %cst {dimension_numbers = #tpu.dot_dimension_numbers<[1], [0], [0], [1], [0, 0, 1, 1], [], []>} : vector<16x512xbf16>, vector<512x512xbf16>, vector<16x512xf32> -> vector<16x512xf32>
    %c0_3 = arith.constant 0 : index
    %c0_4 = arith.constant 0 : index
    %4 = vector.load %arg3[%c0_3, %c0_4] : memref<1x512xf32, #tpu.memory_space<vmem>>, vector<1x512xf32>
    %5 = vector.broadcast %4 : vector<1x512xf32> to vector<16x512xf32>
    %6 = arith.addf %3, %5 : vector<16x512xf32>
    %c0_5 = arith.constant 0 : index
    %c0_6 = arith.constant 0 : index
    %7 = vector.load %arg4[%c0_5, %c0_6] : memref<16x512xf32, #tpu.memory_space<vmem>>, vector<16x512xf32>
    tpu.vector_store %arg4[%c0_5, %c0_6], %6 {strides = array<i32>} : memref<16x512xf32, #tpu.memory_space<vmem>>, vector<16x512xf32>,
    return
  }
  func.func @transform_0(%arg0: i32) -> (i32, i32) {
    %c0_i32 = arith.constant 0 : i32
    %c0_i32_0 = arith.constant 0 : i32
    %c0_i32_1 = arith.constant 0 : i32
    return %c0_i32, %c0_i32_0 : i32, i32
  }
  func.func @transform_1(%arg0: i32) -> (i32, i32) {
    %c0_i32 = arith.constant 0 : i32
    %c0_i32_0 = arith.constant 0 : i32
    return %c0_i32, %arg0 : i32, i32
  }
  func.func @transform_2(%arg0: i32) -> (i32, i32) {
    %c0_i32 = arith.constant 0 : i32
    %c0_i32_0 = arith.constant 0 : i32
    return %c0_i32, %arg0 : i32, i32
  }
  func.func @transform_3(%arg0: i32) -> (i32, i32) {
    %c0_i32 = arith.constant 0 : i32
    %c0_i32_0 = arith.constant 0 : i32
    return %c0_i32, %arg0 : i32, i32
  }
}

module attributes {stable_mosaic.version = 11 : i64} {
  func.func @_layernorm_kernel(%arg0: i32, %arg1: memref<16x512xf32, #tpu.memory_space<vmem>>, %arg2: memref<1x512xf32, #tpu.memory_space<vmem>>, %arg3: memref<1x512xf32, #tpu.memory_space<vmem>>, %arg4: memref<16x512xf32, #tpu.memory_space<vmem>>) attributes {dimension_semantics = [#tpu.dimension_semantics<arbitrary>], iteration_bounds = array<i64: 1>, scalar_prefetch = 0 : i64, scratch_operands = 0 : i64, tpu.core_type = #tpu.core_type<tc>, window_params = [{pipeline_mode = #tpu.pipeline_mode<synchronous>, transform_indices = @transform_0, window_bounds = array<i64: 16, 512>}, {pipeline_mode = #tpu.pipeline_mode<synchronous>, transform_indices = @transform_1, window_bounds = array<i64: 1, 512>}, {pipeline_mode = #tpu.pipeline_mode<synchronous>, transform_indices = @transform_2, window_bounds = array<i64: 1, 512>}, {pipeline_mode = #tpu.pipeline_mode<synchronous>, transform_indices = @transform_3, window_bounds = array<i64: 16, 512>}]} {
    %c0 = arith.constant 0 : index
    %c0_0 = arith.constant 0 : index
    %0 = vector.load %arg1[%c0, %c0_0] : memref<16x512xf32, #tpu.memory_space<vmem>>, vector<16x512xf32>
    %c0_1 = arith.constant 0 : index
    %c0_2 = arith.constant 0 : index
    %1 = vector.load %arg2[%c0_1, %c0_2] : memref<1x512xf32, #tpu.memory_space<vmem>>, vector<1x512xf32>
    %c0_3 = arith.constant 0 : index
    %c0_4 = arith.constant 0 : index
    %2 = vector.load %arg3[%c0_3, %c0_4] : memref<1x512xf32, #tpu.memory_space<vmem>>, vector<1x512xf32>
    %cst = arith.constant dense<0.000000e+00> : vector<16xf32>
    %3 = vector.multi_reduction <add>, %0, %cst [1] : vector<16x512xf32> to vector<16xf32>
    %4 = vector.shape_cast %3 : vector<16xf32> to vector<16x1xf32>
    %cst_5 = arith.constant 5.120000e+02 : f32
    %5 = vector.broadcast %cst_5 : f32 to vector<16x1xf32>
    %6 = arith.divf %4, %5 : vector<16x1xf32>
    %7 = vector.broadcast %6 : vector<16x1xf32> to vector<16x512xf32>
    %8 = arith.subf %0, %7 : vector<16x512xf32>
    %9 = arith.mulf %8, %8 : vector<16x512xf32>
    %cst_6 = arith.constant dense<0.000000e+00> : vector<16xf32>
    %10 = vector.multi_reduction <add>, %9, %cst_6 [1] : vector<16x512xf32> to vector<16xf32>
    %11 = vector.shape_cast %10 : vector<16xf32> to vector<16x1xf32>
    %cst_7 = arith.constant 5.120000e+02 : f32
    %12 = vector.broadcast %cst_7 : f32 to vector<16x1xf32>
    %13 = arith.divf %11, %12 : vector<16x1xf32>
    %cst_8 = arith.constant 9.99999974E-6 : f32
    %14 = vector.broadcast %cst_8 : f32 to vector<16x1xf32>
    %15 = arith.addf %13, %14 : vector<16x1xf32>
    %16 = math.rsqrt %15 : vector<16x1xf32>
    %17 = vector.broadcast %16 : vector<16x1xf32> to vector<16x512xf32>
    %18 = arith.mulf %8, %17 : vector<16x512xf32>
    %19 = vector.broadcast %1 : vector<1x512xf32> to vector<16x512xf32>
    %20 = arith.mulf %18, %19 : vector<16x512xf32>
    %21 = vector.broadcast %2 : vector<1x512xf32> to vector<16x512xf32>
    %22 = arith.addf %20, %21 : vector<16x512xf32>
    %c0_9 = arith.constant 0 : index
    %c0_10 = arith.constant 0 : index
    %23 = vector.load %arg4[%c0_9, %c0_10] : memref<16x512xf32, #tpu.memory_space<vmem>>, vector<16x512xf32>
    tpu.vector_store %arg4[%c0_9, %c0_10], %22 {strides = array<i32>} : memref<16x512xf32, #tpu.memory_space<vmem>>, vector<16x512xf32>,
    return
  }
  func.func @transform_0(%arg0: i32) -> (i32, i32) {
    %c0_i32 = arith.constant 0 : i32
    %c0_i32_0 = arith.constant 0 : i32
    %c0_i32_1 = arith.constant 0 : i32
    return %c0_i32, %c0_i32_0 : i32, i32
  }
  func.func @transform_1(%arg0: i32) -> (i32, i32) {
    %c0_i32 = arith.constant 0 : i32
    %c0_i32_0 = arith.constant 0 : i32
    %c0_i32_1 = arith.constant 0 : i32
    return %c0_i32, %c0_i32_0 : i32, i32
  }
  func.func @transform_2(%arg0: i32) -> (i32, i32) {
    %c0_i32 = arith.constant 0 : i32
    %c0_i32_0 = arith.constant 0 : i32
    %c0_i32_1 = arith.constant 0 : i32
    return %c0_i32, %c0_i32_0 : i32, i32
  }
  func.func @transform_3(%arg0: i32) -> (i32, i32) {
    %c0_i32 = arith.constant 0 : i32
    %c0_i32_0 = arith.constant 0 : i32
    %c0_i32_1 = arith.constant 0 : i32
    return %c0_i32, %c0_i32_0 : i32, i32
  }
}

module attributes {stable_mosaic.version = 11 : i64} {
  func.func @_ln_linear_kernel(%arg0: i32, %arg1: memref<16x512xf32, #tpu.memory_space<vmem>>, %arg2: memref<1x512xf32, #tpu.memory_space<vmem>>, %arg3: memref<1x512xf32, #tpu.memory_space<vmem>>, %arg4: memref<512x128xbf16, #tpu.memory_space<vmem>>, %arg5: memref<1x128xf32, #tpu.memory_space<vmem>>, %arg6: memref<16x128xf32, #tpu.memory_space<vmem>>) attributes {dimension_semantics = [#tpu.dimension_semantics<parallel>], iteration_bounds = array<i64: 1>, scalar_prefetch = 0 : i64, scratch_operands = 0 : i64, tpu.core_type = #tpu.core_type<tc>, window_params = [{pipeline_mode = #tpu.pipeline_mode<synchronous>, transform_indices = @transform_0, window_bounds = array<i64: 16, 512>}, {pipeline_mode = #tpu.pipeline_mode<synchronous>, transform_indices = @transform_1, window_bounds = array<i64: 1, 512>}, {pipeline_mode = #tpu.pipeline_mode<synchronous>, transform_indices = @transform_2, window_bounds = array<i64: 1, 512>}, {transform_indices = @transform_3, window_bounds = array<i64: 512, 128>}, {transform_indices = @transform_4, window_bounds = array<i64: 1, 128>}, {transform_indices = @transform_5, window_bounds = array<i64: 16, 128>}]} {
    %c0 = arith.constant 0 : index
    %c0_0 = arith.constant 0 : index
    %0 = vector.load %arg1[%c0, %c0_0] : memref<16x512xf32, #tpu.memory_space<vmem>>, vector<16x512xf32>
    %c0_1 = arith.constant 0 : index
    %c0_2 = arith.constant 0 : index
    %1 = vector.load %arg2[%c0_1, %c0_2] : memref<1x512xf32, #tpu.memory_space<vmem>>, vector<1x512xf32>
    %c0_3 = arith.constant 0 : index
    %c0_4 = arith.constant 0 : index
    %2 = vector.load %arg3[%c0_3, %c0_4] : memref<1x512xf32, #tpu.memory_space<vmem>>, vector<1x512xf32>
    %cst = arith.constant dense<0.000000e+00> : vector<16xf32>
    %3 = vector.multi_reduction <add>, %0, %cst [1] : vector<16x512xf32> to vector<16xf32>
    %4 = vector.shape_cast %3 : vector<16xf32> to vector<16x1xf32>
    %cst_5 = arith.constant 5.120000e+02 : f32
    %5 = vector.broadcast %cst_5 : f32 to vector<16x1xf32>
    %6 = arith.divf %4, %5 : vector<16x1xf32>
    %7 = vector.broadcast %6 : vector<16x1xf32> to vector<16x512xf32>
    %8 = arith.subf %0, %7 : vector<16x512xf32>
    %9 = arith.mulf %8, %8 : vector<16x512xf32>
    %cst_6 = arith.constant dense<0.000000e+00> : vector<16xf32>
    %10 = vector.multi_reduction <add>, %9, %cst_6 [1] : vector<16x512xf32> to vector<16xf32>
    %11 = vector.shape_cast %10 : vector<16xf32> to vector<16x1xf32>
    %cst_7 = arith.constant 5.120000e+02 : f32
    %12 = vector.broadcast %cst_7 : f32 to vector<16x1xf32>
    %13 = arith.divf %11, %12 : vector<16x1xf32>
    %cst_8 = arith.constant 9.99999974E-6 : f32
    %14 = vector.broadcast %cst_8 : f32 to vector<16x1xf32>
    %15 = arith.addf %13, %14 : vector<16x1xf32>
    %16 = math.rsqrt %15 : vector<16x1xf32>
    %17 = vector.broadcast %16 : vector<16x1xf32> to vector<16x512xf32>
    %18 = arith.mulf %8, %17 : vector<16x512xf32>
    %19 = vector.broadcast %1 : vector<1x512xf32> to vector<16x512xf32>
    %20 = arith.mulf %18, %19 : vector<16x512xf32>
    %21 = vector.broadcast %2 : vector<1x512xf32> to vector<16x512xf32>
    %22 = arith.addf %20, %21 : vector<16x512xf32>
    %23 = arith.truncf %22 : vector<16x512xf32> to vector<16x512xbf16>
    %c0_9 = arith.constant 0 : index
    %c0_10 = arith.constant 0 : index
    %24 = vector.load %arg4[%c0_9, %c0_10] : memref<512x128xbf16, #tpu.memory_space<vmem>>, vector<512x128xbf16>
    %cst_11 = arith.constant dense<0.000000e+00> : vector<16x128xf32>
    %25 = tpu.matmul %23, %24, %cst_11 {dimension_numbers = #tpu.dot_dimension_numbers<[1], [0], [0], [1], [0, 0, 1, 1], [], []>} : vector<16x512xbf16>, vector<512x128xbf16>, vector<16x128xf32> -> vector<16x128xf32>
    %c0_12 = arith.constant 0 : index
    %c0_13 = arith.constant 0 : index
    %26 = vector.load %arg5[%c0_12, %c0_13] : memref<1x128xf32, #tpu.memory_space<vmem>>, vector<1x128xf32>
    %27 = vector.broadcast %26 : vector<1x128xf32> to vector<16x128xf32>
    %28 = arith.addf %25, %27 : vector<16x128xf32>
    %c0_14 = arith.constant 0 : index
    %c0_15 = arith.constant 0 : index
    %29 = vector.load %arg6[%c0_14, %c0_15] : memref<16x128xf32, #tpu.memory_space<vmem>>, vector<16x128xf32>
    tpu.vector_store %arg6[%c0_14, %c0_15], %28 {strides = array<i32>} : memref<16x128xf32, #tpu.memory_space<vmem>>, vector<16x128xf32>,
    return
  }
  func.func @transform_0(%arg0: i32) -> (i32, i32) {
    %c0_i32 = arith.constant 0 : i32
    %c0_i32_0 = arith.constant 0 : i32
    %c0_i32_1 = arith.constant 0 : i32
    return %c0_i32, %c0_i32_0 : i32, i32
  }
  func.func @transform_1(%arg0: i32) -> (i32, i32) {
    %c0_i32 = arith.constant 0 : i32
    %c0_i32_0 = arith.constant 0 : i32
    %c0_i32_1 = arith.constant 0 : i32
    return %c0_i32, %c0_i32_0 : i32, i32
  }
  func.func @transform_2(%arg0: i32) -> (i32, i32) {
    %c0_i32 = arith.constant 0 : i32
    %c0_i32_0 = arith.constant 0 : i32
    %c0_i32_1 = arith.constant 0 : i32
    return %c0_i32, %c0_i32_0 : i32, i32
  }
  func.func @transform_3(%arg0: i32) -> (i32, i32) {
    %c0_i32 = arith.constant 0 : i32
    %c0_i32_0 = arith.constant 0 : i32
    return %c0_i32, %arg0 : i32, i32
  }
  func.func @transform_4(%arg0: i32) -> (i32, i32) {
    %c0_i32 = arith.constant 0 : i32
    %c0_i32_0 = arith.constant 0 : i32
    return %c0_i32, %arg0 : i32, i32
  }
  func.func @transform_5(%arg0: i32) -> (i32, i32) {
    %c0_i32 = arith.constant 0 : i32
    %c0_i32_0 = arith.constant 0 : i32
    return %c0_i32, %arg0 : i32, i32
  }
}

</mosaic_0001>

<bundles_post_ra>
// kernel: transformer2_forward.99
= control target key start
LH: loop header
LB: loop body
LE: loop exit
PB: predicated region body
PF: predicated region fallthrough
CT: control target
= control target key end

     0   :  { %10 = vsyncpa [#allocation3], 0  ;;  %s2512_s0 = inlined_call_operand.vmem [shape: f32[16,512], index: 0, kind: input, shape index: {}]   ;;  %s2513_s1 = inlined_call_operand.hbm [shape: f32[1,512], index: 1, kind: input, shape index: {}]   ;;  %s2514_s2 = inlined_call_operand.hbm [shape: f32[1,512], index: 2, kind: input, shape index: {}]   ;;  %s2515_s3 = inlined_call_operand.hbm [shape: bf16[512,1536], index: 3, kind: input, shape index: {}]   ;;  %s2516_s4 = inlined_call_operand.vmem [shape: f32[1,1536], index: 4, kind: input, shape index: {}]   ;;  %s2517_s5 = inlined_call_operand.vmem [shape: f32[16,1536], index: 5, kind: output, shape index: {}]  }
   0x1   :  { %11 = vsyncpa [#allocation5], 0  ;;  %s2077_s18 = smov 0   ;;  %s2079_s19 = smov 0  }
   0x2   :  { %s2081_s20 = smov 0   ;;  %s2083_s21 = smov 0  }
   0x3 LB: > { %s2096_s22 = sadd.s32 4294967295, %s2039_s21   ;;  %s2099_s23 = sadd.s32 1, %s2039_s21   ;;  %s2039_s21 = sphi %s2083_s21, %s2539_s21   ;;  %s2035_s20 = sphi %s2081_s20, %s2538_s20   ;;  %s2031_s19 = sphi %s2079_s19, %s2537_s19   ;;  %s2027_s18 = sphi %s2077_s18, %s2536_s18  }
   0x4   : > { %s84_s24 = ssub.s32 %s2039_s21, %s2099_s23  ;;  %s87_s25 = sadd.s32 1, %s2035_s20 }
   0x5   : > { %p85_p0 = scmp.eq.s32.totalorder %s84_s24, 0  ;;  %p94_p1 = scmp.ne.s32.totalorder %s2035_s20, %s2031_s19 }
   0x6   : > { %p95_p2 = scmp.eq.s32.totalorder %s2039_s21, 0  ;;  %p100_p3 = scmp.ne.s32.totalorder %s2031_s19, %s2027_s18 }
   0x7   : > { %s2109_s26 = scalar_select %p85_p0, %s2035_s20, %s87_s25  }
   0x8   : > { %p2111_p4 = por %p95_p2, %p94_p1  ;;  %p2518_p5 = scmp.eq.s32.totalorder %s2096_s22, 0 }
   0x9   : > { %p150_p6 = scmp.eq.s32.totalorder %s2096_s22, 2  ;;  %p1510_p7 = scmp.ge.s32.totalorder %s2039_s21, 1 }
   0xa   : > { %p2120_p8 = por %p2518_p5, %p100_p3  ;;  %p163_p9 = scmp.lt.s32.totalorder %s2039_s21, 4 }
   0xb   : > { %p2125_p10 = por %p150_p6, %p94_p1  ;;  %s2041_s6 = smov [#allocation2]  }
   0xc   : > { %s2523_s28 = scalar_select %p2120_p8, 1, 0 }
   0xd   : > { %s2524_s29 = scalar_select %p2125_p10, 1, 0 }
   0xe   : > { %p2129_p11 = pnand %p1510_p7, %p163_p9  ;;  %s179_s7 = sshll.u32 %s2041_s6, 4  ;;  %s180_s7 = int_to_ptr.vmem [resolvable:$true] %s179_s7 }
   0xf   : > { %p1681_p13 = scmp.lt.s32.totalorder %s2039_s21, 3  ;;  %s2042_s9 = smov [#allocation4]  }
  0x10   : > { %s2525_s30 = scalar_select %p2129_p11, 1, 0 }
  0x11   : > { %p1668_p12 = pneg %p2129_p11  ;;  %s190_s10 = sshll.u32 %s2042_s9, 4  ;;  %s191_s10 = int_to_ptr.vmem [resolvable:$true] %s190_s10 }
  0x12   : > { %p2144_p1 = pnand %p1681_p13, %p2111_p4  ;;  %s201_s12 = sand.u32 1, %s2039_s21  }
  0x13   : > { %p2138_p0 = pnand %p1668_p12, %p2518_p5  ;;  %s1928_s13 = scalar_lea.vmem %s180_s7, 64 }
  0x14   : > { %s2527_s11 = scalar_select %p2144_p1, 1, 0 }
  0x15   : > { %p1919_p2 = pneg %p2138_p0  ;;  %p1929_p3 = scmp.ne.s32.totalorder %s180_s7, %s1928_s13 }
  0x16   : > { %p1936_p9 = scmp.lt.s32.totalorder %s180_s7, %s180_s7  ;;  %p1937_p12 = scmp.lt.s32.totalorder %s1928_s13, %s1928_s13 }
  0x17   : > { %p1931_p6 = pnand %p1929_p3, %p1919_p2 }
  0x18   : > { %p1938_p5 = por %p1937_p12, %p1936_p9 }
  0x19   : > { %p1932_p7 = pneg %p1931_p6 }
  0x1b   : > { %p1939_p10 = pnand %p1938_p5, %p1932_p7 }
  0x1d   : > { %1942 = shalt.err (!%p1939_p10)
}
  0x1e   : > { %1671 = dma.hbm_to_vmem [thread:$0]  (!%p2138_p0), %s2513_s1, 64, %s180_s7, [#allocation3]  }
  0x1f   : > { %s1954_s16 = scalar_lea.vmem %s191_s10, 64  ;;  %p1962_p3 = scmp.lt.s32.totalorder %s191_s10, %s191_s10 }
  0x20   : > { %p1955_p4 = scmp.ne.s32.totalorder %s191_s10, %s1954_s16  ;;  %p1963_p6 = scmp.lt.s32.totalorder %s1954_s16, %s1954_s16 }
  0x22   : > { %p1957_p13 = pnand %p1955_p4, %p1919_p2  ;;  %p1964_p11 = por %p1963_p6, %p1962_p3 }
  0x24   : > { %p1958_p8 = pneg %p1957_p13 }
  0x26   : > { %p1965_p1 = pnand %p1964_p11, %p1958_p8 }
  0x28   : > { %1968 = shalt.err (!%p1965_p1)
}
  0x29   : > { %1674 = dma.hbm_to_vmem [thread:$0]  (!%p2138_p0), %s2514_s2, 64, %s191_s10, [#allocation5]  }
  0x2a   : > { %s203_s24 = sand.u32 1, %s2035_s20   ;;  %s1656_s25 = sshll.u32 %s2039_s21, 8 }
  0x2b   : > { %s1514_s27 = sshll.u32 %s203_s24, 10  ;;  %s2172_s9 = scalar_lea.hbm %s2515_s3, %s1656_s25 }
  0x2c   : > { %s205_s13 = scalar_lea.vmem [#allocation6], %s1514_s27  ;;  %s2176_s14 = scalar_lea.sflag [#allocation3], %s201_s12 }
  0x2d   : > { %s212_s8 = sshll.u32 %s205_s13, 4  ;;  %s1969_s15 = scalar_lea.hbm %s2172_s9, 16384  ;;  %s2174_s8 = int_to_ptr.vmem [resolvable:$true] %s212_s8 }
  0x2e   : > { %p1970_p5 = scmp.ne.s32.totalorder %s2172_s9, %s1969_s15  ;;  %p2528_p8 = scmp.ne.s32.totalorder %s2527_s11, 0 }
  0x2f   : > { %s1974_s16 = scalar_lea.hbm %s2515_s3, 49152  ;;  %p1975_p1 = scmp.lt.s32.totalorder %s2172_s9, %s2515_s3 }
  0x30   : > { %p1971_p10 = pneg %p2528_p8  ;;  %p1976_p2 = scmp.lt.s32.totalorder %s1974_s16, %s1969_s15 }
  0x32   : > { %p1972_p11 = pnand %p1971_p10, %p1970_p5  ;;  %p1977_p7 = por %p1976_p2, %p1975_p1 }
  0x34   : > { %p1973_p0 = pneg %p1972_p11 }
  0x36   : > { %p1978_p9 = pnand %p1977_p7, %p1973_p0 }
  0x38   : > { %1981 = shalt.err (!%p1978_p9)
}
  0x39   : > { %s1982_s12 = scalar_lea.vmem %s2174_s8, 16384  ;;  %s2043_s24 = smov [#allocation6]  }
  0x3a   : > { %p1983_p12 = scmp.ne.s32.totalorder %s2174_s8, %s1982_s12  ;;  %s1987_s25 = sshll.u32 %s2043_s24, 4  ;;  %s1988_s25 = int_to_ptr.vmem [resolvable:$false] %s1987_s25 }
  0x3b   : > { %s1989_s27 = scalar_lea.vmem %s1988_s25, 32768  ;;  %p1990_p3 = scmp.lt.s32.totalorder %s2174_s8, %s1988_s25 }
  0x3c   : > { %p1985_p4 = pnand %p1983_p12, %p1971_p10  ;;  %p1991_p6 = scmp.lt.s32.totalorder %s1989_s27, %s1982_s12 }
  0x3e   : > { %p1986_p13 = pneg %p1985_p4  ;;  %p1992_p5 = por %p1991_p6, %p1990_p3 }
  0x40   : > { %p1993_p11 = pnand %p1992_p5, %p1986_p13 }
  0x42   : > { %1996 = shalt.err (!%p1993_p11)
}
  0x43   : > { %s2044_s6 = smov 768   ;;  %s2045_s7 = smov 256  }
  0x44   : > { %s2046_s13 = smov 16   ;;  %p2529_p10 = scmp.ne.s32.totalorder %s2525_s30, 0 }
  0x45   : > { %1678 = dma.hbm_to_vmem [thread:$0]  (!%p2528_p8), %s2172_s9, 16384, %s2174_s8, %s2176_s14, %s2044_s6, %s2045_s7, %s2046_s13  }
  0x46   : > { %232 = sbr.rel (%p2529_p10) target bundleno = 686 (0x2ae), region = 40  ;;  %p2530_p0 = scmp.eq.s32.totalorder (!%p2529_p10), %s2096_s22, 0 }
  0x4b   : > { %2014 = dma.done.wait (%p2530_p0), [#allocation3], 64   ;;  %p2531_p1 = pmov %p2530_p0 }
  0x4c   : > { %p2532_p2 = pmov %p2530_p0 }
  0x4d   : > { %2016 = vsyncadd (%p2531_p1), [#allocation3], 4294967232 }
  0x4e   : > { %2018 = dma.done.wait (%p2532_p2), [#allocation5], 64   ;;  %p2533_p7 = pmov %p2530_p0 }
  0x4f   : > { %s242_s11 = sand.u32 1, %s2096_s22   ;;  %s244_s9 = sand.u32 1, %s2031_s19  }
  0x50   : > { %2020 = vsyncadd (%p2533_p7), [#allocation5], 4294967232  ;;  %s1520_s30 = sshll.u32 %s244_s9, 10  ;;  %s243_s8 = scalar_lea.sflag [#allocation3], %s242_s11 }
  0x51   : > { %s2211_s14 = scalar_lea.vmem [#allocation6], %s1520_s30  ;;  %p2534_p8 = scmp.ne.s32.totalorder %s2523_s28, 0 }
  0x53   : > { %2022 = dma.done.wait (%p2534_p8), %s243_s8, 16384  }
  0x54   : > { %2024 = vsyncadd (%p2534_p8), %s243_s8, 4294950912  ;;  %v2220_v0 = vld [vmem:[%s2512_s0] sm:$0xff]  ;;  %v2225_v1 = vld [vmem:[%s2512_s0 + $0x8] sm:$0xff]  ;;  %s1522_s8 = sshll.u32 %s2096_s22, 2  ;;  %p2535_p12 = scmp.ne.s32.totalorder %s2524_s29, 0 }
  0x55   : > { %v2230_v2 = vld [vmem:[%s2512_s0 + $0x10] sm:$0xff]  ;;  %v2235_v3 = vld [vmem:[%s2512_s0 + $0x18] sm:$0xff]  ;;  %v293_v4 = vadd.f32 %v2225_v1, %v2220_v0  ;;  %v2242_v5 = vld [vmem:[%s2512_s0 + $0x20] sm:$0xff]  ;;  %p278_p9 = scmp.lt.s32.totalorder %s1522_s8, 11 }
  0x56   : > { %v2247_v6 = vld [vmem:[%s2512_s0 + $0x28] sm:$0xff]  ;;  %v2252_v7 = vld [vmem:[%s2512_s0 + $0x30] sm:$0xff]  ;;  %v2257_v8 = vld [vmem:[%s2512_s0 + $0x38] sm:$0xff] }
  0x57   : > { %v298_v9 = vadd.f32 %v2247_v6, %v2242_v5  ;;  %v294_v10 = vadd.f32 %v293_v4, %v2230_v2  ;;  %v1721_v14 = vld [vmem:[%s2211_s14 + $0xe4] ss:$16 sps:$4 sm:$0xff]   ;;  %v1725_v16 = vld [vmem:[%s2211_s14 + $0xe0] ss:$16 sps:$4 sm:$0xff]   ;;  %s2541_s8 = smov (!%p278_p9, %s1522_s8), 11 }
  0x58   : > { %v1723_v15 = vld [vmem:[%s2211_s14 + $0x2e4] ss:$16 sps:$4 sm:$0xff]   ;;  %v1726_v17 = vld [vmem:[%s2211_s14 + $0x2e0] ss:$16 sps:$4 sm:$0xff]   ;;  %1198 = vmatprep.subr.bf16.mxu0 %v1721_v14  ;;  %s280_s10 = scalar_lea.vmem %s2516_s4, %s2541_s8 }
  0x59   : > { %v299_v11 = vadd.f32 %v298_v9, %v2252_v7  ;;  %v295_v12 = vadd.f32 %v294_v10, %v2235_v3  ;;  %v1727_v18 = vld [vmem:[%s2211_s14 + $0xc4] ss:$16 sps:$4 sm:$0xff]   ;;  %1241 = vmatprep.subr.bf16.mxu1 %v1723_v15  ;;  %1199 = vmatpush1.bf16.msra.mxu0 %v1725_v16  ;;  %v1731_v20 = vld [vmem:[%s2211_s14 + $0xc0] ss:$16 sps:$4 sm:$0xff]  }
  0x5a   : > { %v1729_v19 = vld [vmem:[%s2211_s14 + $0x2c4] ss:$16 sps:$4 sm:$0xff]   ;;  %1242 = vmatpush1.bf16.msra.mxu1 %v1726_v17  ;;  %v1732_v21 = vld [vmem:[%s2211_s14 + $0x2c0] ss:$16 sps:$4 sm:$0xff]   ;;  %1200 = vmatprep.subr.bf16.mxu0 %v1727_v18 }
  0x5b   : > { %296 = vadd.xlane.f32.xlu0 %v295_v12  ;;  %v300_v13 = vadd.f32 %v299_v11, %v2257_v8  ;;  %1243 = vmatprep.subr.bf16.mxu1 %v1729_v19  ;;  %v1733_v22 = vld [vmem:[%s2211_s14 + $0xa4] ss:$16 sps:$4 sm:$0xff]   ;;  %v1737_v24 = vld [vmem:[%s2211_s14 + $0xa0] ss:$16 sps:$4 sm:$0xff]  }
  0x5c   : > { %v1735_v23 = vld [vmem:[%s2211_s14 + $0x2a4] ss:$16 sps:$4 sm:$0xff]   ;;  %v1738_v25 = vld [vmem:[%s2211_s14 + $0x2a0] ss:$16 sps:$4 sm:$0xff]  }
  0x5d   : > { %1201 = vmatpush1.bf16.msra.mxu0 %v1731_v20  ;;  %v1739_v26 = vld [vmem:[%s2211_s14 + $0x84] ss:$16 sps:$4 sm:$0xff]   ;;  %v1743_v28 = vld [vmem:[%s2211_s14 + $0x80] ss:$16 sps:$4 sm:$0xff]  }
  0x5e   : > { %1244 = vmatpush1.bf16.msra.mxu1 %v1732_v21  ;;  %1202 = vmatprep.subr.bf16.mxu0 %v1733_v22  ;;  %v1741_v27 = vld [vmem:[%s2211_s14 + $0x284] ss:$16 sps:$4 sm:$0xff]   ;;  %v1744_v29 = vld [vmem:[%s2211_s14 + $0x280] ss:$16 sps:$4 sm:$0xff]  }
  0x5f   : > { %301 = vadd.xlane.f32.xlu0 %v300_v13  ;;  %1245 = vmatprep.subr.bf16.mxu1 %v1735_v23  ;;  %v1745_v30 = vld [vmem:[%s2211_s14 + $0x64] ss:$16 sps:$4 sm:$0xff]   ;;  %v1749_v32 = vld [vmem:[%s2211_s14 + $0x60] ss:$16 sps:$4 sm:$0xff]  }
  0x60   : > { %v1747_v31 = vld [vmem:[%s2211_s14 + $0x264] ss:$16 sps:$4 sm:$0xff]   ;;  %v1750_v33 = vld [vmem:[%s2211_s14 + $0x260] ss:$16 sps:$4 sm:$0xff]  }
  0x61   : > { %1203 = vmatpush1.bf16.msra.mxu0 %v1737_v24  ;;  %v1751_v34 = vld [vmem:[%s2211_s14 + $0x44] ss:$16 sps:$4 sm:$0xff]   ;;  %v1755_v36 = vld [vmem:[%s2211_s14 + $0x40] ss:$16 sps:$4 sm:$0xff]  }
  0x62   : > { %1246 = vmatpush1.bf16.msra.mxu1 %v1738_v25  ;;  %1204 = vmatprep.subr.bf16.mxu0 %v1739_v26  ;;  %v1753_v35 = vld [vmem:[%s2211_s14 + $0x244] ss:$16 sps:$4 sm:$0xff]   ;;  %v1756_v37 = vld [vmem:[%s2211_s14 + $0x240] ss:$16 sps:$4 sm:$0xff]  }
  0x63   : > { %1247 = vmatprep.subr.bf16.mxu1 %v1741_v27  ;;  %v1757_v38 = vld [vmem:[%s2211_s14 + $0x24] ss:$16 sps:$4 sm:$0xff]   ;;  %v1761_v40 = vld [vmem:[%s2211_s14 + $0x20] ss:$16 sps:$4 sm:$0xff]  }
  0x64   : > { %v1759_v39 = vld [vmem:[%s2211_s14 + $0x224] ss:$16 sps:$4 sm:$0xff]   ;;  %v1762_v41 = vld [vmem:[%s2211_s14 + $0x220] ss:$16 sps:$4 sm:$0xff]  }
  0x65   : > { %1205 = vmatpush1.bf16.msra.mxu0 %v1743_v28  ;;  %v1763_v42 = vld [vmem:[%s2211_s14 + $0x4] ss:$16 sps:$4 sm:$0xff]   ;;  %v1767_v44 = vld [vmem:[%s2211_s14] ss:$16 sps:$4 sm:$0xff]  }
  0x66   : > { %1248 = vmatpush1.bf16.msra.mxu1 %v1744_v29  ;;  %1206 = vmatprep.subr.bf16.mxu0 %v1745_v30  ;;  %v1765_v43 = vld [vmem:[%s2211_s14 + $0x204] ss:$16 sps:$4 sm:$0xff]   ;;  %v1768_v45 = vld [vmem:[%s2211_s14 + $0x200] ss:$16 sps:$4 sm:$0xff]  }
  0x67   : > { %1249 = vmatprep.subr.bf16.mxu1 %v1747_v31  ;;  %v1769_v46 = vld [vmem:[%s2211_s14 + $0x1e4] ss:$16 sps:$4 sm:$0xff]   ;;  %v1773_v48 = vld [vmem:[%s2211_s14 + $0x1e0] ss:$16 sps:$4 sm:$0xff]  }
  0x68   : > { %v1771_v47 = vld [vmem:[%s2211_s14 + $0x3e4] ss:$16 sps:$4 sm:$0xff]   ;;  %v1774_v49 = vld [vmem:[%s2211_s14 + $0x3e0] ss:$16 sps:$4 sm:$0xff]  }
  0x69   : > { %1207 = vmatpush1.bf16.msra.mxu0 %v1749_v32  ;;  %v1775_v12 = vld [vmem:[%s2211_s14 + $0x1c4] ss:$16 sps:$4 sm:$0xff]   ;;  %v1779_v14 = vld [vmem:[%s2211_s14 + $0x1c0] ss:$16 sps:$4 sm:$0xff]  }
  0x6a   : > { %1250 = vmatpush1.bf16.msra.mxu1 %v1750_v33  ;;  %1208 = vmatprep.subr.bf16.mxu0 %v1751_v34  ;;  %v1777_v13 = vld [vmem:[%s2211_s14 + $0x3c4] ss:$16 sps:$4 sm:$0xff]   ;;  %v1780_v15 = vld [vmem:[%s2211_s14 + $0x3c0] ss:$16 sps:$4 sm:$0xff]  }
  0x6b   : > { %1251 = vmatprep.subr.bf16.mxu1 %v1753_v35  ;;  %v1781_v16 = vld [vmem:[%s2211_s14 + $0x1a4] ss:$16 sps:$4 sm:$0xff]   ;;  %v1785_v18 = vld [vmem:[%s2211_s14 + $0x1a0] ss:$16 sps:$4 sm:$0xff]  }
  0x6c   : > { %v1783_v17 = vld [vmem:[%s2211_s14 + $0x3a4] ss:$16 sps:$4 sm:$0xff]   ;;  %v1786_v19 = vld [vmem:[%s2211_s14 + $0x3a0] ss:$16 sps:$4 sm:$0xff]  }
  0x6d   : > { %1209 = vmatpush1.bf16.msra.mxu0 %v1755_v36  ;;  %v1787_v20 = vld [vmem:[%s2211_s14 + $0x184] ss:$16 sps:$4 sm:$0xff]   ;;  %v1791_v22 = vld [vmem:[%s2211_s14 + $0x180] ss:$16 sps:$4 sm:$0xff]  }
  0x6e   : > { %1252 = vmatpush1.bf16.msra.mxu1 %v1756_v37  ;;  %1210 = vmatprep.subr.bf16.mxu0 %v1757_v38  ;;  %v1789_v21 = vld [vmem:[%s2211_s14 + $0x384] ss:$16 sps:$4 sm:$0xff]   ;;  %v1792_v23 = vld [vmem:[%s2211_s14 + $0x380] ss:$16 sps:$4 sm:$0xff]  }
  0x6f   : > { %1253 = vmatprep.subr.bf16.mxu1 %v1759_v39  ;;  %v1793_v24 = vld [vmem:[%s2211_s14 + $0x164] ss:$16 sps:$4 sm:$0xff]   ;;  %v1797_v26 = vld [vmem:[%s2211_s14 + $0x160] ss:$16 sps:$4 sm:$0xff]  }
  0x70   : > { %v1795_v25 = vld [vmem:[%s2211_s14 + $0x364] ss:$16 sps:$4 sm:$0xff]   ;;  %v1798_v27 = vld [vmem:[%s2211_s14 + $0x360] ss:$16 sps:$4 sm:$0xff]  }
  0x71   : > { %1211 = vmatpush1.bf16.msra.mxu0 %v1761_v40  ;;  %v1799_v28 = vld [vmem:[%s2211_s14 + $0x144] ss:$16 sps:$4 sm:$0xff]   ;;  %v1803_v30 = vld [vmem:[%s2211_s14 + $0x140] ss:$16 sps:$4 sm:$0xff]   ;;  %v1819_v40 = vld [vmem:[%s2211_s14 + $0xec] ss:$16 sps:$4 sm:$0xff]  }
  0x72   : > { %1254 = vmatpush1.bf16.msra.mxu1 %v1762_v41  ;;  %1212 = vmatprep.subr.bf16.mxu0 %v1763_v42  ;;  %v1801_v29 = vld [vmem:[%s2211_s14 + $0x344] ss:$16 sps:$4 sm:$0xff]   ;;  %v1804_v31 = vld [vmem:[%s2211_s14 + $0x340] ss:$16 sps:$4 sm:$0xff]   ;;  %v1822_v41 = vld [vmem:[%s2211_s14 + $0x2ec] ss:$16 sps:$4 sm:$0xff]  }
  0x73   : > { %1255 = vmatprep.subr.bf16.mxu1 %v1765_v43  ;;  %v1805_v32 = vld [vmem:[%s2211_s14 + $0x124] ss:$16 sps:$4 sm:$0xff]   ;;  %v1809_v34 = vld [vmem:[%s2211_s14 + $0x120] ss:$16 sps:$4 sm:$0xff]  }
  0x74   : > { %v1807_v33 = vld [vmem:[%s2211_s14 + $0x324] ss:$16 sps:$4 sm:$0xff]   ;;  %v1810_v35 = vld [vmem:[%s2211_s14 + $0x320] ss:$16 sps:$4 sm:$0xff]  }
  0x75   : > { %1213 = vmatpush1.bf16.msra.mxu0 %v1767_v44  ;;  %v1811_v36 = vld [vmem:[%s2211_s14 + $0x104] ss:$16 sps:$4 sm:$0xff]   ;;  %v1815_v38 = vld [vmem:[%s2211_s14 + $0x100] ss:$16 sps:$4 sm:$0xff]  }
  0x76   : > { %1256 = vmatpush1.bf16.msra.mxu1 %v1768_v45  ;;  %1214 = vmatprep.subr.bf16.mxu0 %v1769_v46  ;;  %v1813_v37 = vld [vmem:[%s2211_s14 + $0x304] ss:$16 sps:$4 sm:$0xff]   ;;  %v1816_v39 = vld [vmem:[%s2211_s14 + $0x300] ss:$16 sps:$4 sm:$0xff]  }
  0x77   : > { %1257 = vmatprep.subr.bf16.mxu1 %v1771_v47 }
  0x79   : > { %1215 = vmatpush2.bf16.msra.mxu0 %v1773_v48  ;;  %v347_v48 = vlaneseq }
  0x7a   : > { %1258 = vmatpush2.bf16.msra.mxu1 %v1774_v49  ;;  %1216 = vmatprep.subr.bf16.mxu0 %v1775_v12 }
  0x7b   : > { %1259 = vmatprep.subr.bf16.mxu1 %v1777_v13  ;;  %v348_v49 = vshrl.u32 %v347_v48, 7  ;;  %v1849_v48 = vld [vmem:[%s2211_s14 + $0x4c] ss:$16 sps:$4 sm:$0xff]  }
  0x7d   : > { %1217 = vmatpush2.bf16.msra.mxu0 %v1779_v14 }
  0x7e   : > { %1260 = vmatpush2.bf16.msra.mxu1 %v1780_v15  ;;  %1218 = vmatprep.subr.bf16.mxu0 %v1781_v16 }
  0x7f   : > { %1261 = vmatprep.subr.bf16.mxu1 %v1783_v17 }
  0x81   : > { %1219 = vmatpush2.bf16.msra.mxu0 %v1785_v18 }
  0x82   : > { %1262 = vmatpush2.bf16.msra.mxu1 %v1786_v19  ;;  %1220 = vmatprep.subr.bf16.mxu0 %v1787_v20 }
  0x83   : > { %1263 = vmatprep.subr.bf16.mxu1 %v1789_v21 }
  0x85   : > { %1221 = vmatpush2.bf16.msra.mxu0 %v1791_v22 }
  0x86   : > { %1264 = vmatpush2.bf16.msra.mxu1 %v1792_v23  ;;  %1222 = vmatprep.subr.bf16.mxu0 %v1793_v24 }
  0x87   : > { %1265 = vmatprep.subr.bf16.mxu1 %v1795_v25 }
  0x89   : > { %1223 = vmatpush2.bf16.msra.mxu0 %v1797_v26 }
  0x8a   : > { %1266 = vmatpush2.bf16.msra.mxu1 %v1798_v27  ;;  %1224 = vmatprep.subr.bf16.mxu0 %v1799_v28  ;;  %v1817_v28 = vld [vmem:[%s2211_s14 + $0xe8] ss:$16 sps:$4 sm:$0xff]  }
  0x8b   : > { %1267 = vmatprep.subr.bf16.mxu1 %v1801_v29  ;;  %v1820_v29 = vld [vmem:[%s2211_s14 + $0x2e8] ss:$16 sps:$4 sm:$0xff]  }
  0x8d   : > { %1225 = vmatpush2.bf16.msra.mxu0 %v1803_v30 }
  0x8e   : > { %1268 = vmatpush2.bf16.msra.mxu1 %v1804_v31  ;;  %1226 = vmatprep.subr.bf16.mxu0 %v1805_v32  ;;  %v1825_v32 = vld [vmem:[%s2211_s14 + $0xcc] ss:$16 sps:$4 sm:$0xff]  }
  0x8f   : > { %1269 = vmatprep.subr.bf16.mxu1 %v1807_v33  ;;  %v1828_v33 = vld [vmem:[%s2211_s14 + $0x2cc] ss:$16 sps:$4 sm:$0xff]  }
  0x91   : > { %1227 = vmatpush2.bf16.msra.mxu0 %v1809_v34  ;;  %v1823_v34 = vld [vmem:[%s2211_s14 + $0xc8] ss:$16 sps:$4 sm:$0xff]  }
  0x92   : > { %1270 = vmatpush2.bf16.msra.mxu1 %v1810_v35  ;;  %1228 = vmatprep.subr.bf16.mxu0 %v1811_v36  ;;  %v1826_v35 = vld [vmem:[%s2211_s14 + $0x2c8] ss:$16 sps:$4 sm:$0xff]   ;;  %v1831_v36 = vld [vmem:[%s2211_s14 + $0xac] ss:$16 sps:$4 sm:$0xff]  }
  0x93   : > { %1271 = vmatprep.subr.bf16.mxu1 %v1813_v37  ;;  %v1834_v37 = vld [vmem:[%s2211_s14 + $0x2ac] ss:$16 sps:$4 sm:$0xff]  }
  0x95   : > { %1229 = vmatpush2.bf16.msra.mxu0 %v1815_v38  ;;  %v1829_v38 = vld [vmem:[%s2211_s14 + $0xa8] ss:$16 sps:$4 sm:$0xff]  }
  0x96   : > { %1272 = vmatpush2.bf16.msra.mxu1 %v1816_v39  ;;  %1284 = vmatprep.subr.bf16.mxu0 %v1819_v40  ;;  %v1832_v39 = vld [vmem:[%s2211_s14 + $0x2a8] ss:$16 sps:$4 sm:$0xff]   ;;  %v1837_v40 = vld [vmem:[%s2211_s14 + $0x8c] ss:$16 sps:$4 sm:$0xff]  }
  0x97   : > { %1327 = vmatprep.subr.bf16.mxu1 %v1822_v41  ;;  %v1840_v41 = vld [vmem:[%s2211_s14 + $0x28c] ss:$16 sps:$4 sm:$0xff]  }
  0xe4   : > { %v297_v50 = vpop.xlane.xlu0 %296 }
  0xe5   : > { %v304_v51 = vmul.f32 0.001953125, %v297_v50  ;;  %v2371_v50 = vsub.s32 1, %v348_v49 }
  0xe7   : > { %v2302_v52 = vsub.f32 %v2220_v0, %v304_v51  ;;  %v2305_v53 = vsub.f32 %v2225_v1, %v304_v51  ;;  %v2308_v54 = vsub.f32 %v2230_v2, %v304_v51  ;;  %v2311_v56 = vsub.f32 %v2235_v3, %v304_v51 }
  0xe8   : > { %v302_v55 = vpop.xlane.xlu0 %301  ;;  %v2373_v51 = vsub.s32 3, %v348_v49 }
  0xe9   : > { %v305_v57 = vmul.f32 0.001953125, %v302_v55  ;;  %v314_v58 = vmul.f32 %v2302_v52, %v2302_v52  ;;  %v315_v59 = vmul.f32 %v2305_v53, %v2305_v53  ;;  %v316_v60 = vmul.f32 %v2308_v54, %v2308_v54  ;;  %v291_v55 = vld [vmem:[#allocation2] sm:$0xf] }
  0xea   : > { %v317_v1 = vmul.f32 %v2311_v56, %v2311_v56 }
  0xeb   : > { %v2320_v61 = vsub.f32 %v2242_v5, %v305_v57  ;;  %v2323_v62 = vsub.f32 %v2247_v6, %v305_v57  ;;  %v322_v63 = vadd.f32 %v315_v59, %v314_v58  ;;  %v2326_v0 = vsub.f32 %v2252_v7, %v305_v57 }
  0xec   : > { %v2331_v3 = vsub.f32 %v2257_v8, %v305_v57  ;;  %v2375_v57 = vsub.s32 0, %v348_v49  ;;  %v2377_v58 = vsub.s32 2, %v348_v49  ;;  %v1852_v49 = vld [vmem:[%s2211_s14 + $0x24c] ss:$16 sps:$4 sm:$0xff]  }
  0xed   : > { %v323_v2 = vadd.f32 %v322_v63, %v316_v60  ;;  %v318_v4 = vmul.f32 %v2320_v61, %v2320_v61  ;;  %v319_v5 = vmul.f32 %v2323_v62, %v2323_v62  ;;  %v320_v7 = vmul.f32 %v2326_v0, %v2326_v0  ;;  %v292_v60 = vld [vmem:[#allocation4] sm:$0xf] }
  0xee   : > { %v321_v8 = vmul.f32 %v2331_v3, %v2331_v3  ;;  %v387_v12 = vrot.slane %v292_v60, %v2377_v58 }
  0xef   : > { %v324_v6 = vadd.f32 %v323_v2, %v317_v1  ;;  %v327_v9 = vadd.f32 %v319_v5, %v318_v4  ;;  %v354_v1 = vrot.slane %v291_v55, %v2371_v50  ;;  %v362_v4 = vrot.slane %v291_v55, %v2373_v51 }
  0xf1   : > { %325 = vadd.xlane.f32.xlu1 %v324_v6  ;;  %v328_v10 = vadd.f32 %v327_v9, %v320_v7  ;;  %v350_v6 = vrot.slane %v291_v55, %v2375_v57  ;;  %v358_v9 = vrot.slane %v291_v55, %v2377_v58  ;;  %v1847_v55 = vld [vmem:[%s2211_s14 + $0x48] ss:$16 sps:$4 sm:$0xff]  }
  0xf3   : > { %v329_v11 = vadd.f32 %v328_v10, %v321_v8  ;;  %v383_v10 = vrot.slane %v292_v60, %v2371_v50 }
  0xf5   : > { %330 = vadd.xlane.f32.xlu1 %v329_v11  ;;  %v391_v11 = vrot.slane %v292_v60, %v2373_v51 }
 0x17a   : > { %v326_v42 = vpop.xlane.xlu1 %325 }
 0x17b   : > { %v332_v43 = vmul.f32 0.001953125, %v326_v42  ;;  %v1835_v42 = vld [vmem:[%s2211_s14 + $0x88] ss:$16 sps:$4 sm:$0xff]  }
 0x17d   : > { %v334_v44 = vadd.f32 1e-05, %v332_v43  ;;  %v1838_v43 = vld [vmem:[%s2211_s14 + $0x288] ss:$16 sps:$4 sm:$0xff]  }
 0x17e   : > { %v331_v45 = vpop.xlane.xlu1 %330 }
 0x17f   : > { %1913 = vrsqrt.f32 %v334_v44  ;;  %v333_v46 = vmul.f32 0.001953125, %v331_v45  ;;  %v1843_v44 = vld [vmem:[%s2211_s14 + $0x6c] ss:$16 sps:$4 sm:$0xff]  }
 0x180   : > { %v1846_v45 = vld [vmem:[%s2211_s14 + $0x26c] ss:$16 sps:$4 sm:$0xff]  }
 0x181   : > { %v335_v47 = vadd.f32 1e-05, %v333_v46  ;;  %v1841_v46 = vld [vmem:[%s2211_s14 + $0x68] ss:$16 sps:$4 sm:$0xff]  }
 0x183   : > { %1915 = vrsqrt.f32 %v335_v47  ;;  %v1844_v47 = vld [vmem:[%s2211_s14 + $0x268] ss:$16 sps:$4 sm:$0xff]  }
 0x18c   : > { %v1914_v59 = vpop.eup %1913 }
 0x18d   : > { %v339_v63 = vmul.f32 %v1914_v59, %v2305_v53  ;;  %v341_v2 = vmul.f32 %v1914_v59, %v2311_v56  ;;  %v338_v5 = vmul.f32 %v1914_v59, %v2302_v52  ;;  %v340_v7 = vmul.f32 %v1914_v59, %v2308_v54  ;;  %v1850_v59 = vld [vmem:[%s2211_s14 + $0x248] ss:$16 sps:$4 sm:$0xff]  }
 0x18e   : > { %v379_v53 = vrot.slane %v292_v60, %v2375_v57  ;;  %v1855_v60 = vld [vmem:[%s2211_s14 + $0x2c] ss:$16 sps:$4 sm:$0xff]  }
 0x18f   : > { %v368_v13 = vmul.f32 %v354_v1, %v339_v63  ;;  %v370_v14 = vmul.f32 %v362_v4, %v341_v2  ;;  %v367_v54 = vmul.f32 %v350_v6, %v338_v5  ;;  %v369_v17 = vmul.f32 %v358_v9, %v340_v7  ;;  %v1858_v63 = vld [vmem:[%s2211_s14 + $0x22c] ss:$16 sps:$4 sm:$0xff]   ;;  %v1856_v2 = vld [vmem:[%s2211_s14 + $0x228] ss:$16 sps:$4 sm:$0xff]  }
 0x190   : > { %v1916_v8 = vpop.eup %1915  ;;  %v1864_v5 = vld [vmem:[%s2211_s14 + $0x20c] ss:$16 sps:$4 sm:$0xff]   ;;  %v1862_v7 = vld [vmem:[%s2211_s14 + $0x208] ss:$16 sps:$4 sm:$0xff]  }
 0x191   : > { %v343_v56 = vmul.f32 %v1916_v8, %v2323_v62  ;;  %v345_v52 = vmul.f32 %v1916_v8, %v2331_v3  ;;  %v342_v15 = vmul.f32 %v1916_v8, %v2320_v61  ;;  %v344_v16 = vmul.f32 %v1916_v8, %v2326_v0  ;;  %v1870_v8 = vld [vmem:[%s2211_s14 + $0x3ec] ss:$16 sps:$4 sm:$0xff]  }
 0x192   : > { %v397_v22 = vadd.f32 %v383_v10, %v368_v13  ;;  %v399_v62 = vadd.f32 %v391_v11, %v370_v14  ;;  %v396_v3 = vadd.f32 %v379_v53, %v367_v54  ;;  %v398_v26 = vadd.f32 %v387_v12, %v369_v17  ;;  %v1874_v13 = vld [vmem:[%s2211_s14 + $0x3c8] ss:$16 sps:$4 sm:$0xff]   ;;  %v1882_v14 = vld [vmem:[%s2211_s14 + $0x3ac] ss:$16 sps:$4 sm:$0xff]  }
 0x193   : > { %v372_v18 = vmul.f32 %v354_v1, %v343_v56  ;;  %v374_v19 = vmul.f32 %v362_v4, %v345_v52  ;;  %v371_v20 = vmul.f32 %v350_v6, %v342_v15  ;;  %v373_v21 = vmul.f32 %v358_v9, %v344_v16  ;;  %v1853_v1 = vld [vmem:[%s2211_s14 + $0x28] ss:$16 sps:$4 sm:$0xff]   ;;  %v1861_v4 = vld [vmem:[%s2211_s14 + $0xc] ss:$16 sps:$4 sm:$0xff]  }
 0x194   : > { %v1859_v6 = vld [vmem:[%s2211_s14 + $0x8] ss:$16 sps:$4 sm:$0xff]   ;;  %v1867_v9 = vld [vmem:[%s2211_s14 + $0x1ec] ss:$16 sps:$4 sm:$0xff]  }
 0x195   : > { %v401_v23 = vadd.f32 %v383_v10, %v372_v18  ;;  %v403_v24 = vadd.f32 %v391_v11, %v374_v19  ;;  %v400_v25 = vadd.f32 %v379_v53, %v371_v20  ;;  %v402_v61 = vadd.f32 %v387_v12, %v373_v21  ;;  %v1865_v10 = vld [vmem:[%s2211_s14 + $0x1e8] ss:$16 sps:$4 sm:$0xff]   ;;  %v1873_v53 = vld [vmem:[%s2211_s14 + $0x1cc] ss:$16 sps:$4 sm:$0xff]  }
 0x196   : > { %v1868_v11 = vld [vmem:[%s2211_s14 + $0x3e8] ss:$16 sps:$4 sm:$0xff]   ;;  %v1876_v12 = vld [vmem:[%s2211_s14 + $0x3cc] ss:$16 sps:$4 sm:$0xff]  }
 0x197   : > { %v405_v0 = vpack.c.bf16 %v401_v23, %v397_v22  ;;  %v407_v27 = vpack.c.bf16 %v403_v24, %v399_v62  ;;  %v2397_v30 = vpack.c.bf16 %v400_v25, %v396_v3  ;;  %v2399_v31 = vpack.c.bf16 %v402_v61, %v398_v26  ;;  %v1871_v56 = vld [vmem:[%s2211_s14 + $0x1c8] ss:$16 sps:$4 sm:$0xff]   ;;  %v1879_v52 = vld [vmem:[%s2211_s14 + $0x1ac] ss:$16 sps:$4 sm:$0xff]  }
 0x198   : > { %v1877_v15 = vld [vmem:[%s2211_s14 + $0x1a8] ss:$16 sps:$4 sm:$0xff]   ;;  %v1885_v16 = vld [vmem:[%s2211_s14 + $0x18c] ss:$16 sps:$4 sm:$0xff]  }
 0x199   : > { %1230 = vmatprep.mubr.bf16.mxu0 %v405_v0  ;;  %1273 = vmatprep.mubr.bf16.mxu1 %v407_v27  ;;  %v1880_v54 = vld [vmem:[%s2211_s14 + $0x3a8] ss:$16 sps:$4 sm:$0xff]   ;;  %v1888_v17 = vld [vmem:[%s2211_s14 + $0x38c] ss:$16 sps:$4 sm:$0xff]  }
 0x19a   : > { %1231 = vmatmul.mubr.bf16.vlgmr.msra.gmra.mxu0 %v2397_v30  ;;  %1274 = vmatmul.mubr.bf16.vlgmr.msra.gmra.mxu1 %v2399_v31  ;;  %v1883_v18 = vld [vmem:[%s2211_s14 + $0x188] ss:$16 sps:$4 sm:$0xff]   ;;  %v1891_v20 = vld [vmem:[%s2211_s14 + $0x16c] ss:$16 sps:$4 sm:$0xff]  }
 0x19b   : > { %1285 = vmatpush1.bf16.msra.mxu0 %v1817_v28  ;;  %1328 = vmatpush1.bf16.msra.mxu1 %v1820_v29  ;;  %v1886_v19 = vld [vmem:[%s2211_s14 + $0x388] ss:$16 sps:$4 sm:$0xff]   ;;  %v1894_v21 = vld [vmem:[%s2211_s14 + $0x36c] ss:$16 sps:$4 sm:$0xff]  }
 0x19c   : > { %1316 = vmatprep.mubr.bf16.mxu0 %v405_v0  ;;  %1359 = vmatprep.mubr.bf16.mxu1 %v407_v27  ;;  %v1889_v22 = vld [vmem:[%s2211_s14 + $0x168] ss:$16 sps:$4 sm:$0xff]   ;;  %v1897_v62 = vld [vmem:[%s2211_s14 + $0x14c] ss:$16 sps:$4 sm:$0xff]  }
 0x19d   : > { %1286 = vmatprep.subr.bf16.mxu0 %v1825_v32  ;;  %1329 = vmatprep.subr.bf16.mxu1 %v1828_v33  ;;  %v1892_v23 = vld [vmem:[%s2211_s14 + $0x368] ss:$16 sps:$4 sm:$0xff]   ;;  %v1900_v24 = vld [vmem:[%s2211_s14 + $0x34c] ss:$16 sps:$4 sm:$0xff]  }
 0x19e   : > { %v1895_v3 = vld [vmem:[%s2211_s14 + $0x148] ss:$16 sps:$4 sm:$0xff]   ;;  %v1903_v26 = vld [vmem:[%s2211_s14 + $0x12c] ss:$16 sps:$4 sm:$0xff]  }
 0x19f   : > { %1287 = vmatpush1.bf16.msra.mxu0 %v1823_v34  ;;  %1330 = vmatpush1.bf16.msra.mxu1 %v1826_v35  ;;  %v1898_v25 = vld [vmem:[%s2211_s14 + $0x348] ss:$16 sps:$4 sm:$0xff]   ;;  %v1906_v61 = vld [vmem:[%s2211_s14 + $0x32c] ss:$16 sps:$4 sm:$0xff]  }
 0x1a0   : > { %1288 = vmatprep.subr.bf16.mxu0 %v1831_v36  ;;  %1331 = vmatprep.subr.bf16.mxu1 %v1834_v37  ;;  %v1901_v0 = vld [vmem:[%s2211_s14 + $0x128] ss:$16 sps:$4 sm:$0xff]   ;;  %v1909_v28 = vld [vmem:[%s2211_s14 + $0x10c] ss:$16 sps:$4 sm:$0xff]  }
 0x1a1   : > { %v1904_v27 = vld [vmem:[%s2211_s14 + $0x328] ss:$16 sps:$4 sm:$0xff]   ;;  %v1912_v29 = vld [vmem:[%s2211_s14 + $0x30c] ss:$16 sps:$4 sm:$0xff]  }
 0x1a2   : > { %v1907_v32 = vld [vmem:[%s2211_s14 + $0x108] ss:$16 sps:$4 sm:$0xff]  }
 0x1a3   : > { %1289 = vmatpush1.bf16.msra.mxu0 %v1829_v38  ;;  %1332 = vmatpush1.bf16.msra.mxu1 %v1832_v39  ;;  %v1910_v33 = vld [vmem:[%s2211_s14 + $0x308] ss:$16 sps:$4 sm:$0xff]   ;;  %s1521_s14 = sshll.u32 %s244_s9, 6  ;;  %s1657_s9 = sshll.u32 (%p2535_p12), %s2096_s22, 5 }
 0x1a4   : > { %1290 = vmatprep.subr.bf16.mxu0 %v1837_v40  ;;  %1333 = vmatprep.subr.bf16.mxu1 %v1840_v41  ;;  %v536_v34 = vld [vmem:[%s280_s10] sm:$0xf]  ;;  %s2473_s16 = scalar_lea.vmem [#allocation7], %s1521_s14  ;;  %s1387_s12 = scalar_lea.vmem (%p2535_p12), %s2517_s5, %s1657_s9 }
 0x1a5   : > { %v541_v35 = vrot.slane %v536_v34, %v2375_v57  ;;  %v545_v36 = vrot.slane %v536_v34, %v2371_v50 }
 0x1a7   : > { %1291 = vmatpush1.bf16.msra.mxu0 %v1835_v42  ;;  %1334 = vmatpush1.bf16.msra.mxu1 %v1838_v43 }
 0x1a8   : > { %1292 = vmatprep.subr.bf16.mxu0 %v1843_v44  ;;  %1335 = vmatprep.subr.bf16.mxu1 %v1846_v45 }
 0x1ab   : > { %1293 = vmatpush1.bf16.msra.mxu0 %v1841_v46  ;;  %1336 = vmatpush1.bf16.msra.mxu1 %v1844_v47 }
 0x1ac   : > { %1294 = vmatprep.subr.bf16.mxu0 %v1849_v48  ;;  %1337 = vmatprep.subr.bf16.mxu1 %v1852_v49  ;;  %v549_v49 = vrot.slane %v536_v34, %v2377_v58 }
 0x1af   : > { %1295 = vmatpush1.bf16.msra.mxu0 %v1847_v55  ;;  %1338 = vmatpush1.bf16.msra.mxu1 %v1850_v59  ;;  %v553_v55 = vrot.slane %v536_v34, %v2373_v51 }
 0x1b0   : > { %1296 = vmatprep.subr.bf16.mxu0 %v1855_v60  ;;  %1339 = vmatprep.subr.bf16.mxu1 %v1858_v63 }
 0x1b3   : > { %1297 = vmatpush1.bf16.msra.mxu0 %v1853_v1  ;;  %1340 = vmatpush1.bf16.msra.mxu1 %v1856_v2 }
 0x1b4   : > { %1298 = vmatprep.subr.bf16.mxu0 %v1861_v4  ;;  %1341 = vmatprep.subr.bf16.mxu1 %v1864_v5 }
 0x1b7   : > { %1299 = vmatpush1.bf16.msra.mxu0 %v1859_v6  ;;  %1342 = vmatpush1.bf16.msra.mxu1 %v1862_v7 }
 0x1b8   : > { %1300 = vmatprep.subr.bf16.mxu0 %v1867_v9  ;;  %1343 = vmatprep.subr.bf16.mxu1 %v1870_v8 }
 0x1bb   : > { %1301 = vmatpush2.bf16.msra.mxu0 %v1865_v10  ;;  %1344 = vmatpush2.bf16.msra.mxu1 %v1868_v11 }
 0x1bc   : > { %1302 = vmatprep.subr.bf16.mxu0 %v1873_v53  ;;  %1345 = vmatprep.subr.bf16.mxu1 %v1876_v12 }
 0x1bf   : > { %1303 = vmatpush2.bf16.msra.mxu0 %v1871_v56  ;;  %1346 = vmatpush2.bf16.msra.mxu1 %v1874_v13 }
 0x1c0   : > { %1304 = vmatprep.subr.bf16.mxu0 %v1879_v52  ;;  %1347 = vmatprep.subr.bf16.mxu1 %v1882_v14 }
 0x1c3   : > { %1305 = vmatpush2.bf16.msra.mxu0 %v1877_v15  ;;  %1348 = vmatpush2.bf16.msra.mxu1 %v1880_v54 }
 0x1c4   : > { %1306 = vmatprep.subr.bf16.mxu0 %v1885_v16  ;;  %1349 = vmatprep.subr.bf16.mxu1 %v1888_v17 }
 0x1c7   : > { %1307 = vmatpush2.bf16.msra.mxu0 %v1883_v18  ;;  %1350 = vmatpush2.bf16.msra.mxu1 %v1886_v19 }
 0x1c8   : > { %1308 = vmatprep.subr.bf16.mxu0 %v1891_v20  ;;  %1351 = vmatprep.subr.bf16.mxu1 %v1894_v21 }
 0x1cb   : > { %1309 = vmatpush2.bf16.msra.mxu0 %v1889_v22  ;;  %1352 = vmatpush2.bf16.msra.mxu1 %v1892_v23 }
 0x1cc   : > { %1310 = vmatprep.subr.bf16.mxu0 %v1897_v62  ;;  %1353 = vmatprep.subr.bf16.mxu1 %v1900_v24 }
 0x1cf   : > { %1311 = vmatpush2.bf16.msra.mxu0 %v1895_v3  ;;  %1354 = vmatpush2.bf16.msra.mxu1 %v1898_v25 }
 0x1d0   : > { %1312 = vmatprep.subr.bf16.mxu0 %v1903_v26  ;;  %1355 = vmatprep.subr.bf16.mxu1 %v1906_v61 }
 0x1d3   : > { %1313 = vmatpush2.bf16.msra.mxu0 %v1901_v0  ;;  %1356 = vmatpush2.bf16.msra.mxu1 %v1904_v27 }
 0x1d4   : > { %1314 = vmatprep.subr.bf16.mxu0 %v1909_v28  ;;  %1357 = vmatprep.subr.bf16.mxu1 %v1912_v29 }
 0x1d7   : > { %1315 = vmatpush2.bf16.msra.mxu0 %v1907_v32  ;;  %1358 = vmatpush2.bf16.msra.mxu1 %v1910_v33 }
 0x1da   : > { %1317 = vmatmul.mubr.bf16.vlgmr.msra.gmra.mxu0 %v2397_v30  ;;  %1360 = vmatmul.mubr.bf16.vlgmr.msra.gmra.mxu1 %v2399_v31 }
 0x25a   : > { %v1232_v37 = vpop.f32.mrf.mxu0  ;;  %v1275_v38 = vpop.f32.mrf.mxu1 }
 0x25b   : > { %v1233_v39 = vadd.f32 %v1232_v37, %v541_v35 }
 0x25c   : > { %v1234_v30 = vpop.f32.mrf.mxu0  ;;  %v1277_v40 = vpop.f32.mrf.mxu1 }
 0x25d   : > { %v1276_v31 = vadd.f32 %v1275_v38, %v1233_v39  ;;  %v1235_v41 = vadd.f32 %v1234_v30, %v545_v36 }
 0x25e   : > { %v1236_v42 = vpop.f32.mrf.mxu0  ;;  %v1279_v43 = vpop.f32.mrf.mxu1 }
 0x25f   : > { %1370 = vst [vmem:[%s2473_s16] sm:$0xff] %v1276_v31  ;;  %v1278_v57 = vadd.f32 %v1277_v40, %v1235_v41  ;;  %v1237_v44 = vadd.f32 %v1236_v42, %v541_v35 }
 0x260   : > { %v1238_v45 = vpop.f32.mrf.mxu0  ;;  %v1281_v47 = vpop.f32.mrf.mxu1 }
 0x261   : > { %1371 = vst [vmem:[%s2473_s16 + $0x8] sm:$0xff] %v1278_v57  ;;  %v1280_v50 = vadd.f32 %v1279_v43, %v1237_v44  ;;  %v1239_v46 = vadd.f32 %v1238_v45, %v545_v36 }
 0x263   : > { %1374 = vst [vmem:[%s2473_s16 + $0x20] sm:$0xff] %v1280_v50  ;;  %v1282_v48 = vadd.f32 %v1281_v47, %v1239_v46 }
 0x265   : > { %1375 = vst [vmem:[%s2473_s16 + $0x28] sm:$0xff] %v1282_v48 }
 0x266   : > { %v1400_v12 = vld [vmem:[%s2473_s16] sm:$0xff] (%p2535_p12) }
 0x267   : > { %1401 = vst [vmem:[%s1387_s12] sm:$0xff] (%p2535_p12), %v1400_v12 }
 0x268   : > { %v1402_v56 = vld [vmem:[%s2473_s16 + $0x8] sm:$0xff] (%p2535_p12) }
 0x269   : > { %1403 = vst [vmem:[%s1387_s12 + $0x8] sm:$0xff] (%p2535_p12), %v1402_v56 }
 0x26a   : > { %v1408_v14 = vld [vmem:[%s2473_s16 + $0x20] sm:$0xff] (%p2535_p12) }
 0x26b   : > { %1409 = vst [vmem:[%s1387_s12 + $0x60] sm:$0xff] (%p2535_p12), %v1408_v14 }
 0x26c   : > { %v1410_v15 = vld [vmem:[%s2473_s16 + $0x28] sm:$0xff] (%p2535_p12) }
 0x26d   : > { %1411 = vst [vmem:[%s1387_s12 + $0x68] sm:$0xff] (%p2535_p12), %v1410_v15 }
 0x29a   : > { %v1318_v59 = vpop.f32.mrf.mxu0  ;;  %v1361_v60 = vpop.f32.mrf.mxu1 }
 0x29b   : > { %v1319_v63 = vadd.f32 %v1318_v59, %v549_v49 }
 0x29c   : > { %v1320_v1 = vpop.f32.mrf.mxu0  ;;  %v1363_v2 = vpop.f32.mrf.mxu1 }
 0x29d   : > { %v1362_v4 = vadd.f32 %v1361_v60, %v1319_v63  ;;  %v1321_v5 = vadd.f32 %v1320_v1, %v553_v55 }
 0x29e   : > { %v1322_v6 = vpop.f32.mrf.mxu0  ;;  %v1365_v7 = vpop.f32.mrf.mxu1 }
 0x29f   : > { %1372 = vst [vmem:[%s2473_s16 + $0x10] sm:$0xff] %v1362_v4  ;;  %v1364_v9 = vadd.f32 %v1363_v2, %v1321_v5  ;;  %v1323_v8 = vadd.f32 %v1322_v6, %v549_v49 }
 0x2a0   : > { %v1324_v10 = vpop.f32.mrf.mxu0  ;;  %v1367_v53 = vpop.f32.mrf.mxu1 }
 0x2a1   : > { %1373 = vst [vmem:[%s2473_s16 + $0x18] sm:$0xff] %v1364_v9  ;;  %v1366_v11 = vadd.f32 %v1365_v7, %v1323_v8  ;;  %v1325_v58 = vadd.f32 %v1324_v10, %v553_v55  ;;  %1384 = sbr.rel (!%p2535_p12) target bundleno = 686 (0x2ae), region = 56 }
 0x2a3   : > { %1376 = vst [vmem:[%s2473_s16 + $0x30] sm:$0xff] %v1366_v11  ;;  %v1368_v51 = vadd.f32 %v1367_v53, %v1325_v58 }
 0x2a5   : > { %1377 = vst [vmem:[%s2473_s16 + $0x38] sm:$0xff] %v1368_v51 }
 0x2a6   : > { %v1404_v13 = vld [vmem:[%s2473_s16 + $0x10] sm:$0xff] }
 0x2a7   : > { %1405 = vst [vmem:[%s1387_s12 + $0x10] sm:$0xff] %v1404_v13 }
 0x2a8   : > { %v1406_v52 = vld [vmem:[%s2473_s16 + $0x18] sm:$0xff] }
 0x2a9   : > { %1407 = vst [vmem:[%s1387_s12 + $0x18] sm:$0xff] %v1406_v52 }
 0x2aa   : > { %v1412_v54 = vld [vmem:[%s2473_s16 + $0x30] sm:$0xff] }
 0x2ab   : > { %1413 = vst [vmem:[%s1387_s12 + $0x70] sm:$0xff] %v1412_v54 }
 0x2ac   : > { %v1414_v16 = vld [vmem:[%s2473_s16 + $0x38] sm:$0xff] }
 0x2ad   : > { %1415 = vst [vmem:[%s1387_s12 + $0x78] sm:$0xff] %v1414_v16 }
 0x2ae PF: > { %p14_p4 = scmp.ge.s32.totalorder %s2099_s23, 5   ;;  %s2536_s18 = smov %s2031_s19 }
 0x2af   : > { %s2537_s19 = smov %s2035_s20  ;;  %s2538_s20 = smov %s2109_s26 }
 0x2b0   : > { %s2539_s21 = smov %s2099_s23  ;;  %16 = sbr.rel (!%p14_p4) target bundleno = 3 (0x3), region = 113 }
 0x2b5   :  { %1431 = vsyncpa [#allocation3], 1 }
 0x2b6   :  { %1433 = vsyncpa [#allocation3 + $0x1], 1 }
 0x2b7   :  { %1434 = vsyncpa [#allocation5], 1 }

// kernel: transformer2_forward.102
= control target key start
LH: loop header
LB: loop body
LE: loop exit
PB: predicated region body
PF: predicated region fallthrough
CT: control target
= control target key end

     0   :  { %s2014_s0 = inlined_call_operand.vmem [shape: f32[16,512], index: 0, kind: input, shape index: {}]   ;;  %s2015_s3 = inlined_call_operand.vmem [shape: bf16[512,512], index: 3, kind: input, shape index: {}]   ;;  %s2016_s1 = inlined_call_operand.vmem [shape: f32[1,512], index: 1, kind: input, shape index: {}]   ;;  %s2017_s2 = inlined_call_operand.vmem [shape: f32[1,512], index: 2, kind: input, shape index: {}]   ;;  %s2018_s4 = inlined_call_operand.vmem [shape: f32[1,512], index: 4, kind: input, shape index: {}]   ;;  %s2019_s5 = inlined_call_operand.vmem [shape: f32[16,512], index: 5, kind: output, shape index: {}]  }
   0x1   :  { %v1476_v0 = vld [vmem:[%s2014_s0] sm:$0xff]  ;;  %v1481_v1 = vld [vmem:[%s2014_s0 + $0x8] sm:$0xff]  ;;  %v1486_v2 = vld [vmem:[%s2014_s0 + $0x10] sm:$0xff] }
   0x2   :  { %v30_v3 = vadd.f32 %v1481_v1, %v1476_v0  ;;  %v1493_v4 = vld [vmem:[%s2014_s0 + $0x20] sm:$0xff]  ;;  %v1498_v5 = vld [vmem:[%s2014_s0 + $0x28] sm:$0xff]  ;;  %v1503_v6 = vld [vmem:[%s2014_s0 + $0x18] sm:$0xff] }
   0x3   :  { %v1508_v7 = vld [vmem:[%s2014_s0 + $0x30] sm:$0xff]  ;;  %v35_v8 = vadd.f32 %v1498_v5, %v1493_v4  ;;  %v1516_v10 = vld [vmem:[%s2014_s0 + $0x38] sm:$0xff] }
   0x4   :  { %v31_v9 = vadd.f32 %v30_v3, %v1486_v2  ;;  %v1247_v14 = vld [vmem:[%s2015_s3 + $0xe4] ss:$16 sps:$4 sm:$0xff]   ;;  %v1251_v16 = vld [vmem:[%s2015_s3 + $0xe0] ss:$16 sps:$4 sm:$0xff]  }
   0x5   :  { %v36_v11 = vadd.f32 %v35_v8, %v1508_v7  ;;  %v1249_v15 = vld [vmem:[%s2015_s3 + $0x2e4] ss:$16 sps:$4 sm:$0xff]   ;;  %935 = vmatprep.subr.bf16.mxu0 %v1247_v14  ;;  %v1252_v17 = vld [vmem:[%s2015_s3 + $0x2e0] ss:$16 sps:$4 sm:$0xff]  }
   0x6   :  { %v32_v12 = vadd.f32 %v31_v9, %v1503_v6  ;;  %978 = vmatprep.subr.bf16.mxu1 %v1249_v15  ;;  %v1253_v18 = vld [vmem:[%s2015_s3 + $0xc4] ss:$16 sps:$4 sm:$0xff]   ;;  %936 = vmatpush1.bf16.msra.mxu0 %v1251_v16  ;;  %v1257_v20 = vld [vmem:[%s2015_s3 + $0xc0] ss:$16 sps:$4 sm:$0xff]  }
   0x7   :  { %v37_v13 = vadd.f32 %v36_v11, %v1516_v10  ;;  %979 = vmatpush1.bf16.msra.mxu1 %v1252_v17  ;;  %v1255_v19 = vld [vmem:[%s2015_s3 + $0x2c4] ss:$16 sps:$4 sm:$0xff]   ;;  %937 = vmatprep.subr.bf16.mxu0 %v1253_v18  ;;  %v1258_v21 = vld [vmem:[%s2015_s3 + $0x2c0] ss:$16 sps:$4 sm:$0xff]  }
   0x8   :  { %33 = vadd.xlane.f32.xlu0 %v32_v12  ;;  %980 = vmatprep.subr.bf16.mxu1 %v1255_v19  ;;  %v1259_v22 = vld [vmem:[%s2015_s3 + $0xa4] ss:$16 sps:$4 sm:$0xff]   ;;  %v1263_v24 = vld [vmem:[%s2015_s3 + $0xa0] ss:$16 sps:$4 sm:$0xff]  }
   0x9   :  { %v1261_v23 = vld [vmem:[%s2015_s3 + $0x2a4] ss:$16 sps:$4 sm:$0xff]   ;;  %v1264_v25 = vld [vmem:[%s2015_s3 + $0x2a0] ss:$16 sps:$4 sm:$0xff]  }
   0xa   :  { %938 = vmatpush1.bf16.msra.mxu0 %v1257_v20  ;;  %v1265_v26 = vld [vmem:[%s2015_s3 + $0x84] ss:$16 sps:$4 sm:$0xff]   ;;  %v1269_v28 = vld [vmem:[%s2015_s3 + $0x80] ss:$16 sps:$4 sm:$0xff]  }
   0xb   :  { %981 = vmatpush1.bf16.msra.mxu1 %v1258_v21  ;;  %939 = vmatprep.subr.bf16.mxu0 %v1259_v22  ;;  %v1267_v27 = vld [vmem:[%s2015_s3 + $0x284] ss:$16 sps:$4 sm:$0xff]   ;;  %v1270_v29 = vld [vmem:[%s2015_s3 + $0x280] ss:$16 sps:$4 sm:$0xff]  }
   0xc   :  { %38 = vadd.xlane.f32.xlu0 %v37_v13  ;;  %982 = vmatprep.subr.bf16.mxu1 %v1261_v23  ;;  %v1271_v30 = vld [vmem:[%s2015_s3 + $0x64] ss:$16 sps:$4 sm:$0xff]   ;;  %v1275_v32 = vld [vmem:[%s2015_s3 + $0x60] ss:$16 sps:$4 sm:$0xff]  }
   0xd   :  { %v1273_v31 = vld [vmem:[%s2015_s3 + $0x264] ss:$16 sps:$4 sm:$0xff]   ;;  %v1276_v33 = vld [vmem:[%s2015_s3 + $0x260] ss:$16 sps:$4 sm:$0xff]  }
   0xe   :  { %940 = vmatpush1.bf16.msra.mxu0 %v1263_v24  ;;  %v1277_v34 = vld [vmem:[%s2015_s3 + $0x44] ss:$16 sps:$4 sm:$0xff]   ;;  %v1281_v36 = vld [vmem:[%s2015_s3 + $0x40] ss:$16 sps:$4 sm:$0xff]  }
   0xf   :  { %983 = vmatpush1.bf16.msra.mxu1 %v1264_v25  ;;  %941 = vmatprep.subr.bf16.mxu0 %v1265_v26  ;;  %v1279_v35 = vld [vmem:[%s2015_s3 + $0x244] ss:$16 sps:$4 sm:$0xff]   ;;  %v1282_v37 = vld [vmem:[%s2015_s3 + $0x240] ss:$16 sps:$4 sm:$0xff]  }
  0x10   :  { %984 = vmatprep.subr.bf16.mxu1 %v1267_v27  ;;  %v1283_v38 = vld [vmem:[%s2015_s3 + $0x24] ss:$16 sps:$4 sm:$0xff]   ;;  %v1287_v40 = vld [vmem:[%s2015_s3 + $0x20] ss:$16 sps:$4 sm:$0xff]  }
  0x11   :  { %v1285_v39 = vld [vmem:[%s2015_s3 + $0x224] ss:$16 sps:$4 sm:$0xff]   ;;  %v1288_v41 = vld [vmem:[%s2015_s3 + $0x220] ss:$16 sps:$4 sm:$0xff]  }
  0x12   :  { %942 = vmatpush1.bf16.msra.mxu0 %v1269_v28  ;;  %v1289_v42 = vld [vmem:[%s2015_s3 + $0x4] ss:$16 sps:$4 sm:$0xff]   ;;  %v1293_v44 = vld [vmem:[%s2015_s3] ss:$16 sps:$4 sm:$0xff]  }
  0x13   :  { %985 = vmatpush1.bf16.msra.mxu1 %v1270_v29  ;;  %943 = vmatprep.subr.bf16.mxu0 %v1271_v30  ;;  %v1291_v43 = vld [vmem:[%s2015_s3 + $0x204] ss:$16 sps:$4 sm:$0xff]   ;;  %v1294_v45 = vld [vmem:[%s2015_s3 + $0x200] ss:$16 sps:$4 sm:$0xff]  }
  0x14   :  { %986 = vmatprep.subr.bf16.mxu1 %v1273_v31  ;;  %v1295_v46 = vld [vmem:[%s2015_s3 + $0x1e4] ss:$16 sps:$4 sm:$0xff]   ;;  %v1299_v48 = vld [vmem:[%s2015_s3 + $0x1e0] ss:$16 sps:$4 sm:$0xff]  }
  0x15   :  { %v1297_v47 = vld [vmem:[%s2015_s3 + $0x3e4] ss:$16 sps:$4 sm:$0xff]   ;;  %v1300_v49 = vld [vmem:[%s2015_s3 + $0x3e0] ss:$16 sps:$4 sm:$0xff]  }
  0x16   :  { %944 = vmatpush1.bf16.msra.mxu0 %v1275_v32  ;;  %v1303_v13 = vld [vmem:[%s2015_s3 + $0x3c4] ss:$16 sps:$4 sm:$0xff]   ;;  %v1305_v14 = vld [vmem:[%s2015_s3 + $0x1c0] ss:$16 sps:$4 sm:$0xff]  }
  0x17   :  { %987 = vmatpush1.bf16.msra.mxu1 %v1276_v33  ;;  %945 = vmatprep.subr.bf16.mxu0 %v1277_v34  ;;  %v1306_v15 = vld [vmem:[%s2015_s3 + $0x3c0] ss:$16 sps:$4 sm:$0xff]   ;;  %v1307_v16 = vld [vmem:[%s2015_s3 + $0x1a4] ss:$16 sps:$4 sm:$0xff]  }
  0x18   :  { %988 = vmatprep.subr.bf16.mxu1 %v1279_v35  ;;  %v1309_v17 = vld [vmem:[%s2015_s3 + $0x3a4] ss:$16 sps:$4 sm:$0xff]   ;;  %v1311_v18 = vld [vmem:[%s2015_s3 + $0x1a0] ss:$16 sps:$4 sm:$0xff]  }
  0x19   :  { %v1312_v19 = vld [vmem:[%s2015_s3 + $0x3a0] ss:$16 sps:$4 sm:$0xff]   ;;  %v1313_v20 = vld [vmem:[%s2015_s3 + $0x184] ss:$16 sps:$4 sm:$0xff]  }
  0x1a   :  { %946 = vmatpush1.bf16.msra.mxu0 %v1281_v36  ;;  %v1315_v21 = vld [vmem:[%s2015_s3 + $0x384] ss:$16 sps:$4 sm:$0xff]   ;;  %v1317_v22 = vld [vmem:[%s2015_s3 + $0x180] ss:$16 sps:$4 sm:$0xff]  }
  0x1b   :  { %989 = vmatpush1.bf16.msra.mxu1 %v1282_v37  ;;  %947 = vmatprep.subr.bf16.mxu0 %v1283_v38  ;;  %v1318_v23 = vld [vmem:[%s2015_s3 + $0x380] ss:$16 sps:$4 sm:$0xff]   ;;  %v1319_v24 = vld [vmem:[%s2015_s3 + $0x164] ss:$16 sps:$4 sm:$0xff]  }
  0x1c   :  { %990 = vmatprep.subr.bf16.mxu1 %v1285_v39  ;;  %v1321_v25 = vld [vmem:[%s2015_s3 + $0x364] ss:$16 sps:$4 sm:$0xff]   ;;  %v1323_v26 = vld [vmem:[%s2015_s3 + $0x160] ss:$16 sps:$4 sm:$0xff]  }
  0x1d   :  { %v1324_v27 = vld [vmem:[%s2015_s3 + $0x360] ss:$16 sps:$4 sm:$0xff]   ;;  %v1325_v28 = vld [vmem:[%s2015_s3 + $0x144] ss:$16 sps:$4 sm:$0xff]  }
  0x1e   :  { %948 = vmatpush1.bf16.msra.mxu0 %v1287_v40  ;;  %v1327_v29 = vld [vmem:[%s2015_s3 + $0x344] ss:$16 sps:$4 sm:$0xff]   ;;  %v1329_v30 = vld [vmem:[%s2015_s3 + $0x140] ss:$16 sps:$4 sm:$0xff]   ;;  %v1345_v40 = vld [vmem:[%s2015_s3 + $0xec] ss:$16 sps:$4 sm:$0xff]  }
  0x1f   :  { %991 = vmatpush1.bf16.msra.mxu1 %v1288_v41  ;;  %949 = vmatprep.subr.bf16.mxu0 %v1289_v42  ;;  %v1330_v31 = vld [vmem:[%s2015_s3 + $0x340] ss:$16 sps:$4 sm:$0xff]   ;;  %v1331_v32 = vld [vmem:[%s2015_s3 + $0x124] ss:$16 sps:$4 sm:$0xff]   ;;  %v1348_v41 = vld [vmem:[%s2015_s3 + $0x2ec] ss:$16 sps:$4 sm:$0xff]  }
  0x20   :  { %992 = vmatprep.subr.bf16.mxu1 %v1291_v43  ;;  %v1333_v33 = vld [vmem:[%s2015_s3 + $0x324] ss:$16 sps:$4 sm:$0xff]   ;;  %v1335_v34 = vld [vmem:[%s2015_s3 + $0x120] ss:$16 sps:$4 sm:$0xff]  }
  0x21   :  { %v1336_v35 = vld [vmem:[%s2015_s3 + $0x320] ss:$16 sps:$4 sm:$0xff]   ;;  %v1337_v36 = vld [vmem:[%s2015_s3 + $0x104] ss:$16 sps:$4 sm:$0xff]  }
  0x22   :  { %950 = vmatpush1.bf16.msra.mxu0 %v1293_v44  ;;  %v1339_v37 = vld [vmem:[%s2015_s3 + $0x304] ss:$16 sps:$4 sm:$0xff]   ;;  %v1341_v38 = vld [vmem:[%s2015_s3 + $0x100] ss:$16 sps:$4 sm:$0xff]  }
  0x23   :  { %993 = vmatpush1.bf16.msra.mxu1 %v1294_v45  ;;  %951 = vmatprep.subr.bf16.mxu0 %v1295_v46  ;;  %v1342_v39 = vld [vmem:[%s2015_s3 + $0x300] ss:$16 sps:$4 sm:$0xff]  }
  0x24   :  { %994 = vmatprep.subr.bf16.mxu1 %v1297_v47 }
  0x26   :  { %952 = vmatpush2.bf16.msra.mxu0 %v1299_v48  ;;  %v84_v48 = vlaneseq }
  0x27   :  { %995 = vmatpush2.bf16.msra.mxu1 %v1300_v49 }
  0x28   :  { %996 = vmatprep.subr.bf16.mxu1 %v1303_v13  ;;  %v85_v49 = vshrl.u32 %v84_v48, 7  ;;  %v1375_v48 = vld [vmem:[%s2015_s3 + $0x4c] ss:$16 sps:$4 sm:$0xff]  }
  0x2b   :  { %997 = vmatpush2.bf16.msra.mxu1 %v1306_v15 }
  0x2c   :  { %998 = vmatprep.subr.bf16.mxu1 %v1309_v17 }
  0x2f   :  { %999 = vmatpush2.bf16.msra.mxu1 %v1312_v19 }
  0x30   :  { %1000 = vmatprep.subr.bf16.mxu1 %v1315_v21 }
  0x33   :  { %1001 = vmatpush2.bf16.msra.mxu1 %v1318_v23 }
  0x34   :  { %1002 = vmatprep.subr.bf16.mxu1 %v1321_v25 }
  0x37   :  { %1003 = vmatpush2.bf16.msra.mxu1 %v1324_v27 }
  0x38   :  { %1004 = vmatprep.subr.bf16.mxu1 %v1327_v29 }
  0x3b   :  { %1005 = vmatpush2.bf16.msra.mxu1 %v1330_v31 }
  0x3c   :  { %1006 = vmatprep.subr.bf16.mxu1 %v1333_v33  ;;  %v1354_v33 = vld [vmem:[%s2015_s3 + $0x2cc] ss:$16 sps:$4 sm:$0xff]  }
  0x3f   :  { %1007 = vmatpush2.bf16.msra.mxu1 %v1336_v35  ;;  %v1352_v35 = vld [vmem:[%s2015_s3 + $0x2c8] ss:$16 sps:$4 sm:$0xff]  }
  0x40   :  { %1008 = vmatprep.subr.bf16.mxu1 %v1339_v37  ;;  %v1360_v37 = vld [vmem:[%s2015_s3 + $0x2ac] ss:$16 sps:$4 sm:$0xff]  }
  0x43   :  { %1009 = vmatpush2.bf16.msra.mxu1 %v1342_v39  ;;  %v1358_v39 = vld [vmem:[%s2015_s3 + $0x2a8] ss:$16 sps:$4 sm:$0xff]  }
  0x44   :  { %1064 = vmatprep.subr.bf16.mxu1 %v1348_v41  ;;  %v1366_v41 = vld [vmem:[%s2015_s3 + $0x28c] ss:$16 sps:$4 sm:$0xff]  }
  0x91   :  { %v34_v50 = vpop.xlane.xlu0 %33 }
  0x92   :  { %v41_v51 = vmul.f32 0.001953125, %v34_v50  ;;  %v1759_v50 = vsub.s32 1, %v85_v49 }
  0x94   :  { %v1630_v52 = vsub.f32 %v1476_v0, %v41_v51  ;;  %v1633_v53 = vsub.f32 %v1481_v1, %v41_v51  ;;  %v1636_v54 = vsub.f32 %v1486_v2, %v41_v51  ;;  %v1639_v56 = vsub.f32 %v1503_v6, %v41_v51 }
  0x95   :  { %v39_v55 = vpop.xlane.xlu0 %38  ;;  %v1761_v51 = vsub.s32 3, %v85_v49 }
  0x96   :  { %v42_v57 = vmul.f32 0.001953125, %v39_v55  ;;  %v51_v58 = vmul.f32 %v1630_v52, %v1630_v52  ;;  %v52_v59 = vmul.f32 %v1633_v53, %v1633_v53  ;;  %v53_v60 = vmul.f32 %v1636_v54, %v1636_v54  ;;  %v28_v55 = vld [vmem:[%s2016_s1] sm:$0xf] }
  0x97   :  { %v54_v1 = vmul.f32 %v1639_v56, %v1639_v56 }
  0x98   :  { %v1648_v61 = vsub.f32 %v1493_v4, %v42_v57  ;;  %v1651_v62 = vsub.f32 %v1498_v5, %v42_v57  ;;  %v59_v63 = vadd.f32 %v52_v59, %v51_v58  ;;  %v1654_v0 = vsub.f32 %v1508_v7, %v42_v57 }
  0x99   :  { %v1659_v3 = vsub.f32 %v1516_v10, %v42_v57  ;;  %v1301_v10 = vld [vmem:[%s2015_s3 + $0x1c4] ss:$16 sps:$4 sm:$0xff]   ;;  %v1766_v57 = vsub.s32 0, %v85_v49  ;;  %v1768_v58 = vsub.s32 2, %v85_v49  ;;  %v1378_v49 = vld [vmem:[%s2015_s3 + $0x24c] ss:$16 sps:$4 sm:$0xff]  }
  0x9a   :  { %v60_v2 = vadd.f32 %v59_v63, %v53_v60  ;;  %v55_v6 = vmul.f32 %v1648_v61, %v1648_v61  ;;  %v56_v4 = vmul.f32 %v1651_v62, %v1651_v62  ;;  %v57_v5 = vmul.f32 %v1654_v0, %v1654_v0  ;;  %953 = vmatprep.subr.bf16.mxu0 %v1301_v10  ;;  %v29_v60 = vld [vmem:[%s2017_s2] sm:$0xf] }
  0x9b   :  { %v58_v7 = vmul.f32 %v1659_v3, %v1659_v3  ;;  %954 = vmatpush2.bf16.msra.mxu0 %v1305_v14  ;;  %v124_v10 = vrot.slane %v29_v60, %v1768_v58 }
  0x9c   :  { %v61_v8 = vadd.f32 %v60_v2, %v54_v1  ;;  %v64_v9 = vadd.f32 %v56_v4, %v55_v6  ;;  %955 = vmatprep.subr.bf16.mxu0 %v1307_v16  ;;  %v91_v1 = vrot.slane %v28_v55, %v1759_v50  ;;  %v99_v6 = vrot.slane %v28_v55, %v1761_v51 }
  0x9e   :  { %62 = vadd.xlane.f32.xlu1 %v61_v8  ;;  %v65_v11 = vadd.f32 %v64_v9, %v57_v5  ;;  %v87_v8 = vrot.slane %v28_v55, %v1766_v57  ;;  %v95_v9 = vrot.slane %v28_v55, %v1768_v58  ;;  %v1373_v55 = vld [vmem:[%s2015_s3 + $0x48] ss:$16 sps:$4 sm:$0xff]  }
  0x9f   :  { %956 = vmatpush2.bf16.msra.mxu0 %v1311_v18 }
  0xa0   :  { %v66_v12 = vadd.f32 %v65_v11, %v58_v7  ;;  %957 = vmatprep.subr.bf16.mxu0 %v1313_v20  ;;  %v120_v11 = vrot.slane %v29_v60, %v1759_v50 }
  0xa2   :  { %67 = vadd.xlane.f32.xlu1 %v66_v12  ;;  %v128_v12 = vrot.slane %v29_v60, %v1761_v51 }
  0xa3   :  { %958 = vmatpush2.bf16.msra.mxu0 %v1317_v22 }
  0xa4   :  { %959 = vmatprep.subr.bf16.mxu0 %v1319_v24 }
  0xa7   :  { %960 = vmatpush2.bf16.msra.mxu0 %v1323_v26 }
  0xa8   :  { %961 = vmatprep.subr.bf16.mxu0 %v1325_v28 }
  0xab   :  { %962 = vmatpush2.bf16.msra.mxu0 %v1329_v30 }
  0xac   :  { %963 = vmatprep.subr.bf16.mxu0 %v1331_v32  ;;  %v1351_v32 = vld [vmem:[%s2015_s3 + $0xcc] ss:$16 sps:$4 sm:$0xff]  }
  0xaf   :  { %964 = vmatpush2.bf16.msra.mxu0 %v1335_v34  ;;  %v1349_v34 = vld [vmem:[%s2015_s3 + $0xc8] ss:$16 sps:$4 sm:$0xff]  }
  0xb0   :  { %965 = vmatprep.subr.bf16.mxu0 %v1337_v36  ;;  %v1357_v36 = vld [vmem:[%s2015_s3 + $0xac] ss:$16 sps:$4 sm:$0xff]  }
  0xb3   :  { %966 = vmatpush2.bf16.msra.mxu0 %v1341_v38  ;;  %v1355_v38 = vld [vmem:[%s2015_s3 + $0xa8] ss:$16 sps:$4 sm:$0xff]  }
  0xb4   :  { %1021 = vmatprep.subr.bf16.mxu0 %v1345_v40  ;;  %v1363_v40 = vld [vmem:[%s2015_s3 + $0x8c] ss:$16 sps:$4 sm:$0xff]  }
 0x127   :  { %v63_v42 = vpop.xlane.xlu1 %62 }
 0x128   :  { %v69_v43 = vmul.f32 0.001953125, %v63_v42  ;;  %v1361_v42 = vld [vmem:[%s2015_s3 + $0x88] ss:$16 sps:$4 sm:$0xff]  }
 0x12a   :  { %v71_v44 = vadd.f32 1e-05, %v69_v43  ;;  %v1364_v43 = vld [vmem:[%s2015_s3 + $0x288] ss:$16 sps:$4 sm:$0xff]  }
 0x12b   :  { %v68_v45 = vpop.xlane.xlu1 %67 }
 0x12c   :  { %1439 = vrsqrt.f32 %v71_v44  ;;  %v70_v46 = vmul.f32 0.001953125, %v68_v45  ;;  %v1369_v44 = vld [vmem:[%s2015_s3 + $0x6c] ss:$16 sps:$4 sm:$0xff]  }
 0x12d   :  { %v1372_v45 = vld [vmem:[%s2015_s3 + $0x26c] ss:$16 sps:$4 sm:$0xff]  }
 0x12e   :  { %v72_v47 = vadd.f32 1e-05, %v70_v46  ;;  %v1367_v46 = vld [vmem:[%s2015_s3 + $0x68] ss:$16 sps:$4 sm:$0xff]  }
 0x130   :  { %1441 = vrsqrt.f32 %v72_v47  ;;  %v1370_v47 = vld [vmem:[%s2015_s3 + $0x268] ss:$16 sps:$4 sm:$0xff]  }
 0x139   :  { %v1440_v59 = vpop.eup %1439 }
 0x13a   :  { %v76_v63 = vmul.f32 %v1440_v59, %v1633_v53  ;;  %v78_v2 = vmul.f32 %v1440_v59, %v1639_v56  ;;  %v75_v4 = vmul.f32 %v1440_v59, %v1630_v52  ;;  %v77_v5 = vmul.f32 %v1440_v59, %v1636_v54  ;;  %v1376_v59 = vld [vmem:[%s2015_s3 + $0x248] ss:$16 sps:$4 sm:$0xff]  }
 0x13b   :  { %v116_v53 = vrot.slane %v29_v60, %v1766_v57  ;;  %v1381_v60 = vld [vmem:[%s2015_s3 + $0x2c] ss:$16 sps:$4 sm:$0xff]  }
 0x13c   :  { %v105_v13 = vmul.f32 %v91_v1, %v76_v63  ;;  %v107_v14 = vmul.f32 %v99_v6, %v78_v2  ;;  %v104_v54 = vmul.f32 %v87_v8, %v75_v4  ;;  %v106_v17 = vmul.f32 %v95_v9, %v77_v5  ;;  %v1384_v63 = vld [vmem:[%s2015_s3 + $0x22c] ss:$16 sps:$4 sm:$0xff]   ;;  %v1382_v2 = vld [vmem:[%s2015_s3 + $0x228] ss:$16 sps:$4 sm:$0xff]  }
 0x13d   :  { %v1442_v7 = vpop.eup %1441  ;;  %v1390_v4 = vld [vmem:[%s2015_s3 + $0x20c] ss:$16 sps:$4 sm:$0xff]   ;;  %v1388_v5 = vld [vmem:[%s2015_s3 + $0x208] ss:$16 sps:$4 sm:$0xff]  }
 0x13e   :  { %v80_v56 = vmul.f32 %v1442_v7, %v1651_v62  ;;  %v82_v52 = vmul.f32 %v1442_v7, %v1659_v3  ;;  %v79_v15 = vmul.f32 %v1442_v7, %v1648_v61  ;;  %v81_v16 = vmul.f32 %v1442_v7, %v1654_v0  ;;  %v1343_v61 = vld [vmem:[%s2015_s3 + $0xe8] ss:$16 sps:$4 sm:$0xff]   ;;  %v1396_v7 = vld [vmem:[%s2015_s3 + $0x3ec] ss:$16 sps:$4 sm:$0xff]  }
 0x13f   :  { %v134_v22 = vadd.f32 %v120_v11, %v105_v13  ;;  %v136_v24 = vadd.f32 %v128_v12, %v107_v14  ;;  %v133_v26 = vadd.f32 %v116_v53, %v104_v54  ;;  %v135_v27 = vadd.f32 %v124_v10, %v106_v17  ;;  %v1346_v0 = vld [vmem:[%s2015_s3 + $0x2e8] ss:$16 sps:$4 sm:$0xff]   ;;  %v1408_v14 = vld [vmem:[%s2015_s3 + $0x3ac] ss:$16 sps:$4 sm:$0xff]  }
 0x140   :  { %v109_v18 = vmul.f32 %v91_v1, %v80_v56  ;;  %v111_v19 = vmul.f32 %v99_v6, %v82_v52  ;;  %v108_v20 = vmul.f32 %v87_v8, %v79_v15  ;;  %v110_v21 = vmul.f32 %v95_v9, %v81_v16  ;;  %v1379_v1 = vld [vmem:[%s2015_s3 + $0x28] ss:$16 sps:$4 sm:$0xff]   ;;  %v1387_v6 = vld [vmem:[%s2015_s3 + $0xc] ss:$16 sps:$4 sm:$0xff]  }
 0x141   :  { %v1385_v8 = vld [vmem:[%s2015_s3 + $0x8] ss:$16 sps:$4 sm:$0xff]   ;;  %v1393_v9 = vld [vmem:[%s2015_s3 + $0x1ec] ss:$16 sps:$4 sm:$0xff]  }
 0x142   :  { %v138_v23 = vadd.f32 %v120_v11, %v109_v18  ;;  %v140_v25 = vadd.f32 %v128_v12, %v111_v19  ;;  %v137_v62 = vadd.f32 %v116_v53, %v108_v20  ;;  %v139_v28 = vadd.f32 %v124_v10, %v110_v21  ;;  %v1391_v11 = vld [vmem:[%s2015_s3 + $0x1e8] ss:$16 sps:$4 sm:$0xff]   ;;  %v1399_v53 = vld [vmem:[%s2015_s3 + $0x1cc] ss:$16 sps:$4 sm:$0xff]  }
 0x143   :  { %v1394_v12 = vld [vmem:[%s2015_s3 + $0x3e8] ss:$16 sps:$4 sm:$0xff]   ;;  %v1402_v10 = vld [vmem:[%s2015_s3 + $0x3cc] ss:$16 sps:$4 sm:$0xff]  }
 0x144   :  { %v142_v3 = vpack.c.bf16 %v138_v23, %v134_v22  ;;  %v144_v29 = vpack.c.bf16 %v140_v25, %v136_v24  ;;  %v1795_v30 = vpack.c.bf16 %v137_v62, %v133_v26  ;;  %v1797_v31 = vpack.c.bf16 %v139_v28, %v135_v27  ;;  %v1397_v56 = vld [vmem:[%s2015_s3 + $0x1c8] ss:$16 sps:$4 sm:$0xff]   ;;  %v1405_v52 = vld [vmem:[%s2015_s3 + $0x1ac] ss:$16 sps:$4 sm:$0xff]  }
 0x145   :  { %v1400_v13 = vld [vmem:[%s2015_s3 + $0x3c8] ss:$16 sps:$4 sm:$0xff]   ;;  %v1411_v16 = vld [vmem:[%s2015_s3 + $0x18c] ss:$16 sps:$4 sm:$0xff]  }
 0x146   :  { %967 = vmatprep.mubr.bf16.mxu0 %v142_v3  ;;  %1010 = vmatprep.mubr.bf16.mxu1 %v144_v29  ;;  %v1403_v15 = vld [vmem:[%s2015_s3 + $0x1a8] ss:$16 sps:$4 sm:$0xff]   ;;  %v1414_v17 = vld [vmem:[%s2015_s3 + $0x38c] ss:$16 sps:$4 sm:$0xff]  }
 0x147   :  { %968 = vmatmul.mubr.bf16.vlgmr.msra.gmra.mxu0 %v1795_v30  ;;  %1011 = vmatmul.mubr.bf16.vlgmr.msra.gmra.mxu1 %v1797_v31  ;;  %v1406_v54 = vld [vmem:[%s2015_s3 + $0x3a8] ss:$16 sps:$4 sm:$0xff]   ;;  %v1417_v20 = vld [vmem:[%s2015_s3 + $0x16c] ss:$16 sps:$4 sm:$0xff]  }
 0x148   :  { %1022 = vmatpush1.bf16.msra.mxu0 %v1343_v61  ;;  %1065 = vmatpush1.bf16.msra.mxu1 %v1346_v0  ;;  %v1409_v18 = vld [vmem:[%s2015_s3 + $0x188] ss:$16 sps:$4 sm:$0xff]   ;;  %v1420_v21 = vld [vmem:[%s2015_s3 + $0x36c] ss:$16 sps:$4 sm:$0xff]  }
 0x149   :  { %1053 = vmatprep.mubr.bf16.mxu0 %v142_v3  ;;  %1096 = vmatprep.mubr.bf16.mxu1 %v144_v29  ;;  %v1412_v19 = vld [vmem:[%s2015_s3 + $0x388] ss:$16 sps:$4 sm:$0xff]   ;;  %v1423_v24 = vld [vmem:[%s2015_s3 + $0x14c] ss:$16 sps:$4 sm:$0xff]  }
 0x14a   :  { %1023 = vmatprep.subr.bf16.mxu0 %v1351_v32  ;;  %1066 = vmatprep.subr.bf16.mxu1 %v1354_v33  ;;  %v1415_v22 = vld [vmem:[%s2015_s3 + $0x168] ss:$16 sps:$4 sm:$0xff]   ;;  %v1426_v25 = vld [vmem:[%s2015_s3 + $0x34c] ss:$16 sps:$4 sm:$0xff]  }
 0x14b   :  { %v1418_v23 = vld [vmem:[%s2015_s3 + $0x368] ss:$16 sps:$4 sm:$0xff]   ;;  %v1429_v27 = vld [vmem:[%s2015_s3 + $0x12c] ss:$16 sps:$4 sm:$0xff]  }
 0x14c   :  { %1024 = vmatpush1.bf16.msra.mxu0 %v1349_v34  ;;  %1067 = vmatpush1.bf16.msra.mxu1 %v1352_v35  ;;  %v1421_v26 = vld [vmem:[%s2015_s3 + $0x148] ss:$16 sps:$4 sm:$0xff]   ;;  %v1432_v28 = vld [vmem:[%s2015_s3 + $0x32c] ss:$16 sps:$4 sm:$0xff]   ;;  %v273_v34 = vld [vmem:[%s2018_s4] sm:$0xf] }
 0x14d   :  { %1025 = vmatprep.subr.bf16.mxu0 %v1357_v36  ;;  %1068 = vmatprep.subr.bf16.mxu1 %v1360_v37  ;;  %v1424_v62 = vld [vmem:[%s2015_s3 + $0x348] ss:$16 sps:$4 sm:$0xff]   ;;  %v1435_v61 = vld [vmem:[%s2015_s3 + $0x10c] ss:$16 sps:$4 sm:$0xff]   ;;  %v278_v35 = vrot.slane %v273_v34, %v1766_v57  ;;  %v282_v36 = vrot.slane %v273_v34, %v1759_v50 }
 0x14e   :  { %v1427_v3 = vld [vmem:[%s2015_s3 + $0x128] ss:$16 sps:$4 sm:$0xff]   ;;  %v1438_v0 = vld [vmem:[%s2015_s3 + $0x30c] ss:$16 sps:$4 sm:$0xff]  }
 0x14f   :  { %v1430_v29 = vld [vmem:[%s2015_s3 + $0x328] ss:$16 sps:$4 sm:$0xff]  }
 0x150   :  { %1026 = vmatpush1.bf16.msra.mxu0 %v1355_v38  ;;  %1069 = vmatpush1.bf16.msra.mxu1 %v1358_v39  ;;  %v1433_v32 = vld [vmem:[%s2015_s3 + $0x108] ss:$16 sps:$4 sm:$0xff]  }
 0x151   :  { %1027 = vmatprep.subr.bf16.mxu0 %v1363_v40  ;;  %1070 = vmatprep.subr.bf16.mxu1 %v1366_v41  ;;  %v1436_v33 = vld [vmem:[%s2015_s3 + $0x308] ss:$16 sps:$4 sm:$0xff]  }
 0x154   :  { %1028 = vmatpush1.bf16.msra.mxu0 %v1361_v42  ;;  %1071 = vmatpush1.bf16.msra.mxu1 %v1364_v43 }
 0x155   :  { %1029 = vmatprep.subr.bf16.mxu0 %v1369_v44  ;;  %1072 = vmatprep.subr.bf16.mxu1 %v1372_v45 }
 0x158   :  { %1030 = vmatpush1.bf16.msra.mxu0 %v1367_v46  ;;  %1073 = vmatpush1.bf16.msra.mxu1 %v1370_v47 }
 0x159   :  { %1031 = vmatprep.subr.bf16.mxu0 %v1375_v48  ;;  %1074 = vmatprep.subr.bf16.mxu1 %v1378_v49  ;;  %v286_v49 = vrot.slane %v273_v34, %v1768_v58 }
 0x15c   :  { %1032 = vmatpush1.bf16.msra.mxu0 %v1373_v55  ;;  %1075 = vmatpush1.bf16.msra.mxu1 %v1376_v59  ;;  %v290_v55 = vrot.slane %v273_v34, %v1761_v51 }
 0x15d   :  { %1033 = vmatprep.subr.bf16.mxu0 %v1381_v60  ;;  %1076 = vmatprep.subr.bf16.mxu1 %v1384_v63 }
 0x160   :  { %1034 = vmatpush1.bf16.msra.mxu0 %v1379_v1  ;;  %1077 = vmatpush1.bf16.msra.mxu1 %v1382_v2 }
 0x161   :  { %1035 = vmatprep.subr.bf16.mxu0 %v1387_v6  ;;  %1078 = vmatprep.subr.bf16.mxu1 %v1390_v4 }
 0x164   :  { %1036 = vmatpush1.bf16.msra.mxu0 %v1385_v8  ;;  %1079 = vmatpush1.bf16.msra.mxu1 %v1388_v5 }
 0x165   :  { %1037 = vmatprep.subr.bf16.mxu0 %v1393_v9  ;;  %1080 = vmatprep.subr.bf16.mxu1 %v1396_v7 }
 0x168   :  { %1038 = vmatpush2.bf16.msra.mxu0 %v1391_v11  ;;  %1081 = vmatpush2.bf16.msra.mxu1 %v1394_v12 }
 0x169   :  { %1039 = vmatprep.subr.bf16.mxu0 %v1399_v53  ;;  %1082 = vmatprep.subr.bf16.mxu1 %v1402_v10 }
 0x16c   :  { %1040 = vmatpush2.bf16.msra.mxu0 %v1397_v56  ;;  %1083 = vmatpush2.bf16.msra.mxu1 %v1400_v13 }
 0x16d   :  { %1041 = vmatprep.subr.bf16.mxu0 %v1405_v52  ;;  %1084 = vmatprep.subr.bf16.mxu1 %v1408_v14 }
 0x170   :  { %1042 = vmatpush2.bf16.msra.mxu0 %v1403_v15  ;;  %1085 = vmatpush2.bf16.msra.mxu1 %v1406_v54 }
 0x171   :  { %1043 = vmatprep.subr.bf16.mxu0 %v1411_v16  ;;  %1086 = vmatprep.subr.bf16.mxu1 %v1414_v17 }
 0x174   :  { %1044 = vmatpush2.bf16.msra.mxu0 %v1409_v18  ;;  %1087 = vmatpush2.bf16.msra.mxu1 %v1412_v19 }
 0x175   :  { %1045 = vmatprep.subr.bf16.mxu0 %v1417_v20  ;;  %1088 = vmatprep.subr.bf16.mxu1 %v1420_v21 }
 0x178   :  { %1046 = vmatpush2.bf16.msra.mxu0 %v1415_v22  ;;  %1089 = vmatpush2.bf16.msra.mxu1 %v1418_v23 }
 0x179   :  { %1047 = vmatprep.subr.bf16.mxu0 %v1423_v24  ;;  %1090 = vmatprep.subr.bf16.mxu1 %v1426_v25 }
 0x17c   :  { %1048 = vmatpush2.bf16.msra.mxu0 %v1421_v26  ;;  %1091 = vmatpush2.bf16.msra.mxu1 %v1424_v62 }
 0x17d   :  { %1049 = vmatprep.subr.bf16.mxu0 %v1429_v27  ;;  %1092 = vmatprep.subr.bf16.mxu1 %v1432_v28 }
 0x180   :  { %1050 = vmatpush2.bf16.msra.mxu0 %v1427_v3  ;;  %1093 = vmatpush2.bf16.msra.mxu1 %v1430_v29 }
 0x181   :  { %1051 = vmatprep.subr.bf16.mxu0 %v1435_v61  ;;  %1094 = vmatprep.subr.bf16.mxu1 %v1438_v0 }
 0x184   :  { %1052 = vmatpush2.bf16.msra.mxu0 %v1433_v32  ;;  %1095 = vmatpush2.bf16.msra.mxu1 %v1436_v33 }
 0x187   :  { %1054 = vmatmul.mubr.bf16.vlgmr.msra.gmra.mxu0 %v1795_v30  ;;  %1097 = vmatmul.mubr.bf16.vlgmr.msra.gmra.mxu1 %v1797_v31 }
 0x207   :  { %v969_v37 = vpop.f32.mrf.mxu0  ;;  %v1012_v38 = vpop.f32.mrf.mxu1 }
 0x208   :  { %v970_v39 = vadd.f32 %v969_v37, %v278_v35 }
 0x209   :  { %v971_v40 = vpop.f32.mrf.mxu0  ;;  %v1014_v41 = vpop.f32.mrf.mxu1 }
 0x20a   :  { %v1013_v42 = vadd.f32 %v1012_v38, %v970_v39  ;;  %v972_v43 = vadd.f32 %v971_v40, %v282_v36 }
 0x20b   :  { %v973_v44 = vpop.f32.mrf.mxu0  ;;  %v1016_v45 = vpop.f32.mrf.mxu1 }
 0x20c   :  { %1107 = vst [vmem:[%s2019_s5] sm:$0xff] %v1013_v42  ;;  %v1015_v30 = vadd.f32 %v1014_v41, %v972_v43  ;;  %v974_v31 = vadd.f32 %v973_v44, %v278_v35 }
 0x20d   :  { %v975_v46 = vpop.f32.mrf.mxu0  ;;  %v1018_v47 = vpop.f32.mrf.mxu1 }
 0x20e   :  { %1108 = vst [vmem:[%s2019_s5 + $0x8] sm:$0xff] %v1015_v30  ;;  %v1017_v50 = vadd.f32 %v1016_v45, %v974_v31  ;;  %v976_v57 = vadd.f32 %v975_v46, %v282_v36 }
 0x210   :  { %1111 = vst [vmem:[%s2019_s5 + $0x20] sm:$0xff] %v1017_v50  ;;  %v1019_v48 = vadd.f32 %v1018_v47, %v976_v57 }
 0x212   :  { %1112 = vst [vmem:[%s2019_s5 + $0x28] sm:$0xff] %v1019_v48 }
 0x247   :  { %v1055_v59 = vpop.f32.mrf.mxu0  ;;  %v1098_v60 = vpop.f32.mrf.mxu1 }
 0x248   :  { %v1056_v63 = vadd.f32 %v1055_v59, %v286_v49 }
 0x249   :  { %v1057_v1 = vpop.f32.mrf.mxu0  ;;  %v1100_v2 = vpop.f32.mrf.mxu1 }
 0x24a   :  { %v1099_v6 = vadd.f32 %v1098_v60, %v1056_v63  ;;  %v1058_v4 = vadd.f32 %v1057_v1, %v290_v55 }
 0x24b   :  { %v1059_v8 = vpop.f32.mrf.mxu0  ;;  %v1102_v5 = vpop.f32.mrf.mxu1 }
 0x24c   :  { %1109 = vst [vmem:[%s2019_s5 + $0x10] sm:$0xff] %v1099_v6  ;;  %v1101_v9 = vadd.f32 %v1100_v2, %v1058_v4  ;;  %v1060_v7 = vadd.f32 %v1059_v8, %v286_v49 }
 0x24d   :  { %v1061_v11 = vpop.f32.mrf.mxu0  ;;  %v1104_v12 = vpop.f32.mrf.mxu1 }
 0x24e   :  { %1110 = vst [vmem:[%s2019_s5 + $0x18] sm:$0xff] %v1101_v9  ;;  %v1103_v51 = vadd.f32 %v1102_v5, %v1060_v7  ;;  %v1062_v58 = vadd.f32 %v1061_v11, %v290_v55 }
 0x250   :  { %1113 = vst [vmem:[%s2019_s5 + $0x30] sm:$0xff] %v1103_v51  ;;  %v1105_v53 = vadd.f32 %v1104_v12, %v1062_v58 }
 0x252   :  { %1114 = vst [vmem:[%s2019_s5 + $0x38] sm:$0xff] %v1105_v53 }

// kernel: transformer2_forward.100
= control target key start
LH: loop header
LB: loop body
LE: loop exit
PB: predicated region body
PF: predicated region fallthrough
CT: control target
= control target key end

     0   :  { %s1506_s18 = smov 0   ;;  %s1715_s0 = inlined_call_operand.vmem [shape: f32[2,1,8], index: 0, kind: input, shape index: {}]   ;;  %s1716_s1 = inlined_call_operand.vmem [shape: f32[1,8,8], index: 1, kind: input, shape index: {}]   ;;  %s1717_s2 = inlined_call_operand.vmem [shape: bf16[2,8,8,64], index: 2, kind: input, shape index: {}]   ;;  %s1718_s3 = inlined_call_operand.vmem [shape: bf16[2,8,8,64], index: 3, kind: input, shape index: {}]   ;;  %s1719_s4 = inlined_call_operand.vmem [shape: bf16[2,8,8,64], index: 4, kind: input, shape index: {}]   ;;  %s1720_s5 = inlined_call_operand.vmem [shape: f32[2,8,8,64], index: 5, kind: output, shape index: {}]  }
   0x1 LB: > { %s1260_s19 = sadd.s32 4294967295, %s1472_s18   ;;  %p1264_p0 = scmp.ge.s32.totalorder %s1472_s18, 1  ;;  %s1472_s18 = sphi %s1506_s18, %s15_s18  }
   0x2   : > { %p215_p1 = scmp.lt.s32.totalorder %s1472_s18, 3 }
   0x4   : > { %p216_p2 = pnand %p1264_p0, %p215_p1 }
   0x5   : > { %p256_p3 = scmp.lt.s32.totalorder (!%p216_p2), %s1260_s19, 1 }
   0x6   : > { %219 = sbr.rel (%p216_p2) target bundleno = 761 (0x2f9), region = 40 }
   0xb   : > { %v1474_v0 = vmov 0.0   ;;  %s1722_s19 = smov (!%p256_p3, %s1260_s19), 1  ;;  %vm1475_vm0 = vmmov 0   ;;  %vm313_vm1 = vcmask 523264   ;;  %v305_v26 = vld [vmem:[%s1716_s1] sm:$0xff]  ;;  %vm698_vm2 = vcmask 64512  }
   0xc   : > { %1328 = vmatprep.subr.bf16.mxu0 %v1474_v0  ;;  %1334 = vmatprep.subr.bf16.mxu1 %v1474_v0  ;;  %s1523_s20 = sshll.u32 %s1722_s19, 5  ;;  %s258_s29 = scalar_lea.vmem %s1715_s0, %s1722_s19  ;;  %vm798_vm3 = vcmask 1043456  }
   0xd   : > { %1330 = vmatprep.mubr.msk.bf16.mxu0 %vm1475_vm0, %v1474_v0  ;;  %1336 = vmatprep.mubr.msk.bf16.mxu1 %vm1475_vm0, %v1474_v0  ;;  %s1529_s23 = scalar_lea.vmem %s1718_s3, %s1523_s20  ;;  %s1539_s26 = scalar_lea.vmem %s1717_s2, %s1523_s20  ;;  %v1273_v25 = vld [vmem:[%s258_s29] ss:$0 sm:$0xff] }
   0xe   : > { %v288_v1 = vld [vmem:[%s1529_s23] sm:$0xf]  ;;  %v289_v2 = vld [vmem:[%s1529_s23 + $0x4] sm:$0xf]  ;;  %v290_v5 = vld [vmem:[%s1529_s23 + $0x8] sm:$0xf]  ;;  %v312_v27 = vadd.f32 %v1273_v25, %v305_v26  ;;  %s273_s9 = scalar_lea.vmem %s1719_s4, %s1523_s20 }
   0xf   : > { %v318_v3 = vsel %vm313_vm1, %v288_v1, 0  ;;  %v364_v4 = vsel %vm313_vm1, %v289_v2, 0  ;;  %v291_v6 = vld [vmem:[%s1529_s23 + $0xc] sm:$0xf]  ;;  %v280_v7 = vld [vmem:[%s1539_s26] sm:$0xf] }
  0x10   : > { %1329 = vmatpush3.bf16.xpose.msra.mxu0 %v318_v3  ;;  %1335 = vmatpush3.bf16.xpose.msra.mxu1 %v364_v4  ;;  %v281_v8 = vld [vmem:[%s1539_s26 + $0x4] sm:$0xf]  ;;  %v410_v9 = vsel %vm313_vm1, %v290_v5, 0  ;;  %v456_v10 = vsel %vm313_vm1, %v291_v6, 0  ;;  %v292_v11 = vld [vmem:[%s1529_s23 + $0x10] sm:$0xf] }
  0x11   : > { %1340 = vmatprep.subr.bf16.mxu0 %v1474_v0  ;;  %1346 = vmatprep.subr.bf16.mxu1 %v1474_v0  ;;  %v293_v12 = vld [vmem:[%s1529_s23 + $0x14] sm:$0xf]  ;;  %v282_v13 = vld [vmem:[%s1539_s26 + $0x8] sm:$0xf]  ;;  %v283_v14 = vld [vmem:[%s1539_s26 + $0xc] sm:$0xf] }
  0x12   : > { %v502_v15 = vsel %vm313_vm1, %v292_v11, 0  ;;  %v548_v16 = vsel %vm313_vm1, %v293_v12, 0  ;;  %v294_v17 = vld [vmem:[%s1529_s23 + $0x18] sm:$0xf]  ;;  %v295_v18 = vld [vmem:[%s1529_s23 + $0x1c] sm:$0xf] }
  0x13   : > { %v284_v19 = vld [vmem:[%s1539_s26 + $0x10] sm:$0xf]  ;;  %v285_v20 = vld [vmem:[%s1539_s26 + $0x14] sm:$0xf]  ;;  %v594_v21 = vsel %vm313_vm1, %v294_v17, 0  ;;  %v640_v22 = vsel %vm313_vm1, %v295_v18, 0 }
  0x14   : > { %v286_v23 = vld [vmem:[%s1539_s26 + $0x18] sm:$0xf]  ;;  %v287_v24 = vld [vmem:[%s1539_s26 + $0x1c] sm:$0xf]  ;;  %s1295_s10 = sshll.u32 %s1722_s19, 6 }
  0x15   : > { %s1694_s13 = scalar_lea.vmem %s1720_s5, %s1295_s10 }
  0x17   : > { %1331 = vmatmul.mubr.msk.bf16.vlgmr.msra.gmra.mxu0 %vm313_vm1, %v280_v7  ;;  %1337 = vmatmul.mubr.msk.bf16.vlgmr.msra.gmra.mxu1 %vm313_vm1, %v281_v8 }
  0x18   : > { %1341 = vmatpush3.bf16.xpose.msra.mxu0 %v410_v9  ;;  %1347 = vmatpush3.bf16.xpose.msra.mxu1 %v456_v10 }
  0x19   : > { %1342 = vmatprep.mubr.msk.bf16.mxu0 %vm1475_vm0, %v1474_v0  ;;  %1348 = vmatprep.mubr.msk.bf16.mxu1 %vm1475_vm0, %v1474_v0 }
  0x1a   : > { %1352 = vmatprep.subr.bf16.mxu0 %v1474_v0  ;;  %1358 = vmatprep.subr.bf16.mxu1 %v1474_v0 }
  0x1f   : > { %1343 = vmatmul.mubr.msk.bf16.vlgmr.msra.gmra.mxu0 %vm313_vm1, %v282_v13  ;;  %1349 = vmatmul.mubr.msk.bf16.vlgmr.msra.gmra.mxu1 %vm313_vm1, %v283_v14 }
  0x20   : > { %1353 = vmatpush3.bf16.xpose.msra.mxu0 %v502_v15  ;;  %1359 = vmatpush3.bf16.xpose.msra.mxu1 %v548_v16 }
  0x21   : > { %1354 = vmatprep.mubr.msk.bf16.mxu0 %vm1475_vm0, %v1474_v0  ;;  %1360 = vmatprep.mubr.msk.bf16.mxu1 %vm1475_vm0, %v1474_v0 }
  0x22   : > { %1364 = vmatprep.subr.bf16.mxu0 %v1474_v0  ;;  %1370 = vmatprep.subr.bf16.mxu1 %v1474_v0 }
  0x27   : > { %1355 = vmatmul.mubr.msk.bf16.vlgmr.msra.gmra.mxu0 %vm313_vm1, %v284_v19  ;;  %1361 = vmatmul.mubr.msk.bf16.vlgmr.msra.gmra.mxu1 %vm313_vm1, %v285_v20 }
  0x28   : > { %1365 = vmatpush3.bf16.xpose.msra.mxu0 %v594_v21  ;;  %1371 = vmatpush3.bf16.xpose.msra.mxu1 %v640_v22 }
  0x29   : > { %1366 = vmatprep.mubr.msk.bf16.mxu0 %vm1475_vm0, %v1474_v0  ;;  %1372 = vmatprep.mubr.msk.bf16.mxu1 %vm1475_vm0, %v1474_v0 }
  0x2a   : > { %1376 = vmatprep.subr.bf16.mxu0 %v1474_v0  ;;  %1382 = vmatprep.subr.bf16.mxu1 %v1474_v0 }
  0x2f   : > { %1367 = vmatmul.mubr.msk.bf16.vlgmr.msra.gmra.mxu0 %vm313_vm1, %v286_v23  ;;  %1373 = vmatmul.mubr.msk.bf16.vlgmr.msra.gmra.mxu1 %vm313_vm1, %v287_v24 }
  0x30   : > { %1378 = vmatprep.mubr.msk.bf16.mxu0 %vm1475_vm0, %v1474_v0  ;;  %1384 = vmatprep.mubr.msk.bf16.mxu1 %vm1475_vm0, %v1474_v0 }
  0xd7   : > { %v354_v28 = vpop.f32.mrf.mxu0  ;;  %v400_v29 = vpop.f32.mrf.mxu1 }
  0xd8   : > { %v682_v30 = vmul.f32 0.125, %v354_v28  ;;  %v683_v31 = vmul.f32 0.125, %v400_v29 }
  0xd9   : > { %v1332_v32 = vpop.f32.mrf.mxu0  ;;  %v1338_v33 = vpop.f32.mrf.mxu1 }
  0xda   : > { %v690_v34 = vadd.f32 %v682_v30, %v312_v27  ;;  %v1600_v35 = vadd.f32 %v683_v31, %v312_v27 }
  0xdb   : > { %v357_v36 = vpop.f32.mrf.mxu0  ;;  %v403_v37 = vpop.f32.mrf.mxu1 }
  0xdc   : > { %v699_v38 = vsel %vm698_vm2, %v690_v34, -inf  ;;  %v702_v41 = vsel %vm698_vm2, %v1600_v35, -inf }
  0xdd   : > { %v1333_v39 = vpop.f32.mrf.mxu0  ;;  %v1339_v40 = vpop.f32.mrf.mxu1  ;;  %700 = vmax.xlane.f32.xlu0 %v699_v38 }
  0xdf   : > { %v446_v42 = vpop.f32.mrf.mxu0  ;;  %v492_v43 = vpop.f32.mrf.mxu1 }
  0xe0   : > { %v684_v44 = vmul.f32 0.125, %v446_v42  ;;  %v685_v45 = vmul.f32 0.125, %v492_v43 }
  0xe1   : > { %v1344_v46 = vpop.f32.mrf.mxu0  ;;  %v1350_v47 = vpop.f32.mrf.mxu1  ;;  %703 = vmax.xlane.f32.xlu0 %v702_v41 }
  0xe2   : > { %v692_v48 = vadd.f32 %v684_v44, %v312_v27  ;;  %v693_v49 = vadd.f32 %v685_v45, %v312_v27 }
  0xe3   : > { %v449_v50 = vpop.f32.mrf.mxu0  ;;  %v495_v51 = vpop.f32.mrf.mxu1 }
  0xe4   : > { %v705_v52 = vsel %vm698_vm2, %v692_v48, -inf  ;;  %v708_v55 = vsel %vm698_vm2, %v693_v49, -inf }
  0xe5   : > { %v1345_v53 = vpop.f32.mrf.mxu0  ;;  %v1351_v54 = vpop.f32.mrf.mxu1  ;;  %706 = vmax.xlane.f32.xlu1 %v705_v52 }
  0xe7   : > { %v538_v56 = vpop.f32.mrf.mxu0  ;;  %v584_v57 = vpop.f32.mrf.mxu1 }
  0xe8   : > { %v686_v58 = vmul.f32 0.125, %v538_v56  ;;  %v687_v59 = vmul.f32 0.125, %v584_v57 }
  0xe9   : > { %v1356_v60 = vpop.f32.mrf.mxu0  ;;  %v1362_v61 = vpop.f32.mrf.mxu1  ;;  %709 = vmax.xlane.f32.xlu1 %v708_v55 }
  0xea   : > { %v695_v62 = vadd.f32 %v687_v59, %v312_v27  ;;  %v694_v63 = vadd.f32 %v686_v58, %v312_v27  ;;  %v296_v60 = vld [vmem:[%s273_s9] sm:$0xf]  ;;  %v297_v61 = vld [vmem:[%s273_s9 + $0x4] sm:$0xf] }
  0xeb   : > { %v541_v1 = vpop.f32.mrf.mxu0  ;;  %v587_v2 = vpop.f32.mrf.mxu1 }
  0xec   : > { %v714_v3 = vsel %vm698_vm2, %v695_v62, -inf  ;;  %v711_v4 = vsel %vm698_vm2, %v694_v63, -inf  ;;  %v846_v1 = vsel %vm798_vm3, %v297_v61, 0  ;;  %v299_v2 = vld [vmem:[%s273_s9 + $0xc] sm:$0xf] }
  0xed   : > { %v1357_v5 = vpop.f32.mrf.mxu0  ;;  %v1363_v6 = vpop.f32.mrf.mxu1  ;;  %715 = vmax.xlane.f32.xlu1 %v714_v3  ;;  %712 = vmax.xlane.f32.xlu0 %v711_v4  ;;  %v298_v3 = vld [vmem:[%s273_s9 + $0x8] sm:$0xf]  ;;  %v938_v4 = vsel %vm798_vm3, %v299_v2, 0 }
  0xee   : > { %1383 = vmatpush3.bf16.msra.mxu1 %v846_v1  ;;  %v892_v5 = vsel %vm798_vm3, %v298_v3, 0  ;;  %v300_v6 = vld [vmem:[%s273_s9 + $0x10] sm:$0xf] }
  0xef   : > { %v630_v7 = vpop.f32.mrf.mxu0  ;;  %v676_v8 = vpop.f32.mrf.mxu1  ;;  %1394 = vmatprep.subr.bf16.mxu1 %v1474_v0 }
  0xf0   : > { %v688_v9 = vmul.f32 0.125, %v630_v7  ;;  %v689_v10 = vmul.f32 0.125, %v676_v8  ;;  %v301_v7 = vld [vmem:[%s273_s9 + $0x14] sm:$0xf]  ;;  %v984_v8 = vsel %vm798_vm3, %v300_v6, 0 }
  0xf1   : > { %v1368_v11 = vpop.f32.mrf.mxu0  ;;  %v1374_v12 = vpop.f32.mrf.mxu1 }
  0xf2   : > { %v697_v13 = vadd.f32 %v689_v10, %v312_v27  ;;  %v696_v14 = vadd.f32 %v688_v9, %v312_v27  ;;  %v1030_v9 = vsel %vm798_vm3, %v301_v7, 0  ;;  %v302_v10 = vld [vmem:[%s273_s9 + $0x18] sm:$0xf]  ;;  %v303_v11 = vld [vmem:[%s273_s9 + $0x1c] sm:$0xf] }
  0xf3   : > { %v633_v15 = vpop.f32.mrf.mxu0  ;;  %v679_v16 = vpop.f32.mrf.mxu1  ;;  %v1076_v12 = vsel %vm798_vm3, %v302_v10, 0 }
  0xf4   : > { %v720_v17 = vsel %vm698_vm2, %v697_v13, -inf  ;;  %v717_v18 = vsel %vm698_vm2, %v696_v14, -inf }
  0xf5   : > { %v1369_v19 = vpop.f32.mrf.mxu0  ;;  %v1375_v20 = vpop.f32.mrf.mxu1  ;;  %721 = vmax.xlane.f32.xlu1 %v720_v17  ;;  %718 = vmax.xlane.f32.xlu0 %v717_v18 }
 0x166   : > { %v701_v21 = vpop.xlane.xlu0 %700 }
 0x167   : > { %v723_v22 = vsub.f32 %v690_v34, %v701_v21 }
 0x169   : > { %v731_v23 = vmul.f32 1.442695, %v723_v22 }
 0x16a   : > { %v704_v24 = vpop.xlane.xlu0 %703 }
 0x16b   : > { %1434 = vpow2.f32 %v731_v23  ;;  %v724_v25 = vsub.f32 %v1600_v35, %v704_v24 }
 0x16d   : > { %v733_v26 = vmul.f32 1.442695, %v724_v25 }
 0x16e   : > { %v707_v28 = vpop.xlane.xlu1 %706 }
 0x16f   : > { %1436 = vpow2.f32 %v733_v26  ;;  %v725_v27 = vsub.f32 %v692_v48, %v707_v28 }
 0x171   : > { %v735_v29 = vmul.f32 1.442695, %v725_v27 }
 0x172   : > { %v710_v30 = vpop.xlane.xlu1 %709 }
 0x173   : > { %1438 = vpow2.f32 %v735_v29  ;;  %v726_v31 = vsub.f32 %v693_v49, %v710_v30 }
 0x175   : > { %v737_v32 = vmul.f32 1.442695, %v726_v31 }
 0x176   : > { %v716_v33 = vpop.xlane.xlu1 %715  ;;  %v713_v36 = vpop.xlane.xlu0 %712 }
 0x177   : > { %1440 = vpow2.f32 %v737_v32  ;;  %v728_v37 = vsub.f32 %v695_v62, %v716_v33  ;;  %v727_v38 = vsub.f32 %v694_v63, %v713_v36  ;;  %v800_v63 = vsel %vm798_vm3, %v296_v60, 0 }
 0x178   : > { %v1612_v34 = vpop.eup %1434  ;;  %1377 = vmatpush3.bf16.msra.mxu0 %v800_v63 }
 0x179   : > { %v741_v39 = vmul.f32 1.442695, %v728_v37  ;;  %v739_v40 = vmul.f32 1.442695, %v727_v38  ;;  %v747_v35 = vsel %vm698_vm2, %v1612_v34, 0.0  ;;  %1388 = vmatprep.subr.bf16.mxu0 %v1474_v0 }
 0x17a   : > { %748 = vadd.xlane.f32.xlu0 %v747_v35 }
 0x17b   : > { %1442 = vpow2.f32 %v741_v39 }
 0x17c   : > { %v1616_v41 = vpop.eup %1436  ;;  %1444 = vpow2.f32 %v739_v40 }
 0x17d   : > { %v750_v42 = vsel %vm698_vm2, %v1616_v41, 0.0 }
 0x17e   : > { %v722_v43 = vpop.xlane.xlu1 %721  ;;  %751 = vadd.xlane.f32.xlu1 %v750_v42  ;;  %v719_v44 = vpop.xlane.xlu0 %718 }
 0x17f   : > { %v730_v45 = vsub.f32 %v697_v13, %v722_v43  ;;  %v729_v46 = vsub.f32 %v696_v14, %v719_v44  ;;  %v1122_v13 = vsel %vm798_vm3, %v303_v11, 0 }
 0x180   : > { %v1620_v47 = vpop.eup %1438 }
 0x181   : > { %v745_v48 = vmul.f32 1.442695, %v730_v45  ;;  %v743_v49 = vmul.f32 1.442695, %v729_v46  ;;  %v753_v50 = vsel %vm698_vm2, %v1620_v47, 0.0 }
 0x182   : > { %754 = vadd.xlane.f32.xlu0 %v753_v50 }
 0x183   : > { %1446 = vpow2.f32 %v745_v48 }
 0x184   : > { %v1624_v51 = vpop.eup %1440  ;;  %1448 = vpow2.f32 %v743_v49 }
 0x185   : > { %v756_v52 = vsel %vm698_vm2, %v1624_v51, 0.0 }
 0x186   : > { %757 = vadd.xlane.f32.xlu1 %v756_v52 }
 0x188   : > { %v1628_v53 = vpop.eup %1442 }
 0x189   : > { %v1630_v54 = vpop.eup %1444  ;;  %v762_v55 = vsel %vm698_vm2, %v1628_v53, 0.0 }
 0x18a   : > { %763 = vadd.xlane.f32.xlu1 %v762_v55  ;;  %v759_v56 = vsel %vm698_vm2, %v1630_v54, 0.0 }
 0x18b   : > { %760 = vadd.xlane.f32.xlu0 %v759_v56 }
 0x190   : > { %v1636_v57 = vpop.eup %1446 }
 0x191   : > { %v1642_v58 = vpop.eup %1448  ;;  %v768_v59 = vsel %vm698_vm2, %v1636_v57, 0.0 }
 0x192   : > { %769 = vadd.xlane.f32.xlu1 %v768_v59  ;;  %v765_v62 = vsel %vm698_vm2, %v1642_v58, 0.0 }
 0x193   : > { %766 = vadd.xlane.f32.xlu0 %v765_v62 }
 0x203   : > { %v749_v14 = vpop.xlane.xlu0 %748 }
 0x204   : > { %1450 = vrcp.f32 %v749_v14 }
 0x207   : > { %v752_v15 = vpop.xlane.xlu1 %751 }
 0x208   : > { %1452 = vrcp.f32 %v752_v15 }
 0x20b   : > { %v755_v16 = vpop.xlane.xlu0 %754 }
 0x20c   : > { %1454 = vrcp.f32 %v755_v16 }
 0x20f   : > { %v758_v17 = vpop.xlane.xlu1 %757 }
 0x210   : > { %1456 = vrcp.f32 %v758_v17 }
 0x211   : > { %v1451_v18 = vpop.eup %1450 }
 0x212   : > { %v779_v19 = vmul.f32 %v1451_v18, %v1612_v34 }
 0x213   : > { %v764_v20 = vpop.xlane.xlu1 %763 }
 0x214   : > { %1458 = vrcp.f32 %v764_v20  ;;  %v761_v21 = vpop.xlane.xlu0 %760  ;;  %v787_v22 = vpack.c.bf16 %v779_v19, %v779_v19 }
 0x215   : > { %v1453_v23 = vpop.eup %1452  ;;  %1460 = vrcp.f32 %v761_v21 }
 0x216   : > { %1379 = vmatmul.mubr.msk.bf16.vlgmr.msra.gmra.mxu0 %vm698_vm2, %v787_v22  ;;  %v780_v24 = vmul.f32 %v1453_v23, %v1616_v41 }
 0x217   : > { %1389 = vmatpush3.bf16.msra.mxu0 %v892_v5  ;;  %1390 = vmatprep.mubr.msk.bf16.mxu0 %vm1475_vm0, %v1474_v0 }
 0x218   : > { %v788_v25 = vpack.c.bf16 %v780_v24, %v780_v24  ;;  %1400 = vmatprep.subr.bf16.mxu0 %v1474_v0 }
 0x219   : > { %v1455_v26 = vpop.eup %1454 }
 0x21a   : > { %1385 = vmatmul.mubr.msk.bf16.vlgmr.msra.gmra.mxu1 %vm698_vm2, %v788_v25  ;;  %v781_v28 = vmul.f32 %v1455_v26, %v1620_v47 }
 0x21b   : > { %1395 = vmatpush3.bf16.msra.mxu1 %v938_v4  ;;  %v770_v27 = vpop.xlane.xlu1 %769  ;;  %1396 = vmatprep.mubr.msk.bf16.mxu1 %vm1475_vm0, %v1474_v0 }
 0x21c   : > { %1462 = vrcp.f32 %v770_v27  ;;  %v767_v29 = vpop.xlane.xlu0 %766  ;;  %v789_v30 = vpack.c.bf16 %v781_v28, %v781_v28  ;;  %1406 = vmatprep.subr.bf16.mxu1 %v1474_v0 }
 0x21d   : > { %v1457_v31 = vpop.eup %1456  ;;  %1464 = vrcp.f32 %v767_v29 }
 0x21e   : > { %1391 = vmatmul.mubr.msk.bf16.vlgmr.msra.gmra.mxu0 %vm698_vm2, %v789_v30  ;;  %v782_v32 = vmul.f32 %v1457_v31, %v1624_v51 }
 0x21f   : > { %1401 = vmatpush3.bf16.msra.mxu0 %v984_v8  ;;  %1402 = vmatprep.mubr.msk.bf16.mxu0 %vm1475_vm0, %v1474_v0 }
 0x220   : > { %v790_v33 = vpack.c.bf16 %v782_v32, %v782_v32  ;;  %1412 = vmatprep.subr.bf16.mxu0 %v1474_v0 }
 0x221   : > { %v1459_v36 = vpop.eup %1458 }
 0x222   : > { %v1461_v37 = vpop.eup %1460  ;;  %1397 = vmatmul.mubr.msk.bf16.vlgmr.msra.gmra.mxu1 %vm698_vm2, %v790_v33  ;;  %v784_v34 = vmul.f32 %v1459_v36, %v1628_v53 }
 0x223   : > { %1407 = vmatpush3.bf16.msra.mxu1 %v1030_v9  ;;  %v783_v38 = vmul.f32 %v1461_v37, %v1630_v54  ;;  %1408 = vmatprep.mubr.msk.bf16.mxu1 %vm1475_vm0, %v1474_v0 }
 0x224   : > { %1418 = vmatprep.subr.bf16.mxu1 %v1474_v0  ;;  %v792_v40 = vpack.c.bf16 %v784_v34, %v784_v34 }
 0x225   : > { %v791_v39 = vpack.c.bf16 %v783_v38, %v783_v38 }
 0x227   : > { %1403 = vmatmul.mubr.msk.bf16.vlgmr.msra.gmra.mxu0 %vm698_vm2, %v791_v39 }
 0x228   : > { %1413 = vmatpush3.bf16.msra.mxu0 %v1076_v12  ;;  %1414 = vmatprep.mubr.msk.bf16.mxu0 %vm1475_vm0, %v1474_v0 }
 0x229   : > { %v1463_v35 = vpop.eup %1462 }
 0x22a   : > { %v1465_v41 = vpop.eup %1464  ;;  %1409 = vmatmul.mubr.msk.bf16.vlgmr.msra.gmra.mxu1 %vm698_vm2, %v792_v40  ;;  %v786_v43 = vmul.f32 %v1463_v35, %v1636_v57 }
 0x22b   : > { %1419 = vmatpush3.bf16.msra.mxu1 %v1122_v13  ;;  %v785_v42 = vmul.f32 %v1465_v41, %v1642_v58  ;;  %1420 = vmatprep.mubr.msk.bf16.mxu1 %vm1475_vm0, %v1474_v0 }
 0x22c   : > { %v794_v45 = vpack.c.bf16 %v786_v43, %v786_v43 }
 0x22d   : > { %v793_v44 = vpack.c.bf16 %v785_v42, %v785_v42 }
 0x22f   : > { %1415 = vmatmul.mubr.msk.bf16.vlgmr.msra.gmra.mxu0 %vm698_vm2, %v793_v44 }
 0x232   : > { %1421 = vmatmul.mubr.msk.bf16.vlgmr.msra.gmra.mxu1 %vm698_vm2, %v794_v45 }
 0x2d6   : > { %v836_v46 = vpop.f32.mrf.mxu0 }
 0x2d7   : > { %1164 = vst.msk [vmem:[%s1694_s13] sm:$0xff] %vm313_vm1, %v836_v46 }
 0x2d8   : > { %v1380_v0 = vpop.f32.mrf.mxu0 }
 0x2da   : > { %v839_v47 = vpop.f32.mrf.mxu0  ;;  %v882_v48 = vpop.f32.mrf.mxu1 }
 0x2db   : > { %1165 = vst.msk [vmem:[%s1694_s13 + $0x8] sm:$0xff] %vm313_vm1, %v882_v48 }
 0x2dc   : > { %v1381_v49 = vpop.f32.mrf.mxu0  ;;  %v1386_v50 = vpop.f32.mrf.mxu1 }
 0x2de   : > { %v885_v51 = vpop.f32.mrf.mxu1  ;;  %v928_v52 = vpop.f32.mrf.mxu0 }
 0x2df   : > { %1166 = vst.msk [vmem:[%s1694_s13 + $0x10] sm:$0xff] %vm313_vm1, %v928_v52 }
 0x2e0   : > { %v1387_v53 = vpop.f32.mrf.mxu1  ;;  %v1392_v54 = vpop.f32.mrf.mxu0 }
 0x2e2   : > { %v931_v55 = vpop.f32.mrf.mxu0  ;;  %v974_v56 = vpop.f32.mrf.mxu1 }
 0x2e3   : > { %1167 = vst.msk [vmem:[%s1694_s13 + $0x18] sm:$0xff] %vm313_vm1, %v974_v56 }
 0x2e4   : > { %v1393_v57 = vpop.f32.mrf.mxu0  ;;  %v1398_v58 = vpop.f32.mrf.mxu1 }
 0x2e6   : > { %v977_v59 = vpop.f32.mrf.mxu1 }
 0x2e7   : > { %v1020_v60 = vpop.f32.mrf.mxu0 }
 0x2e8   : > { %1168 = vst.msk [vmem:[%s1694_s13 + $0x20] sm:$0xff] %vm313_vm1, %v1020_v60  ;;  %v1399_v61 = vpop.f32.mrf.mxu1 }
 0x2e9   : > { %v1404_v62 = vpop.f32.mrf.mxu0 }
 0x2ea   : > { %v1066_v63 = vpop.f32.mrf.mxu1 }
 0x2eb   : > { %v1023_v1 = vpop.f32.mrf.mxu0  ;;  %1169 = vst.msk [vmem:[%s1694_s13 + $0x28] sm:$0xff] %vm313_vm1, %v1066_v63 }
 0x2ec   : > { %v1410_v2 = vpop.f32.mrf.mxu1 }
 0x2ed   : > { %v1405_v3 = vpop.f32.mrf.mxu0 }
 0x2ee   : > { %v1069_v4 = vpop.f32.mrf.mxu1 }
 0x2ef   : > { %v1112_v5 = vpop.f32.mrf.mxu0 }
 0x2f0   : > { %1170 = vst.msk [vmem:[%s1694_s13 + $0x30] sm:$0xff] %vm313_vm1, %v1112_v5  ;;  %v1411_v6 = vpop.f32.mrf.mxu1 }
 0x2f1   : > { %v1416_v7 = vpop.f32.mrf.mxu0 }
 0x2f2   : > { %v1158_v8 = vpop.f32.mrf.mxu1 }
 0x2f3   : > { %v1115_v9 = vpop.f32.mrf.mxu0  ;;  %1171 = vst.msk [vmem:[%s1694_s13 + $0x38] sm:$0xff] %vm313_vm1, %v1158_v8 }
 0x2f4   : > { %v1422_v10 = vpop.f32.mrf.mxu1 }
 0x2f5   : > { %v1417_v11 = vpop.f32.mrf.mxu0 }
 0x2f6   : > { %v1161_v12 = vpop.f32.mrf.mxu1 }
 0x2f8   : > { %v1423_v13 = vpop.f32.mrf.mxu1 }
 0x2f9 PF: > { %s15_s18 = sadd.s32 1, %s1472_s18  }
 0x2fa   : > { %p12_p4 = scmp.ge.s32.totalorder %s15_s18, 4  }
 0x2fc   :  { %14 = sbr.rel (!%p12_p4) target bundleno = 1 (0x1), region = 79 }

// kernel: transformer2_forward.101
= control target key start
LH: loop header
LB: loop body
LE: loop exit
PB: predicated region body
PF: predicated region fallthrough
CT: control target
= control target key end

     0   :  { %s1839_s1 = inlined_call_operand.vmem [shape: bf16[512,512], index: 1, kind: input, shape index: {}]   ;;  %s1840_s0 = inlined_call_operand.vmem [shape: f32[16,512], index: 0, kind: input, shape index: {}]   ;;  %s1841_s2 = inlined_call_operand.vmem [shape: f32[1,512], index: 2, kind: input, shape index: {}]   ;;  %s1842_s3 = inlined_call_operand.vmem [shape: f32[16,512], index: 3, kind: input, shape index: {}]   ;;  %s1843_s4 = inlined_call_operand.vmem [shape: f32[16,512], index: 4, kind: output, shape index: {}]  }
   0x1   :  { %v1155_v0 = vld [vmem:[%s1839_s1 + $0xe4] ss:$16 sps:$4 sm:$0xff]   ;;  %v1159_v2 = vld [vmem:[%s1839_s1 + $0xe0] ss:$16 sps:$4 sm:$0xff]   ;;  %v26_v46 = vld [vmem:[%s1840_s0 + $0x8] sm:$0xff] }
   0x2   :  { %v1157_v1 = vld [vmem:[%s1839_s1 + $0x2e4] ss:$16 sps:$4 sm:$0xff]   ;;  %805 = vmatprep.subr.bf16.mxu0 %v1155_v0  ;;  %v1160_v3 = vld [vmem:[%s1839_s1 + $0x2e0] ss:$16 sps:$4 sm:$0xff]   ;;  %v30_v47 = vld [vmem:[%s1840_s0 + $0x28] sm:$0xff] }
   0x3   :  { %848 = vmatprep.subr.bf16.mxu1 %v1157_v1  ;;  %v1161_v4 = vld [vmem:[%s1839_s1 + $0xc4] ss:$16 sps:$4 sm:$0xff]   ;;  %806 = vmatpush1.bf16.msra.mxu0 %v1159_v2  ;;  %v1165_v6 = vld [vmem:[%s1839_s1 + $0xc0] ss:$16 sps:$4 sm:$0xff]   ;;  %v28_v48 = vld [vmem:[%s1840_s0 + $0x18] sm:$0xff]  ;;  %v34_v53 = vpack.c.bf16 %v30_v47, %v26_v46 }
   0x4   :  { %849 = vmatpush1.bf16.msra.mxu1 %v1160_v3  ;;  %v1163_v5 = vld [vmem:[%s1839_s1 + $0x2c4] ss:$16 sps:$4 sm:$0xff]   ;;  %807 = vmatprep.subr.bf16.mxu0 %v1161_v4  ;;  %v1166_v7 = vld [vmem:[%s1839_s1 + $0x2c0] ss:$16 sps:$4 sm:$0xff]   ;;  %v32_v49 = vld [vmem:[%s1840_s0 + $0x38] sm:$0xff] }
   0x5   :  { %850 = vmatprep.subr.bf16.mxu1 %v1163_v5  ;;  %v1167_v8 = vld [vmem:[%s1839_s1 + $0xa4] ss:$16 sps:$4 sm:$0xff]   ;;  %v1171_v10 = vld [vmem:[%s1839_s1 + $0xa0] ss:$16 sps:$4 sm:$0xff]   ;;  %v36_v54 = vpack.c.bf16 %v32_v49, %v28_v48  ;;  %837 = vmatprep.mubr.bf16.mxu0 %v34_v53  ;;  %v1299_v46 = vld [vmem:[%s1839_s1 + $0x1e8] ss:$16 sps:$4 sm:$0xff]  }
   0x6   :  { %v1169_v9 = vld [vmem:[%s1839_s1 + $0x2a4] ss:$16 sps:$4 sm:$0xff]   ;;  %v1172_v11 = vld [vmem:[%s1839_s1 + $0x2a0] ss:$16 sps:$4 sm:$0xff]   ;;  %v1302_v47 = vld [vmem:[%s1839_s1 + $0x3e8] ss:$16 sps:$4 sm:$0xff]  }
   0x7   :  { %808 = vmatpush1.bf16.msra.mxu0 %v1165_v6  ;;  %v1173_v12 = vld [vmem:[%s1839_s1 + $0x84] ss:$16 sps:$4 sm:$0xff]   ;;  %v1177_v14 = vld [vmem:[%s1839_s1 + $0x80] ss:$16 sps:$4 sm:$0xff]   ;;  %880 = vmatprep.mubr.bf16.mxu1 %v36_v54  ;;  %v1307_v48 = vld [vmem:[%s1839_s1 + $0x1cc] ss:$16 sps:$4 sm:$0xff]  }
   0x8   :  { %851 = vmatpush1.bf16.msra.mxu1 %v1166_v7  ;;  %809 = vmatprep.subr.bf16.mxu0 %v1167_v8  ;;  %v1175_v13 = vld [vmem:[%s1839_s1 + $0x284] ss:$16 sps:$4 sm:$0xff]   ;;  %v1178_v15 = vld [vmem:[%s1839_s1 + $0x280] ss:$16 sps:$4 sm:$0xff]   ;;  %v1310_v49 = vld [vmem:[%s1839_s1 + $0x3cc] ss:$16 sps:$4 sm:$0xff]  }
   0x9   :  { %852 = vmatprep.subr.bf16.mxu1 %v1169_v9  ;;  %v1179_v16 = vld [vmem:[%s1839_s1 + $0x64] ss:$16 sps:$4 sm:$0xff]   ;;  %v1183_v18 = vld [vmem:[%s1839_s1 + $0x60] ss:$16 sps:$4 sm:$0xff]  }
   0xa   :  { %v1181_v17 = vld [vmem:[%s1839_s1 + $0x264] ss:$16 sps:$4 sm:$0xff]   ;;  %v1184_v19 = vld [vmem:[%s1839_s1 + $0x260] ss:$16 sps:$4 sm:$0xff]  }
   0xb   :  { %810 = vmatpush1.bf16.msra.mxu0 %v1171_v10  ;;  %v1185_v20 = vld [vmem:[%s1839_s1 + $0x44] ss:$16 sps:$4 sm:$0xff]   ;;  %v1189_v22 = vld [vmem:[%s1839_s1 + $0x40] ss:$16 sps:$4 sm:$0xff]   ;;  %v1253_v10 = vld [vmem:[%s1839_s1 + $0xec] ss:$16 sps:$4 sm:$0xff]  }
   0xc   :  { %853 = vmatpush1.bf16.msra.mxu1 %v1172_v11  ;;  %811 = vmatprep.subr.bf16.mxu0 %v1173_v12  ;;  %v1187_v21 = vld [vmem:[%s1839_s1 + $0x244] ss:$16 sps:$4 sm:$0xff]   ;;  %v1190_v23 = vld [vmem:[%s1839_s1 + $0x240] ss:$16 sps:$4 sm:$0xff]   ;;  %v1256_v11 = vld [vmem:[%s1839_s1 + $0x2ec] ss:$16 sps:$4 sm:$0xff]  }
   0xd   :  { %854 = vmatprep.subr.bf16.mxu1 %v1175_v13  ;;  %v1191_v24 = vld [vmem:[%s1839_s1 + $0x24] ss:$16 sps:$4 sm:$0xff]   ;;  %v1195_v26 = vld [vmem:[%s1839_s1 + $0x20] ss:$16 sps:$4 sm:$0xff]  }
   0xe   :  { %v1193_v25 = vld [vmem:[%s1839_s1 + $0x224] ss:$16 sps:$4 sm:$0xff]   ;;  %v1196_v27 = vld [vmem:[%s1839_s1 + $0x220] ss:$16 sps:$4 sm:$0xff]  }
   0xf   :  { %812 = vmatpush1.bf16.msra.mxu0 %v1177_v14  ;;  %v1197_v28 = vld [vmem:[%s1839_s1 + $0x4] ss:$16 sps:$4 sm:$0xff]   ;;  %v1201_v30 = vld [vmem:[%s1839_s1] ss:$16 sps:$4 sm:$0xff]   ;;  %v1251_v14 = vld [vmem:[%s1839_s1 + $0xe8] ss:$16 sps:$4 sm:$0xff]  }
  0x10   :  { %855 = vmatpush1.bf16.msra.mxu1 %v1178_v15  ;;  %813 = vmatprep.subr.bf16.mxu0 %v1179_v16  ;;  %v1199_v29 = vld [vmem:[%s1839_s1 + $0x204] ss:$16 sps:$4 sm:$0xff]   ;;  %v1202_v31 = vld [vmem:[%s1839_s1 + $0x200] ss:$16 sps:$4 sm:$0xff]   ;;  %v1254_v15 = vld [vmem:[%s1839_s1 + $0x2e8] ss:$16 sps:$4 sm:$0xff]  }
  0x11   :  { %856 = vmatprep.subr.bf16.mxu1 %v1181_v17  ;;  %v1203_v32 = vld [vmem:[%s1839_s1 + $0x1e4] ss:$16 sps:$4 sm:$0xff]   ;;  %v1207_v34 = vld [vmem:[%s1839_s1 + $0x1e0] ss:$16 sps:$4 sm:$0xff]   ;;  %v1259_v16 = vld [vmem:[%s1839_s1 + $0xcc] ss:$16 sps:$4 sm:$0xff]  }
  0x12   :  { %v1205_v33 = vld [vmem:[%s1839_s1 + $0x3e4] ss:$16 sps:$4 sm:$0xff]   ;;  %v1208_v35 = vld [vmem:[%s1839_s1 + $0x3e0] ss:$16 sps:$4 sm:$0xff]   ;;  %v1262_v17 = vld [vmem:[%s1839_s1 + $0x2cc] ss:$16 sps:$4 sm:$0xff]  }
  0x13   :  { %814 = vmatpush1.bf16.msra.mxu0 %v1183_v18  ;;  %v1209_v36 = vld [vmem:[%s1839_s1 + $0x1c4] ss:$16 sps:$4 sm:$0xff]   ;;  %v1213_v38 = vld [vmem:[%s1839_s1 + $0x1c0] ss:$16 sps:$4 sm:$0xff]   ;;  %v1257_v18 = vld [vmem:[%s1839_s1 + $0xc8] ss:$16 sps:$4 sm:$0xff]  }
  0x14   :  { %857 = vmatpush1.bf16.msra.mxu1 %v1184_v19  ;;  %815 = vmatprep.subr.bf16.mxu0 %v1185_v20  ;;  %v1211_v37 = vld [vmem:[%s1839_s1 + $0x3c4] ss:$16 sps:$4 sm:$0xff]   ;;  %v1214_v39 = vld [vmem:[%s1839_s1 + $0x3c0] ss:$16 sps:$4 sm:$0xff]   ;;  %v1260_v19 = vld [vmem:[%s1839_s1 + $0x2c8] ss:$16 sps:$4 sm:$0xff]  }
  0x15   :  { %858 = vmatprep.subr.bf16.mxu1 %v1187_v21  ;;  %v1215_v40 = vld [vmem:[%s1839_s1 + $0x1a4] ss:$16 sps:$4 sm:$0xff]   ;;  %v1219_v42 = vld [vmem:[%s1839_s1 + $0x1a0] ss:$16 sps:$4 sm:$0xff]   ;;  %v1265_v20 = vld [vmem:[%s1839_s1 + $0xac] ss:$16 sps:$4 sm:$0xff]  }
  0x16   :  { %v1217_v41 = vld [vmem:[%s1839_s1 + $0x3a4] ss:$16 sps:$4 sm:$0xff]   ;;  %v1220_v43 = vld [vmem:[%s1839_s1 + $0x3a0] ss:$16 sps:$4 sm:$0xff]   ;;  %v1268_v21 = vld [vmem:[%s1839_s1 + $0x2ac] ss:$16 sps:$4 sm:$0xff]  }
  0x17   :  { %816 = vmatpush1.bf16.msra.mxu0 %v1189_v22  ;;  %v1221_v44 = vld [vmem:[%s1839_s1 + $0x184] ss:$16 sps:$4 sm:$0xff]   ;;  %v1225_v50 = vld [vmem:[%s1839_s1 + $0x180] ss:$16 sps:$4 sm:$0xff]   ;;  %v1263_v22 = vld [vmem:[%s1839_s1 + $0xa8] ss:$16 sps:$4 sm:$0xff]  }
  0x18   :  { %859 = vmatpush1.bf16.msra.mxu1 %v1190_v23  ;;  %817 = vmatprep.subr.bf16.mxu0 %v1191_v24  ;;  %v1223_v45 = vld [vmem:[%s1839_s1 + $0x384] ss:$16 sps:$4 sm:$0xff]   ;;  %v1226_v51 = vld [vmem:[%s1839_s1 + $0x380] ss:$16 sps:$4 sm:$0xff]   ;;  %v1266_v23 = vld [vmem:[%s1839_s1 + $0x2a8] ss:$16 sps:$4 sm:$0xff]  }
  0x19   :  { %860 = vmatprep.subr.bf16.mxu1 %v1193_v25  ;;  %v1227_v52 = vld [vmem:[%s1839_s1 + $0x164] ss:$16 sps:$4 sm:$0xff]   ;;  %v1231_v56 = vld [vmem:[%s1839_s1 + $0x160] ss:$16 sps:$4 sm:$0xff]   ;;  %v1271_v24 = vld [vmem:[%s1839_s1 + $0x8c] ss:$16 sps:$4 sm:$0xff]  }
  0x1a   :  { %v1229_v55 = vld [vmem:[%s1839_s1 + $0x364] ss:$16 sps:$4 sm:$0xff]   ;;  %v1232_v57 = vld [vmem:[%s1839_s1 + $0x360] ss:$16 sps:$4 sm:$0xff]   ;;  %v1274_v25 = vld [vmem:[%s1839_s1 + $0x28c] ss:$16 sps:$4 sm:$0xff]  }
  0x1b   :  { %818 = vmatpush1.bf16.msra.mxu0 %v1195_v26  ;;  %v1233_v58 = vld [vmem:[%s1839_s1 + $0x144] ss:$16 sps:$4 sm:$0xff]   ;;  %v1237_v60 = vld [vmem:[%s1839_s1 + $0x140] ss:$16 sps:$4 sm:$0xff]   ;;  %v1269_v26 = vld [vmem:[%s1839_s1 + $0x88] ss:$16 sps:$4 sm:$0xff]  }
  0x1c   :  { %861 = vmatpush1.bf16.msra.mxu1 %v1196_v27  ;;  %819 = vmatprep.subr.bf16.mxu0 %v1197_v28  ;;  %v1235_v59 = vld [vmem:[%s1839_s1 + $0x344] ss:$16 sps:$4 sm:$0xff]   ;;  %v1238_v61 = vld [vmem:[%s1839_s1 + $0x340] ss:$16 sps:$4 sm:$0xff]   ;;  %v1272_v27 = vld [vmem:[%s1839_s1 + $0x288] ss:$16 sps:$4 sm:$0xff]  }
  0x1d   :  { %862 = vmatprep.subr.bf16.mxu1 %v1199_v29  ;;  %v1239_v62 = vld [vmem:[%s1839_s1 + $0x124] ss:$16 sps:$4 sm:$0xff]   ;;  %v1243_v0 = vld [vmem:[%s1839_s1 + $0x120] ss:$16 sps:$4 sm:$0xff]   ;;  %v1277_v28 = vld [vmem:[%s1839_s1 + $0x6c] ss:$16 sps:$4 sm:$0xff]  }
  0x1e   :  { %v1241_v63 = vld [vmem:[%s1839_s1 + $0x324] ss:$16 sps:$4 sm:$0xff]   ;;  %v1244_v1 = vld [vmem:[%s1839_s1 + $0x320] ss:$16 sps:$4 sm:$0xff]   ;;  %v1280_v29 = vld [vmem:[%s1839_s1 + $0x26c] ss:$16 sps:$4 sm:$0xff]  }
  0x1f   :  { %820 = vmatpush1.bf16.msra.mxu0 %v1201_v30  ;;  %v1245_v2 = vld [vmem:[%s1839_s1 + $0x104] ss:$16 sps:$4 sm:$0xff]   ;;  %v1249_v4 = vld [vmem:[%s1839_s1 + $0x100] ss:$16 sps:$4 sm:$0xff]   ;;  %v1275_v30 = vld [vmem:[%s1839_s1 + $0x68] ss:$16 sps:$4 sm:$0xff]  }
  0x20   :  { %863 = vmatpush1.bf16.msra.mxu1 %v1202_v31  ;;  %821 = vmatprep.subr.bf16.mxu0 %v1203_v32  ;;  %v1247_v3 = vld [vmem:[%s1839_s1 + $0x304] ss:$16 sps:$4 sm:$0xff]   ;;  %v1250_v5 = vld [vmem:[%s1839_s1 + $0x300] ss:$16 sps:$4 sm:$0xff]   ;;  %v1278_v31 = vld [vmem:[%s1839_s1 + $0x268] ss:$16 sps:$4 sm:$0xff]  }
  0x21   :  { %864 = vmatprep.subr.bf16.mxu1 %v1205_v33  ;;  %v25_v6 = vld [vmem:[%s1840_s0] sm:$0xff]  ;;  %v27_v8 = vld [vmem:[%s1840_s0 + $0x10] sm:$0xff]  ;;  %v1283_v32 = vld [vmem:[%s1839_s1 + $0x4c] ss:$16 sps:$4 sm:$0xff]  }
  0x22   :  { %v29_v7 = vld [vmem:[%s1840_s0 + $0x20] sm:$0xff]  ;;  %v31_v9 = vld [vmem:[%s1840_s0 + $0x30] sm:$0xff]  ;;  %v1286_v33 = vld [vmem:[%s1839_s1 + $0x24c] ss:$16 sps:$4 sm:$0xff]  }
  0x23   :  { %822 = vmatpush2.bf16.msra.mxu0 %v1207_v34  ;;  %v1594_v12 = vpack.c.bf16 %v29_v7, %v25_v6  ;;  %v1596_v13 = vpack.c.bf16 %v31_v9, %v27_v8  ;;  %v1281_v34 = vld [vmem:[%s1839_s1 + $0x48] ss:$16 sps:$4 sm:$0xff]   ;;  %v1343_v8 = vld [vmem:[%s1839_s1 + $0x10c] ss:$16 sps:$4 sm:$0xff]  }
  0x24   :  { %865 = vmatpush2.bf16.msra.mxu1 %v1208_v35  ;;  %823 = vmatprep.subr.bf16.mxu0 %v1209_v36  ;;  %v1284_v35 = vld [vmem:[%s1839_s1 + $0x248] ss:$16 sps:$4 sm:$0xff]   ;;  %v1289_v36 = vld [vmem:[%s1839_s1 + $0x2c] ss:$16 sps:$4 sm:$0xff]  }
  0x25   :  { %866 = vmatprep.subr.bf16.mxu1 %v1211_v37  ;;  %v1292_v37 = vld [vmem:[%s1839_s1 + $0x22c] ss:$16 sps:$4 sm:$0xff]   ;;  %v1335_v6 = vld [vmem:[%s1839_s1 + $0x128] ss:$16 sps:$4 sm:$0xff]  }
  0x26   :  { %v1338_v7 = vld [vmem:[%s1839_s1 + $0x328] ss:$16 sps:$4 sm:$0xff]   ;;  %v1346_v9 = vld [vmem:[%s1839_s1 + $0x30c] ss:$16 sps:$4 sm:$0xff]  }
  0x27   :  { %824 = vmatpush2.bf16.msra.mxu0 %v1213_v38  ;;  %v1287_v38 = vld [vmem:[%s1839_s1 + $0x28] ss:$16 sps:$4 sm:$0xff]  }
  0x28   :  { %867 = vmatpush2.bf16.msra.mxu1 %v1214_v39  ;;  %825 = vmatprep.subr.bf16.mxu0 %v1215_v40  ;;  %v1290_v39 = vld [vmem:[%s1839_s1 + $0x228] ss:$16 sps:$4 sm:$0xff]   ;;  %v1295_v40 = vld [vmem:[%s1839_s1 + $0xc] ss:$16 sps:$4 sm:$0xff]  }
  0x29   :  { %868 = vmatprep.subr.bf16.mxu1 %v1217_v41  ;;  %v1298_v41 = vld [vmem:[%s1839_s1 + $0x20c] ss:$16 sps:$4 sm:$0xff]  }
  0x2b   :  { %826 = vmatpush2.bf16.msra.mxu0 %v1219_v42  ;;  %v1293_v42 = vld [vmem:[%s1839_s1 + $0x8] ss:$16 sps:$4 sm:$0xff]  }
  0x2c   :  { %869 = vmatpush2.bf16.msra.mxu1 %v1220_v43  ;;  %827 = vmatprep.subr.bf16.mxu0 %v1221_v44  ;;  %v1296_v43 = vld [vmem:[%s1839_s1 + $0x208] ss:$16 sps:$4 sm:$0xff]   ;;  %v1301_v44 = vld [vmem:[%s1839_s1 + $0x1ec] ss:$16 sps:$4 sm:$0xff]  }
  0x2d   :  { %870 = vmatprep.subr.bf16.mxu1 %v1223_v45  ;;  %v1304_v45 = vld [vmem:[%s1839_s1 + $0x3ec] ss:$16 sps:$4 sm:$0xff]  }
  0x2f   :  { %828 = vmatpush2.bf16.msra.mxu0 %v1225_v50  ;;  %v1305_v50 = vld [vmem:[%s1839_s1 + $0x1c8] ss:$16 sps:$4 sm:$0xff]  }
  0x30   :  { %871 = vmatpush2.bf16.msra.mxu1 %v1226_v51  ;;  %829 = vmatprep.subr.bf16.mxu0 %v1227_v52  ;;  %v1308_v51 = vld [vmem:[%s1839_s1 + $0x3c8] ss:$16 sps:$4 sm:$0xff]   ;;  %v1313_v52 = vld [vmem:[%s1839_s1 + $0x1ac] ss:$16 sps:$4 sm:$0xff]  }
  0x31   :  { %872 = vmatprep.subr.bf16.mxu1 %v1229_v55  ;;  %v1314_v55 = vld [vmem:[%s1839_s1 + $0x3a8] ss:$16 sps:$4 sm:$0xff]  }
  0x33   :  { %830 = vmatpush2.bf16.msra.mxu0 %v1231_v56  ;;  %v1319_v56 = vld [vmem:[%s1839_s1 + $0x18c] ss:$16 sps:$4 sm:$0xff]  }
  0x34   :  { %873 = vmatpush2.bf16.msra.mxu1 %v1232_v57  ;;  %831 = vmatprep.subr.bf16.mxu0 %v1233_v58  ;;  %v1322_v57 = vld [vmem:[%s1839_s1 + $0x38c] ss:$16 sps:$4 sm:$0xff]   ;;  %v1317_v58 = vld [vmem:[%s1839_s1 + $0x188] ss:$16 sps:$4 sm:$0xff]  }
  0x35   :  { %874 = vmatprep.subr.bf16.mxu1 %v1235_v59  ;;  %v1320_v59 = vld [vmem:[%s1839_s1 + $0x388] ss:$16 sps:$4 sm:$0xff]  }
  0x37   :  { %832 = vmatpush2.bf16.msra.mxu0 %v1237_v60  ;;  %v1325_v60 = vld [vmem:[%s1839_s1 + $0x16c] ss:$16 sps:$4 sm:$0xff]  }
  0x38   :  { %875 = vmatpush2.bf16.msra.mxu1 %v1238_v61  ;;  %833 = vmatprep.subr.bf16.mxu0 %v1239_v62  ;;  %v1328_v61 = vld [vmem:[%s1839_s1 + $0x36c] ss:$16 sps:$4 sm:$0xff]   ;;  %v1323_v62 = vld [vmem:[%s1839_s1 + $0x168] ss:$16 sps:$4 sm:$0xff]  }
  0x39   :  { %876 = vmatprep.subr.bf16.mxu1 %v1241_v63  ;;  %v1326_v63 = vld [vmem:[%s1839_s1 + $0x368] ss:$16 sps:$4 sm:$0xff]  }
  0x3b   :  { %834 = vmatpush2.bf16.msra.mxu0 %v1243_v0  ;;  %v1331_v0 = vld [vmem:[%s1839_s1 + $0x14c] ss:$16 sps:$4 sm:$0xff]  }
  0x3c   :  { %877 = vmatpush2.bf16.msra.mxu1 %v1244_v1  ;;  %835 = vmatprep.subr.bf16.mxu0 %v1245_v2  ;;  %v1334_v1 = vld [vmem:[%s1839_s1 + $0x34c] ss:$16 sps:$4 sm:$0xff]   ;;  %v1329_v2 = vld [vmem:[%s1839_s1 + $0x148] ss:$16 sps:$4 sm:$0xff]  }
  0x3d   :  { %878 = vmatprep.subr.bf16.mxu1 %v1247_v3  ;;  %v1332_v3 = vld [vmem:[%s1839_s1 + $0x348] ss:$16 sps:$4 sm:$0xff]  }
  0x3f   :  { %836 = vmatpush2.bf16.msra.mxu0 %v1249_v4  ;;  %v1337_v4 = vld [vmem:[%s1839_s1 + $0x12c] ss:$16 sps:$4 sm:$0xff]  }
  0x40   :  { %879 = vmatpush2.bf16.msra.mxu1 %v1250_v5  ;;  %891 = vmatprep.subr.bf16.mxu0 %v1253_v10  ;;  %v1340_v5 = vld [vmem:[%s1839_s1 + $0x32c] ss:$16 sps:$4 sm:$0xff]   ;;  %v1341_v10 = vld [vmem:[%s1839_s1 + $0x108] ss:$16 sps:$4 sm:$0xff]  }
  0x41   :  { %934 = vmatprep.subr.bf16.mxu1 %v1256_v11  ;;  %v1344_v11 = vld [vmem:[%s1839_s1 + $0x308] ss:$16 sps:$4 sm:$0xff]  }
  0x42   :  { %838 = vmatmul.mubr.bf16.vlgmr.msra.gmra.mxu0 %v1594_v12 }
  0x43   :  { %881 = vmatmul.mubr.bf16.vlgmr.msra.gmra.mxu1 %v1596_v13  ;;  %892 = vmatpush1.bf16.msra.mxu0 %v1251_v14  ;;  %v987_v14 = vlaneseq }
  0x44   :  { %935 = vmatpush1.bf16.msra.mxu1 %v1254_v15  ;;  %893 = vmatprep.subr.bf16.mxu0 %v1259_v16 }
  0x45   :  { %936 = vmatprep.subr.bf16.mxu1 %v1262_v17  ;;  %923 = vmatprep.mubr.bf16.mxu0 %v34_v53  ;;  %v1316_v53 = vld [vmem:[%s1839_s1 + $0x3ac] ss:$16 sps:$4 sm:$0xff]   ;;  %v988_v15 = vshrl.u32 %v987_v14, 7  ;;  %v985_v17 = vld [vmem:[%s1841_s2] sm:$0xf] }
  0x46   :  { %966 = vmatprep.mubr.bf16.mxu1 %v36_v54  ;;  %v1311_v54 = vld [vmem:[%s1839_s1 + $0x1a8] ss:$16 sps:$4 sm:$0xff]  }
  0x47   :  { %894 = vmatpush1.bf16.msra.mxu0 %v1257_v18  ;;  %v989_v16 = vsub.s32 0, %v988_v15  ;;  %v993_v18 = vsub.s32 1, %v988_v15 }
  0x48   :  { %937 = vmatpush1.bf16.msra.mxu1 %v1260_v19  ;;  %895 = vmatprep.subr.bf16.mxu0 %v1265_v20  ;;  %v17_v20 = vld [vmem:[%s1842_s3] sm:$0xff] }
  0x49   :  { %938 = vmatprep.subr.bf16.mxu1 %v1268_v21 }
  0x4b   :  { %896 = vmatpush1.bf16.msra.mxu0 %v1263_v22 }
  0x4c   :  { %939 = vmatpush1.bf16.msra.mxu1 %v1266_v23  ;;  %897 = vmatprep.subr.bf16.mxu0 %v1271_v24  ;;  %v990_v23 = vrot.slane %v985_v17, %v989_v16 }
  0x4d   :  { %940 = vmatprep.subr.bf16.mxu1 %v1274_v25 }
  0x4f   :  { %898 = vmatpush1.bf16.msra.mxu0 %v1269_v26 }
  0x50   :  { %941 = vmatpush1.bf16.msra.mxu1 %v1272_v27  ;;  %899 = vmatprep.subr.bf16.mxu0 %v1277_v28  ;;  %v994_v27 = vrot.slane %v985_v17, %v993_v18 }
  0x51   :  { %942 = vmatprep.subr.bf16.mxu1 %v1280_v29  ;;  %v21_v29 = vld [vmem:[%s1842_s3 + $0x20] sm:$0xff] }
  0x53   :  { %900 = vmatpush1.bf16.msra.mxu0 %v1275_v30 }
  0x54   :  { %943 = vmatpush1.bf16.msra.mxu1 %v1278_v31  ;;  %901 = vmatprep.subr.bf16.mxu0 %v1283_v32 }
  0x55   :  { %944 = vmatprep.subr.bf16.mxu1 %v1286_v33 }
  0x57   :  { %902 = vmatpush1.bf16.msra.mxu0 %v1281_v34 }
  0x58   :  { %945 = vmatpush1.bf16.msra.mxu1 %v1284_v35  ;;  %903 = vmatprep.subr.bf16.mxu0 %v1289_v36  ;;  %v22_v35 = vld [vmem:[%s1842_s3 + $0x28] sm:$0xff] }
  0x59   :  { %946 = vmatprep.subr.bf16.mxu1 %v1292_v37 }
  0x5b   :  { %904 = vmatpush1.bf16.msra.mxu0 %v1287_v38 }
  0x5c   :  { %947 = vmatpush1.bf16.msra.mxu1 %v1290_v39  ;;  %905 = vmatprep.subr.bf16.mxu0 %v1295_v40 }
  0x5d   :  { %948 = vmatprep.subr.bf16.mxu1 %v1298_v41 }
  0x5f   :  { %906 = vmatpush1.bf16.msra.mxu0 %v1293_v42 }
  0x60   :  { %949 = vmatpush1.bf16.msra.mxu1 %v1296_v43  ;;  %907 = vmatprep.subr.bf16.mxu0 %v1301_v44  ;;  %v997_v43 = vsub.s32 2, %v988_v15  ;;  %v1001_v44 = vsub.s32 3, %v988_v15 }
  0x61   :  { %950 = vmatprep.subr.bf16.mxu1 %v1304_v45 }
  0x63   :  { %908 = vmatpush2.bf16.msra.mxu0 %v1299_v46  ;;  %v19_v46 = vld [vmem:[%s1842_s3 + $0x10] sm:$0xff] }
  0x64   :  { %951 = vmatpush2.bf16.msra.mxu1 %v1302_v47  ;;  %909 = vmatprep.subr.bf16.mxu0 %v1307_v48 }
  0x65   :  { %952 = vmatprep.subr.bf16.mxu1 %v1310_v49  ;;  %v998_v49 = vrot.slane %v985_v17, %v997_v43 }
  0x67   :  { %910 = vmatpush2.bf16.msra.mxu0 %v1305_v50 }
  0x68   :  { %953 = vmatpush2.bf16.msra.mxu1 %v1308_v51  ;;  %911 = vmatprep.subr.bf16.mxu0 %v1313_v52  ;;  %v20_v51 = vld [vmem:[%s1842_s3 + $0x18] sm:$0xff] }
  0x69   :  { %954 = vmatprep.subr.bf16.mxu1 %v1316_v53 }
  0x6b   :  { %912 = vmatpush2.bf16.msra.mxu0 %v1311_v54 }
  0x6c   :  { %955 = vmatpush2.bf16.msra.mxu1 %v1314_v55  ;;  %913 = vmatprep.subr.bf16.mxu0 %v1319_v56  ;;  %v1002_v55 = vrot.slane %v985_v17, %v1001_v44 }
  0x6d   :  { %956 = vmatprep.subr.bf16.mxu1 %v1322_v57  ;;  %v23_v57 = vld [vmem:[%s1842_s3 + $0x30] sm:$0xff] }
  0x6f   :  { %914 = vmatpush2.bf16.msra.mxu0 %v1317_v58 }
  0x70   :  { %957 = vmatpush2.bf16.msra.mxu1 %v1320_v59  ;;  %915 = vmatprep.subr.bf16.mxu0 %v1325_v60 }
  0x71   :  { %958 = vmatprep.subr.bf16.mxu1 %v1328_v61 }
  0x73   :  { %916 = vmatpush2.bf16.msra.mxu0 %v1323_v62 }
  0x74   :  { %959 = vmatpush2.bf16.msra.mxu1 %v1326_v63  ;;  %917 = vmatprep.subr.bf16.mxu0 %v1331_v0  ;;  %v24_v63 = vld [vmem:[%s1842_s3 + $0x38] sm:$0xff] }
  0x75   :  { %960 = vmatprep.subr.bf16.mxu1 %v1334_v1 }
  0x77   :  { %918 = vmatpush2.bf16.msra.mxu0 %v1329_v2 }
  0x78   :  { %961 = vmatpush2.bf16.msra.mxu1 %v1332_v3  ;;  %919 = vmatprep.subr.bf16.mxu0 %v1337_v4 }
  0x79   :  { %962 = vmatprep.subr.bf16.mxu1 %v1340_v5 }
  0x7b   :  { %920 = vmatpush2.bf16.msra.mxu0 %v1335_v6 }
  0x7c   :  { %963 = vmatpush2.bf16.msra.mxu1 %v1338_v7  ;;  %921 = vmatprep.subr.bf16.mxu0 %v1343_v8 }
  0x7d   :  { %964 = vmatprep.subr.bf16.mxu1 %v1346_v9 }
  0x7f   :  { %922 = vmatpush2.bf16.msra.mxu0 %v1341_v10 }
  0x80   :  { %965 = vmatpush2.bf16.msra.mxu1 %v1344_v11 }
  0x82   :  { %924 = vmatmul.mubr.bf16.vlgmr.msra.gmra.mxu0 %v1594_v12  ;;  %v18_v12 = vld [vmem:[%s1842_s3 + $0x8] sm:$0xff] }
  0x83   :  { %967 = vmatmul.mubr.bf16.vlgmr.msra.gmra.mxu1 %v1596_v13 }
 0x102   :  { %v839_v19 = vpop.f32.mrf.mxu0 }
 0x103   :  { %v882_v21 = vpop.f32.mrf.mxu1 }
 0x104   :  { %v883_v22 = vadd.f32 %v882_v21, %v839_v19  ;;  %v841_v24 = vpop.f32.mrf.mxu0 }
 0x105   :  { %v884_v13 = vpop.f32.mrf.mxu1 }
 0x106   :  { %v977_v25 = vadd.f32 %v883_v22, %v17_v20  ;;  %v885_v26 = vadd.f32 %v884_v13, %v841_v24  ;;  %v843_v28 = vpop.f32.mrf.mxu0 }
 0x107   :  { %v886_v30 = vpop.f32.mrf.mxu1 }
 0x108   :  { %v1007_v31 = vadd.f32 %v990_v23, %v977_v25  ;;  %v978_v32 = vadd.f32 %v885_v26, %v18_v12  ;;  %v887_v33 = vadd.f32 %v886_v30, %v843_v28  ;;  %v845_v34 = vpop.f32.mrf.mxu0 }
 0x109   :  { %v888_v36 = vpop.f32.mrf.mxu1 }
 0x10a   :  { %1015 = vst [vmem:[%s1843_s4] sm:$0xff] %v1007_v31  ;;  %v1008_v37 = vadd.f32 %v994_v27, %v978_v32  ;;  %v981_v38 = vadd.f32 %v887_v33, %v21_v29  ;;  %v889_v39 = vadd.f32 %v888_v36, %v845_v34 }
 0x10c   :  { %1016 = vst [vmem:[%s1843_s4 + $0x8] sm:$0xff] %v1008_v37  ;;  %v1011_v40 = vadd.f32 %v990_v23, %v981_v38  ;;  %v982_v41 = vadd.f32 %v889_v39, %v22_v35 }
 0x10e   :  { %1019 = vst [vmem:[%s1843_s4 + $0x20] sm:$0xff] %v1011_v40  ;;  %v1012_v42 = vadd.f32 %v994_v27, %v982_v41 }
 0x110   :  { %1020 = vst [vmem:[%s1843_s4 + $0x28] sm:$0xff] %v1012_v42 }
 0x142   :  { %v925_v45 = vpop.f32.mrf.mxu0 }
 0x143   :  { %v968_v47 = vpop.f32.mrf.mxu1 }
 0x144   :  { %v969_v48 = vadd.f32 %v968_v47, %v925_v45  ;;  %v927_v50 = vpop.f32.mrf.mxu0 }
 0x145   :  { %v970_v52 = vpop.f32.mrf.mxu1 }
 0x146   :  { %v979_v53 = vadd.f32 %v969_v48, %v19_v46  ;;  %v971_v54 = vadd.f32 %v970_v52, %v927_v50  ;;  %v929_v56 = vpop.f32.mrf.mxu0 }
 0x147   :  { %v972_v58 = vpop.f32.mrf.mxu1 }
 0x148   :  { %v1009_v59 = vadd.f32 %v998_v49, %v979_v53  ;;  %v980_v60 = vadd.f32 %v971_v54, %v20_v51  ;;  %v973_v61 = vadd.f32 %v972_v58, %v929_v56  ;;  %v931_v62 = vpop.f32.mrf.mxu0 }
 0x149   :  { %v974_v0 = vpop.f32.mrf.mxu1 }
 0x14a   :  { %1017 = vst [vmem:[%s1843_s4 + $0x10] sm:$0xff] %v1009_v59  ;;  %v1010_v1 = vadd.f32 %v1002_v55, %v980_v60  ;;  %v983_v2 = vadd.f32 %v973_v61, %v23_v57  ;;  %v975_v3 = vadd.f32 %v974_v0, %v931_v62 }
 0x14c   :  { %1018 = vst [vmem:[%s1843_s4 + $0x18] sm:$0xff] %v1010_v1  ;;  %v1013_v4 = vadd.f32 %v998_v49, %v983_v2  ;;  %v984_v5 = vadd.f32 %v975_v3, %v24_v63 }
 0x14e   :  { %1021 = vst [vmem:[%s1843_s4 + $0x30] sm:$0xff] %v1013_v4  ;;  %v1014_v6 = vadd.f32 %v1002_v55, %v984_v5 }
 0x150   :  { %1022 = vst [vmem:[%s1843_s4 + $0x38] sm:$0xff] %v1014_v6 }

// kernel: transformer2_forward.98
= control target key start
LH: loop header
LB: loop body
LE: loop exit
PB: predicated region body
PF: predicated region fallthrough
CT: control target
= control target key end

     0   :  { %v78_v44 = vlaneseq  ;;  %s225_s0 = inlined_call_operand.vmem [shape: f32[16,512], index: 0, kind: input, shape index: {}]   ;;  %s226_s1 = inlined_call_operand.vmem [shape: f32[1,512], index: 1, kind: input, shape index: {}]   ;;  %s227_s2 = inlined_call_operand.vmem [shape: f32[1,512], index: 2, kind: input, shape index: {}]   ;;  %s228_s3 = inlined_call_operand.vmem [shape: f32[16,512], index: 3, kind: output, shape index: {}]  }
   0x1   :  { %v14_v0 = vld [vmem:[%s225_s0] sm:$0xff]  ;;  %v15_v1 = vld [vmem:[%s225_s0 + $0x8] sm:$0xff]  ;;  %v16_v2 = vld [vmem:[%s225_s0 + $0x10] sm:$0xff] }
   0x2   :  { %v24_v3 = vadd.f32 %v15_v1, %v14_v0  ;;  %v18_v4 = vld [vmem:[%s225_s0 + $0x20] sm:$0xff]  ;;  %v19_v5 = vld [vmem:[%s225_s0 + $0x28] sm:$0xff]  ;;  %v17_v6 = vld [vmem:[%s225_s0 + $0x18] sm:$0xff]  ;;  %v79_v47 = vshrl.u32 %v78_v44, 7 }
   0x3   :  { %v20_v7 = vld [vmem:[%s225_s0 + $0x30] sm:$0xff]  ;;  %v29_v8 = vadd.f32 %v19_v5, %v18_v4  ;;  %v21_v10 = vld [vmem:[%s225_s0 + $0x38] sm:$0xff]  ;;  %v22_v52 = vld [vmem:[%s226_s1] sm:$0xf] }
   0x4   :  { %v25_v9 = vadd.f32 %v24_v3, %v16_v2  ;;  %v80_v48 = vsub.s32 0, %v79_v47  ;;  %v84_v49 = vsub.s32 1, %v79_v47  ;;  %v88_v50 = vsub.s32 2, %v79_v47  ;;  %v23_v53 = vld [vmem:[%s227_s2] sm:$0xf] }
   0x5   :  { %v30_v11 = vadd.f32 %v29_v8, %v20_v7  ;;  %v92_v51 = vsub.s32 3, %v79_v47 }
   0x6   :  { %v26_v12 = vadd.f32 %v25_v9, %v17_v6  ;;  %v81_v54 = vrot.slane %v22_v52, %v80_v48  ;;  %v85_v55 = vrot.slane %v22_v52, %v84_v49  ;;  %v89_v56 = vrot.slane %v22_v52, %v88_v50 }
   0x7   :  { %v31_v13 = vadd.f32 %v30_v11, %v21_v10  ;;  %v93_v57 = vrot.slane %v22_v52, %v92_v51  ;;  %v110_v59 = vrot.slane %v23_v53, %v80_v48  ;;  %v114_v60 = vrot.slane %v23_v53, %v84_v49 }
   0x8   :  { %27 = vadd.xlane.f32.xlu0 %v26_v12  ;;  %v118_v61 = vrot.slane %v23_v53, %v88_v50  ;;  %v122_v62 = vrot.slane %v23_v53, %v92_v51 }
   0xc   :  { %32 = vadd.xlane.f32.xlu0 %v31_v13 }
  0x91   :  { %v28_v14 = vpop.xlane.xlu0 %27 }
  0x92   :  { %v35_v15 = vmul.f32 0.001953125, %v28_v14 }
  0x94   :  { %v37_v16 = vsub.f32 %v14_v0, %v35_v15  ;;  %v38_v17 = vsub.f32 %v15_v1, %v35_v15  ;;  %v39_v18 = vsub.f32 %v16_v2, %v35_v15  ;;  %v40_v20 = vsub.f32 %v17_v6, %v35_v15 }
  0x95   :  { %v33_v19 = vpop.xlane.xlu0 %32 }
  0x96   :  { %v36_v21 = vmul.f32 0.001953125, %v33_v19  ;;  %v45_v22 = vmul.f32 %v37_v16, %v37_v16  ;;  %v46_v23 = vmul.f32 %v38_v17, %v38_v17  ;;  %v47_v24 = vmul.f32 %v39_v18, %v39_v18 }
  0x97   :  { %v48_v29 = vmul.f32 %v40_v20, %v40_v20 }
  0x98   :  { %v41_v25 = vsub.f32 %v18_v4, %v36_v21  ;;  %v42_v26 = vsub.f32 %v19_v5, %v36_v21  ;;  %v53_v27 = vadd.f32 %v46_v23, %v45_v22  ;;  %v43_v28 = vsub.f32 %v20_v7, %v36_v21 }
  0x99   :  { %v44_v31 = vsub.f32 %v21_v10, %v36_v21 }
  0x9a   :  { %v54_v30 = vadd.f32 %v53_v27, %v47_v24  ;;  %v49_v32 = vmul.f32 %v41_v25, %v41_v25  ;;  %v50_v33 = vmul.f32 %v42_v26, %v42_v26  ;;  %v51_v35 = vmul.f32 %v43_v28, %v43_v28 }
  0x9b   :  { %v52_v37 = vmul.f32 %v44_v31, %v44_v31 }
  0x9c   :  { %v55_v34 = vadd.f32 %v54_v30, %v48_v29  ;;  %v58_v36 = vadd.f32 %v50_v33, %v49_v32 }
  0x9e   :  { %56 = vadd.xlane.f32.xlu1 %v55_v34  ;;  %v59_v38 = vadd.f32 %v58_v36, %v51_v35 }
  0xa0   :  { %v60_v39 = vadd.f32 %v59_v38, %v52_v37 }
  0xa2   :  { %61 = vadd.xlane.f32.xlu1 %v60_v39 }
 0x127   :  { %v57_v40 = vpop.xlane.xlu1 %56 }
 0x128   :  { %v63_v41 = vmul.f32 0.001953125, %v57_v40 }
 0x12a   :  { %v65_v42 = vadd.f32 1e-05, %v63_v41 }
 0x12b   :  { %v62_v43 = vpop.xlane.xlu1 %61 }
 0x12c   :  { %147 = vrsqrt.f32 %v65_v42  ;;  %v64_v45 = vmul.f32 0.001953125, %v62_v43 }
 0x12e   :  { %v66_v46 = vadd.f32 1e-05, %v64_v45 }
 0x130   :  { %149 = vrsqrt.f32 %v66_v46 }
 0x139   :  { %v148_v58 = vpop.eup %147 }
 0x13a   :  { %v69_v63 = vmul.f32 %v148_v58, %v37_v16  ;;  %v70_v0 = vmul.f32 %v148_v58, %v38_v17  ;;  %v71_v1 = vmul.f32 %v148_v58, %v39_v18  ;;  %v72_v2 = vmul.f32 %v148_v58, %v40_v20 }
 0x13c   :  { %v98_v3 = vmul.f32 %v81_v54, %v69_v63  ;;  %v99_v4 = vmul.f32 %v85_v55, %v70_v0  ;;  %v100_v5 = vmul.f32 %v89_v56, %v71_v1  ;;  %v101_v6 = vmul.f32 %v93_v57, %v72_v2 }
 0x13d   :  { %v150_v7 = vpop.eup %149 }
 0x13e   :  { %v127_v8 = vadd.f32 %v110_v59, %v98_v3  ;;  %v128_v9 = vadd.f32 %v114_v60, %v99_v4  ;;  %v129_v10 = vadd.f32 %v118_v61, %v100_v5  ;;  %v130_v11 = vadd.f32 %v122_v62, %v101_v6 }
 0x13f   :  { %v73_v12 = vmul.f32 %v150_v7, %v41_v25  ;;  %v74_v13 = vmul.f32 %v150_v7, %v42_v26  ;;  %v75_v14 = vmul.f32 %v150_v7, %v43_v28  ;;  %v76_v15 = vmul.f32 %v150_v7, %v44_v31 }
 0x140   :  { %135 = vst [vmem:[%s228_s3] sm:$0xff] %v127_v8  ;;  %136 = vst [vmem:[%s228_s3 + $0x8] sm:$0xff] %v128_v9 }
 0x141   :  { %137 = vst [vmem:[%s228_s3 + $0x10] sm:$0xff] %v129_v10  ;;  %138 = vst [vmem:[%s228_s3 + $0x18] sm:$0xff] %v130_v11  ;;  %v102_v16 = vmul.f32 %v81_v54, %v73_v12  ;;  %v103_v17 = vmul.f32 %v85_v55, %v74_v13  ;;  %v104_v18 = vmul.f32 %v89_v56, %v75_v14 }
 0x142   :  { %v105_v19 = vmul.f32 %v93_v57, %v76_v15 }
 0x143   :  { %v131_v20 = vadd.f32 %v110_v59, %v102_v16  ;;  %v132_v21 = vadd.f32 %v114_v60, %v103_v17  ;;  %v133_v22 = vadd.f32 %v118_v61, %v104_v18 }
 0x144   :  { %v134_v23 = vadd.f32 %v122_v62, %v105_v19 }
 0x145   :  { %139 = vst [vmem:[%s228_s3 + $0x20] sm:$0xff] %v131_v20  ;;  %140 = vst [vmem:[%s228_s3 + $0x28] sm:$0xff] %v132_v21 }
 0x146   :  { %141 = vst [vmem:[%s228_s3 + $0x30] sm:$0xff] %v133_v22  ;;  %142 = vst [vmem:[%s228_s3 + $0x38] sm:$0xff] %v134_v23 }

// kernel: transformer2_forward.103
= control target key start
LH: loop header
LB: loop body
LE: loop exit
PB: predicated region body
PF: predicated region fallthrough
CT: control target
= control target key end

     0   :  { %s1954_s12 = smov 0   ;;  %s1956_s13 = smov 0   ;;  %s2470_s0 = inlined_call_operand.vmem [shape: f32[16,512], index: 0, kind: input, shape index: {}]   ;;  %s2471_s1 = inlined_call_operand.vmem [shape: bf16[512,1024], index: 1, kind: input, shape index: {}]   ;;  %s2472_s2 = inlined_call_operand.vmem [shape: f32[1,1024], index: 2, kind: input, shape index: {}]   ;;  %s2473_s3 = inlined_call_operand.vmem [shape: f32[16,1024], index: 3, kind: output, shape index: {}]  }
   0x1   :  { %s1958_s14 = smov 0  }
   0x2 LB: > { %s1970_s15 = sadd.s32 4294967295, %s1932_s14   ;;  %s1973_s16 = sadd.s32 1, %s1932_s14   ;;  %s1932_s14 = sphi %s1958_s14, %s2477_s14   ;;  %s1928_s13 = sphi %s1956_s13, %s2476_s13   ;;  %s1924_s12 = sphi %s1954_s12, %s2475_s12  }
   0x3   : > { %s38_s17 = ssub.s32 %s1932_s14, %s1973_s16  ;;  %s41_s18 = sadd.s32 1, %s1928_s13 }
   0x4   : > { %p39_p0 = scmp.eq.s32.totalorder %s38_s17, 0  ;;  %p48_p1 = scmp.ne.s32.totalorder %s1928_s13, %s1924_s12 }
   0x5   : > { %p49_p2 = scmp.eq.s32.totalorder %s1932_s14, 0  ;;  %p104_p3 = scmp.eq.s32.totalorder %s1970_s15, 1 }
   0x6   : > { %s1983_s19 = scalar_select %p39_p0, %s1928_s13, %s41_s18  }
   0x7   : > { %p50_p4 = por %p49_p2, %p48_p1  ;;  %p1985_p5 = por %p104_p3, %p48_p1 }
   0x8   : > { %p1551_p6 = scmp.ge.s32.totalorder %s1932_s14, 2 }
   0xa   : > { %129 = sbr.rel (%p1551_p6) target bundleno = 83 (0x53), region = 20 }
   0xf   : > { %132 = sbr.rel (!%p50_p4) target bundleno = 83 (0x53), region = 24  ;;  %s134_s21 = sand.u32 (%p50_p4), 1, %s1928_s13  }
  0x10   : > { %s1692_s22 = sshll.u32 (%p50_p4), %s1932_s14, 4  ;;  %s1552_s23 = sshll.u32 (%p50_p4), %s134_s21, 10 }
  0x11   : > { %s1995_s26 = scalar_lea.vmem (%p50_p4), %s2471_s1, %s1692_s22  ;;  %s2000_s27 = scalar_lea.vmem (%p50_p4), [#allocation2], %s1552_s23 }
  0x12   : > { %v152_v0 = vld [vmem:[%s1995_s26] sm:$0xff] (%p50_p4)  ;;  %v154_v1 = vld [vmem:[%s1995_s26 + $0x8] sm:$0xff] (%p50_p4) }
  0x13   : > { %v156_v2 = vld [vmem:[%s1995_s26 + $0x20] sm:$0xff] (%p50_p4)  ;;  %153 = vst [vmem:[%s2000_s27] sm:$0xff] (%p50_p4), %v152_v0  ;;  %155 = vst [vmem:[%s2000_s27 + $0x8] sm:$0xff] (%p50_p4), %v154_v1  ;;  %v158_v3 = vld [vmem:[%s1995_s26 + $0x28] sm:$0xff] (%p50_p4) }
  0x14   : > { %157 = vst [vmem:[%s2000_s27 + $0x10] sm:$0xff] %v156_v2  ;;  %v160_v4 = vld [vmem:[%s1995_s26 + $0x40] sm:$0xff]  ;;  %v162_v5 = vld [vmem:[%s1995_s26 + $0x48] sm:$0xff]  ;;  %159 = vst [vmem:[%s2000_s27 + $0x18] sm:$0xff] %v158_v3 }
  0x15   : > { %161 = vst [vmem:[%s2000_s27 + $0x20] sm:$0xff] %v160_v4  ;;  %163 = vst [vmem:[%s2000_s27 + $0x28] sm:$0xff] %v162_v5  ;;  %v164_v6 = vld [vmem:[%s1995_s26 + $0x60] sm:$0xff]  ;;  %v166_v7 = vld [vmem:[%s1995_s26 + $0x68] sm:$0xff] }
  0x16   : > { %v168_v8 = vld [vmem:[%s1995_s26 + $0x80] sm:$0xff]  ;;  %165 = vst [vmem:[%s2000_s27 + $0x30] sm:$0xff] %v164_v6  ;;  %167 = vst [vmem:[%s2000_s27 + $0x38] sm:$0xff] %v166_v7  ;;  %v170_v9 = vld [vmem:[%s1995_s26 + $0x88] sm:$0xff] }
  0x17   : > { %169 = vst [vmem:[%s2000_s27 + $0x40] sm:$0xff] %v168_v8  ;;  %v172_v10 = vld [vmem:[%s1995_s26 + $0xa0] sm:$0xff]  ;;  %v174_v11 = vld [vmem:[%s1995_s26 + $0xa8] sm:$0xff]  ;;  %171 = vst [vmem:[%s2000_s27 + $0x48] sm:$0xff] %v170_v9 }
  0x18   : > { %173 = vst [vmem:[%s2000_s27 + $0x50] sm:$0xff] %v172_v10  ;;  %175 = vst [vmem:[%s2000_s27 + $0x58] sm:$0xff] %v174_v11  ;;  %v176_v12 = vld [vmem:[%s1995_s26 + $0xc0] sm:$0xff]  ;;  %v178_v13 = vld [vmem:[%s1995_s26 + $0xc8] sm:$0xff] }
  0x19   : > { %v180_v14 = vld [vmem:[%s1995_s26 + $0xe0] sm:$0xff]  ;;  %177 = vst [vmem:[%s2000_s27 + $0x60] sm:$0xff] %v176_v12  ;;  %179 = vst [vmem:[%s2000_s27 + $0x68] sm:$0xff] %v178_v13  ;;  %v182_v15 = vld [vmem:[%s1995_s26 + $0xe8] sm:$0xff] }
  0x1a   : > { %181 = vst [vmem:[%s2000_s27 + $0x70] sm:$0xff] %v180_v14  ;;  %v184_v16 = vld [vmem:[%s1995_s26 + $0x100] sm:$0xff]  ;;  %v186_v17 = vld [vmem:[%s1995_s26 + $0x108] sm:$0xff]  ;;  %183 = vst [vmem:[%s2000_s27 + $0x78] sm:$0xff] %v182_v15 }
  0x1b   : > { %185 = vst [vmem:[%s2000_s27 + $0x80] sm:$0xff] %v184_v16  ;;  %187 = vst [vmem:[%s2000_s27 + $0x88] sm:$0xff] %v186_v17  ;;  %v188_v18 = vld [vmem:[%s1995_s26 + $0x120] sm:$0xff]  ;;  %v190_v19 = vld [vmem:[%s1995_s26 + $0x128] sm:$0xff] }
  0x1c   : > { %v192_v20 = vld [vmem:[%s1995_s26 + $0x140] sm:$0xff]  ;;  %189 = vst [vmem:[%s2000_s27 + $0x90] sm:$0xff] %v188_v18  ;;  %191 = vst [vmem:[%s2000_s27 + $0x98] sm:$0xff] %v190_v19  ;;  %v194_v21 = vld [vmem:[%s1995_s26 + $0x148] sm:$0xff] }
  0x1d   : > { %193 = vst [vmem:[%s2000_s27 + $0xa0] sm:$0xff] %v192_v20  ;;  %v196_v22 = vld [vmem:[%s1995_s26 + $0x160] sm:$0xff]  ;;  %v198_v23 = vld [vmem:[%s1995_s26 + $0x168] sm:$0xff]  ;;  %195 = vst [vmem:[%s2000_s27 + $0xa8] sm:$0xff] %v194_v21 }
  0x1e   : > { %197 = vst [vmem:[%s2000_s27 + $0xb0] sm:$0xff] %v196_v22  ;;  %199 = vst [vmem:[%s2000_s27 + $0xb8] sm:$0xff] %v198_v23  ;;  %v200_v24 = vld [vmem:[%s1995_s26 + $0x180] sm:$0xff]  ;;  %v202_v25 = vld [vmem:[%s1995_s26 + $0x188] sm:$0xff] }
  0x1f   : > { %v204_v26 = vld [vmem:[%s1995_s26 + $0x1a0] sm:$0xff]  ;;  %201 = vst [vmem:[%s2000_s27 + $0xc0] sm:$0xff] %v200_v24  ;;  %203 = vst [vmem:[%s2000_s27 + $0xc8] sm:$0xff] %v202_v25  ;;  %v206_v27 = vld [vmem:[%s1995_s26 + $0x1a8] sm:$0xff] }
  0x20   : > { %205 = vst [vmem:[%s2000_s27 + $0xd0] sm:$0xff] %v204_v26  ;;  %v208_v28 = vld [vmem:[%s1995_s26 + $0x1c0] sm:$0xff]  ;;  %v210_v29 = vld [vmem:[%s1995_s26 + $0x1c8] sm:$0xff]  ;;  %207 = vst [vmem:[%s2000_s27 + $0xd8] sm:$0xff] %v206_v27 }
  0x21   : > { %209 = vst [vmem:[%s2000_s27 + $0xe0] sm:$0xff] %v208_v28  ;;  %211 = vst [vmem:[%s2000_s27 + $0xe8] sm:$0xff] %v210_v29  ;;  %v212_v30 = vld [vmem:[%s1995_s26 + $0x1e0] sm:$0xff]  ;;  %v214_v31 = vld [vmem:[%s1995_s26 + $0x1e8] sm:$0xff] }
  0x22   : > { %v216_v32 = vld [vmem:[%s1995_s26 + $0x200] sm:$0xff]  ;;  %213 = vst [vmem:[%s2000_s27 + $0xf0] sm:$0xff] %v212_v30  ;;  %215 = vst [vmem:[%s2000_s27 + $0xf8] sm:$0xff] %v214_v31  ;;  %v218_v33 = vld [vmem:[%s1995_s26 + $0x208] sm:$0xff] }
  0x23   : > { %217 = vst [vmem:[%s2000_s27 + $0x100] sm:$0xff] %v216_v32  ;;  %v220_v34 = vld [vmem:[%s1995_s26 + $0x220] sm:$0xff]  ;;  %v222_v35 = vld [vmem:[%s1995_s26 + $0x228] sm:$0xff]  ;;  %219 = vst [vmem:[%s2000_s27 + $0x108] sm:$0xff] %v218_v33 }
  0x24   : > { %221 = vst [vmem:[%s2000_s27 + $0x110] sm:$0xff] %v220_v34  ;;  %223 = vst [vmem:[%s2000_s27 + $0x118] sm:$0xff] %v222_v35  ;;  %v224_v36 = vld [vmem:[%s1995_s26 + $0x240] sm:$0xff]  ;;  %v226_v37 = vld [vmem:[%s1995_s26 + $0x248] sm:$0xff] }
  0x25   : > { %v228_v38 = vld [vmem:[%s1995_s26 + $0x260] sm:$0xff]  ;;  %225 = vst [vmem:[%s2000_s27 + $0x120] sm:$0xff] %v224_v36  ;;  %227 = vst [vmem:[%s2000_s27 + $0x128] sm:$0xff] %v226_v37  ;;  %v230_v39 = vld [vmem:[%s1995_s26 + $0x268] sm:$0xff] }
  0x26   : > { %229 = vst [vmem:[%s2000_s27 + $0x130] sm:$0xff] %v228_v38  ;;  %v232_v40 = vld [vmem:[%s1995_s26 + $0x280] sm:$0xff]  ;;  %v234_v41 = vld [vmem:[%s1995_s26 + $0x288] sm:$0xff]  ;;  %231 = vst [vmem:[%s2000_s27 + $0x138] sm:$0xff] %v230_v39 }
  0x27   : > { %233 = vst [vmem:[%s2000_s27 + $0x140] sm:$0xff] %v232_v40  ;;  %235 = vst [vmem:[%s2000_s27 + $0x148] sm:$0xff] %v234_v41  ;;  %v236_v42 = vld [vmem:[%s1995_s26 + $0x2a0] sm:$0xff]  ;;  %v238_v43 = vld [vmem:[%s1995_s26 + $0x2a8] sm:$0xff] }
  0x28   : > { %v240_v44 = vld [vmem:[%s1995_s26 + $0x2c0] sm:$0xff]  ;;  %237 = vst [vmem:[%s2000_s27 + $0x150] sm:$0xff] %v236_v42  ;;  %239 = vst [vmem:[%s2000_s27 + $0x158] sm:$0xff] %v238_v43  ;;  %v242_v45 = vld [vmem:[%s1995_s26 + $0x2c8] sm:$0xff] }
  0x29   : > { %241 = vst [vmem:[%s2000_s27 + $0x160] sm:$0xff] %v240_v44  ;;  %v244_v46 = vld [vmem:[%s1995_s26 + $0x2e0] sm:$0xff]  ;;  %v246_v47 = vld [vmem:[%s1995_s26 + $0x2e8] sm:$0xff]  ;;  %243 = vst [vmem:[%s2000_s27 + $0x168] sm:$0xff] %v242_v45 }
  0x2a   : > { %245 = vst [vmem:[%s2000_s27 + $0x170] sm:$0xff] %v244_v46  ;;  %247 = vst [vmem:[%s2000_s27 + $0x178] sm:$0xff] %v246_v47  ;;  %v248_v48 = vld [vmem:[%s1995_s26 + $0x300] sm:$0xff]  ;;  %v250_v49 = vld [vmem:[%s1995_s26 + $0x308] sm:$0xff] }
  0x2b   : > { %v252_v50 = vld [vmem:[%s1995_s26 + $0x320] sm:$0xff]  ;;  %249 = vst [vmem:[%s2000_s27 + $0x180] sm:$0xff] %v248_v48  ;;  %251 = vst [vmem:[%s2000_s27 + $0x188] sm:$0xff] %v250_v49  ;;  %v254_v51 = vld [vmem:[%s1995_s26 + $0x328] sm:$0xff] }
  0x2c   : > { %253 = vst [vmem:[%s2000_s27 + $0x190] sm:$0xff] %v252_v50  ;;  %v256_v52 = vld [vmem:[%s1995_s26 + $0x340] sm:$0xff]  ;;  %v258_v53 = vld [vmem:[%s1995_s26 + $0x348] sm:$0xff]  ;;  %255 = vst [vmem:[%s2000_s27 + $0x198] sm:$0xff] %v254_v51 }
  0x2d   : > { %257 = vst [vmem:[%s2000_s27 + $0x1a0] sm:$0xff] %v256_v52  ;;  %259 = vst [vmem:[%s2000_s27 + $0x1a8] sm:$0xff] %v258_v53  ;;  %v260_v54 = vld [vmem:[%s1995_s26 + $0x360] sm:$0xff]  ;;  %v262_v55 = vld [vmem:[%s1995_s26 + $0x368] sm:$0xff] }
  0x2e   : > { %v264_v56 = vld [vmem:[%s1995_s26 + $0x380] sm:$0xff]  ;;  %261 = vst [vmem:[%s2000_s27 + $0x1b0] sm:$0xff] %v260_v54  ;;  %263 = vst [vmem:[%s2000_s27 + $0x1b8] sm:$0xff] %v262_v55  ;;  %v266_v57 = vld [vmem:[%s1995_s26 + $0x388] sm:$0xff] }
  0x2f   : > { %265 = vst [vmem:[%s2000_s27 + $0x1c0] sm:$0xff] %v264_v56  ;;  %v268_v58 = vld [vmem:[%s1995_s26 + $0x3a0] sm:$0xff]  ;;  %v270_v59 = vld [vmem:[%s1995_s26 + $0x3a8] sm:$0xff]  ;;  %267 = vst [vmem:[%s2000_s27 + $0x1c8] sm:$0xff] %v266_v57 }
  0x30   : > { %269 = vst [vmem:[%s2000_s27 + $0x1d0] sm:$0xff] %v268_v58  ;;  %271 = vst [vmem:[%s2000_s27 + $0x1d8] sm:$0xff] %v270_v59  ;;  %v272_v60 = vld [vmem:[%s1995_s26 + $0x3c0] sm:$0xff]  ;;  %v274_v61 = vld [vmem:[%s1995_s26 + $0x3c8] sm:$0xff] }
  0x31   : > { %v276_v62 = vld [vmem:[%s1995_s26 + $0x3e0] sm:$0xff]  ;;  %273 = vst [vmem:[%s2000_s27 + $0x1e0] sm:$0xff] %v272_v60  ;;  %275 = vst [vmem:[%s2000_s27 + $0x1e8] sm:$0xff] %v274_v61  ;;  %v278_v63 = vld [vmem:[%s1995_s26 + $0x3e8] sm:$0xff] }
  0x32   : > { %277 = vst [vmem:[%s2000_s27 + $0x1f0] sm:$0xff] %v276_v62  ;;  %v280_v0 = vld [vmem:[%s1995_s26 + $0x400] sm:$0xff]  ;;  %v282_v1 = vld [vmem:[%s1995_s26 + $0x408] sm:$0xff]  ;;  %279 = vst [vmem:[%s2000_s27 + $0x1f8] sm:$0xff] %v278_v63 }
  0x33   : > { %281 = vst [vmem:[%s2000_s27 + $0x200] sm:$0xff] %v280_v0  ;;  %283 = vst [vmem:[%s2000_s27 + $0x208] sm:$0xff] %v282_v1  ;;  %v284_v2 = vld [vmem:[%s1995_s26 + $0x420] sm:$0xff]  ;;  %v286_v3 = vld [vmem:[%s1995_s26 + $0x428] sm:$0xff] }
  0x34   : > { %v288_v4 = vld [vmem:[%s1995_s26 + $0x440] sm:$0xff]  ;;  %285 = vst [vmem:[%s2000_s27 + $0x210] sm:$0xff] %v284_v2  ;;  %287 = vst [vmem:[%s2000_s27 + $0x218] sm:$0xff] %v286_v3  ;;  %v290_v5 = vld [vmem:[%s1995_s26 + $0x448] sm:$0xff] }
  0x35   : > { %289 = vst [vmem:[%s2000_s27 + $0x220] sm:$0xff] %v288_v4  ;;  %v292_v6 = vld [vmem:[%s1995_s26 + $0x460] sm:$0xff]  ;;  %v294_v7 = vld [vmem:[%s1995_s26 + $0x468] sm:$0xff]  ;;  %291 = vst [vmem:[%s2000_s27 + $0x228] sm:$0xff] %v290_v5 }
  0x36   : > { %293 = vst [vmem:[%s2000_s27 + $0x230] sm:$0xff] %v292_v6  ;;  %295 = vst [vmem:[%s2000_s27 + $0x238] sm:$0xff] %v294_v7  ;;  %v296_v8 = vld [vmem:[%s1995_s26 + $0x480] sm:$0xff]  ;;  %v298_v9 = vld [vmem:[%s1995_s26 + $0x488] sm:$0xff] }
  0x37   : > { %v300_v10 = vld [vmem:[%s1995_s26 + $0x4a0] sm:$0xff]  ;;  %297 = vst [vmem:[%s2000_s27 + $0x240] sm:$0xff] %v296_v8  ;;  %299 = vst [vmem:[%s2000_s27 + $0x248] sm:$0xff] %v298_v9  ;;  %v302_v11 = vld [vmem:[%s1995_s26 + $0x4a8] sm:$0xff] }
  0x38   : > { %301 = vst [vmem:[%s2000_s27 + $0x250] sm:$0xff] %v300_v10  ;;  %v304_v12 = vld [vmem:[%s1995_s26 + $0x4c0] sm:$0xff]  ;;  %v306_v13 = vld [vmem:[%s1995_s26 + $0x4c8] sm:$0xff]  ;;  %303 = vst [vmem:[%s2000_s27 + $0x258] sm:$0xff] %v302_v11 }
  0x39   : > { %305 = vst [vmem:[%s2000_s27 + $0x260] sm:$0xff] %v304_v12  ;;  %307 = vst [vmem:[%s2000_s27 + $0x268] sm:$0xff] %v306_v13  ;;  %v308_v14 = vld [vmem:[%s1995_s26 + $0x4e0] sm:$0xff]  ;;  %v310_v15 = vld [vmem:[%s1995_s26 + $0x4e8] sm:$0xff] }
  0x3a   : > { %v312_v16 = vld [vmem:[%s1995_s26 + $0x500] sm:$0xff]  ;;  %309 = vst [vmem:[%s2000_s27 + $0x270] sm:$0xff] %v308_v14  ;;  %311 = vst [vmem:[%s2000_s27 + $0x278] sm:$0xff] %v310_v15  ;;  %v314_v17 = vld [vmem:[%s1995_s26 + $0x508] sm:$0xff] }
  0x3b   : > { %313 = vst [vmem:[%s2000_s27 + $0x280] sm:$0xff] %v312_v16  ;;  %v316_v18 = vld [vmem:[%s1995_s26 + $0x520] sm:$0xff]  ;;  %v318_v19 = vld [vmem:[%s1995_s26 + $0x528] sm:$0xff]  ;;  %315 = vst [vmem:[%s2000_s27 + $0x288] sm:$0xff] %v314_v17 }
  0x3c   : > { %317 = vst [vmem:[%s2000_s27 + $0x290] sm:$0xff] %v316_v18  ;;  %319 = vst [vmem:[%s2000_s27 + $0x298] sm:$0xff] %v318_v19  ;;  %v320_v20 = vld [vmem:[%s1995_s26 + $0x540] sm:$0xff]  ;;  %v322_v21 = vld [vmem:[%s1995_s26 + $0x548] sm:$0xff] }
  0x3d   : > { %v324_v22 = vld [vmem:[%s1995_s26 + $0x560] sm:$0xff]  ;;  %321 = vst [vmem:[%s2000_s27 + $0x2a0] sm:$0xff] %v320_v20  ;;  %323 = vst [vmem:[%s2000_s27 + $0x2a8] sm:$0xff] %v322_v21  ;;  %v326_v23 = vld [vmem:[%s1995_s26 + $0x568] sm:$0xff] }
  0x3e   : > { %325 = vst [vmem:[%s2000_s27 + $0x2b0] sm:$0xff] %v324_v22  ;;  %v328_v24 = vld [vmem:[%s1995_s26 + $0x580] sm:$0xff]  ;;  %v330_v25 = vld [vmem:[%s1995_s26 + $0x588] sm:$0xff]  ;;  %327 = vst [vmem:[%s2000_s27 + $0x2b8] sm:$0xff] %v326_v23 }
  0x3f   : > { %329 = vst [vmem:[%s2000_s27 + $0x2c0] sm:$0xff] %v328_v24  ;;  %331 = vst [vmem:[%s2000_s27 + $0x2c8] sm:$0xff] %v330_v25  ;;  %v332_v26 = vld [vmem:[%s1995_s26 + $0x5a0] sm:$0xff]  ;;  %v334_v27 = vld [vmem:[%s1995_s26 + $0x5a8] sm:$0xff] }
  0x40   : > { %v336_v28 = vld [vmem:[%s1995_s26 + $0x5c0] sm:$0xff]  ;;  %333 = vst [vmem:[%s2000_s27 + $0x2d0] sm:$0xff] %v332_v26  ;;  %335 = vst [vmem:[%s2000_s27 + $0x2d8] sm:$0xff] %v334_v27  ;;  %v338_v29 = vld [vmem:[%s1995_s26 + $0x5c8] sm:$0xff] }
  0x41   : > { %337 = vst [vmem:[%s2000_s27 + $0x2e0] sm:$0xff] %v336_v28  ;;  %v340_v30 = vld [vmem:[%s1995_s26 + $0x5e0] sm:$0xff]  ;;  %v342_v31 = vld [vmem:[%s1995_s26 + $0x5e8] sm:$0xff]  ;;  %339 = vst [vmem:[%s2000_s27 + $0x2e8] sm:$0xff] %v338_v29 }
  0x42   : > { %341 = vst [vmem:[%s2000_s27 + $0x2f0] sm:$0xff] %v340_v30  ;;  %343 = vst [vmem:[%s2000_s27 + $0x2f8] sm:$0xff] %v342_v31  ;;  %v344_v32 = vld [vmem:[%s1995_s26 + $0x600] sm:$0xff]  ;;  %v346_v33 = vld [vmem:[%s1995_s26 + $0x608] sm:$0xff] }
  0x43   : > { %v348_v34 = vld [vmem:[%s1995_s26 + $0x620] sm:$0xff]  ;;  %345 = vst [vmem:[%s2000_s27 + $0x300] sm:$0xff] %v344_v32  ;;  %347 = vst [vmem:[%s2000_s27 + $0x308] sm:$0xff] %v346_v33  ;;  %v350_v35 = vld [vmem:[%s1995_s26 + $0x628] sm:$0xff] }
  0x44   : > { %349 = vst [vmem:[%s2000_s27 + $0x310] sm:$0xff] %v348_v34  ;;  %v352_v36 = vld [vmem:[%s1995_s26 + $0x640] sm:$0xff]  ;;  %v354_v37 = vld [vmem:[%s1995_s26 + $0x648] sm:$0xff]  ;;  %351 = vst [vmem:[%s2000_s27 + $0x318] sm:$0xff] %v350_v35 }
  0x45   : > { %353 = vst [vmem:[%s2000_s27 + $0x320] sm:$0xff] %v352_v36  ;;  %355 = vst [vmem:[%s2000_s27 + $0x328] sm:$0xff] %v354_v37  ;;  %v356_v38 = vld [vmem:[%s1995_s26 + $0x660] sm:$0xff]  ;;  %v358_v39 = vld [vmem:[%s1995_s26 + $0x668] sm:$0xff] }
  0x46   : > { %v360_v40 = vld [vmem:[%s1995_s26 + $0x680] sm:$0xff]  ;;  %357 = vst [vmem:[%s2000_s27 + $0x330] sm:$0xff] %v356_v38  ;;  %359 = vst [vmem:[%s2000_s27 + $0x338] sm:$0xff] %v358_v39  ;;  %v362_v41 = vld [vmem:[%s1995_s26 + $0x688] sm:$0xff] }
  0x47   : > { %361 = vst [vmem:[%s2000_s27 + $0x340] sm:$0xff] %v360_v40  ;;  %v364_v42 = vld [vmem:[%s1995_s26 + $0x6a0] sm:$0xff]  ;;  %v366_v43 = vld [vmem:[%s1995_s26 + $0x6a8] sm:$0xff]  ;;  %363 = vst [vmem:[%s2000_s27 + $0x348] sm:$0xff] %v362_v41 }
  0x48   : > { %365 = vst [vmem:[%s2000_s27 + $0x350] sm:$0xff] %v364_v42  ;;  %367 = vst [vmem:[%s2000_s27 + $0x358] sm:$0xff] %v366_v43  ;;  %v368_v44 = vld [vmem:[%s1995_s26 + $0x6c0] sm:$0xff]  ;;  %v370_v45 = vld [vmem:[%s1995_s26 + $0x6c8] sm:$0xff] }
  0x49   : > { %v372_v46 = vld [vmem:[%s1995_s26 + $0x6e0] sm:$0xff]  ;;  %369 = vst [vmem:[%s2000_s27 + $0x360] sm:$0xff] %v368_v44  ;;  %371 = vst [vmem:[%s2000_s27 + $0x368] sm:$0xff] %v370_v45  ;;  %v374_v47 = vld [vmem:[%s1995_s26 + $0x6e8] sm:$0xff] }
  0x4a   : > { %373 = vst [vmem:[%s2000_s27 + $0x370] sm:$0xff] %v372_v46  ;;  %v376_v48 = vld [vmem:[%s1995_s26 + $0x700] sm:$0xff]  ;;  %v378_v49 = vld [vmem:[%s1995_s26 + $0x708] sm:$0xff]  ;;  %375 = vst [vmem:[%s2000_s27 + $0x378] sm:$0xff] %v374_v47 }
  0x4b   : > { %377 = vst [vmem:[%s2000_s27 + $0x380] sm:$0xff] %v376_v48  ;;  %379 = vst [vmem:[%s2000_s27 + $0x388] sm:$0xff] %v378_v49  ;;  %v380_v50 = vld [vmem:[%s1995_s26 + $0x720] sm:$0xff]  ;;  %v382_v51 = vld [vmem:[%s1995_s26 + $0x728] sm:$0xff] }
  0x4c   : > { %v384_v52 = vld [vmem:[%s1995_s26 + $0x740] sm:$0xff]  ;;  %381 = vst [vmem:[%s2000_s27 + $0x390] sm:$0xff] %v380_v50  ;;  %383 = vst [vmem:[%s2000_s27 + $0x398] sm:$0xff] %v382_v51  ;;  %v386_v53 = vld [vmem:[%s1995_s26 + $0x748] sm:$0xff] }
  0x4d   : > { %385 = vst [vmem:[%s2000_s27 + $0x3a0] sm:$0xff] %v384_v52  ;;  %v388_v54 = vld [vmem:[%s1995_s26 + $0x760] sm:$0xff]  ;;  %v390_v55 = vld [vmem:[%s1995_s26 + $0x768] sm:$0xff]  ;;  %387 = vst [vmem:[%s2000_s27 + $0x3a8] sm:$0xff] %v386_v53 }
  0x4e   : > { %389 = vst [vmem:[%s2000_s27 + $0x3b0] sm:$0xff] %v388_v54  ;;  %391 = vst [vmem:[%s2000_s27 + $0x3b8] sm:$0xff] %v390_v55  ;;  %v392_v56 = vld [vmem:[%s1995_s26 + $0x780] sm:$0xff]  ;;  %v394_v57 = vld [vmem:[%s1995_s26 + $0x788] sm:$0xff] }
  0x4f   : > { %v396_v58 = vld [vmem:[%s1995_s26 + $0x7a0] sm:$0xff]  ;;  %393 = vst [vmem:[%s2000_s27 + $0x3c0] sm:$0xff] %v392_v56  ;;  %395 = vst [vmem:[%s2000_s27 + $0x3c8] sm:$0xff] %v394_v57  ;;  %v398_v59 = vld [vmem:[%s1995_s26 + $0x7a8] sm:$0xff] }
  0x50   : > { %397 = vst [vmem:[%s2000_s27 + $0x3d0] sm:$0xff] %v396_v58  ;;  %v400_v60 = vld [vmem:[%s1995_s26 + $0x7c0] sm:$0xff]  ;;  %v402_v61 = vld [vmem:[%s1995_s26 + $0x7c8] sm:$0xff]  ;;  %399 = vst [vmem:[%s2000_s27 + $0x3d8] sm:$0xff] %v398_v59 }
  0x51   : > { %401 = vst [vmem:[%s2000_s27 + $0x3e0] sm:$0xff] %v400_v60  ;;  %403 = vst [vmem:[%s2000_s27 + $0x3e8] sm:$0xff] %v402_v61  ;;  %v404_v62 = vld [vmem:[%s1995_s26 + $0x7e0] sm:$0xff]  ;;  %v406_v63 = vld [vmem:[%s1995_s26 + $0x7e8] sm:$0xff] }
  0x52   : > { %405 = vst [vmem:[%s2000_s27 + $0x3f0] sm:$0xff] %v404_v62  ;;  %407 = vst [vmem:[%s2000_s27 + $0x3f8] sm:$0xff] %v406_v63 }
  0x53 PF: > { %p1555_p7 = scmp.ge.s32.totalorder %s1932_s14, 1  ;;  %p420_p8 = scmp.lt.s32.totalorder %s1932_s14, 3 }
  0x55   : > { %p421_p9 = pnand %p1555_p7, %p420_p8 }
  0x56   : > { %s427_s28 = sand.u32 (!%p421_p9), 1, %s1924_s12   ;;  %s1558_s26 = sshll.u32 (!%p421_p9), %s1970_s15, 2 }
  0x57   : > { %424 = sbr.rel (%p421_p9) target bundleno = 434 (0x1b2), region = 51  ;;  %s1556_s8 = sshll.u32 (!%p421_p9), %s427_s28, 10 }
  0x58   : > { %s2276_s11 = scalar_lea.vmem (!%p421_p9), [#allocation2], %s1556_s8  ;;  %p455_p10 = scmp.lt.s32.totalorder (!%p421_p9), %s1558_s26, 7 }
  0x59   : > { %s1557_s4 = sshll.u32 (!%p421_p9), %s427_s28, 6 }
  0x5a   : > { %s2436_s5 = scalar_lea.vmem (!%p421_p9), [#allocation3], %s1557_s4 }
  0x5c   : > { %v461_v0 = vld [vmem:[%s2470_s0 + $0x8] sm:$0xff]  ;;  %v463_v2 = vld [vmem:[%s2470_s0 + $0x18] sm:$0xff]  ;;  %v1718_v6 = vld [vmem:[%s2276_s11 + $0xe4] ss:$16 sps:$4 sm:$0xff]   ;;  %s2479_s26 = smov (!%p455_p10, %s1558_s26), 7  ;;  %s1693_s12 = sshll.u32 (%p1985_p5), %s1970_s15, 5 }
  0x5d   : > { %v465_v1 = vld [vmem:[%s2470_s0 + $0x28] sm:$0xff]  ;;  %v467_v4 = vld [vmem:[%s2470_s0 + $0x38] sm:$0xff]  ;;  %v1720_v7 = vld [vmem:[%s2276_s11 + $0x2e4] ss:$16 sps:$4 sm:$0xff]   ;;  %1262 = vmatprep.subr.bf16.mxu0 %v1718_v6  ;;  %s457_s30 = scalar_lea.vmem %s2472_s2, %s2479_s26  ;;  %s1451_s7 = scalar_lea.vmem (%p1985_p5), %s2473_s3, %s1693_s12 }
  0x5e   : > { %v2269_v3 = vpack.c.bf16 %v465_v1, %v461_v0  ;;  %v2274_v5 = vpack.c.bf16 %v467_v4, %v463_v2  ;;  %v1722_v8 = vld [vmem:[%s2276_s11 + $0xe0] ss:$16 sps:$4 sm:$0xff]   ;;  %1305 = vmatprep.subr.bf16.mxu1 %v1720_v7  ;;  %v1724_v10 = vld [vmem:[%s2276_s11 + $0xc4] ss:$16 sps:$4 sm:$0xff]  }
  0x5f   : > { %v1723_v9 = vld [vmem:[%s2276_s11 + $0x2e0] ss:$16 sps:$4 sm:$0xff]   ;;  %1263 = vmatpush1.bf16.msra.mxu0 %v1722_v8  ;;  %v1726_v11 = vld [vmem:[%s2276_s11 + $0x2c4] ss:$16 sps:$4 sm:$0xff]  }
  0x60   : > { %1294 = vmatprep.mubr.bf16.mxu0 %v2269_v3  ;;  %1337 = vmatprep.mubr.bf16.mxu1 %v2274_v5  ;;  %v1728_v12 = vld [vmem:[%s2276_s11 + $0xc0] ss:$16 sps:$4 sm:$0xff]   ;;  %v1730_v14 = vld [vmem:[%s2276_s11 + $0xa4] ss:$16 sps:$4 sm:$0xff]  }
  0x61   : > { %1306 = vmatpush1.bf16.msra.mxu1 %v1723_v9  ;;  %1264 = vmatprep.subr.bf16.mxu0 %v1724_v10  ;;  %v1729_v13 = vld [vmem:[%s2276_s11 + $0x2c0] ss:$16 sps:$4 sm:$0xff]   ;;  %v1732_v15 = vld [vmem:[%s2276_s11 + $0x2a4] ss:$16 sps:$4 sm:$0xff]  }
  0x62   : > { %1307 = vmatprep.subr.bf16.mxu1 %v1726_v11  ;;  %v1734_v16 = vld [vmem:[%s2276_s11 + $0xa0] ss:$16 sps:$4 sm:$0xff]   ;;  %v1736_v18 = vld [vmem:[%s2276_s11 + $0x84] ss:$16 sps:$4 sm:$0xff]  }
  0x63   : > { %v1735_v17 = vld [vmem:[%s2276_s11 + $0x2a0] ss:$16 sps:$4 sm:$0xff]   ;;  %1265 = vmatpush1.bf16.msra.mxu0 %v1728_v12  ;;  %v1738_v19 = vld [vmem:[%s2276_s11 + $0x284] ss:$16 sps:$4 sm:$0xff]   ;;  %v1816_v12 = vld [vmem:[%s2276_s11 + $0xec] ss:$16 sps:$4 sm:$0xff]  }
  0x64   : > { %1266 = vmatprep.subr.bf16.mxu0 %v1730_v14  ;;  %v1740_v20 = vld [vmem:[%s2276_s11 + $0x80] ss:$16 sps:$4 sm:$0xff]   ;;  %v1742_v22 = vld [vmem:[%s2276_s11 + $0x64] ss:$16 sps:$4 sm:$0xff]  }
  0x65   : > { %1308 = vmatpush1.bf16.msra.mxu1 %v1729_v13  ;;  %v1741_v21 = vld [vmem:[%s2276_s11 + $0x280] ss:$16 sps:$4 sm:$0xff]   ;;  %v1744_v23 = vld [vmem:[%s2276_s11 + $0x264] ss:$16 sps:$4 sm:$0xff]   ;;  %v1819_v13 = vld [vmem:[%s2276_s11 + $0x2ec] ss:$16 sps:$4 sm:$0xff]  }
  0x66   : > { %1309 = vmatprep.subr.bf16.mxu1 %v1732_v15  ;;  %v1746_v24 = vld [vmem:[%s2276_s11 + $0x60] ss:$16 sps:$4 sm:$0xff]   ;;  %v1748_v26 = vld [vmem:[%s2276_s11 + $0x44] ss:$16 sps:$4 sm:$0xff]  }
  0x67   : > { %1267 = vmatpush1.bf16.msra.mxu0 %v1734_v16  ;;  %v1747_v25 = vld [vmem:[%s2276_s11 + $0x260] ss:$16 sps:$4 sm:$0xff]   ;;  %v1750_v27 = vld [vmem:[%s2276_s11 + $0x244] ss:$16 sps:$4 sm:$0xff]   ;;  %v1814_v16 = vld [vmem:[%s2276_s11 + $0xe8] ss:$16 sps:$4 sm:$0xff]  }
  0x68   : > { %1268 = vmatprep.subr.bf16.mxu0 %v1736_v18  ;;  %v1752_v28 = vld [vmem:[%s2276_s11 + $0x40] ss:$16 sps:$4 sm:$0xff]   ;;  %v1754_v30 = vld [vmem:[%s2276_s11 + $0x24] ss:$16 sps:$4 sm:$0xff]   ;;  %v1822_v18 = vld [vmem:[%s2276_s11 + $0xcc] ss:$16 sps:$4 sm:$0xff]  }
  0x69   : > { %1310 = vmatpush1.bf16.msra.mxu1 %v1735_v17  ;;  %v1753_v29 = vld [vmem:[%s2276_s11 + $0x240] ss:$16 sps:$4 sm:$0xff]   ;;  %v1756_v31 = vld [vmem:[%s2276_s11 + $0x224] ss:$16 sps:$4 sm:$0xff]   ;;  %v1817_v17 = vld [vmem:[%s2276_s11 + $0x2e8] ss:$16 sps:$4 sm:$0xff]  }
  0x6a   : > { %1311 = vmatprep.subr.bf16.mxu1 %v1738_v19  ;;  %v1758_v32 = vld [vmem:[%s2276_s11 + $0x20] ss:$16 sps:$4 sm:$0xff]   ;;  %v1760_v34 = vld [vmem:[%s2276_s11 + $0x4] ss:$16 sps:$4 sm:$0xff]   ;;  %v1825_v19 = vld [vmem:[%s2276_s11 + $0x2cc] ss:$16 sps:$4 sm:$0xff]  }
  0x6b   : > { %1269 = vmatpush1.bf16.msra.mxu0 %v1740_v20  ;;  %v1759_v33 = vld [vmem:[%s2276_s11 + $0x220] ss:$16 sps:$4 sm:$0xff]   ;;  %v1762_v35 = vld [vmem:[%s2276_s11 + $0x204] ss:$16 sps:$4 sm:$0xff]   ;;  %v1820_v20 = vld [vmem:[%s2276_s11 + $0xc8] ss:$16 sps:$4 sm:$0xff]  }
  0x6c   : > { %1270 = vmatprep.subr.bf16.mxu0 %v1742_v22  ;;  %v1764_v36 = vld [vmem:[%s2276_s11] ss:$16 sps:$4 sm:$0xff]   ;;  %v1766_v38 = vld [vmem:[%s2276_s11 + $0x1e4] ss:$16 sps:$4 sm:$0xff]   ;;  %v1828_v22 = vld [vmem:[%s2276_s11 + $0xac] ss:$16 sps:$4 sm:$0xff]  }
  0x6d   : > { %1312 = vmatpush1.bf16.msra.mxu1 %v1741_v21  ;;  %v1765_v37 = vld [vmem:[%s2276_s11 + $0x200] ss:$16 sps:$4 sm:$0xff]   ;;  %v1768_v39 = vld [vmem:[%s2276_s11 + $0x3e4] ss:$16 sps:$4 sm:$0xff]   ;;  %v1823_v21 = vld [vmem:[%s2276_s11 + $0x2c8] ss:$16 sps:$4 sm:$0xff]  }
  0x6e   : > { %1313 = vmatprep.subr.bf16.mxu1 %v1744_v23  ;;  %v1770_v40 = vld [vmem:[%s2276_s11 + $0x1e0] ss:$16 sps:$4 sm:$0xff]   ;;  %v1772_v42 = vld [vmem:[%s2276_s11 + $0x1c4] ss:$16 sps:$4 sm:$0xff]   ;;  %v1831_v23 = vld [vmem:[%s2276_s11 + $0x2ac] ss:$16 sps:$4 sm:$0xff]  }
  0x6f   : > { %1271 = vmatpush1.bf16.msra.mxu0 %v1746_v24  ;;  %v1771_v41 = vld [vmem:[%s2276_s11 + $0x3e0] ss:$16 sps:$4 sm:$0xff]   ;;  %v1774_v43 = vld [vmem:[%s2276_s11 + $0x3c4] ss:$16 sps:$4 sm:$0xff]   ;;  %v1826_v24 = vld [vmem:[%s2276_s11 + $0xa8] ss:$16 sps:$4 sm:$0xff]  }
  0x70   : > { %1272 = vmatprep.subr.bf16.mxu0 %v1748_v26  ;;  %v1776_v44 = vld [vmem:[%s2276_s11 + $0x1c0] ss:$16 sps:$4 sm:$0xff]   ;;  %v1778_v46 = vld [vmem:[%s2276_s11 + $0x1a4] ss:$16 sps:$4 sm:$0xff]   ;;  %v1834_v26 = vld [vmem:[%s2276_s11 + $0x8c] ss:$16 sps:$4 sm:$0xff]  }
  0x71   : > { %1314 = vmatpush1.bf16.msra.mxu1 %v1747_v25  ;;  %v1777_v45 = vld [vmem:[%s2276_s11 + $0x3c0] ss:$16 sps:$4 sm:$0xff]   ;;  %v1780_v47 = vld [vmem:[%s2276_s11 + $0x3a4] ss:$16 sps:$4 sm:$0xff]   ;;  %v1829_v25 = vld [vmem:[%s2276_s11 + $0x2a8] ss:$16 sps:$4 sm:$0xff]  }
  0x72   : > { %1315 = vmatprep.subr.bf16.mxu1 %v1750_v27  ;;  %v1782_v48 = vld [vmem:[%s2276_s11 + $0x1a0] ss:$16 sps:$4 sm:$0xff]   ;;  %v1784_v50 = vld [vmem:[%s2276_s11 + $0x184] ss:$16 sps:$4 sm:$0xff]   ;;  %v1837_v27 = vld [vmem:[%s2276_s11 + $0x28c] ss:$16 sps:$4 sm:$0xff]  }
  0x73   : > { %1273 = vmatpush1.bf16.msra.mxu0 %v1752_v28  ;;  %v1783_v49 = vld [vmem:[%s2276_s11 + $0x3a0] ss:$16 sps:$4 sm:$0xff]   ;;  %v1786_v51 = vld [vmem:[%s2276_s11 + $0x384] ss:$16 sps:$4 sm:$0xff]   ;;  %v1832_v28 = vld [vmem:[%s2276_s11 + $0x88] ss:$16 sps:$4 sm:$0xff]  }
  0x74   : > { %1274 = vmatprep.subr.bf16.mxu0 %v1754_v30  ;;  %v1788_v52 = vld [vmem:[%s2276_s11 + $0x180] ss:$16 sps:$4 sm:$0xff]   ;;  %v1790_v54 = vld [vmem:[%s2276_s11 + $0x164] ss:$16 sps:$4 sm:$0xff]   ;;  %v1838_v30 = vld [vmem:[%s2276_s11 + $0x68] ss:$16 sps:$4 sm:$0xff]  }
  0x75   : > { %1316 = vmatpush1.bf16.msra.mxu1 %v1753_v29  ;;  %v1789_v53 = vld [vmem:[%s2276_s11 + $0x380] ss:$16 sps:$4 sm:$0xff]   ;;  %v1792_v55 = vld [vmem:[%s2276_s11 + $0x364] ss:$16 sps:$4 sm:$0xff]   ;;  %v1835_v29 = vld [vmem:[%s2276_s11 + $0x288] ss:$16 sps:$4 sm:$0xff]  }
  0x76   : > { %1317 = vmatprep.subr.bf16.mxu1 %v1756_v31  ;;  %v1794_v56 = vld [vmem:[%s2276_s11 + $0x160] ss:$16 sps:$4 sm:$0xff]   ;;  %v1796_v58 = vld [vmem:[%s2276_s11 + $0x144] ss:$16 sps:$4 sm:$0xff]   ;;  %v1841_v31 = vld [vmem:[%s2276_s11 + $0x268] ss:$16 sps:$4 sm:$0xff]  }
  0x77   : > { %1275 = vmatpush1.bf16.msra.mxu0 %v1758_v32  ;;  %v1795_v57 = vld [vmem:[%s2276_s11 + $0x360] ss:$16 sps:$4 sm:$0xff]   ;;  %v1798_v59 = vld [vmem:[%s2276_s11 + $0x344] ss:$16 sps:$4 sm:$0xff]   ;;  %v1846_v32 = vld [vmem:[%s2276_s11 + $0x4c] ss:$16 sps:$4 sm:$0xff]  }
  0x78   : > { %1276 = vmatprep.subr.bf16.mxu0 %v1760_v34  ;;  %v1800_v60 = vld [vmem:[%s2276_s11 + $0x140] ss:$16 sps:$4 sm:$0xff]   ;;  %v1802_v62 = vld [vmem:[%s2276_s11 + $0x124] ss:$16 sps:$4 sm:$0xff]   ;;  %v1844_v34 = vld [vmem:[%s2276_s11 + $0x48] ss:$16 sps:$4 sm:$0xff]  }
  0x79   : > { %1318 = vmatpush1.bf16.msra.mxu1 %v1759_v33  ;;  %v1801_v61 = vld [vmem:[%s2276_s11 + $0x340] ss:$16 sps:$4 sm:$0xff]   ;;  %v1804_v63 = vld [vmem:[%s2276_s11 + $0x324] ss:$16 sps:$4 sm:$0xff]   ;;  %v1849_v33 = vld [vmem:[%s2276_s11 + $0x24c] ss:$16 sps:$4 sm:$0xff]  }
  0x7a   : > { %1319 = vmatprep.subr.bf16.mxu1 %v1762_v35  ;;  %v1806_v0 = vld [vmem:[%s2276_s11 + $0x120] ss:$16 sps:$4 sm:$0xff]   ;;  %v1808_v2 = vld [vmem:[%s2276_s11 + $0x104] ss:$16 sps:$4 sm:$0xff]   ;;  %v1847_v35 = vld [vmem:[%s2276_s11 + $0x248] ss:$16 sps:$4 sm:$0xff]  }
  0x7b   : > { %1277 = vmatpush1.bf16.msra.mxu0 %v1764_v36  ;;  %v1807_v1 = vld [vmem:[%s2276_s11 + $0x320] ss:$16 sps:$4 sm:$0xff]   ;;  %v1810_v4 = vld [vmem:[%s2276_s11 + $0x304] ss:$16 sps:$4 sm:$0xff]   ;;  %v1852_v36 = vld [vmem:[%s2276_s11 + $0x2c] ss:$16 sps:$4 sm:$0xff]  }
  0x7c   : > { %1278 = vmatprep.subr.bf16.mxu0 %v1766_v38  ;;  %v460_v6 = vld [vmem:[%s2470_s0] sm:$0xff]  ;;  %v462_v8 = vld [vmem:[%s2470_s0 + $0x10] sm:$0xff]  ;;  %v1850_v38 = vld [vmem:[%s2276_s11 + $0x28] ss:$16 sps:$4 sm:$0xff]  }
  0x7d   : > { %1320 = vmatpush1.bf16.msra.mxu1 %v1765_v37  ;;  %v464_v7 = vld [vmem:[%s2470_s0 + $0x20] sm:$0xff]  ;;  %v466_v9 = vld [vmem:[%s2470_s0 + $0x30] sm:$0xff]  ;;  %v1855_v37 = vld [vmem:[%s2276_s11 + $0x22c] ss:$16 sps:$4 sm:$0xff]  }
  0x7e   : > { %1321 = vmatprep.subr.bf16.mxu1 %v1768_v39  ;;  %v1812_v10 = vld [vmem:[%s2276_s11 + $0x100] ss:$16 sps:$4 sm:$0xff]   ;;  %v2358_v14 = vpack.c.bf16 %v464_v7, %v460_v6  ;;  %v2360_v15 = vpack.c.bf16 %v466_v9, %v462_v8  ;;  %v1853_v39 = vld [vmem:[%s2276_s11 + $0x228] ss:$16 sps:$4 sm:$0xff]   ;;  %v1900_v6 = vld [vmem:[%s2276_s11 + $0x12c] ss:$16 sps:$4 sm:$0xff]  }
  0x7f   : > { %1279 = vmatpush2.bf16.msra.mxu0 %v1770_v40  ;;  %v1813_v11 = vld [vmem:[%s2276_s11 + $0x300] ss:$16 sps:$4 sm:$0xff]   ;;  %v1858_v40 = vld [vmem:[%s2276_s11 + $0xc] ss:$16 sps:$4 sm:$0xff]   ;;  %v1898_v8 = vld [vmem:[%s2276_s11 + $0x128] ss:$16 sps:$4 sm:$0xff]  }
  0x80   : > { %1280 = vmatprep.subr.bf16.mxu0 %v1772_v42  ;;  %v1856_v42 = vld [vmem:[%s2276_s11 + $0x8] ss:$16 sps:$4 sm:$0xff]   ;;  %v1903_v7 = vld [vmem:[%s2276_s11 + $0x32c] ss:$16 sps:$4 sm:$0xff]  }
  0x81   : > { %1322 = vmatpush2.bf16.msra.mxu1 %v1771_v41  ;;  %v1861_v41 = vld [vmem:[%s2276_s11 + $0x20c] ss:$16 sps:$4 sm:$0xff]   ;;  %v1901_v9 = vld [vmem:[%s2276_s11 + $0x328] ss:$16 sps:$4 sm:$0xff]  }
  0x82   : > { %1323 = vmatprep.subr.bf16.mxu1 %v1774_v43  ;;  %v1859_v43 = vld [vmem:[%s2276_s11 + $0x208] ss:$16 sps:$4 sm:$0xff]  }
  0x83   : > { %1281 = vmatpush2.bf16.msra.mxu0 %v1776_v44  ;;  %v1864_v44 = vld [vmem:[%s2276_s11 + $0x1ec] ss:$16 sps:$4 sm:$0xff]  }
  0x84   : > { %1282 = vmatprep.subr.bf16.mxu0 %v1778_v46  ;;  %v1862_v46 = vld [vmem:[%s2276_s11 + $0x1e8] ss:$16 sps:$4 sm:$0xff]  }
  0x85   : > { %1324 = vmatpush2.bf16.msra.mxu1 %v1777_v45  ;;  %v1867_v45 = vld [vmem:[%s2276_s11 + $0x3ec] ss:$16 sps:$4 sm:$0xff]  }
  0x86   : > { %1325 = vmatprep.subr.bf16.mxu1 %v1780_v47  ;;  %v1865_v47 = vld [vmem:[%s2276_s11 + $0x3e8] ss:$16 sps:$4 sm:$0xff]  }
  0x87   : > { %1283 = vmatpush2.bf16.msra.mxu0 %v1782_v48  ;;  %v1870_v48 = vld [vmem:[%s2276_s11 + $0x1cc] ss:$16 sps:$4 sm:$0xff]  }
  0x88   : > { %1284 = vmatprep.subr.bf16.mxu0 %v1784_v50  ;;  %v1868_v50 = vld [vmem:[%s2276_s11 + $0x1c8] ss:$16 sps:$4 sm:$0xff]  }
  0x89   : > { %1326 = vmatpush2.bf16.msra.mxu1 %v1783_v49  ;;  %v1873_v49 = vld [vmem:[%s2276_s11 + $0x3cc] ss:$16 sps:$4 sm:$0xff]  }
  0x8a   : > { %1327 = vmatprep.subr.bf16.mxu1 %v1786_v51  ;;  %v1871_v51 = vld [vmem:[%s2276_s11 + $0x3c8] ss:$16 sps:$4 sm:$0xff]  }
  0x8b   : > { %1285 = vmatpush2.bf16.msra.mxu0 %v1788_v52  ;;  %v1876_v52 = vld [vmem:[%s2276_s11 + $0x1ac] ss:$16 sps:$4 sm:$0xff]  }
  0x8c   : > { %1286 = vmatprep.subr.bf16.mxu0 %v1790_v54  ;;  %v1874_v54 = vld [vmem:[%s2276_s11 + $0x1a8] ss:$16 sps:$4 sm:$0xff]  }
  0x8d   : > { %1328 = vmatpush2.bf16.msra.mxu1 %v1789_v53  ;;  %v1879_v53 = vld [vmem:[%s2276_s11 + $0x3ac] ss:$16 sps:$4 sm:$0xff]  }
  0x8e   : > { %1329 = vmatprep.subr.bf16.mxu1 %v1792_v55  ;;  %v1877_v55 = vld [vmem:[%s2276_s11 + $0x3a8] ss:$16 sps:$4 sm:$0xff]  }
  0x8f   : > { %1287 = vmatpush2.bf16.msra.mxu0 %v1794_v56  ;;  %v1882_v56 = vld [vmem:[%s2276_s11 + $0x18c] ss:$16 sps:$4 sm:$0xff]  }
  0x90   : > { %1288 = vmatprep.subr.bf16.mxu0 %v1796_v58  ;;  %v1880_v58 = vld [vmem:[%s2276_s11 + $0x188] ss:$16 sps:$4 sm:$0xff]  }
  0x91   : > { %1330 = vmatpush2.bf16.msra.mxu1 %v1795_v57  ;;  %v1885_v57 = vld [vmem:[%s2276_s11 + $0x38c] ss:$16 sps:$4 sm:$0xff]  }
  0x92   : > { %1331 = vmatprep.subr.bf16.mxu1 %v1798_v59  ;;  %v1883_v59 = vld [vmem:[%s2276_s11 + $0x388] ss:$16 sps:$4 sm:$0xff]  }
  0x93   : > { %1289 = vmatpush2.bf16.msra.mxu0 %v1800_v60  ;;  %v1888_v60 = vld [vmem:[%s2276_s11 + $0x16c] ss:$16 sps:$4 sm:$0xff]  }
  0x94   : > { %1290 = vmatprep.subr.bf16.mxu0 %v1802_v62  ;;  %v1886_v62 = vld [vmem:[%s2276_s11 + $0x168] ss:$16 sps:$4 sm:$0xff]  }
  0x95   : > { %1332 = vmatpush2.bf16.msra.mxu1 %v1801_v61  ;;  %v1891_v61 = vld [vmem:[%s2276_s11 + $0x36c] ss:$16 sps:$4 sm:$0xff]  }
  0x96   : > { %1333 = vmatprep.subr.bf16.mxu1 %v1804_v63  ;;  %v1889_v63 = vld [vmem:[%s2276_s11 + $0x368] ss:$16 sps:$4 sm:$0xff]  }
  0x97   : > { %1291 = vmatpush2.bf16.msra.mxu0 %v1806_v0  ;;  %v1894_v0 = vld [vmem:[%s2276_s11 + $0x14c] ss:$16 sps:$4 sm:$0xff]  }
  0x98   : > { %1292 = vmatprep.subr.bf16.mxu0 %v1808_v2  ;;  %v1892_v2 = vld [vmem:[%s2276_s11 + $0x148] ss:$16 sps:$4 sm:$0xff]  }
  0x99   : > { %1334 = vmatpush2.bf16.msra.mxu1 %v1807_v1  ;;  %v1897_v1 = vld [vmem:[%s2276_s11 + $0x34c] ss:$16 sps:$4 sm:$0xff]  }
  0x9a   : > { %1335 = vmatprep.subr.bf16.mxu1 %v1810_v4  ;;  %v1895_v4 = vld [vmem:[%s2276_s11 + $0x348] ss:$16 sps:$4 sm:$0xff]  }
  0x9b   : > { %1293 = vmatpush2.bf16.msra.mxu0 %v1812_v10  ;;  %v1906_v10 = vld [vmem:[%s2276_s11 + $0x10c] ss:$16 sps:$4 sm:$0xff]  }
  0x9c   : > { %1348 = vmatprep.subr.bf16.mxu0 %v1816_v12  ;;  %v1904_v12 = vld [vmem:[%s2276_s11 + $0x108] ss:$16 sps:$4 sm:$0xff]  }
  0x9d   : > { %1336 = vmatpush2.bf16.msra.mxu1 %v1813_v11  ;;  %v1909_v11 = vld [vmem:[%s2276_s11 + $0x30c] ss:$16 sps:$4 sm:$0xff]  }
  0x9e   : > { %1391 = vmatprep.subr.bf16.mxu1 %v1819_v13  ;;  %1295 = vmatmul.mubr.bf16.vlgmr.msra.gmra.mxu0 %v2358_v14  ;;  %v1907_v13 = vld [vmem:[%s2276_s11 + $0x308] ss:$16 sps:$4 sm:$0xff]  }
  0x9f   : > { %1349 = vmatpush1.bf16.msra.mxu0 %v1814_v16  ;;  %1380 = vmatprep.mubr.bf16.mxu0 %v2269_v3  ;;  %v1840_v3 = vld [vmem:[%s2276_s11 + $0x6c] ss:$16 sps:$4 sm:$0xff]   ;;  %v602_v16 = vlaneseq }
  0xa0   : > { %1338 = vmatmul.mubr.bf16.vlgmr.msra.gmra.mxu1 %v2360_v15  ;;  %1350 = vmatprep.subr.bf16.mxu0 %v1822_v18 }
  0xa1   : > { %1392 = vmatpush1.bf16.msra.mxu1 %v1817_v17  ;;  %1423 = vmatprep.mubr.bf16.mxu1 %v2274_v5  ;;  %v1843_v5 = vld [vmem:[%s2276_s11 + $0x26c] ss:$16 sps:$4 sm:$0xff]   ;;  %v603_v17 = vshrl.u32 %v602_v16, 7 }
  0xa2   : > { %1393 = vmatprep.subr.bf16.mxu1 %v1825_v19  ;;  %v600_v19 = vld [vmem:[%s457_s30] sm:$0xf] }
  0xa3   : > { %1351 = vmatpush1.bf16.msra.mxu0 %v1820_v20  ;;  %v604_v18 = vsub.s32 0, %v603_v17  ;;  %v608_v20 = vsub.s32 1, %v603_v17 }
  0xa4   : > { %1352 = vmatprep.subr.bf16.mxu0 %v1828_v22 }
  0xa5   : > { %1394 = vmatpush1.bf16.msra.mxu1 %v1823_v21  ;;  %v605_v21 = vrot.slane %v600_v19, %v604_v18  ;;  %v609_v22 = vrot.slane %v600_v19, %v608_v20 }
  0xa6   : > { %1395 = vmatprep.subr.bf16.mxu1 %v1831_v23 }
  0xa7   : > { %1353 = vmatpush1.bf16.msra.mxu0 %v1826_v24 }
  0xa8   : > { %1354 = vmatprep.subr.bf16.mxu0 %v1834_v26 }
  0xa9   : > { %1396 = vmatpush1.bf16.msra.mxu1 %v1829_v25 }
  0xaa   : > { %1397 = vmatprep.subr.bf16.mxu1 %v1837_v27 }
  0xab   : > { %1355 = vmatpush1.bf16.msra.mxu0 %v1832_v28 }
  0xac   : > { %1356 = vmatprep.subr.bf16.mxu0 %v1840_v3 }
  0xad   : > { %1398 = vmatpush1.bf16.msra.mxu1 %v1835_v29 }
  0xae   : > { %1399 = vmatprep.subr.bf16.mxu1 %v1843_v5 }
  0xaf   : > { %1357 = vmatpush1.bf16.msra.mxu0 %v1838_v30 }
  0xb0   : > { %1358 = vmatprep.subr.bf16.mxu0 %v1846_v32 }
  0xb1   : > { %1400 = vmatpush1.bf16.msra.mxu1 %v1841_v31 }
  0xb2   : > { %1401 = vmatprep.subr.bf16.mxu1 %v1849_v33 }
  0xb3   : > { %1359 = vmatpush1.bf16.msra.mxu0 %v1844_v34 }
  0xb4   : > { %1360 = vmatprep.subr.bf16.mxu0 %v1852_v36  ;;  %v616_v36 = vsub.s32 3, %v603_v17 }
  0xb5   : > { %1402 = vmatpush1.bf16.msra.mxu1 %v1847_v35  ;;  %v612_v35 = vsub.s32 2, %v603_v17 }
  0xb6   : > { %1403 = vmatprep.subr.bf16.mxu1 %v1855_v37 }
  0xb7   : > { %1361 = vmatpush1.bf16.msra.mxu0 %v1850_v38  ;;  %v613_v37 = vrot.slane %v600_v19, %v612_v35  ;;  %v617_v38 = vrot.slane %v600_v19, %v616_v36 }
  0xb8   : > { %1362 = vmatprep.subr.bf16.mxu0 %v1858_v40 }
  0xb9   : > { %1404 = vmatpush1.bf16.msra.mxu1 %v1853_v39 }
  0xba   : > { %1405 = vmatprep.subr.bf16.mxu1 %v1861_v41 }
  0xbb   : > { %1363 = vmatpush1.bf16.msra.mxu0 %v1856_v42 }
  0xbc   : > { %1364 = vmatprep.subr.bf16.mxu0 %v1864_v44 }
  0xbd   : > { %1406 = vmatpush1.bf16.msra.mxu1 %v1859_v43 }
  0xbe   : > { %1407 = vmatprep.subr.bf16.mxu1 %v1867_v45 }
  0xbf   : > { %1365 = vmatpush2.bf16.msra.mxu0 %v1862_v46 }
  0xc0   : > { %1366 = vmatprep.subr.bf16.mxu0 %v1870_v48 }
  0xc1   : > { %1408 = vmatpush2.bf16.msra.mxu1 %v1865_v47 }
  0xc2   : > { %1409 = vmatprep.subr.bf16.mxu1 %v1873_v49 }
  0xc3   : > { %1367 = vmatpush2.bf16.msra.mxu0 %v1868_v50 }
  0xc4   : > { %1368 = vmatprep.subr.bf16.mxu0 %v1876_v52 }
  0xc5   : > { %1410 = vmatpush2.bf16.msra.mxu1 %v1871_v51 }
  0xc6   : > { %1411 = vmatprep.subr.bf16.mxu1 %v1879_v53 }
  0xc7   : > { %1369 = vmatpush2.bf16.msra.mxu0 %v1874_v54 }
  0xc8   : > { %1370 = vmatprep.subr.bf16.mxu0 %v1882_v56 }
  0xc9   : > { %1412 = vmatpush2.bf16.msra.mxu1 %v1877_v55 }
  0xca   : > { %1413 = vmatprep.subr.bf16.mxu1 %v1885_v57 }
  0xcb   : > { %1371 = vmatpush2.bf16.msra.mxu0 %v1880_v58 }
  0xcc   : > { %1372 = vmatprep.subr.bf16.mxu0 %v1888_v60 }
  0xcd   : > { %1414 = vmatpush2.bf16.msra.mxu1 %v1883_v59 }
  0xce   : > { %1415 = vmatprep.subr.bf16.mxu1 %v1891_v61 }
  0xcf   : > { %1373 = vmatpush2.bf16.msra.mxu0 %v1886_v62 }
  0xd0   : > { %1374 = vmatprep.subr.bf16.mxu0 %v1894_v0 }
  0xd1   : > { %1416 = vmatpush2.bf16.msra.mxu1 %v1889_v63 }
  0xd2   : > { %1417 = vmatprep.subr.bf16.mxu1 %v1897_v1 }
  0xd3   : > { %1375 = vmatpush2.bf16.msra.mxu0 %v1892_v2 }
  0xd4   : > { %1376 = vmatprep.subr.bf16.mxu0 %v1900_v6 }
  0xd5   : > { %1418 = vmatpush2.bf16.msra.mxu1 %v1895_v4 }
  0xd6   : > { %1419 = vmatprep.subr.bf16.mxu1 %v1903_v7 }
  0xd7   : > { %1377 = vmatpush2.bf16.msra.mxu0 %v1898_v8 }
  0xd8   : > { %1378 = vmatprep.subr.bf16.mxu0 %v1906_v10 }
  0xd9   : > { %1420 = vmatpush2.bf16.msra.mxu1 %v1901_v9 }
  0xda   : > { %1421 = vmatprep.subr.bf16.mxu1 %v1909_v11 }
  0xdb   : > { %1379 = vmatpush2.bf16.msra.mxu0 %v1904_v12 }
  0xdd   : > { %1422 = vmatpush2.bf16.msra.mxu1 %v1907_v13 }
  0xde   : > { %1381 = vmatmul.mubr.bf16.vlgmr.msra.gmra.mxu0 %v2358_v14 }
  0xe0   : > { %1424 = vmatmul.mubr.bf16.vlgmr.msra.gmra.mxu1 %v2360_v15 }
 0x15e   : > { %v1296_v23 = vpop.f32.mrf.mxu0 }
 0x15f   : > { %v1297_v24 = vadd.f32 %v1296_v23, %v605_v21 }
 0x160   : > { %v1339_v14 = vpop.f32.mrf.mxu1  ;;  %v1298_v15 = vpop.f32.mrf.mxu0 }
 0x161   : > { %v1340_v26 = vadd.f32 %v1339_v14, %v1297_v24  ;;  %v1299_v27 = vadd.f32 %v1298_v15, %v609_v22 }
 0x162   : > { %v1341_v25 = vpop.f32.mrf.mxu1  ;;  %v1300_v28 = vpop.f32.mrf.mxu0 }
 0x163   : > { %1434 = vst [vmem:[%s2436_s5] sm:$0xff] %v1340_v26  ;;  %v1342_v3 = vadd.f32 %v1341_v25, %v1299_v27  ;;  %v1301_v5 = vadd.f32 %v1300_v28, %v605_v21 }
 0x164   : > { %v1343_v29 = vpop.f32.mrf.mxu1  ;;  %v1302_v30 = vpop.f32.mrf.mxu0 }
 0x165   : > { %1435 = vst [vmem:[%s2436_s5 + $0x8] sm:$0xff] %v1342_v3  ;;  %v1344_v31 = vadd.f32 %v1343_v29, %v1301_v5  ;;  %v1303_v32 = vadd.f32 %v1302_v30, %v609_v22 }
 0x166   : > { %v1345_v33 = vpop.f32.mrf.mxu1 }
 0x167   : > { %1438 = vst [vmem:[%s2436_s5 + $0x20] sm:$0xff] %v1344_v31  ;;  %v1346_v34 = vadd.f32 %v1345_v33, %v1303_v32 }
 0x169   : > { %1439 = vst [vmem:[%s2436_s5 + $0x28] sm:$0xff] %v1346_v34 }
 0x16a   : > { %v1464_v55 = vld [vmem:[%s2436_s5] sm:$0xff] (%p1985_p5) }
 0x16b   : > { %1465 = vst [vmem:[%s1451_s7] sm:$0xff] (%p1985_p5), %v1464_v55 }
 0x16c   : > { %v1466_v56 = vld [vmem:[%s2436_s5 + $0x8] sm:$0xff] (%p1985_p5) }
 0x16d   : > { %1467 = vst [vmem:[%s1451_s7 + $0x8] sm:$0xff] (%p1985_p5), %v1466_v56 }
 0x16e   : > { %v1472_v59 = vld [vmem:[%s2436_s5 + $0x20] sm:$0xff] (%p1985_p5) }
 0x16f   : > { %1473 = vst [vmem:[%s1451_s7 + $0x40] sm:$0xff] (%p1985_p5), %v1472_v59 }
 0x170   : > { %v1474_v60 = vld [vmem:[%s2436_s5 + $0x28] sm:$0xff] (%p1985_p5) }
 0x171   : > { %1475 = vst [vmem:[%s1451_s7 + $0x48] sm:$0xff] (%p1985_p5), %v1474_v60 }
 0x19e   : > { %v1382_v39 = vpop.f32.mrf.mxu0 }
 0x19f   : > { %v1383_v41 = vadd.f32 %v1382_v39, %v613_v37 }
 0x1a0   : > { %v1425_v40 = vpop.f32.mrf.mxu1  ;;  %v1384_v42 = vpop.f32.mrf.mxu0 }
 0x1a1   : > { %v1426_v44 = vadd.f32 %v1425_v40, %v1383_v41  ;;  %v1385_v45 = vadd.f32 %v1384_v42, %v617_v38 }
 0x1a2   : > { %v1427_v43 = vpop.f32.mrf.mxu1  ;;  %v1386_v46 = vpop.f32.mrf.mxu0 }
 0x1a3   : > { %1436 = vst [vmem:[%s2436_s5 + $0x10] sm:$0xff] %v1426_v44  ;;  %v1428_v48 = vadd.f32 %v1427_v43, %v1385_v45  ;;  %v1387_v49 = vadd.f32 %v1386_v46, %v613_v37 }
 0x1a4   : > { %v1429_v47 = vpop.f32.mrf.mxu1  ;;  %v1388_v50 = vpop.f32.mrf.mxu0 }
 0x1a5   : > { %1437 = vst [vmem:[%s2436_s5 + $0x18] sm:$0xff] %v1428_v48  ;;  %v1430_v51 = vadd.f32 %v1429_v47, %v1387_v49  ;;  %v1389_v52 = vadd.f32 %v1388_v50, %v617_v38  ;;  %1448 = sbr.rel (!%p1985_p5) target bundleno = 434 (0x1b2), region = 59 }
 0x1a6   : > { %v1431_v53 = vpop.f32.mrf.mxu1 }
 0x1a7   : > { %1440 = vst [vmem:[%s2436_s5 + $0x30] sm:$0xff] %v1430_v51  ;;  %v1432_v54 = vadd.f32 %v1431_v53, %v1389_v52 }
 0x1a9   : > { %1441 = vst [vmem:[%s2436_s5 + $0x38] sm:$0xff] %v1432_v54 }
 0x1aa   : > { %v1468_v57 = vld [vmem:[%s2436_s5 + $0x10] sm:$0xff] }
 0x1ab   : > { %1469 = vst [vmem:[%s1451_s7 + $0x10] sm:$0xff] %v1468_v57 }
 0x1ac   : > { %v1470_v58 = vld [vmem:[%s2436_s5 + $0x18] sm:$0xff] }
 0x1ad   : > { %1471 = vst [vmem:[%s1451_s7 + $0x18] sm:$0xff] %v1470_v58 }
 0x1ae   : > { %v1476_v61 = vld [vmem:[%s2436_s5 + $0x30] sm:$0xff] }
 0x1af   : > { %1477 = vst [vmem:[%s1451_s7 + $0x50] sm:$0xff] %v1476_v61 }
 0x1b0   : > { %v1478_v62 = vld [vmem:[%s2436_s5 + $0x38] sm:$0xff] }
 0x1b1   : > { %1479 = vst [vmem:[%s1451_s7 + $0x58] sm:$0xff] %v1478_v62 }
 0x1b2 PF: > { %p10_p11 = scmp.ge.s32.totalorder %s1973_s16, 4   ;;  %s2475_s12 = smov %s1928_s13 }
 0x1b3   : > { %s2476_s13 = smov %s1983_s19  ;;  %s2477_s14 = smov %s1973_s16 }
 0x1b4   :  { %12 = sbr.rel (!%p10_p11) target bundleno = 2 (0x2), region = 116 }

// kernel: transformer2_forward.74
= control target key start
LH: loop header
LB: loop body
LE: loop exit
PB: predicated region body
PF: predicated region fallthrough
CT: control target
= control target key end

     0   :  { %s2135_s18 = smov 0   ;;  %s2137_s19 = smov 0   ;;  %s2741_s0 = inlined_call_operand.vmem [shape: f32[16,512], index: 0, kind: input, shape index: {}]   ;;  %s2742_s1 = inlined_call_operand.vmem [shape: f32[1,512], index: 1, kind: input, shape index: {}]   ;;  %s2743_s2 = inlined_call_operand.vmem [shape: f32[1,512], index: 2, kind: input, shape index: {}]   ;;  %s2744_s3 = inlined_call_operand.vmem [shape: bf16[512,1536], index: 3, kind: input, shape index: {}]   ;;  %s2745_s4 = inlined_call_operand.vmem [shape: f32[1,1536], index: 4, kind: input, shape index: {}]   ;;  %s2746_s5 = inlined_call_operand.vmem [shape: f32[16,1536], index: 5, kind: output, shape index: {}]  }
   0x1   :  { %s2139_s20 = smov 0  }
   0x2 LB: > { %s2151_s21 = sadd.s32 4294967295, %s2103_s20   ;;  %s2154_s22 = sadd.s32 1, %s2103_s20   ;;  %s2103_s20 = sphi %s2139_s20, %s2750_s20   ;;  %s2099_s19 = sphi %s2137_s19, %s2749_s19   ;;  %s2095_s18 = sphi %s2135_s18, %s2748_s18  }
   0x3   : > { %s82_s23 = ssub.s32 %s2103_s20, %s2154_s22  ;;  %s85_s24 = sadd.s32 1, %s2099_s19 }
   0x4   : > { %p83_p0 = scmp.eq.s32.totalorder %s82_s23, 0  ;;  %p92_p1 = scmp.ne.s32.totalorder %s2099_s19, %s2095_s18 }
   0x5   : > { %p93_p2 = scmp.eq.s32.totalorder %s2103_s20, 0  ;;  %p148_p3 = scmp.eq.s32.totalorder %s2151_s21, 2 }
   0x6   : > { %s2164_s25 = scalar_select %p83_p0, %s2099_s19, %s85_s24  }
   0x7   : > { %p94_p4 = por %p93_p2, %p92_p1  ;;  %p2166_p5 = por %p148_p3, %p92_p1 }
   0x8   : > { %p1718_p6 = scmp.ge.s32.totalorder %s2103_s20, 3 }
   0xa   : > { %179 = sbr.rel (%p1718_p6) target bundleno = 83 (0x53), region = 28 }
   0xf   : > { %182 = sbr.rel (!%p94_p4) target bundleno = 83 (0x53), region = 32  ;;  %s184_s27 = sand.u32 (%p94_p4), 1, %s2099_s19  }
  0x10   : > { %s1859_s28 = sshll.u32 (%p94_p4), %s2103_s20, 4  ;;  %s1719_s29 = sshll.u32 (%p94_p4), %s184_s27, 10 }
  0x11   : > { %s2176_s7 = scalar_lea.vmem (%p94_p4), %s2744_s3, %s1859_s28  ;;  %s2181_s8 = scalar_lea.vmem (%p94_p4), [#allocation2], %s1719_s29 }
  0x12   : > { %v202_v0 = vld [vmem:[%s2176_s7] sm:$0xff] (%p94_p4)  ;;  %v204_v1 = vld [vmem:[%s2176_s7 + $0x8] sm:$0xff] (%p94_p4)  ;;  %v206_v2 = vld [vmem:[%s2176_s7 + $0x30] sm:$0xff] (%p94_p4) }
  0x13   : > { %203 = vst [vmem:[%s2181_s8] sm:$0xff] (%p94_p4), %v202_v0  ;;  %205 = vst [vmem:[%s2181_s8 + $0x8] sm:$0xff] (%p94_p4), %v204_v1  ;;  %v208_v3 = vld [vmem:[%s2176_s7 + $0x38] sm:$0xff] (%p94_p4)  ;;  %v210_v4 = vld [vmem:[%s2176_s7 + $0x60] sm:$0xff] (%p94_p4) }
  0x14   : > { %207 = vst [vmem:[%s2181_s8 + $0x10] sm:$0xff] %v206_v2  ;;  %v212_v5 = vld [vmem:[%s2176_s7 + $0x68] sm:$0xff]  ;;  %209 = vst [vmem:[%s2181_s8 + $0x18] sm:$0xff] %v208_v3  ;;  %v214_v6 = vld [vmem:[%s2176_s7 + $0x90] sm:$0xff] }
  0x15   : > { %211 = vst [vmem:[%s2181_s8 + $0x20] sm:$0xff] %v210_v4  ;;  %213 = vst [vmem:[%s2181_s8 + $0x28] sm:$0xff] %v212_v5  ;;  %v216_v7 = vld [vmem:[%s2176_s7 + $0x98] sm:$0xff]  ;;  %v218_v8 = vld [vmem:[%s2176_s7 + $0xc0] sm:$0xff] }
  0x16   : > { %215 = vst [vmem:[%s2181_s8 + $0x30] sm:$0xff] %v214_v6  ;;  %217 = vst [vmem:[%s2181_s8 + $0x38] sm:$0xff] %v216_v7  ;;  %v220_v9 = vld [vmem:[%s2176_s7 + $0xc8] sm:$0xff]  ;;  %v222_v10 = vld [vmem:[%s2176_s7 + $0xf0] sm:$0xff] }
  0x17   : > { %219 = vst [vmem:[%s2181_s8 + $0x40] sm:$0xff] %v218_v8  ;;  %v224_v11 = vld [vmem:[%s2176_s7 + $0xf8] sm:$0xff]  ;;  %221 = vst [vmem:[%s2181_s8 + $0x48] sm:$0xff] %v220_v9  ;;  %v226_v12 = vld [vmem:[%s2176_s7 + $0x120] sm:$0xff] }
  0x18   : > { %223 = vst [vmem:[%s2181_s8 + $0x50] sm:$0xff] %v222_v10  ;;  %225 = vst [vmem:[%s2181_s8 + $0x58] sm:$0xff] %v224_v11  ;;  %v228_v13 = vld [vmem:[%s2176_s7 + $0x128] sm:$0xff]  ;;  %v230_v14 = vld [vmem:[%s2176_s7 + $0x150] sm:$0xff] }
  0x19   : > { %227 = vst [vmem:[%s2181_s8 + $0x60] sm:$0xff] %v226_v12  ;;  %229 = vst [vmem:[%s2181_s8 + $0x68] sm:$0xff] %v228_v13  ;;  %v232_v15 = vld [vmem:[%s2176_s7 + $0x158] sm:$0xff]  ;;  %v234_v16 = vld [vmem:[%s2176_s7 + $0x180] sm:$0xff] }
  0x1a   : > { %231 = vst [vmem:[%s2181_s8 + $0x70] sm:$0xff] %v230_v14  ;;  %v236_v17 = vld [vmem:[%s2176_s7 + $0x188] sm:$0xff]  ;;  %233 = vst [vmem:[%s2181_s8 + $0x78] sm:$0xff] %v232_v15  ;;  %v238_v18 = vld [vmem:[%s2176_s7 + $0x1b0] sm:$0xff] }
  0x1b   : > { %235 = vst [vmem:[%s2181_s8 + $0x80] sm:$0xff] %v234_v16  ;;  %237 = vst [vmem:[%s2181_s8 + $0x88] sm:$0xff] %v236_v17  ;;  %v240_v19 = vld [vmem:[%s2176_s7 + $0x1b8] sm:$0xff]  ;;  %v242_v20 = vld [vmem:[%s2176_s7 + $0x1e0] sm:$0xff] }
  0x1c   : > { %239 = vst [vmem:[%s2181_s8 + $0x90] sm:$0xff] %v238_v18  ;;  %241 = vst [vmem:[%s2181_s8 + $0x98] sm:$0xff] %v240_v19  ;;  %v244_v21 = vld [vmem:[%s2176_s7 + $0x1e8] sm:$0xff]  ;;  %v246_v22 = vld [vmem:[%s2176_s7 + $0x210] sm:$0xff] }
  0x1d   : > { %243 = vst [vmem:[%s2181_s8 + $0xa0] sm:$0xff] %v242_v20  ;;  %v248_v23 = vld [vmem:[%s2176_s7 + $0x218] sm:$0xff]  ;;  %245 = vst [vmem:[%s2181_s8 + $0xa8] sm:$0xff] %v244_v21  ;;  %v250_v24 = vld [vmem:[%s2176_s7 + $0x240] sm:$0xff] }
  0x1e   : > { %247 = vst [vmem:[%s2181_s8 + $0xb0] sm:$0xff] %v246_v22  ;;  %249 = vst [vmem:[%s2181_s8 + $0xb8] sm:$0xff] %v248_v23  ;;  %v252_v25 = vld [vmem:[%s2176_s7 + $0x248] sm:$0xff]  ;;  %v254_v26 = vld [vmem:[%s2176_s7 + $0x270] sm:$0xff] }
  0x1f   : > { %251 = vst [vmem:[%s2181_s8 + $0xc0] sm:$0xff] %v250_v24  ;;  %253 = vst [vmem:[%s2181_s8 + $0xc8] sm:$0xff] %v252_v25  ;;  %v256_v27 = vld [vmem:[%s2176_s7 + $0x278] sm:$0xff]  ;;  %v258_v28 = vld [vmem:[%s2176_s7 + $0x2a0] sm:$0xff] }
  0x20   : > { %255 = vst [vmem:[%s2181_s8 + $0xd0] sm:$0xff] %v254_v26  ;;  %v260_v29 = vld [vmem:[%s2176_s7 + $0x2a8] sm:$0xff]  ;;  %257 = vst [vmem:[%s2181_s8 + $0xd8] sm:$0xff] %v256_v27  ;;  %v262_v30 = vld [vmem:[%s2176_s7 + $0x2d0] sm:$0xff] }
  0x21   : > { %259 = vst [vmem:[%s2181_s8 + $0xe0] sm:$0xff] %v258_v28  ;;  %261 = vst [vmem:[%s2181_s8 + $0xe8] sm:$0xff] %v260_v29  ;;  %v264_v31 = vld [vmem:[%s2176_s7 + $0x2d8] sm:$0xff]  ;;  %v266_v32 = vld [vmem:[%s2176_s7 + $0x300] sm:$0xff] }
  0x22   : > { %263 = vst [vmem:[%s2181_s8 + $0xf0] sm:$0xff] %v262_v30  ;;  %265 = vst [vmem:[%s2181_s8 + $0xf8] sm:$0xff] %v264_v31  ;;  %v268_v33 = vld [vmem:[%s2176_s7 + $0x308] sm:$0xff]  ;;  %v270_v34 = vld [vmem:[%s2176_s7 + $0x330] sm:$0xff] }
  0x23   : > { %267 = vst [vmem:[%s2181_s8 + $0x100] sm:$0xff] %v266_v32  ;;  %v272_v35 = vld [vmem:[%s2176_s7 + $0x338] sm:$0xff]  ;;  %269 = vst [vmem:[%s2181_s8 + $0x108] sm:$0xff] %v268_v33  ;;  %v274_v36 = vld [vmem:[%s2176_s7 + $0x360] sm:$0xff] }
  0x24   : > { %271 = vst [vmem:[%s2181_s8 + $0x110] sm:$0xff] %v270_v34  ;;  %273 = vst [vmem:[%s2181_s8 + $0x118] sm:$0xff] %v272_v35  ;;  %v276_v37 = vld [vmem:[%s2176_s7 + $0x368] sm:$0xff]  ;;  %v278_v38 = vld [vmem:[%s2176_s7 + $0x390] sm:$0xff] }
  0x25   : > { %275 = vst [vmem:[%s2181_s8 + $0x120] sm:$0xff] %v274_v36  ;;  %277 = vst [vmem:[%s2181_s8 + $0x128] sm:$0xff] %v276_v37  ;;  %v280_v39 = vld [vmem:[%s2176_s7 + $0x398] sm:$0xff]  ;;  %v282_v40 = vld [vmem:[%s2176_s7 + $0x3c0] sm:$0xff] }
  0x26   : > { %279 = vst [vmem:[%s2181_s8 + $0x130] sm:$0xff] %v278_v38  ;;  %v284_v41 = vld [vmem:[%s2176_s7 + $0x3c8] sm:$0xff]  ;;  %281 = vst [vmem:[%s2181_s8 + $0x138] sm:$0xff] %v280_v39  ;;  %v286_v42 = vld [vmem:[%s2176_s7 + $0x3f0] sm:$0xff] }
  0x27   : > { %283 = vst [vmem:[%s2181_s8 + $0x140] sm:$0xff] %v282_v40  ;;  %285 = vst [vmem:[%s2181_s8 + $0x148] sm:$0xff] %v284_v41  ;;  %v288_v43 = vld [vmem:[%s2176_s7 + $0x3f8] sm:$0xff]  ;;  %v290_v44 = vld [vmem:[%s2176_s7 + $0x420] sm:$0xff] }
  0x28   : > { %287 = vst [vmem:[%s2181_s8 + $0x150] sm:$0xff] %v286_v42  ;;  %289 = vst [vmem:[%s2181_s8 + $0x158] sm:$0xff] %v288_v43  ;;  %v292_v45 = vld [vmem:[%s2176_s7 + $0x428] sm:$0xff]  ;;  %v294_v46 = vld [vmem:[%s2176_s7 + $0x450] sm:$0xff] }
  0x29   : > { %291 = vst [vmem:[%s2181_s8 + $0x160] sm:$0xff] %v290_v44  ;;  %v296_v47 = vld [vmem:[%s2176_s7 + $0x458] sm:$0xff]  ;;  %293 = vst [vmem:[%s2181_s8 + $0x168] sm:$0xff] %v292_v45  ;;  %v298_v48 = vld [vmem:[%s2176_s7 + $0x480] sm:$0xff] }
  0x2a   : > { %295 = vst [vmem:[%s2181_s8 + $0x170] sm:$0xff] %v294_v46  ;;  %297 = vst [vmem:[%s2181_s8 + $0x178] sm:$0xff] %v296_v47  ;;  %v300_v49 = vld [vmem:[%s2176_s7 + $0x488] sm:$0xff]  ;;  %v302_v50 = vld [vmem:[%s2176_s7 + $0x4b0] sm:$0xff] }
  0x2b   : > { %299 = vst [vmem:[%s2181_s8 + $0x180] sm:$0xff] %v298_v48  ;;  %301 = vst [vmem:[%s2181_s8 + $0x188] sm:$0xff] %v300_v49  ;;  %v304_v51 = vld [vmem:[%s2176_s7 + $0x4b8] sm:$0xff]  ;;  %v306_v52 = vld [vmem:[%s2176_s7 + $0x4e0] sm:$0xff] }
  0x2c   : > { %303 = vst [vmem:[%s2181_s8 + $0x190] sm:$0xff] %v302_v50  ;;  %v308_v53 = vld [vmem:[%s2176_s7 + $0x4e8] sm:$0xff]  ;;  %305 = vst [vmem:[%s2181_s8 + $0x198] sm:$0xff] %v304_v51  ;;  %v310_v54 = vld [vmem:[%s2176_s7 + $0x510] sm:$0xff] }
  0x2d   : > { %307 = vst [vmem:[%s2181_s8 + $0x1a0] sm:$0xff] %v306_v52  ;;  %309 = vst [vmem:[%s2181_s8 + $0x1a8] sm:$0xff] %v308_v53  ;;  %v312_v55 = vld [vmem:[%s2176_s7 + $0x518] sm:$0xff]  ;;  %v314_v56 = vld [vmem:[%s2176_s7 + $0x540] sm:$0xff] }
  0x2e   : > { %311 = vst [vmem:[%s2181_s8 + $0x1b0] sm:$0xff] %v310_v54  ;;  %313 = vst [vmem:[%s2181_s8 + $0x1b8] sm:$0xff] %v312_v55  ;;  %v316_v57 = vld [vmem:[%s2176_s7 + $0x548] sm:$0xff]  ;;  %v318_v58 = vld [vmem:[%s2176_s7 + $0x570] sm:$0xff] }
  0x2f   : > { %315 = vst [vmem:[%s2181_s8 + $0x1c0] sm:$0xff] %v314_v56  ;;  %v320_v59 = vld [vmem:[%s2176_s7 + $0x578] sm:$0xff]  ;;  %317 = vst [vmem:[%s2181_s8 + $0x1c8] sm:$0xff] %v316_v57  ;;  %v322_v60 = vld [vmem:[%s2176_s7 + $0x5a0] sm:$0xff] }
  0x30   : > { %319 = vst [vmem:[%s2181_s8 + $0x1d0] sm:$0xff] %v318_v58  ;;  %321 = vst [vmem:[%s2181_s8 + $0x1d8] sm:$0xff] %v320_v59  ;;  %v324_v61 = vld [vmem:[%s2176_s7 + $0x5a8] sm:$0xff]  ;;  %v326_v62 = vld [vmem:[%s2176_s7 + $0x5d0] sm:$0xff] }
  0x31   : > { %323 = vst [vmem:[%s2181_s8 + $0x1e0] sm:$0xff] %v322_v60  ;;  %325 = vst [vmem:[%s2181_s8 + $0x1e8] sm:$0xff] %v324_v61  ;;  %v328_v63 = vld [vmem:[%s2176_s7 + $0x5d8] sm:$0xff]  ;;  %v330_v0 = vld [vmem:[%s2176_s7 + $0x600] sm:$0xff] }
  0x32   : > { %327 = vst [vmem:[%s2181_s8 + $0x1f0] sm:$0xff] %v326_v62  ;;  %v332_v1 = vld [vmem:[%s2176_s7 + $0x608] sm:$0xff]  ;;  %329 = vst [vmem:[%s2181_s8 + $0x1f8] sm:$0xff] %v328_v63  ;;  %v334_v2 = vld [vmem:[%s2176_s7 + $0x630] sm:$0xff] }
  0x33   : > { %331 = vst [vmem:[%s2181_s8 + $0x200] sm:$0xff] %v330_v0  ;;  %333 = vst [vmem:[%s2181_s8 + $0x208] sm:$0xff] %v332_v1  ;;  %v336_v3 = vld [vmem:[%s2176_s7 + $0x638] sm:$0xff]  ;;  %v338_v4 = vld [vmem:[%s2176_s7 + $0x660] sm:$0xff] }
  0x34   : > { %335 = vst [vmem:[%s2181_s8 + $0x210] sm:$0xff] %v334_v2  ;;  %337 = vst [vmem:[%s2181_s8 + $0x218] sm:$0xff] %v336_v3  ;;  %v340_v5 = vld [vmem:[%s2176_s7 + $0x668] sm:$0xff]  ;;  %v342_v6 = vld [vmem:[%s2176_s7 + $0x690] sm:$0xff] }
  0x35   : > { %339 = vst [vmem:[%s2181_s8 + $0x220] sm:$0xff] %v338_v4  ;;  %v344_v7 = vld [vmem:[%s2176_s7 + $0x698] sm:$0xff]  ;;  %341 = vst [vmem:[%s2181_s8 + $0x228] sm:$0xff] %v340_v5  ;;  %v346_v8 = vld [vmem:[%s2176_s7 + $0x6c0] sm:$0xff] }
  0x36   : > { %343 = vst [vmem:[%s2181_s8 + $0x230] sm:$0xff] %v342_v6  ;;  %345 = vst [vmem:[%s2181_s8 + $0x238] sm:$0xff] %v344_v7  ;;  %v348_v9 = vld [vmem:[%s2176_s7 + $0x6c8] sm:$0xff]  ;;  %v350_v10 = vld [vmem:[%s2176_s7 + $0x6f0] sm:$0xff] }
  0x37   : > { %347 = vst [vmem:[%s2181_s8 + $0x240] sm:$0xff] %v346_v8  ;;  %349 = vst [vmem:[%s2181_s8 + $0x248] sm:$0xff] %v348_v9  ;;  %v352_v11 = vld [vmem:[%s2176_s7 + $0x6f8] sm:$0xff]  ;;  %v354_v12 = vld [vmem:[%s2176_s7 + $0x720] sm:$0xff] }
  0x38   : > { %351 = vst [vmem:[%s2181_s8 + $0x250] sm:$0xff] %v350_v10  ;;  %v356_v13 = vld [vmem:[%s2176_s7 + $0x728] sm:$0xff]  ;;  %353 = vst [vmem:[%s2181_s8 + $0x258] sm:$0xff] %v352_v11  ;;  %v358_v14 = vld [vmem:[%s2176_s7 + $0x750] sm:$0xff] }
  0x39   : > { %355 = vst [vmem:[%s2181_s8 + $0x260] sm:$0xff] %v354_v12  ;;  %357 = vst [vmem:[%s2181_s8 + $0x268] sm:$0xff] %v356_v13  ;;  %v360_v15 = vld [vmem:[%s2176_s7 + $0x758] sm:$0xff]  ;;  %v362_v16 = vld [vmem:[%s2176_s7 + $0x780] sm:$0xff] }
  0x3a   : > { %359 = vst [vmem:[%s2181_s8 + $0x270] sm:$0xff] %v358_v14  ;;  %361 = vst [vmem:[%s2181_s8 + $0x278] sm:$0xff] %v360_v15  ;;  %v364_v17 = vld [vmem:[%s2176_s7 + $0x788] sm:$0xff]  ;;  %v366_v18 = vld [vmem:[%s2176_s7 + $0x7b0] sm:$0xff] }
  0x3b   : > { %363 = vst [vmem:[%s2181_s8 + $0x280] sm:$0xff] %v362_v16  ;;  %v368_v19 = vld [vmem:[%s2176_s7 + $0x7b8] sm:$0xff]  ;;  %365 = vst [vmem:[%s2181_s8 + $0x288] sm:$0xff] %v364_v17  ;;  %v370_v20 = vld [vmem:[%s2176_s7 + $0x7e0] sm:$0xff] }
  0x3c   : > { %367 = vst [vmem:[%s2181_s8 + $0x290] sm:$0xff] %v366_v18  ;;  %369 = vst [vmem:[%s2181_s8 + $0x298] sm:$0xff] %v368_v19  ;;  %v372_v21 = vld [vmem:[%s2176_s7 + $0x7e8] sm:$0xff]  ;;  %v374_v22 = vld [vmem:[%s2176_s7 + $0x810] sm:$0xff] }
  0x3d   : > { %371 = vst [vmem:[%s2181_s8 + $0x2a0] sm:$0xff] %v370_v20  ;;  %373 = vst [vmem:[%s2181_s8 + $0x2a8] sm:$0xff] %v372_v21  ;;  %v376_v23 = vld [vmem:[%s2176_s7 + $0x818] sm:$0xff]  ;;  %v378_v24 = vld [vmem:[%s2176_s7 + $0x840] sm:$0xff] }
  0x3e   : > { %375 = vst [vmem:[%s2181_s8 + $0x2b0] sm:$0xff] %v374_v22  ;;  %v380_v25 = vld [vmem:[%s2176_s7 + $0x848] sm:$0xff]  ;;  %377 = vst [vmem:[%s2181_s8 + $0x2b8] sm:$0xff] %v376_v23  ;;  %v382_v26 = vld [vmem:[%s2176_s7 + $0x870] sm:$0xff] }
  0x3f   : > { %379 = vst [vmem:[%s2181_s8 + $0x2c0] sm:$0xff] %v378_v24  ;;  %381 = vst [vmem:[%s2181_s8 + $0x2c8] sm:$0xff] %v380_v25  ;;  %v384_v27 = vld [vmem:[%s2176_s7 + $0x878] sm:$0xff]  ;;  %v386_v28 = vld [vmem:[%s2176_s7 + $0x8a0] sm:$0xff] }
  0x40   : > { %383 = vst [vmem:[%s2181_s8 + $0x2d0] sm:$0xff] %v382_v26  ;;  %385 = vst [vmem:[%s2181_s8 + $0x2d8] sm:$0xff] %v384_v27  ;;  %v388_v29 = vld [vmem:[%s2176_s7 + $0x8a8] sm:$0xff]  ;;  %v390_v30 = vld [vmem:[%s2176_s7 + $0x8d0] sm:$0xff] }
  0x41   : > { %387 = vst [vmem:[%s2181_s8 + $0x2e0] sm:$0xff] %v386_v28  ;;  %v392_v31 = vld [vmem:[%s2176_s7 + $0x8d8] sm:$0xff]  ;;  %389 = vst [vmem:[%s2181_s8 + $0x2e8] sm:$0xff] %v388_v29  ;;  %v394_v32 = vld [vmem:[%s2176_s7 + $0x900] sm:$0xff] }
  0x42   : > { %391 = vst [vmem:[%s2181_s8 + $0x2f0] sm:$0xff] %v390_v30  ;;  %393 = vst [vmem:[%s2181_s8 + $0x2f8] sm:$0xff] %v392_v31  ;;  %v396_v33 = vld [vmem:[%s2176_s7 + $0x908] sm:$0xff]  ;;  %v398_v34 = vld [vmem:[%s2176_s7 + $0x930] sm:$0xff] }
  0x43   : > { %395 = vst [vmem:[%s2181_s8 + $0x300] sm:$0xff] %v394_v32  ;;  %397 = vst [vmem:[%s2181_s8 + $0x308] sm:$0xff] %v396_v33  ;;  %v400_v35 = vld [vmem:[%s2176_s7 + $0x938] sm:$0xff]  ;;  %v402_v36 = vld [vmem:[%s2176_s7 + $0x960] sm:$0xff] }
  0x44   : > { %399 = vst [vmem:[%s2181_s8 + $0x310] sm:$0xff] %v398_v34  ;;  %v404_v37 = vld [vmem:[%s2176_s7 + $0x968] sm:$0xff]  ;;  %401 = vst [vmem:[%s2181_s8 + $0x318] sm:$0xff] %v400_v35  ;;  %v406_v38 = vld [vmem:[%s2176_s7 + $0x990] sm:$0xff] }
  0x45   : > { %403 = vst [vmem:[%s2181_s8 + $0x320] sm:$0xff] %v402_v36  ;;  %405 = vst [vmem:[%s2181_s8 + $0x328] sm:$0xff] %v404_v37  ;;  %v408_v39 = vld [vmem:[%s2176_s7 + $0x998] sm:$0xff]  ;;  %v410_v40 = vld [vmem:[%s2176_s7 + $0x9c0] sm:$0xff] }
  0x46   : > { %407 = vst [vmem:[%s2181_s8 + $0x330] sm:$0xff] %v406_v38  ;;  %409 = vst [vmem:[%s2181_s8 + $0x338] sm:$0xff] %v408_v39  ;;  %v412_v41 = vld [vmem:[%s2176_s7 + $0x9c8] sm:$0xff]  ;;  %v414_v42 = vld [vmem:[%s2176_s7 + $0x9f0] sm:$0xff] }
  0x47   : > { %411 = vst [vmem:[%s2181_s8 + $0x340] sm:$0xff] %v410_v40  ;;  %v416_v43 = vld [vmem:[%s2176_s7 + $0x9f8] sm:$0xff]  ;;  %413 = vst [vmem:[%s2181_s8 + $0x348] sm:$0xff] %v412_v41  ;;  %v418_v44 = vld [vmem:[%s2176_s7 + $0xa20] sm:$0xff] }
  0x48   : > { %415 = vst [vmem:[%s2181_s8 + $0x350] sm:$0xff] %v414_v42  ;;  %417 = vst [vmem:[%s2181_s8 + $0x358] sm:$0xff] %v416_v43  ;;  %v420_v45 = vld [vmem:[%s2176_s7 + $0xa28] sm:$0xff]  ;;  %v422_v46 = vld [vmem:[%s2176_s7 + $0xa50] sm:$0xff] }
  0x49   : > { %419 = vst [vmem:[%s2181_s8 + $0x360] sm:$0xff] %v418_v44  ;;  %421 = vst [vmem:[%s2181_s8 + $0x368] sm:$0xff] %v420_v45  ;;  %v424_v47 = vld [vmem:[%s2176_s7 + $0xa58] sm:$0xff]  ;;  %v426_v48 = vld [vmem:[%s2176_s7 + $0xa80] sm:$0xff] }
  0x4a   : > { %423 = vst [vmem:[%s2181_s8 + $0x370] sm:$0xff] %v422_v46  ;;  %v428_v49 = vld [vmem:[%s2176_s7 + $0xa88] sm:$0xff]  ;;  %425 = vst [vmem:[%s2181_s8 + $0x378] sm:$0xff] %v424_v47  ;;  %v430_v50 = vld [vmem:[%s2176_s7 + $0xab0] sm:$0xff] }
  0x4b   : > { %427 = vst [vmem:[%s2181_s8 + $0x380] sm:$0xff] %v426_v48  ;;  %429 = vst [vmem:[%s2181_s8 + $0x388] sm:$0xff] %v428_v49  ;;  %v432_v51 = vld [vmem:[%s2176_s7 + $0xab8] sm:$0xff]  ;;  %v434_v52 = vld [vmem:[%s2176_s7 + $0xae0] sm:$0xff] }
  0x4c   : > { %431 = vst [vmem:[%s2181_s8 + $0x390] sm:$0xff] %v430_v50  ;;  %433 = vst [vmem:[%s2181_s8 + $0x398] sm:$0xff] %v432_v51  ;;  %v436_v53 = vld [vmem:[%s2176_s7 + $0xae8] sm:$0xff]  ;;  %v438_v54 = vld [vmem:[%s2176_s7 + $0xb10] sm:$0xff] }
  0x4d   : > { %435 = vst [vmem:[%s2181_s8 + $0x3a0] sm:$0xff] %v434_v52  ;;  %v440_v55 = vld [vmem:[%s2176_s7 + $0xb18] sm:$0xff]  ;;  %437 = vst [vmem:[%s2181_s8 + $0x3a8] sm:$0xff] %v436_v53  ;;  %v442_v56 = vld [vmem:[%s2176_s7 + $0xb40] sm:$0xff] }
  0x4e   : > { %439 = vst [vmem:[%s2181_s8 + $0x3b0] sm:$0xff] %v438_v54  ;;  %441 = vst [vmem:[%s2181_s8 + $0x3b8] sm:$0xff] %v440_v55  ;;  %v444_v57 = vld [vmem:[%s2176_s7 + $0xb48] sm:$0xff]  ;;  %v446_v58 = vld [vmem:[%s2176_s7 + $0xb70] sm:$0xff] }
  0x4f   : > { %443 = vst [vmem:[%s2181_s8 + $0x3c0] sm:$0xff] %v442_v56  ;;  %445 = vst [vmem:[%s2181_s8 + $0x3c8] sm:$0xff] %v444_v57  ;;  %v448_v59 = vld [vmem:[%s2176_s7 + $0xb78] sm:$0xff]  ;;  %v450_v60 = vld [vmem:[%s2176_s7 + $0xba0] sm:$0xff] }
  0x50   : > { %447 = vst [vmem:[%s2181_s8 + $0x3d0] sm:$0xff] %v446_v58  ;;  %v452_v61 = vld [vmem:[%s2176_s7 + $0xba8] sm:$0xff]  ;;  %449 = vst [vmem:[%s2181_s8 + $0x3d8] sm:$0xff] %v448_v59  ;;  %v454_v62 = vld [vmem:[%s2176_s7 + $0xbd0] sm:$0xff] }
  0x51   : > { %451 = vst [vmem:[%s2181_s8 + $0x3e0] sm:$0xff] %v450_v60  ;;  %453 = vst [vmem:[%s2181_s8 + $0x3e8] sm:$0xff] %v452_v61  ;;  %v456_v63 = vld [vmem:[%s2176_s7 + $0xbd8] sm:$0xff] }
  0x52   : > { %455 = vst [vmem:[%s2181_s8 + $0x3f0] sm:$0xff] %v454_v62  ;;  %457 = vst [vmem:[%s2181_s8 + $0x3f8] sm:$0xff] %v456_v63 }
  0x53 PF: > { %p1722_p7 = scmp.ge.s32.totalorder %s2103_s20, 1  ;;  %p470_p8 = scmp.lt.s32.totalorder %s2103_s20, 4 }
  0x55   : > { %p471_p9 = pnand %p1722_p7, %p470_p8 }
  0x56   : > { %s477_s6 = sand.u32 (!%p471_p9), 1, %s2095_s18   ;;  %s1725_s13 = sshll.u32 (!%p471_p9), %s2151_s21, 2 }
  0x57   : > { %474 = sbr.rel (%p471_p9) target bundleno = 694 (0x2b6), region = 59  ;;  %s1723_s7 = sshll.u32 (!%p471_p9), %s477_s6, 10 }
  0x58   : > { %s2489_s8 = scalar_lea.vmem (!%p471_p9), [#allocation2], %s1723_s7  ;;  %p509_p10 = scmp.lt.s32.totalorder (!%p471_p9), %s1725_s13, 11 }
  0x59   : > { %s1724_s17 = sshll.u32 (!%p471_p9), %s477_s6, 6 }
  0x5a   : > { %s2705_s20 = scalar_lea.vmem (!%p471_p9), [#allocation3], %s1724_s17 }
  0x5c   : > { %v2441_v0 = vld [vmem:[%s2741_s0] sm:$0xff]  ;;  %v2446_v1 = vld [vmem:[%s2741_s0 + $0x8] sm:$0xff]  ;;  %v2451_v2 = vld [vmem:[%s2741_s0 + $0x10] sm:$0xff]  ;;  %s2752_s13 = smov (!%p509_p10, %s1725_s13), 11  ;;  %s1860_s18 = sshll.u32 (%p2166_p5), %s2151_s21, 5 }
  0x5d   : > { %v524_v3 = vadd.f32 %v2446_v1, %v2441_v0  ;;  %v2458_v4 = vld [vmem:[%s2741_s0 + $0x20] sm:$0xff]  ;;  %v2463_v5 = vld [vmem:[%s2741_s0 + $0x28] sm:$0xff]  ;;  %v2468_v6 = vld [vmem:[%s2741_s0 + $0x18] sm:$0xff]  ;;  %s511_s16 = scalar_lea.vmem %s2745_s4, %s2752_s13  ;;  %s1618_s27 = scalar_lea.vmem (%p2166_p5), %s2746_s5, %s1860_s18 }
  0x5e   : > { %v2473_v7 = vld [vmem:[%s2741_s0 + $0x30] sm:$0xff]  ;;  %v529_v8 = vadd.f32 %v2463_v5, %v2458_v4  ;;  %v2481_v10 = vld [vmem:[%s2741_s0 + $0x38] sm:$0xff] }
  0x5f   : > { %v525_v9 = vadd.f32 %v524_v3, %v2451_v2  ;;  %v1885_v14 = vld [vmem:[%s2489_s8 + $0xe4] ss:$16 sps:$4 sm:$0xff]   ;;  %v1889_v16 = vld [vmem:[%s2489_s8 + $0xe0] ss:$16 sps:$4 sm:$0xff]  }
  0x60   : > { %v530_v11 = vadd.f32 %v529_v8, %v2473_v7  ;;  %v1887_v15 = vld [vmem:[%s2489_s8 + $0x2e4] ss:$16 sps:$4 sm:$0xff]   ;;  %1429 = vmatprep.subr.bf16.mxu0 %v1885_v14  ;;  %v1890_v17 = vld [vmem:[%s2489_s8 + $0x2e0] ss:$16 sps:$4 sm:$0xff]  }
  0x61   : > { %v526_v12 = vadd.f32 %v525_v9, %v2468_v6  ;;  %1472 = vmatprep.subr.bf16.mxu1 %v1887_v15  ;;  %v1891_v18 = vld [vmem:[%s2489_s8 + $0xc4] ss:$16 sps:$4 sm:$0xff]   ;;  %1430 = vmatpush1.bf16.msra.mxu0 %v1889_v16  ;;  %v1895_v20 = vld [vmem:[%s2489_s8 + $0xc0] ss:$16 sps:$4 sm:$0xff]  }
  0x62   : > { %v531_v13 = vadd.f32 %v530_v11, %v2481_v10  ;;  %1473 = vmatpush1.bf16.msra.mxu1 %v1890_v17  ;;  %v1893_v19 = vld [vmem:[%s2489_s8 + $0x2c4] ss:$16 sps:$4 sm:$0xff]   ;;  %1431 = vmatprep.subr.bf16.mxu0 %v1891_v18  ;;  %v1896_v21 = vld [vmem:[%s2489_s8 + $0x2c0] ss:$16 sps:$4 sm:$0xff]  }
  0x63   : > { %527 = vadd.xlane.f32.xlu0 %v526_v12  ;;  %1474 = vmatprep.subr.bf16.mxu1 %v1893_v19  ;;  %v1897_v22 = vld [vmem:[%s2489_s8 + $0xa4] ss:$16 sps:$4 sm:$0xff]   ;;  %v1901_v24 = vld [vmem:[%s2489_s8 + $0xa0] ss:$16 sps:$4 sm:$0xff]  }
  0x64   : > { %v1899_v23 = vld [vmem:[%s2489_s8 + $0x2a4] ss:$16 sps:$4 sm:$0xff]   ;;  %v1902_v25 = vld [vmem:[%s2489_s8 + $0x2a0] ss:$16 sps:$4 sm:$0xff]  }
  0x65   : > { %1432 = vmatpush1.bf16.msra.mxu0 %v1895_v20  ;;  %v1903_v26 = vld [vmem:[%s2489_s8 + $0x84] ss:$16 sps:$4 sm:$0xff]   ;;  %v1907_v28 = vld [vmem:[%s2489_s8 + $0x80] ss:$16 sps:$4 sm:$0xff]  }
  0x66   : > { %1475 = vmatpush1.bf16.msra.mxu1 %v1896_v21  ;;  %1433 = vmatprep.subr.bf16.mxu0 %v1897_v22  ;;  %v1905_v27 = vld [vmem:[%s2489_s8 + $0x284] ss:$16 sps:$4 sm:$0xff]   ;;  %v1908_v29 = vld [vmem:[%s2489_s8 + $0x280] ss:$16 sps:$4 sm:$0xff]  }
  0x67   : > { %532 = vadd.xlane.f32.xlu0 %v531_v13  ;;  %1476 = vmatprep.subr.bf16.mxu1 %v1899_v23  ;;  %v1909_v30 = vld [vmem:[%s2489_s8 + $0x64] ss:$16 sps:$4 sm:$0xff]   ;;  %v1913_v32 = vld [vmem:[%s2489_s8 + $0x60] ss:$16 sps:$4 sm:$0xff]  }
  0x68   : > { %v1911_v31 = vld [vmem:[%s2489_s8 + $0x264] ss:$16 sps:$4 sm:$0xff]   ;;  %v1914_v33 = vld [vmem:[%s2489_s8 + $0x260] ss:$16 sps:$4 sm:$0xff]  }
  0x69   : > { %1434 = vmatpush1.bf16.msra.mxu0 %v1901_v24  ;;  %v1915_v34 = vld [vmem:[%s2489_s8 + $0x44] ss:$16 sps:$4 sm:$0xff]   ;;  %v1919_v36 = vld [vmem:[%s2489_s8 + $0x40] ss:$16 sps:$4 sm:$0xff]  }
  0x6a   : > { %1477 = vmatpush1.bf16.msra.mxu1 %v1902_v25  ;;  %1435 = vmatprep.subr.bf16.mxu0 %v1903_v26  ;;  %v1917_v35 = vld [vmem:[%s2489_s8 + $0x244] ss:$16 sps:$4 sm:$0xff]   ;;  %v1920_v37 = vld [vmem:[%s2489_s8 + $0x240] ss:$16 sps:$4 sm:$0xff]  }
  0x6b   : > { %1478 = vmatprep.subr.bf16.mxu1 %v1905_v27  ;;  %v1921_v38 = vld [vmem:[%s2489_s8 + $0x24] ss:$16 sps:$4 sm:$0xff]   ;;  %v1925_v40 = vld [vmem:[%s2489_s8 + $0x20] ss:$16 sps:$4 sm:$0xff]  }
  0x6c   : > { %v1923_v39 = vld [vmem:[%s2489_s8 + $0x224] ss:$16 sps:$4 sm:$0xff]   ;;  %v1926_v41 = vld [vmem:[%s2489_s8 + $0x220] ss:$16 sps:$4 sm:$0xff]  }
  0x6d   : > { %1436 = vmatpush1.bf16.msra.mxu0 %v1907_v28  ;;  %v1927_v42 = vld [vmem:[%s2489_s8 + $0x4] ss:$16 sps:$4 sm:$0xff]   ;;  %v1931_v44 = vld [vmem:[%s2489_s8] ss:$16 sps:$4 sm:$0xff]  }
  0x6e   : > { %1479 = vmatpush1.bf16.msra.mxu1 %v1908_v29  ;;  %1437 = vmatprep.subr.bf16.mxu0 %v1909_v30  ;;  %v1929_v43 = vld [vmem:[%s2489_s8 + $0x204] ss:$16 sps:$4 sm:$0xff]   ;;  %v1932_v45 = vld [vmem:[%s2489_s8 + $0x200] ss:$16 sps:$4 sm:$0xff]  }
  0x6f   : > { %1480 = vmatprep.subr.bf16.mxu1 %v1911_v31  ;;  %v1933_v46 = vld [vmem:[%s2489_s8 + $0x1e4] ss:$16 sps:$4 sm:$0xff]   ;;  %v1938_v11 = vld [vmem:[%s2489_s8 + $0x3e0] ss:$16 sps:$4 sm:$0xff]  }
  0x70   : > { %v1935_v47 = vld [vmem:[%s2489_s8 + $0x3e4] ss:$16 sps:$4 sm:$0xff]   ;;  %v1943_v14 = vld [vmem:[%s2489_s8 + $0x1c0] ss:$16 sps:$4 sm:$0xff]  }
  0x71   : > { %1438 = vmatpush1.bf16.msra.mxu0 %v1913_v32  ;;  %v1939_v12 = vld [vmem:[%s2489_s8 + $0x1c4] ss:$16 sps:$4 sm:$0xff]   ;;  %v1944_v15 = vld [vmem:[%s2489_s8 + $0x3c0] ss:$16 sps:$4 sm:$0xff]  }
  0x72   : > { %1481 = vmatpush1.bf16.msra.mxu1 %v1914_v33  ;;  %1439 = vmatprep.subr.bf16.mxu0 %v1915_v34  ;;  %v1941_v13 = vld [vmem:[%s2489_s8 + $0x3c4] ss:$16 sps:$4 sm:$0xff]   ;;  %v1949_v18 = vld [vmem:[%s2489_s8 + $0x1a0] ss:$16 sps:$4 sm:$0xff]  }
  0x73   : > { %1482 = vmatprep.subr.bf16.mxu1 %v1917_v35  ;;  %v1945_v16 = vld [vmem:[%s2489_s8 + $0x1a4] ss:$16 sps:$4 sm:$0xff]   ;;  %v1950_v19 = vld [vmem:[%s2489_s8 + $0x3a0] ss:$16 sps:$4 sm:$0xff]  }
  0x74   : > { %v1947_v17 = vld [vmem:[%s2489_s8 + $0x3a4] ss:$16 sps:$4 sm:$0xff]   ;;  %v1955_v22 = vld [vmem:[%s2489_s8 + $0x180] ss:$16 sps:$4 sm:$0xff]  }
  0x75   : > { %1440 = vmatpush1.bf16.msra.mxu0 %v1919_v36  ;;  %v1951_v20 = vld [vmem:[%s2489_s8 + $0x184] ss:$16 sps:$4 sm:$0xff]   ;;  %v1956_v23 = vld [vmem:[%s2489_s8 + $0x380] ss:$16 sps:$4 sm:$0xff]  }
  0x76   : > { %1483 = vmatpush1.bf16.msra.mxu1 %v1920_v37  ;;  %1441 = vmatprep.subr.bf16.mxu0 %v1921_v38  ;;  %v1953_v21 = vld [vmem:[%s2489_s8 + $0x384] ss:$16 sps:$4 sm:$0xff]   ;;  %v1961_v26 = vld [vmem:[%s2489_s8 + $0x160] ss:$16 sps:$4 sm:$0xff]  }
  0x77   : > { %1484 = vmatprep.subr.bf16.mxu1 %v1923_v39  ;;  %v1957_v24 = vld [vmem:[%s2489_s8 + $0x164] ss:$16 sps:$4 sm:$0xff]   ;;  %v1962_v27 = vld [vmem:[%s2489_s8 + $0x360] ss:$16 sps:$4 sm:$0xff]  }
  0x78   : > { %v1959_v25 = vld [vmem:[%s2489_s8 + $0x364] ss:$16 sps:$4 sm:$0xff]   ;;  %v1967_v30 = vld [vmem:[%s2489_s8 + $0x140] ss:$16 sps:$4 sm:$0xff]  }
  0x79   : > { %1442 = vmatpush1.bf16.msra.mxu0 %v1925_v40  ;;  %v1963_v28 = vld [vmem:[%s2489_s8 + $0x144] ss:$16 sps:$4 sm:$0xff]   ;;  %v1968_v31 = vld [vmem:[%s2489_s8 + $0x340] ss:$16 sps:$4 sm:$0xff]   ;;  %v1983_v40 = vld [vmem:[%s2489_s8 + $0xec] ss:$16 sps:$4 sm:$0xff]  }
  0x7a   : > { %1485 = vmatpush1.bf16.msra.mxu1 %v1926_v41  ;;  %1443 = vmatprep.subr.bf16.mxu0 %v1927_v42  ;;  %v1965_v29 = vld [vmem:[%s2489_s8 + $0x344] ss:$16 sps:$4 sm:$0xff]   ;;  %v1973_v34 = vld [vmem:[%s2489_s8 + $0x120] ss:$16 sps:$4 sm:$0xff]   ;;  %v1986_v41 = vld [vmem:[%s2489_s8 + $0x2ec] ss:$16 sps:$4 sm:$0xff]  }
  0x7b   : > { %1486 = vmatprep.subr.bf16.mxu1 %v1929_v43  ;;  %v1969_v32 = vld [vmem:[%s2489_s8 + $0x124] ss:$16 sps:$4 sm:$0xff]   ;;  %v1974_v35 = vld [vmem:[%s2489_s8 + $0x320] ss:$16 sps:$4 sm:$0xff]  }
  0x7c   : > { %v1971_v33 = vld [vmem:[%s2489_s8 + $0x324] ss:$16 sps:$4 sm:$0xff]   ;;  %v1979_v38 = vld [vmem:[%s2489_s8 + $0x100] ss:$16 sps:$4 sm:$0xff]  }
  0x7d   : > { %1444 = vmatpush1.bf16.msra.mxu0 %v1931_v44  ;;  %v1975_v36 = vld [vmem:[%s2489_s8 + $0x104] ss:$16 sps:$4 sm:$0xff]   ;;  %v1980_v39 = vld [vmem:[%s2489_s8 + $0x300] ss:$16 sps:$4 sm:$0xff]  }
  0x7e   : > { %1487 = vmatpush1.bf16.msra.mxu1 %v1932_v45  ;;  %1445 = vmatprep.subr.bf16.mxu0 %v1933_v46  ;;  %v1977_v37 = vld [vmem:[%s2489_s8 + $0x304] ss:$16 sps:$4 sm:$0xff]  }
  0x7f   : > { %1488 = vmatprep.subr.bf16.mxu1 %v1935_v47 }
  0x82   : > { %1489 = vmatpush2.bf16.msra.mxu1 %v1938_v11 }
  0x83   : > { %1490 = vmatprep.subr.bf16.mxu1 %v1941_v13 }
  0x86   : > { %1491 = vmatpush2.bf16.msra.mxu1 %v1944_v15 }
  0x87   : > { %1492 = vmatprep.subr.bf16.mxu1 %v1947_v17 }
  0x8a   : > { %1493 = vmatpush2.bf16.msra.mxu1 %v1950_v19 }
  0x8b   : > { %1494 = vmatprep.subr.bf16.mxu1 %v1953_v21 }
  0x8e   : > { %1495 = vmatpush2.bf16.msra.mxu1 %v1956_v23 }
  0x8f   : > { %1496 = vmatprep.subr.bf16.mxu1 %v1959_v25 }
  0x92   : > { %1497 = vmatpush2.bf16.msra.mxu1 %v1962_v27 }
  0x93   : > { %1498 = vmatprep.subr.bf16.mxu1 %v1965_v29  ;;  %v1984_v29 = vld [vmem:[%s2489_s8 + $0x2e8] ss:$16 sps:$4 sm:$0xff]  }
  0x96   : > { %1499 = vmatpush2.bf16.msra.mxu1 %v1968_v31 }
  0x97   : > { %1500 = vmatprep.subr.bf16.mxu1 %v1971_v33  ;;  %v1992_v33 = vld [vmem:[%s2489_s8 + $0x2cc] ss:$16 sps:$4 sm:$0xff]  }
  0x9a   : > { %1501 = vmatpush2.bf16.msra.mxu1 %v1974_v35  ;;  %v1990_v35 = vld [vmem:[%s2489_s8 + $0x2c8] ss:$16 sps:$4 sm:$0xff]  }
  0x9b   : > { %1502 = vmatprep.subr.bf16.mxu1 %v1977_v37  ;;  %v1998_v37 = vld [vmem:[%s2489_s8 + $0x2ac] ss:$16 sps:$4 sm:$0xff]  }
  0x9e   : > { %1503 = vmatpush2.bf16.msra.mxu1 %v1980_v39  ;;  %v1996_v39 = vld [vmem:[%s2489_s8 + $0x2a8] ss:$16 sps:$4 sm:$0xff]  }
  0x9f   : > { %1558 = vmatprep.subr.bf16.mxu1 %v1986_v41  ;;  %v2004_v41 = vld [vmem:[%s2489_s8 + $0x28c] ss:$16 sps:$4 sm:$0xff]  }
  0xec   : > { %v528_v48 = vpop.xlane.xlu0 %527 }
  0xed   : > { %v535_v49 = vmul.f32 0.001953125, %v528_v48  ;;  %v578_v48 = vlaneseq }
  0xef   : > { %v2526_v50 = vsub.f32 %v2441_v0, %v535_v49  ;;  %v2529_v51 = vsub.f32 %v2446_v1, %v535_v49  ;;  %v2532_v52 = vsub.f32 %v2451_v2, %v535_v49  ;;  %v2535_v54 = vsub.f32 %v2468_v6, %v535_v49 }
  0xf0   : > { %v533_v53 = vpop.xlane.xlu0 %532  ;;  %v579_v49 = vshrl.u32 %v578_v48, 7  ;;  %v2013_v48 = vld [vmem:[%s2489_s8 + $0x4c] ss:$16 sps:$4 sm:$0xff]  }
  0xf1   : > { %v536_v55 = vmul.f32 0.001953125, %v533_v53  ;;  %v545_v56 = vmul.f32 %v2526_v50, %v2526_v50  ;;  %v546_v57 = vmul.f32 %v2529_v51, %v2529_v51  ;;  %v547_v58 = vmul.f32 %v2532_v52, %v2532_v52 }
  0xf2   : > { %v548_v63 = vmul.f32 %v2535_v54, %v2535_v54  ;;  %v2597_v53 = vsub.s32 1, %v579_v49 }
  0xf3   : > { %v2544_v59 = vsub.f32 %v2458_v4, %v536_v55  ;;  %v2547_v60 = vsub.f32 %v2463_v5, %v536_v55  ;;  %v553_v61 = vadd.f32 %v546_v57, %v545_v56  ;;  %v2550_v62 = vsub.f32 %v2473_v7, %v536_v55  ;;  %v522_v56 = vld [vmem:[%s2742_s1] sm:$0xf] }
  0xf4   : > { %v2555_v1 = vsub.f32 %v2481_v10, %v536_v55  ;;  %v1937_v10 = vld [vmem:[%s2489_s8 + $0x1e0] ss:$16 sps:$4 sm:$0xff]   ;;  %v2599_v55 = vsub.s32 3, %v579_v49  ;;  %v2604_v57 = vsub.s32 0, %v579_v49 }
  0xf5   : > { %v554_v0 = vadd.f32 %v553_v61, %v547_v58  ;;  %v549_v2 = vmul.f32 %v2544_v59, %v2544_v59  ;;  %v550_v3 = vmul.f32 %v2547_v60, %v2547_v60  ;;  %v551_v5 = vmul.f32 %v2550_v62, %v2550_v62  ;;  %1446 = vmatpush2.bf16.msra.mxu0 %v1937_v10 }
  0xf6   : > { %v552_v7 = vmul.f32 %v2555_v1, %v2555_v1  ;;  %1447 = vmatprep.subr.bf16.mxu0 %v1939_v12  ;;  %v2606_v58 = vsub.s32 2, %v579_v49  ;;  %v2016_v49 = vld [vmem:[%s2489_s8 + $0x24c] ss:$16 sps:$4 sm:$0xff]  }
  0xf7   : > { %v555_v4 = vadd.f32 %v554_v0, %v548_v63  ;;  %v558_v6 = vadd.f32 %v550_v3, %v549_v2  ;;  %v523_v63 = vld [vmem:[%s2743_s2] sm:$0xf]  ;;  %v585_v2 = vrot.slane %v522_v56, %v2597_v53 }
  0xf8   : > { %v614_v10 = vrot.slane %v523_v63, %v2597_v53  ;;  %v622_v11 = vrot.slane %v523_v63, %v2599_v55  ;;  %v618_v12 = vrot.slane %v523_v63, %v2606_v58 }
  0xf9   : > { %556 = vadd.xlane.f32.xlu1 %v555_v4  ;;  %v559_v8 = vadd.f32 %v558_v6, %v551_v5  ;;  %1448 = vmatpush2.bf16.msra.mxu0 %v1943_v14  ;;  %v593_v4 = vrot.slane %v522_v56, %v2599_v55  ;;  %v581_v6 = vrot.slane %v522_v56, %v2604_v57 }
  0xfa   : > { %1449 = vmatprep.subr.bf16.mxu0 %v1945_v16 }
  0xfb   : > { %v560_v9 = vadd.f32 %v559_v8, %v552_v7  ;;  %v589_v8 = vrot.slane %v522_v56, %v2606_v58  ;;  %v2011_v56 = vld [vmem:[%s2489_s8 + $0x48] ss:$16 sps:$4 sm:$0xff]  }
  0xfd   : > { %561 = vadd.xlane.f32.xlu1 %v560_v9  ;;  %1450 = vmatpush2.bf16.msra.mxu0 %v1949_v18 }
  0xfe   : > { %1451 = vmatprep.subr.bf16.mxu0 %v1951_v20 }
 0x101   : > { %1452 = vmatpush2.bf16.msra.mxu0 %v1955_v22 }
 0x102   : > { %1453 = vmatprep.subr.bf16.mxu0 %v1957_v24 }
 0x105   : > { %1454 = vmatpush2.bf16.msra.mxu0 %v1961_v26 }
 0x106   : > { %1455 = vmatprep.subr.bf16.mxu0 %v1963_v28  ;;  %v1981_v28 = vld [vmem:[%s2489_s8 + $0xe8] ss:$16 sps:$4 sm:$0xff]  }
 0x109   : > { %1456 = vmatpush2.bf16.msra.mxu0 %v1967_v30 }
 0x10a   : > { %1457 = vmatprep.subr.bf16.mxu0 %v1969_v32  ;;  %v1989_v32 = vld [vmem:[%s2489_s8 + $0xcc] ss:$16 sps:$4 sm:$0xff]  }
 0x10d   : > { %1458 = vmatpush2.bf16.msra.mxu0 %v1973_v34  ;;  %v1987_v34 = vld [vmem:[%s2489_s8 + $0xc8] ss:$16 sps:$4 sm:$0xff]  }
 0x10e   : > { %1459 = vmatprep.subr.bf16.mxu0 %v1975_v36  ;;  %v1995_v36 = vld [vmem:[%s2489_s8 + $0xac] ss:$16 sps:$4 sm:$0xff]  }
 0x111   : > { %1460 = vmatpush2.bf16.msra.mxu0 %v1979_v38  ;;  %v1993_v38 = vld [vmem:[%s2489_s8 + $0xa8] ss:$16 sps:$4 sm:$0xff]  }
 0x112   : > { %1515 = vmatprep.subr.bf16.mxu0 %v1983_v40  ;;  %v2001_v40 = vld [vmem:[%s2489_s8 + $0x8c] ss:$16 sps:$4 sm:$0xff]  }
 0x182   : > { %v557_v42 = vpop.xlane.xlu1 %556 }
 0x183   : > { %v563_v43 = vmul.f32 0.001953125, %v557_v42  ;;  %v1999_v42 = vld [vmem:[%s2489_s8 + $0x88] ss:$16 sps:$4 sm:$0xff]  }
 0x185   : > { %v565_v44 = vadd.f32 1e-05, %v563_v43  ;;  %v2002_v43 = vld [vmem:[%s2489_s8 + $0x288] ss:$16 sps:$4 sm:$0xff]  }
 0x186   : > { %v562_v45 = vpop.xlane.xlu1 %561 }
 0x187   : > { %2077 = vrsqrt.f32 %v565_v44  ;;  %v564_v46 = vmul.f32 0.001953125, %v562_v45  ;;  %v2007_v44 = vld [vmem:[%s2489_s8 + $0x6c] ss:$16 sps:$4 sm:$0xff]  }
 0x188   : > { %v2010_v45 = vld [vmem:[%s2489_s8 + $0x26c] ss:$16 sps:$4 sm:$0xff]  }
 0x189   : > { %v566_v47 = vadd.f32 1e-05, %v564_v46  ;;  %v2005_v46 = vld [vmem:[%s2489_s8 + $0x68] ss:$16 sps:$4 sm:$0xff]  }
 0x18b   : > { %2079 = vrsqrt.f32 %v566_v47  ;;  %v2008_v47 = vld [vmem:[%s2489_s8 + $0x268] ss:$16 sps:$4 sm:$0xff]  }
 0x194   : > { %v2078_v61 = vpop.eup %2077 }
 0x195   : > { %v570_v0 = vmul.f32 %v2078_v61, %v2529_v51  ;;  %v572_v3 = vmul.f32 %v2078_v61, %v2535_v54  ;;  %v569_v5 = vmul.f32 %v2078_v61, %v2526_v50  ;;  %v571_v7 = vmul.f32 %v2078_v61, %v2532_v52  ;;  %v2014_v61 = vld [vmem:[%s2489_s8 + $0x248] ss:$16 sps:$4 sm:$0xff]  }
 0x196   : > { %v610_v51 = vrot.slane %v523_v63, %v2604_v57  ;;  %v2019_v63 = vld [vmem:[%s2489_s8 + $0x2c] ss:$16 sps:$4 sm:$0xff]  }
 0x197   : > { %v599_v13 = vmul.f32 %v585_v2, %v570_v0  ;;  %v601_v14 = vmul.f32 %v593_v4, %v572_v3  ;;  %v598_v52 = vmul.f32 %v581_v6, %v569_v5  ;;  %v600_v17 = vmul.f32 %v589_v8, %v571_v7  ;;  %v2022_v0 = vld [vmem:[%s2489_s8 + $0x22c] ss:$16 sps:$4 sm:$0xff]   ;;  %v2020_v3 = vld [vmem:[%s2489_s8 + $0x228] ss:$16 sps:$4 sm:$0xff]  }
 0x198   : > { %v2080_v9 = vpop.eup %2079  ;;  %v2028_v5 = vld [vmem:[%s2489_s8 + $0x20c] ss:$16 sps:$4 sm:$0xff]   ;;  %v2026_v7 = vld [vmem:[%s2489_s8 + $0x208] ss:$16 sps:$4 sm:$0xff]  }
 0x199   : > { %v574_v54 = vmul.f32 %v2080_v9, %v2547_v60  ;;  %v576_v50 = vmul.f32 %v2080_v9, %v2555_v1  ;;  %v573_v15 = vmul.f32 %v2080_v9, %v2544_v59  ;;  %v575_v16 = vmul.f32 %v2080_v9, %v2550_v62  ;;  %v2034_v9 = vld [vmem:[%s2489_s8 + $0x3ec] ss:$16 sps:$4 sm:$0xff]  }
 0x19a   : > { %v628_v22 = vadd.f32 %v614_v10, %v599_v13  ;;  %v630_v60 = vadd.f32 %v622_v11, %v601_v14  ;;  %v627_v1 = vadd.f32 %v610_v51, %v598_v52  ;;  %v629_v26 = vadd.f32 %v618_v12, %v600_v17  ;;  %v2038_v13 = vld [vmem:[%s2489_s8 + $0x3c8] ss:$16 sps:$4 sm:$0xff]   ;;  %v2046_v14 = vld [vmem:[%s2489_s8 + $0x3ac] ss:$16 sps:$4 sm:$0xff]  }
 0x19b   : > { %v603_v18 = vmul.f32 %v585_v2, %v574_v54  ;;  %v605_v19 = vmul.f32 %v593_v4, %v576_v50  ;;  %v602_v20 = vmul.f32 %v581_v6, %v573_v15  ;;  %v604_v21 = vmul.f32 %v589_v8, %v575_v16  ;;  %v2017_v2 = vld [vmem:[%s2489_s8 + $0x28] ss:$16 sps:$4 sm:$0xff]   ;;  %v2025_v4 = vld [vmem:[%s2489_s8 + $0xc] ss:$16 sps:$4 sm:$0xff]  }
 0x19c   : > { %v2023_v6 = vld [vmem:[%s2489_s8 + $0x8] ss:$16 sps:$4 sm:$0xff]   ;;  %v2031_v8 = vld [vmem:[%s2489_s8 + $0x1ec] ss:$16 sps:$4 sm:$0xff]  }
 0x19d   : > { %v632_v23 = vadd.f32 %v614_v10, %v603_v18  ;;  %v634_v24 = vadd.f32 %v622_v11, %v605_v19  ;;  %v631_v25 = vadd.f32 %v610_v51, %v602_v20  ;;  %v633_v59 = vadd.f32 %v618_v12, %v604_v21  ;;  %v2029_v10 = vld [vmem:[%s2489_s8 + $0x1e8] ss:$16 sps:$4 sm:$0xff]   ;;  %v2037_v51 = vld [vmem:[%s2489_s8 + $0x1cc] ss:$16 sps:$4 sm:$0xff]  }
 0x19e   : > { %v2032_v11 = vld [vmem:[%s2489_s8 + $0x3e8] ss:$16 sps:$4 sm:$0xff]   ;;  %v2040_v12 = vld [vmem:[%s2489_s8 + $0x3cc] ss:$16 sps:$4 sm:$0xff]  }
 0x19f   : > { %v636_v62 = vpack.c.bf16 %v632_v23, %v628_v22  ;;  %v638_v27 = vpack.c.bf16 %v634_v24, %v630_v60  ;;  %v2629_v30 = vpack.c.bf16 %v631_v25, %v627_v1  ;;  %v2631_v31 = vpack.c.bf16 %v633_v59, %v629_v26  ;;  %v2035_v54 = vld [vmem:[%s2489_s8 + $0x1c8] ss:$16 sps:$4 sm:$0xff]   ;;  %v2043_v50 = vld [vmem:[%s2489_s8 + $0x1ac] ss:$16 sps:$4 sm:$0xff]  }
 0x1a0   : > { %v2041_v15 = vld [vmem:[%s2489_s8 + $0x1a8] ss:$16 sps:$4 sm:$0xff]   ;;  %v2049_v16 = vld [vmem:[%s2489_s8 + $0x18c] ss:$16 sps:$4 sm:$0xff]  }
 0x1a1   : > { %1461 = vmatprep.mubr.bf16.mxu0 %v636_v62  ;;  %1504 = vmatprep.mubr.bf16.mxu1 %v638_v27  ;;  %v2044_v52 = vld [vmem:[%s2489_s8 + $0x3a8] ss:$16 sps:$4 sm:$0xff]   ;;  %v2052_v17 = vld [vmem:[%s2489_s8 + $0x38c] ss:$16 sps:$4 sm:$0xff]  }
 0x1a2   : > { %1462 = vmatmul.mubr.bf16.vlgmr.msra.gmra.mxu0 %v2629_v30  ;;  %1505 = vmatmul.mubr.bf16.vlgmr.msra.gmra.mxu1 %v2631_v31  ;;  %v2047_v18 = vld [vmem:[%s2489_s8 + $0x188] ss:$16 sps:$4 sm:$0xff]   ;;  %v2055_v20 = vld [vmem:[%s2489_s8 + $0x16c] ss:$16 sps:$4 sm:$0xff]  }
 0x1a3   : > { %1516 = vmatpush1.bf16.msra.mxu0 %v1981_v28  ;;  %1559 = vmatpush1.bf16.msra.mxu1 %v1984_v29  ;;  %v2050_v19 = vld [vmem:[%s2489_s8 + $0x388] ss:$16 sps:$4 sm:$0xff]   ;;  %v2058_v21 = vld [vmem:[%s2489_s8 + $0x36c] ss:$16 sps:$4 sm:$0xff]  }
 0x1a4   : > { %1547 = vmatprep.mubr.bf16.mxu0 %v636_v62  ;;  %1590 = vmatprep.mubr.bf16.mxu1 %v638_v27  ;;  %v2053_v22 = vld [vmem:[%s2489_s8 + $0x168] ss:$16 sps:$4 sm:$0xff]   ;;  %v2061_v60 = vld [vmem:[%s2489_s8 + $0x14c] ss:$16 sps:$4 sm:$0xff]  }
 0x1a5   : > { %1517 = vmatprep.subr.bf16.mxu0 %v1989_v32  ;;  %1560 = vmatprep.subr.bf16.mxu1 %v1992_v33  ;;  %v2056_v23 = vld [vmem:[%s2489_s8 + $0x368] ss:$16 sps:$4 sm:$0xff]   ;;  %v2064_v24 = vld [vmem:[%s2489_s8 + $0x34c] ss:$16 sps:$4 sm:$0xff]  }
 0x1a6   : > { %v2059_v1 = vld [vmem:[%s2489_s8 + $0x148] ss:$16 sps:$4 sm:$0xff]   ;;  %v2067_v26 = vld [vmem:[%s2489_s8 + $0x12c] ss:$16 sps:$4 sm:$0xff]  }
 0x1a7   : > { %1518 = vmatpush1.bf16.msra.mxu0 %v1987_v34  ;;  %1561 = vmatpush1.bf16.msra.mxu1 %v1990_v35  ;;  %v2062_v25 = vld [vmem:[%s2489_s8 + $0x348] ss:$16 sps:$4 sm:$0xff]   ;;  %v2070_v59 = vld [vmem:[%s2489_s8 + $0x32c] ss:$16 sps:$4 sm:$0xff]   ;;  %v767_v34 = vld [vmem:[%s511_s16] sm:$0xf] }
 0x1a8   : > { %1519 = vmatprep.subr.bf16.mxu0 %v1995_v36  ;;  %1562 = vmatprep.subr.bf16.mxu1 %v1998_v37  ;;  %v2065_v62 = vld [vmem:[%s2489_s8 + $0x128] ss:$16 sps:$4 sm:$0xff]   ;;  %v2073_v28 = vld [vmem:[%s2489_s8 + $0x10c] ss:$16 sps:$4 sm:$0xff]   ;;  %v772_v35 = vrot.slane %v767_v34, %v2604_v57  ;;  %v776_v36 = vrot.slane %v767_v34, %v2597_v53 }
 0x1a9   : > { %v2068_v27 = vld [vmem:[%s2489_s8 + $0x328] ss:$16 sps:$4 sm:$0xff]   ;;  %v2076_v29 = vld [vmem:[%s2489_s8 + $0x30c] ss:$16 sps:$4 sm:$0xff]  }
 0x1aa   : > { %v2071_v32 = vld [vmem:[%s2489_s8 + $0x108] ss:$16 sps:$4 sm:$0xff]  }
 0x1ab   : > { %1520 = vmatpush1.bf16.msra.mxu0 %v1993_v38  ;;  %1563 = vmatpush1.bf16.msra.mxu1 %v1996_v39  ;;  %v2074_v33 = vld [vmem:[%s2489_s8 + $0x308] ss:$16 sps:$4 sm:$0xff]  }
 0x1ac   : > { %1521 = vmatprep.subr.bf16.mxu0 %v2001_v40  ;;  %1564 = vmatprep.subr.bf16.mxu1 %v2004_v41 }
 0x1af   : > { %1522 = vmatpush1.bf16.msra.mxu0 %v1999_v42  ;;  %1565 = vmatpush1.bf16.msra.mxu1 %v2002_v43 }
 0x1b0   : > { %1523 = vmatprep.subr.bf16.mxu0 %v2007_v44  ;;  %1566 = vmatprep.subr.bf16.mxu1 %v2010_v45 }
 0x1b3   : > { %1524 = vmatpush1.bf16.msra.mxu0 %v2005_v46  ;;  %1567 = vmatpush1.bf16.msra.mxu1 %v2008_v47 }
 0x1b4   : > { %1525 = vmatprep.subr.bf16.mxu0 %v2013_v48  ;;  %1568 = vmatprep.subr.bf16.mxu1 %v2016_v49  ;;  %v780_v49 = vrot.slane %v767_v34, %v2606_v58 }
 0x1b7   : > { %1526 = vmatpush1.bf16.msra.mxu0 %v2011_v56  ;;  %1569 = vmatpush1.bf16.msra.mxu1 %v2014_v61  ;;  %v784_v56 = vrot.slane %v767_v34, %v2599_v55 }
 0x1b8   : > { %1527 = vmatprep.subr.bf16.mxu0 %v2019_v63  ;;  %1570 = vmatprep.subr.bf16.mxu1 %v2022_v0 }
 0x1bb   : > { %1528 = vmatpush1.bf16.msra.mxu0 %v2017_v2  ;;  %1571 = vmatpush1.bf16.msra.mxu1 %v2020_v3 }
 0x1bc   : > { %1529 = vmatprep.subr.bf16.mxu0 %v2025_v4  ;;  %1572 = vmatprep.subr.bf16.mxu1 %v2028_v5 }
 0x1bf   : > { %1530 = vmatpush1.bf16.msra.mxu0 %v2023_v6  ;;  %1573 = vmatpush1.bf16.msra.mxu1 %v2026_v7 }
 0x1c0   : > { %1531 = vmatprep.subr.bf16.mxu0 %v2031_v8  ;;  %1574 = vmatprep.subr.bf16.mxu1 %v2034_v9 }
 0x1c3   : > { %1532 = vmatpush2.bf16.msra.mxu0 %v2029_v10  ;;  %1575 = vmatpush2.bf16.msra.mxu1 %v2032_v11 }
 0x1c4   : > { %1533 = vmatprep.subr.bf16.mxu0 %v2037_v51  ;;  %1576 = vmatprep.subr.bf16.mxu1 %v2040_v12 }
 0x1c7   : > { %1534 = vmatpush2.bf16.msra.mxu0 %v2035_v54  ;;  %1577 = vmatpush2.bf16.msra.mxu1 %v2038_v13 }
 0x1c8   : > { %1535 = vmatprep.subr.bf16.mxu0 %v2043_v50  ;;  %1578 = vmatprep.subr.bf16.mxu1 %v2046_v14 }
 0x1cb   : > { %1536 = vmatpush2.bf16.msra.mxu0 %v2041_v15  ;;  %1579 = vmatpush2.bf16.msra.mxu1 %v2044_v52 }
 0x1cc   : > { %1537 = vmatprep.subr.bf16.mxu0 %v2049_v16  ;;  %1580 = vmatprep.subr.bf16.mxu1 %v2052_v17 }
 0x1cf   : > { %1538 = vmatpush2.bf16.msra.mxu0 %v2047_v18  ;;  %1581 = vmatpush2.bf16.msra.mxu1 %v2050_v19 }
 0x1d0   : > { %1539 = vmatprep.subr.bf16.mxu0 %v2055_v20  ;;  %1582 = vmatprep.subr.bf16.mxu1 %v2058_v21 }
 0x1d3   : > { %1540 = vmatpush2.bf16.msra.mxu0 %v2053_v22  ;;  %1583 = vmatpush2.bf16.msra.mxu1 %v2056_v23 }
 0x1d4   : > { %1541 = vmatprep.subr.bf16.mxu0 %v2061_v60  ;;  %1584 = vmatprep.subr.bf16.mxu1 %v2064_v24 }
 0x1d7   : > { %1542 = vmatpush2.bf16.msra.mxu0 %v2059_v1  ;;  %1585 = vmatpush2.bf16.msra.mxu1 %v2062_v25 }
 0x1d8   : > { %1543 = vmatprep.subr.bf16.mxu0 %v2067_v26  ;;  %1586 = vmatprep.subr.bf16.mxu1 %v2070_v59 }
 0x1db   : > { %1544 = vmatpush2.bf16.msra.mxu0 %v2065_v62  ;;  %1587 = vmatpush2.bf16.msra.mxu1 %v2068_v27 }
 0x1dc   : > { %1545 = vmatprep.subr.bf16.mxu0 %v2073_v28  ;;  %1588 = vmatprep.subr.bf16.mxu1 %v2076_v29 }
 0x1df   : > { %1546 = vmatpush2.bf16.msra.mxu0 %v2071_v32  ;;  %1589 = vmatpush2.bf16.msra.mxu1 %v2074_v33 }
 0x1e2   : > { %1548 = vmatmul.mubr.bf16.vlgmr.msra.gmra.mxu0 %v2629_v30  ;;  %1591 = vmatmul.mubr.bf16.vlgmr.msra.gmra.mxu1 %v2631_v31 }
 0x262   : > { %v1463_v37 = vpop.f32.mrf.mxu0  ;;  %v1506_v38 = vpop.f32.mrf.mxu1 }
 0x263   : > { %v1464_v39 = vadd.f32 %v1463_v37, %v772_v35 }
 0x264   : > { %v1465_v30 = vpop.f32.mrf.mxu0  ;;  %v1508_v40 = vpop.f32.mrf.mxu1 }
 0x265   : > { %v1507_v31 = vadd.f32 %v1506_v38, %v1464_v39  ;;  %v1466_v41 = vadd.f32 %v1465_v30, %v776_v36 }
 0x266   : > { %v1467_v42 = vpop.f32.mrf.mxu0  ;;  %v1510_v43 = vpop.f32.mrf.mxu1 }
 0x267   : > { %1601 = vst [vmem:[%s2705_s20] sm:$0xff] %v1507_v31  ;;  %v1509_v57 = vadd.f32 %v1508_v40, %v1466_v41  ;;  %v1468_v44 = vadd.f32 %v1467_v42, %v772_v35 }
 0x268   : > { %v1469_v45 = vpop.f32.mrf.mxu0  ;;  %v1512_v47 = vpop.f32.mrf.mxu1 }
 0x269   : > { %1602 = vst [vmem:[%s2705_s20 + $0x8] sm:$0xff] %v1509_v57  ;;  %v1511_v53 = vadd.f32 %v1510_v43, %v1468_v44  ;;  %v1470_v46 = vadd.f32 %v1469_v45, %v776_v36 }
 0x26b   : > { %1605 = vst [vmem:[%s2705_s20 + $0x20] sm:$0xff] %v1511_v53  ;;  %v1513_v48 = vadd.f32 %v1512_v47, %v1470_v46 }
 0x26d   : > { %1606 = vst [vmem:[%s2705_s20 + $0x28] sm:$0xff] %v1513_v48 }
 0x26e   : > { %v1631_v12 = vld [vmem:[%s2705_s20] sm:$0xff] (%p2166_p5) }
 0x26f   : > { %1632 = vst [vmem:[%s1618_s27] sm:$0xff] (%p2166_p5), %v1631_v12 }
 0x270   : > { %v1633_v54 = vld [vmem:[%s2705_s20 + $0x8] sm:$0xff] (%p2166_p5) }
 0x271   : > { %1634 = vst [vmem:[%s1618_s27 + $0x8] sm:$0xff] (%p2166_p5), %v1633_v54 }
 0x272   : > { %v1639_v14 = vld [vmem:[%s2705_s20 + $0x20] sm:$0xff] (%p2166_p5) }
 0x273   : > { %1640 = vst [vmem:[%s1618_s27 + $0x60] sm:$0xff] (%p2166_p5), %v1639_v14 }
 0x274   : > { %v1641_v15 = vld [vmem:[%s2705_s20 + $0x28] sm:$0xff] (%p2166_p5) }
 0x275   : > { %1642 = vst [vmem:[%s1618_s27 + $0x68] sm:$0xff] (%p2166_p5), %v1641_v15 }
 0x2a2   : > { %v1549_v61 = vpop.f32.mrf.mxu0  ;;  %v1592_v63 = vpop.f32.mrf.mxu1 }
 0x2a3   : > { %v1550_v0 = vadd.f32 %v1549_v61, %v780_v49 }
 0x2a4   : > { %v1551_v2 = vpop.f32.mrf.mxu0  ;;  %v1594_v3 = vpop.f32.mrf.mxu1 }
 0x2a5   : > { %v1593_v4 = vadd.f32 %v1592_v63, %v1550_v0  ;;  %v1552_v5 = vadd.f32 %v1551_v2, %v784_v56 }
 0x2a6   : > { %v1553_v6 = vpop.f32.mrf.mxu0  ;;  %v1596_v7 = vpop.f32.mrf.mxu1 }
 0x2a7   : > { %1603 = vst [vmem:[%s2705_s20 + $0x10] sm:$0xff] %v1593_v4  ;;  %v1595_v8 = vadd.f32 %v1594_v3, %v1552_v5  ;;  %v1554_v9 = vadd.f32 %v1553_v6, %v780_v49 }
 0x2a8   : > { %v1555_v10 = vpop.f32.mrf.mxu0  ;;  %v1598_v51 = vpop.f32.mrf.mxu1 }
 0x2a9   : > { %1604 = vst [vmem:[%s2705_s20 + $0x18] sm:$0xff] %v1595_v8  ;;  %v1597_v11 = vadd.f32 %v1596_v7, %v1554_v9  ;;  %v1556_v58 = vadd.f32 %v1555_v10, %v784_v56  ;;  %1615 = sbr.rel (!%p2166_p5) target bundleno = 694 (0x2b6), region = 67 }
 0x2ab   : > { %1607 = vst [vmem:[%s2705_s20 + $0x30] sm:$0xff] %v1597_v11  ;;  %v1599_v55 = vadd.f32 %v1598_v51, %v1556_v58 }
 0x2ad   : > { %1608 = vst [vmem:[%s2705_s20 + $0x38] sm:$0xff] %v1599_v55 }
 0x2ae   : > { %v1635_v13 = vld [vmem:[%s2705_s20 + $0x10] sm:$0xff] }
 0x2af   : > { %1636 = vst [vmem:[%s1618_s27 + $0x10] sm:$0xff] %v1635_v13 }
 0x2b0   : > { %v1637_v50 = vld [vmem:[%s2705_s20 + $0x18] sm:$0xff] }
 0x2b1   : > { %1638 = vst [vmem:[%s1618_s27 + $0x18] sm:$0xff] %v1637_v50 }
 0x2b2   : > { %v1643_v52 = vld [vmem:[%s2705_s20 + $0x30] sm:$0xff] }
 0x2b3   : > { %1644 = vst [vmem:[%s1618_s27 + $0x70] sm:$0xff] %v1643_v52 }
 0x2b4   : > { %v1645_v16 = vld [vmem:[%s2705_s20 + $0x38] sm:$0xff] }
 0x2b5   : > { %1646 = vst [vmem:[%s1618_s27 + $0x78] sm:$0xff] %v1645_v16 }
 0x2b6 PF: > { %p12_p11 = scmp.ge.s32.totalorder %s2154_s22, 5   ;;  %s2748_s18 = smov %s2099_s19 }
 0x2b7   : > { %s2749_s19 = smov %s2164_s25  ;;  %s2750_s20 = smov %s2154_s22 }
 0x2b8   :  { %14 = sbr.rel (!%p12_p11) target bundleno = 2 (0x2), region = 124 }

// kernel: transformer2_forward.77
= control target key start
LH: loop header
LB: loop body
LE: loop exit
PB: predicated region body
PF: predicated region fallthrough
CT: control target
= control target key end

     0   :  { %s3597_s24 = smov 0   ;;  %s3599_s25 = smov 0   ;;  %s4324_s0 = inlined_call_operand.vmem [shape: f32[16,512], index: 0, kind: input, shape index: {}]   ;;  %s4325_s1 = inlined_call_operand.vmem [shape: f32[1,512], index: 1, kind: input, shape index: {}]   ;;  %s4326_s2 = inlined_call_operand.vmem [shape: f32[1,512], index: 2, kind: input, shape index: {}]   ;;  %s4327_s3 = inlined_call_operand.vmem [shape: bf16[512,2048], index: 3, kind: input, shape index: {}]   ;;  %s4328_s4 = inlined_call_operand.vmem [shape: f32[1,2048], index: 4, kind: input, shape index: {}]   ;;  %s4329_s5 = inlined_call_operand.vmem [shape: bf16[2048,512], index: 5, kind: input, shape index: {}]   ;;  %s4330_s6 = inlined_call_operand.vmem [shape: f32[1,512], index: 6, kind: input, shape index: {}]   ;;  %s4331_s7 = inlined_call_operand.vmem [shape: f32[16,512], index: 7, kind: output, shape index: {}]  }
   0x1   :  { %s3601_s26 = smov 0  }
   0x2 LB: > { %s3613_s27 = sadd.s32 4294967295, %s3554_s26   ;;  %s3616_s28 = sadd.s32 1, %s3554_s26   ;;  %s3554_s26 = sphi %s3601_s26, %s4334_s26   ;;  %s3550_s25 = sphi %s3599_s25, %s4333_s25   ;;  %s3546_s24 = sphi %s3597_s24, %s4332_s24  }
   0x3   : > { %s84_s29 = ssub.s32 %s3554_s26, %s3616_s28  ;;  %s87_s30 = sadd.s32 1, %s3550_s25 }
   0x4   : > { %p85_p0 = scmp.eq.s32.totalorder %s84_s29, 0  ;;  %p94_p1 = scmp.ne.s32.totalorder %s3550_s25, %s3546_s24 }
   0x5   : > { %p95_p2 = scmp.eq.s32.totalorder %s3554_s26, 0  ;;  %p2829_p4 = scmp.ge.s32.totalorder %s3554_s26, 4 }
   0x6   : > { %s3625_s8 = scalar_select %p85_p0, %s3550_s25, %s87_s30  }
   0x7   : > { %p96_p3 = por %p95_p2, %p94_p1  ;;  %226 = sbr.rel (%p2829_p4) target bundleno = 80 (0x50), region = 32 }
   0xc   : > { %229 = sbr.rel (!%p96_p3) target bundleno = 80 (0x50), region = 36  ;;  %s231_s9 = sand.u32 (%p96_p3), 1, %s3550_s25  }
   0xd   : > { %s3107_s10 = sshll.u32 (%p96_p3), %s3554_s26, 4  ;;  %s2830_s11 = sshll.u32 (%p96_p3), %s231_s9, 10 }
   0xe   : > { %s3633_s14 = scalar_lea.vmem (%p96_p3), %s4327_s3, %s3107_s10  ;;  %s3638_s15 = scalar_lea.vmem (%p96_p3), [#allocation4], %s2830_s11 }
   0xf   : > { %v249_v0 = vld [vmem:[%s3633_s14] sm:$0xff] (%p96_p3)  ;;  %v251_v1 = vld [vmem:[%s3633_s14 + $0x8] sm:$0xff] (%p96_p3) }
  0x10   : > { %v253_v2 = vld [vmem:[%s3633_s14 + $0x40] sm:$0xff] (%p96_p3)  ;;  %250 = vst [vmem:[%s3638_s15] sm:$0xff] (%p96_p3), %v249_v0  ;;  %252 = vst [vmem:[%s3638_s15 + $0x8] sm:$0xff] (%p96_p3), %v251_v1  ;;  %v255_v3 = vld [vmem:[%s3633_s14 + $0x48] sm:$0xff] (%p96_p3) }
  0x11   : > { %254 = vst [vmem:[%s3638_s15 + $0x10] sm:$0xff] %v253_v2  ;;  %v257_v4 = vld [vmem:[%s3633_s14 + $0x80] sm:$0xff]  ;;  %v259_v5 = vld [vmem:[%s3633_s14 + $0x88] sm:$0xff]  ;;  %256 = vst [vmem:[%s3638_s15 + $0x18] sm:$0xff] %v255_v3 }
  0x12   : > { %258 = vst [vmem:[%s3638_s15 + $0x20] sm:$0xff] %v257_v4  ;;  %260 = vst [vmem:[%s3638_s15 + $0x28] sm:$0xff] %v259_v5  ;;  %v261_v6 = vld [vmem:[%s3633_s14 + $0xc0] sm:$0xff]  ;;  %v263_v7 = vld [vmem:[%s3633_s14 + $0xc8] sm:$0xff] }
  0x13   : > { %v265_v8 = vld [vmem:[%s3633_s14 + $0x100] sm:$0xff]  ;;  %262 = vst [vmem:[%s3638_s15 + $0x30] sm:$0xff] %v261_v6  ;;  %264 = vst [vmem:[%s3638_s15 + $0x38] sm:$0xff] %v263_v7  ;;  %v267_v9 = vld [vmem:[%s3633_s14 + $0x108] sm:$0xff] }
  0x14   : > { %266 = vst [vmem:[%s3638_s15 + $0x40] sm:$0xff] %v265_v8  ;;  %v269_v10 = vld [vmem:[%s3633_s14 + $0x140] sm:$0xff]  ;;  %v271_v11 = vld [vmem:[%s3633_s14 + $0x148] sm:$0xff]  ;;  %268 = vst [vmem:[%s3638_s15 + $0x48] sm:$0xff] %v267_v9 }
  0x15   : > { %270 = vst [vmem:[%s3638_s15 + $0x50] sm:$0xff] %v269_v10  ;;  %272 = vst [vmem:[%s3638_s15 + $0x58] sm:$0xff] %v271_v11  ;;  %v273_v12 = vld [vmem:[%s3633_s14 + $0x180] sm:$0xff]  ;;  %v275_v13 = vld [vmem:[%s3633_s14 + $0x188] sm:$0xff] }
  0x16   : > { %v277_v14 = vld [vmem:[%s3633_s14 + $0x1c0] sm:$0xff]  ;;  %274 = vst [vmem:[%s3638_s15 + $0x60] sm:$0xff] %v273_v12  ;;  %276 = vst [vmem:[%s3638_s15 + $0x68] sm:$0xff] %v275_v13  ;;  %v279_v15 = vld [vmem:[%s3633_s14 + $0x1c8] sm:$0xff] }
  0x17   : > { %278 = vst [vmem:[%s3638_s15 + $0x70] sm:$0xff] %v277_v14  ;;  %v281_v16 = vld [vmem:[%s3633_s14 + $0x200] sm:$0xff]  ;;  %v283_v17 = vld [vmem:[%s3633_s14 + $0x208] sm:$0xff]  ;;  %280 = vst [vmem:[%s3638_s15 + $0x78] sm:$0xff] %v279_v15 }
  0x18   : > { %282 = vst [vmem:[%s3638_s15 + $0x80] sm:$0xff] %v281_v16  ;;  %284 = vst [vmem:[%s3638_s15 + $0x88] sm:$0xff] %v283_v17  ;;  %v285_v18 = vld [vmem:[%s3633_s14 + $0x240] sm:$0xff]  ;;  %v287_v19 = vld [vmem:[%s3633_s14 + $0x248] sm:$0xff] }
  0x19   : > { %v289_v20 = vld [vmem:[%s3633_s14 + $0x280] sm:$0xff]  ;;  %286 = vst [vmem:[%s3638_s15 + $0x90] sm:$0xff] %v285_v18  ;;  %288 = vst [vmem:[%s3638_s15 + $0x98] sm:$0xff] %v287_v19  ;;  %v291_v21 = vld [vmem:[%s3633_s14 + $0x288] sm:$0xff] }
  0x1a   : > { %290 = vst [vmem:[%s3638_s15 + $0xa0] sm:$0xff] %v289_v20  ;;  %v293_v22 = vld [vmem:[%s3633_s14 + $0x2c0] sm:$0xff]  ;;  %v295_v23 = vld [vmem:[%s3633_s14 + $0x2c8] sm:$0xff]  ;;  %292 = vst [vmem:[%s3638_s15 + $0xa8] sm:$0xff] %v291_v21 }
  0x1b   : > { %294 = vst [vmem:[%s3638_s15 + $0xb0] sm:$0xff] %v293_v22  ;;  %296 = vst [vmem:[%s3638_s15 + $0xb8] sm:$0xff] %v295_v23  ;;  %v297_v24 = vld [vmem:[%s3633_s14 + $0x300] sm:$0xff]  ;;  %v299_v25 = vld [vmem:[%s3633_s14 + $0x308] sm:$0xff] }
  0x1c   : > { %v301_v26 = vld [vmem:[%s3633_s14 + $0x340] sm:$0xff]  ;;  %298 = vst [vmem:[%s3638_s15 + $0xc0] sm:$0xff] %v297_v24  ;;  %300 = vst [vmem:[%s3638_s15 + $0xc8] sm:$0xff] %v299_v25  ;;  %v303_v27 = vld [vmem:[%s3633_s14 + $0x348] sm:$0xff] }
  0x1d   : > { %302 = vst [vmem:[%s3638_s15 + $0xd0] sm:$0xff] %v301_v26  ;;  %v305_v28 = vld [vmem:[%s3633_s14 + $0x380] sm:$0xff]  ;;  %v307_v29 = vld [vmem:[%s3633_s14 + $0x388] sm:$0xff]  ;;  %304 = vst [vmem:[%s3638_s15 + $0xd8] sm:$0xff] %v303_v27 }
  0x1e   : > { %306 = vst [vmem:[%s3638_s15 + $0xe0] sm:$0xff] %v305_v28  ;;  %308 = vst [vmem:[%s3638_s15 + $0xe8] sm:$0xff] %v307_v29  ;;  %v309_v30 = vld [vmem:[%s3633_s14 + $0x3c0] sm:$0xff]  ;;  %v311_v31 = vld [vmem:[%s3633_s14 + $0x3c8] sm:$0xff] }
  0x1f   : > { %v313_v32 = vld [vmem:[%s3633_s14 + $0x400] sm:$0xff]  ;;  %310 = vst [vmem:[%s3638_s15 + $0xf0] sm:$0xff] %v309_v30  ;;  %312 = vst [vmem:[%s3638_s15 + $0xf8] sm:$0xff] %v311_v31  ;;  %v315_v33 = vld [vmem:[%s3633_s14 + $0x408] sm:$0xff] }
  0x20   : > { %314 = vst [vmem:[%s3638_s15 + $0x100] sm:$0xff] %v313_v32  ;;  %v317_v34 = vld [vmem:[%s3633_s14 + $0x440] sm:$0xff]  ;;  %v319_v35 = vld [vmem:[%s3633_s14 + $0x448] sm:$0xff]  ;;  %316 = vst [vmem:[%s3638_s15 + $0x108] sm:$0xff] %v315_v33 }
  0x21   : > { %318 = vst [vmem:[%s3638_s15 + $0x110] sm:$0xff] %v317_v34  ;;  %320 = vst [vmem:[%s3638_s15 + $0x118] sm:$0xff] %v319_v35  ;;  %v321_v36 = vld [vmem:[%s3633_s14 + $0x480] sm:$0xff]  ;;  %v323_v37 = vld [vmem:[%s3633_s14 + $0x488] sm:$0xff] }
  0x22   : > { %v325_v38 = vld [vmem:[%s3633_s14 + $0x4c0] sm:$0xff]  ;;  %322 = vst [vmem:[%s3638_s15 + $0x120] sm:$0xff] %v321_v36  ;;  %324 = vst [vmem:[%s3638_s15 + $0x128] sm:$0xff] %v323_v37  ;;  %v327_v39 = vld [vmem:[%s3633_s14 + $0x4c8] sm:$0xff] }
  0x23   : > { %326 = vst [vmem:[%s3638_s15 + $0x130] sm:$0xff] %v325_v38  ;;  %v329_v40 = vld [vmem:[%s3633_s14 + $0x500] sm:$0xff]  ;;  %v331_v41 = vld [vmem:[%s3633_s14 + $0x508] sm:$0xff]  ;;  %328 = vst [vmem:[%s3638_s15 + $0x138] sm:$0xff] %v327_v39 }
  0x24   : > { %330 = vst [vmem:[%s3638_s15 + $0x140] sm:$0xff] %v329_v40  ;;  %332 = vst [vmem:[%s3638_s15 + $0x148] sm:$0xff] %v331_v41  ;;  %v333_v42 = vld [vmem:[%s3633_s14 + $0x540] sm:$0xff]  ;;  %v335_v43 = vld [vmem:[%s3633_s14 + $0x548] sm:$0xff] }
  0x25   : > { %v337_v44 = vld [vmem:[%s3633_s14 + $0x580] sm:$0xff]  ;;  %334 = vst [vmem:[%s3638_s15 + $0x150] sm:$0xff] %v333_v42  ;;  %336 = vst [vmem:[%s3638_s15 + $0x158] sm:$0xff] %v335_v43  ;;  %v339_v45 = vld [vmem:[%s3633_s14 + $0x588] sm:$0xff] }
  0x26   : > { %338 = vst [vmem:[%s3638_s15 + $0x160] sm:$0xff] %v337_v44  ;;  %v341_v46 = vld [vmem:[%s3633_s14 + $0x5c0] sm:$0xff]  ;;  %v343_v47 = vld [vmem:[%s3633_s14 + $0x5c8] sm:$0xff]  ;;  %340 = vst [vmem:[%s3638_s15 + $0x168] sm:$0xff] %v339_v45 }
  0x27   : > { %342 = vst [vmem:[%s3638_s15 + $0x170] sm:$0xff] %v341_v46  ;;  %344 = vst [vmem:[%s3638_s15 + $0x178] sm:$0xff] %v343_v47  ;;  %v345_v48 = vld [vmem:[%s3633_s14 + $0x600] sm:$0xff]  ;;  %v347_v49 = vld [vmem:[%s3633_s14 + $0x608] sm:$0xff] }
  0x28   : > { %v349_v50 = vld [vmem:[%s3633_s14 + $0x640] sm:$0xff]  ;;  %346 = vst [vmem:[%s3638_s15 + $0x180] sm:$0xff] %v345_v48  ;;  %348 = vst [vmem:[%s3638_s15 + $0x188] sm:$0xff] %v347_v49  ;;  %v351_v51 = vld [vmem:[%s3633_s14 + $0x648] sm:$0xff] }
  0x29   : > { %350 = vst [vmem:[%s3638_s15 + $0x190] sm:$0xff] %v349_v50  ;;  %v353_v52 = vld [vmem:[%s3633_s14 + $0x680] sm:$0xff]  ;;  %v355_v53 = vld [vmem:[%s3633_s14 + $0x688] sm:$0xff]  ;;  %352 = vst [vmem:[%s3638_s15 + $0x198] sm:$0xff] %v351_v51 }
  0x2a   : > { %354 = vst [vmem:[%s3638_s15 + $0x1a0] sm:$0xff] %v353_v52  ;;  %356 = vst [vmem:[%s3638_s15 + $0x1a8] sm:$0xff] %v355_v53  ;;  %v357_v54 = vld [vmem:[%s3633_s14 + $0x6c0] sm:$0xff]  ;;  %v359_v55 = vld [vmem:[%s3633_s14 + $0x6c8] sm:$0xff] }
  0x2b   : > { %v361_v56 = vld [vmem:[%s3633_s14 + $0x700] sm:$0xff]  ;;  %358 = vst [vmem:[%s3638_s15 + $0x1b0] sm:$0xff] %v357_v54  ;;  %360 = vst [vmem:[%s3638_s15 + $0x1b8] sm:$0xff] %v359_v55  ;;  %v363_v57 = vld [vmem:[%s3633_s14 + $0x708] sm:$0xff] }
  0x2c   : > { %362 = vst [vmem:[%s3638_s15 + $0x1c0] sm:$0xff] %v361_v56  ;;  %v365_v58 = vld [vmem:[%s3633_s14 + $0x740] sm:$0xff]  ;;  %v367_v59 = vld [vmem:[%s3633_s14 + $0x748] sm:$0xff]  ;;  %364 = vst [vmem:[%s3638_s15 + $0x1c8] sm:$0xff] %v363_v57 }
  0x2d   : > { %366 = vst [vmem:[%s3638_s15 + $0x1d0] sm:$0xff] %v365_v58  ;;  %368 = vst [vmem:[%s3638_s15 + $0x1d8] sm:$0xff] %v367_v59  ;;  %v369_v60 = vld [vmem:[%s3633_s14 + $0x780] sm:$0xff]  ;;  %v371_v61 = vld [vmem:[%s3633_s14 + $0x788] sm:$0xff] }
  0x2e   : > { %v373_v62 = vld [vmem:[%s3633_s14 + $0x7c0] sm:$0xff]  ;;  %370 = vst [vmem:[%s3638_s15 + $0x1e0] sm:$0xff] %v369_v60  ;;  %372 = vst [vmem:[%s3638_s15 + $0x1e8] sm:$0xff] %v371_v61  ;;  %v375_v63 = vld [vmem:[%s3633_s14 + $0x7c8] sm:$0xff] }
  0x2f   : > { %374 = vst [vmem:[%s3638_s15 + $0x1f0] sm:$0xff] %v373_v62  ;;  %v377_v0 = vld [vmem:[%s3633_s14 + $0x800] sm:$0xff]  ;;  %v379_v1 = vld [vmem:[%s3633_s14 + $0x808] sm:$0xff]  ;;  %376 = vst [vmem:[%s3638_s15 + $0x1f8] sm:$0xff] %v375_v63 }
  0x30   : > { %378 = vst [vmem:[%s3638_s15 + $0x200] sm:$0xff] %v377_v0  ;;  %380 = vst [vmem:[%s3638_s15 + $0x208] sm:$0xff] %v379_v1  ;;  %v381_v2 = vld [vmem:[%s3633_s14 + $0x840] sm:$0xff]  ;;  %v383_v3 = vld [vmem:[%s3633_s14 + $0x848] sm:$0xff] }
  0x31   : > { %v385_v4 = vld [vmem:[%s3633_s14 + $0x880] sm:$0xff]  ;;  %382 = vst [vmem:[%s3638_s15 + $0x210] sm:$0xff] %v381_v2  ;;  %384 = vst [vmem:[%s3638_s15 + $0x218] sm:$0xff] %v383_v3  ;;  %v387_v5 = vld [vmem:[%s3633_s14 + $0x888] sm:$0xff] }
  0x32   : > { %386 = vst [vmem:[%s3638_s15 + $0x220] sm:$0xff] %v385_v4  ;;  %v389_v6 = vld [vmem:[%s3633_s14 + $0x8c0] sm:$0xff]  ;;  %v391_v7 = vld [vmem:[%s3633_s14 + $0x8c8] sm:$0xff]  ;;  %388 = vst [vmem:[%s3638_s15 + $0x228] sm:$0xff] %v387_v5 }
  0x33   : > { %390 = vst [vmem:[%s3638_s15 + $0x230] sm:$0xff] %v389_v6  ;;  %392 = vst [vmem:[%s3638_s15 + $0x238] sm:$0xff] %v391_v7  ;;  %v393_v8 = vld [vmem:[%s3633_s14 + $0x900] sm:$0xff]  ;;  %v395_v9 = vld [vmem:[%s3633_s14 + $0x908] sm:$0xff] }
  0x34   : > { %v397_v10 = vld [vmem:[%s3633_s14 + $0x940] sm:$0xff]  ;;  %394 = vst [vmem:[%s3638_s15 + $0x240] sm:$0xff] %v393_v8  ;;  %396 = vst [vmem:[%s3638_s15 + $0x248] sm:$0xff] %v395_v9  ;;  %v399_v11 = vld [vmem:[%s3633_s14 + $0x948] sm:$0xff] }
  0x35   : > { %398 = vst [vmem:[%s3638_s15 + $0x250] sm:$0xff] %v397_v10  ;;  %v401_v12 = vld [vmem:[%s3633_s14 + $0x980] sm:$0xff]  ;;  %v403_v13 = vld [vmem:[%s3633_s14 + $0x988] sm:$0xff]  ;;  %400 = vst [vmem:[%s3638_s15 + $0x258] sm:$0xff] %v399_v11 }
  0x36   : > { %402 = vst [vmem:[%s3638_s15 + $0x260] sm:$0xff] %v401_v12  ;;  %404 = vst [vmem:[%s3638_s15 + $0x268] sm:$0xff] %v403_v13  ;;  %v405_v14 = vld [vmem:[%s3633_s14 + $0x9c0] sm:$0xff]  ;;  %v407_v15 = vld [vmem:[%s3633_s14 + $0x9c8] sm:$0xff] }
  0x37   : > { %v409_v16 = vld [vmem:[%s3633_s14 + $0xa00] sm:$0xff]  ;;  %406 = vst [vmem:[%s3638_s15 + $0x270] sm:$0xff] %v405_v14  ;;  %408 = vst [vmem:[%s3638_s15 + $0x278] sm:$0xff] %v407_v15  ;;  %v411_v17 = vld [vmem:[%s3633_s14 + $0xa08] sm:$0xff] }
  0x38   : > { %410 = vst [vmem:[%s3638_s15 + $0x280] sm:$0xff] %v409_v16  ;;  %v413_v18 = vld [vmem:[%s3633_s14 + $0xa40] sm:$0xff]  ;;  %v415_v19 = vld [vmem:[%s3633_s14 + $0xa48] sm:$0xff]  ;;  %412 = vst [vmem:[%s3638_s15 + $0x288] sm:$0xff] %v411_v17 }
  0x39   : > { %414 = vst [vmem:[%s3638_s15 + $0x290] sm:$0xff] %v413_v18  ;;  %416 = vst [vmem:[%s3638_s15 + $0x298] sm:$0xff] %v415_v19  ;;  %v417_v20 = vld [vmem:[%s3633_s14 + $0xa80] sm:$0xff]  ;;  %v419_v21 = vld [vmem:[%s3633_s14 + $0xa88] sm:$0xff] }
  0x3a   : > { %v421_v22 = vld [vmem:[%s3633_s14 + $0xac0] sm:$0xff]  ;;  %418 = vst [vmem:[%s3638_s15 + $0x2a0] sm:$0xff] %v417_v20  ;;  %420 = vst [vmem:[%s3638_s15 + $0x2a8] sm:$0xff] %v419_v21  ;;  %v423_v23 = vld [vmem:[%s3633_s14 + $0xac8] sm:$0xff] }
  0x3b   : > { %422 = vst [vmem:[%s3638_s15 + $0x2b0] sm:$0xff] %v421_v22  ;;  %v425_v24 = vld [vmem:[%s3633_s14 + $0xb00] sm:$0xff]  ;;  %v427_v25 = vld [vmem:[%s3633_s14 + $0xb08] sm:$0xff]  ;;  %424 = vst [vmem:[%s3638_s15 + $0x2b8] sm:$0xff] %v423_v23 }
  0x3c   : > { %426 = vst [vmem:[%s3638_s15 + $0x2c0] sm:$0xff] %v425_v24  ;;  %428 = vst [vmem:[%s3638_s15 + $0x2c8] sm:$0xff] %v427_v25  ;;  %v429_v26 = vld [vmem:[%s3633_s14 + $0xb40] sm:$0xff]  ;;  %v431_v27 = vld [vmem:[%s3633_s14 + $0xb48] sm:$0xff] }
  0x3d   : > { %v433_v28 = vld [vmem:[%s3633_s14 + $0xb80] sm:$0xff]  ;;  %430 = vst [vmem:[%s3638_s15 + $0x2d0] sm:$0xff] %v429_v26  ;;  %432 = vst [vmem:[%s3638_s15 + $0x2d8] sm:$0xff] %v431_v27  ;;  %v435_v29 = vld [vmem:[%s3633_s14 + $0xb88] sm:$0xff] }
  0x3e   : > { %434 = vst [vmem:[%s3638_s15 + $0x2e0] sm:$0xff] %v433_v28  ;;  %v437_v30 = vld [vmem:[%s3633_s14 + $0xbc0] sm:$0xff]  ;;  %v439_v31 = vld [vmem:[%s3633_s14 + $0xbc8] sm:$0xff]  ;;  %436 = vst [vmem:[%s3638_s15 + $0x2e8] sm:$0xff] %v435_v29 }
  0x3f   : > { %438 = vst [vmem:[%s3638_s15 + $0x2f0] sm:$0xff] %v437_v30  ;;  %440 = vst [vmem:[%s3638_s15 + $0x2f8] sm:$0xff] %v439_v31  ;;  %v441_v32 = vld [vmem:[%s3633_s14 + $0xc00] sm:$0xff]  ;;  %v443_v33 = vld [vmem:[%s3633_s14 + $0xc08] sm:$0xff] }
  0x40   : > { %v445_v34 = vld [vmem:[%s3633_s14 + $0xc40] sm:$0xff]  ;;  %442 = vst [vmem:[%s3638_s15 + $0x300] sm:$0xff] %v441_v32  ;;  %444 = vst [vmem:[%s3638_s15 + $0x308] sm:$0xff] %v443_v33  ;;  %v447_v35 = vld [vmem:[%s3633_s14 + $0xc48] sm:$0xff] }
  0x41   : > { %446 = vst [vmem:[%s3638_s15 + $0x310] sm:$0xff] %v445_v34  ;;  %v449_v36 = vld [vmem:[%s3633_s14 + $0xc80] sm:$0xff]  ;;  %v451_v37 = vld [vmem:[%s3633_s14 + $0xc88] sm:$0xff]  ;;  %448 = vst [vmem:[%s3638_s15 + $0x318] sm:$0xff] %v447_v35 }
  0x42   : > { %450 = vst [vmem:[%s3638_s15 + $0x320] sm:$0xff] %v449_v36  ;;  %452 = vst [vmem:[%s3638_s15 + $0x328] sm:$0xff] %v451_v37  ;;  %v453_v38 = vld [vmem:[%s3633_s14 + $0xcc0] sm:$0xff]  ;;  %v455_v39 = vld [vmem:[%s3633_s14 + $0xcc8] sm:$0xff] }
  0x43   : > { %v457_v40 = vld [vmem:[%s3633_s14 + $0xd00] sm:$0xff]  ;;  %454 = vst [vmem:[%s3638_s15 + $0x330] sm:$0xff] %v453_v38  ;;  %456 = vst [vmem:[%s3638_s15 + $0x338] sm:$0xff] %v455_v39  ;;  %v459_v41 = vld [vmem:[%s3633_s14 + $0xd08] sm:$0xff] }
  0x44   : > { %458 = vst [vmem:[%s3638_s15 + $0x340] sm:$0xff] %v457_v40  ;;  %v461_v42 = vld [vmem:[%s3633_s14 + $0xd40] sm:$0xff]  ;;  %v463_v43 = vld [vmem:[%s3633_s14 + $0xd48] sm:$0xff]  ;;  %460 = vst [vmem:[%s3638_s15 + $0x348] sm:$0xff] %v459_v41 }
  0x45   : > { %462 = vst [vmem:[%s3638_s15 + $0x350] sm:$0xff] %v461_v42  ;;  %464 = vst [vmem:[%s3638_s15 + $0x358] sm:$0xff] %v463_v43  ;;  %v465_v44 = vld [vmem:[%s3633_s14 + $0xd80] sm:$0xff]  ;;  %v467_v45 = vld [vmem:[%s3633_s14 + $0xd88] sm:$0xff] }
  0x46   : > { %v469_v46 = vld [vmem:[%s3633_s14 + $0xdc0] sm:$0xff]  ;;  %466 = vst [vmem:[%s3638_s15 + $0x360] sm:$0xff] %v465_v44  ;;  %468 = vst [vmem:[%s3638_s15 + $0x368] sm:$0xff] %v467_v45  ;;  %v471_v47 = vld [vmem:[%s3633_s14 + $0xdc8] sm:$0xff] }
  0x47   : > { %470 = vst [vmem:[%s3638_s15 + $0x370] sm:$0xff] %v469_v46  ;;  %v473_v48 = vld [vmem:[%s3633_s14 + $0xe00] sm:$0xff]  ;;  %v475_v49 = vld [vmem:[%s3633_s14 + $0xe08] sm:$0xff]  ;;  %472 = vst [vmem:[%s3638_s15 + $0x378] sm:$0xff] %v471_v47 }
  0x48   : > { %474 = vst [vmem:[%s3638_s15 + $0x380] sm:$0xff] %v473_v48  ;;  %476 = vst [vmem:[%s3638_s15 + $0x388] sm:$0xff] %v475_v49  ;;  %v477_v50 = vld [vmem:[%s3633_s14 + $0xe40] sm:$0xff]  ;;  %v479_v51 = vld [vmem:[%s3633_s14 + $0xe48] sm:$0xff] }
  0x49   : > { %v481_v52 = vld [vmem:[%s3633_s14 + $0xe80] sm:$0xff]  ;;  %478 = vst [vmem:[%s3638_s15 + $0x390] sm:$0xff] %v477_v50  ;;  %480 = vst [vmem:[%s3638_s15 + $0x398] sm:$0xff] %v479_v51  ;;  %v483_v53 = vld [vmem:[%s3633_s14 + $0xe88] sm:$0xff] }
  0x4a   : > { %482 = vst [vmem:[%s3638_s15 + $0x3a0] sm:$0xff] %v481_v52  ;;  %v485_v54 = vld [vmem:[%s3633_s14 + $0xec0] sm:$0xff]  ;;  %v487_v55 = vld [vmem:[%s3633_s14 + $0xec8] sm:$0xff]  ;;  %484 = vst [vmem:[%s3638_s15 + $0x3a8] sm:$0xff] %v483_v53 }
  0x4b   : > { %486 = vst [vmem:[%s3638_s15 + $0x3b0] sm:$0xff] %v485_v54  ;;  %488 = vst [vmem:[%s3638_s15 + $0x3b8] sm:$0xff] %v487_v55  ;;  %v489_v56 = vld [vmem:[%s3633_s14 + $0xf00] sm:$0xff]  ;;  %v491_v57 = vld [vmem:[%s3633_s14 + $0xf08] sm:$0xff] }
  0x4c   : > { %v493_v58 = vld [vmem:[%s3633_s14 + $0xf40] sm:$0xff]  ;;  %490 = vst [vmem:[%s3638_s15 + $0x3c0] sm:$0xff] %v489_v56  ;;  %492 = vst [vmem:[%s3638_s15 + $0x3c8] sm:$0xff] %v491_v57  ;;  %v495_v59 = vld [vmem:[%s3633_s14 + $0xf48] sm:$0xff] }
  0x4d   : > { %494 = vst [vmem:[%s3638_s15 + $0x3d0] sm:$0xff] %v493_v58  ;;  %v497_v60 = vld [vmem:[%s3633_s14 + $0xf80] sm:$0xff]  ;;  %v499_v61 = vld [vmem:[%s3633_s14 + $0xf88] sm:$0xff]  ;;  %496 = vst [vmem:[%s3638_s15 + $0x3d8] sm:$0xff] %v495_v59 }
  0x4e   : > { %498 = vst [vmem:[%s3638_s15 + $0x3e0] sm:$0xff] %v497_v60  ;;  %500 = vst [vmem:[%s3638_s15 + $0x3e8] sm:$0xff] %v499_v61  ;;  %v501_v62 = vld [vmem:[%s3633_s14 + $0xfc0] sm:$0xff]  ;;  %v503_v63 = vld [vmem:[%s3633_s14 + $0xfc8] sm:$0xff] }
  0x4f   : > { %502 = vst [vmem:[%s3638_s15 + $0x3f0] sm:$0xff] %v501_v62  ;;  %504 = vst [vmem:[%s3638_s15 + $0x3f8] sm:$0xff] %v503_v63 }
  0x50 PF: > { %p2833_p5 = scmp.ge.s32.totalorder %s3554_s26, 1  ;;  %p527_p6 = scmp.lt.s32.totalorder %s3554_s26, 5 }
  0x52   : > { %p528_p7 = pnand %p2833_p5, %p527_p6 }
  0x53   : > { %s534_s16 = sand.u32 (!%p528_p7), 1, %s3546_s24   ;;  %s2835_s17 = sshll.u32 (!%p528_p7), %s3613_s27, 2 }
  0x54   : > { %531 = sbr.rel (%p528_p7) target bundleno = 1040 (0x410), region = 67  ;;  %s2834_s18 = sshll.u32 (!%p528_p7), %s534_s16, 10 }
  0x55   : > { %p572_p8 = scmp.lt.s32.totalorder (!%p528_p7), %s2835_s17, 15  ;;  %s2836_s19 = sshll.u32 (!%p528_p7), %s3613_s27, 6 }
  0x56   : > { %p577_p9 = scmp.lt.s32.totalorder (!%p528_p7), %s2836_s19, 255  ;;  %s3909_s24 = scalar_lea.vmem (!%p528_p7), [#allocation4], %s2834_s18 }
  0x57   : > { %p2839_p10 = scmp.ne.s32.totalorder (!%p528_p7), %s3613_s27, 0 }
  0x59   : > { %s4336_s17 = smov (!%p572_p8, %s2835_s17), 15  ;;  %s4338_s19 = smov (!%p577_p9, %s2836_s19), 255 }
  0x5a   : > { %s574_s22 = scalar_lea.vmem %s4328_s4, %s4336_s17  ;;  %s3108_s23 = sshll.u32 %s4338_s19, 4 }
  0x5b   : > { %s3907_s30 = scalar_lea.vmem %s4329_s5, %s3108_s23  ;;  %586 = sbr.rel (%p2839_p10) target bundleno = 423 (0x1a7), region = 75 }
  0x60   : > { %v587_v0 = vld [vmem:[%s4324_s0] sm:$0xff]  ;;  %v588_v1 = vld [vmem:[%s4324_s0 + $0x8] sm:$0xff]  ;;  %v589_v2 = vld [vmem:[%s4324_s0 + $0x10] sm:$0xff]  ;;  %v3556_v40 = vmov 0.0   ;;  %v651_v45 = vlaneseq }
  0x61   : > { %v597_v3 = vadd.f32 %v588_v1, %v587_v0  ;;  %v591_v4 = vld [vmem:[%s4324_s0 + $0x20] sm:$0xff]  ;;  %v592_v5 = vld [vmem:[%s4324_s0 + $0x28] sm:$0xff]  ;;  %v590_v6 = vld [vmem:[%s4324_s0 + $0x18] sm:$0xff]  ;;  %736 = vst [vmem:[#allocation3] sm:$0xff] %v3556_v40 }
  0x62   : > { %v593_v7 = vld [vmem:[%s4324_s0 + $0x30] sm:$0xff]  ;;  %v602_v8 = vadd.f32 %v592_v5, %v591_v4  ;;  %v594_v10 = vld [vmem:[%s4324_s0 + $0x38] sm:$0xff]  ;;  %737 = vst [vmem:[#allocation3 + $0x38] sm:$0xff] %v3556_v40  ;;  %738 = vst [vmem:[#allocation3 + $0x8] sm:$0xff] %v3556_v40  ;;  %v652_v48 = vshrl.u32 %v651_v45, 7 }
  0x63   : > { %v598_v9 = vadd.f32 %v597_v3, %v589_v2  ;;  %739 = vst [vmem:[#allocation3 + $0x18] sm:$0xff] %v3556_v40  ;;  %740 = vst [vmem:[#allocation3 + $0x20] sm:$0xff] %v3556_v40  ;;  %v595_v53 = vld [vmem:[%s4325_s1] sm:$0xf] }
  0x64   : > { %v603_v11 = vadd.f32 %v602_v8, %v593_v7  ;;  %741 = vst [vmem:[#allocation3 + $0x10] sm:$0xff] %v3556_v40  ;;  %742 = vst [vmem:[#allocation3 + $0x30] sm:$0xff] %v3556_v40  ;;  %v653_v49 = vsub.s32 0, %v652_v48  ;;  %v657_v50 = vsub.s32 1, %v652_v48  ;;  %v661_v51 = vsub.s32 2, %v652_v48 }
  0x65   : > { %v599_v12 = vadd.f32 %v598_v9, %v590_v6  ;;  %743 = vst [vmem:[#allocation3 + $0x28] sm:$0xff] %v3556_v40  ;;  %v665_v52 = vsub.s32 3, %v652_v48  ;;  %v596_v54 = vld [vmem:[%s4326_s2] sm:$0xf] }
  0x66   : > { %v604_v13 = vadd.f32 %v603_v11, %v594_v10  ;;  %v654_v55 = vrot.slane %v595_v53, %v653_v49  ;;  %v658_v56 = vrot.slane %v595_v53, %v657_v50  ;;  %v662_v57 = vrot.slane %v595_v53, %v661_v51 }
  0x67   : > { %600 = vadd.xlane.f32.xlu0 %v599_v12  ;;  %v666_v58 = vrot.slane %v595_v53, %v665_v52  ;;  %v683_v60 = vrot.slane %v596_v54, %v653_v49  ;;  %v687_v61 = vrot.slane %v596_v54, %v657_v50  ;;  %v691_v62 = vrot.slane %v596_v54, %v661_v51 }
  0x68   : > { %v695_v63 = vrot.slane %v596_v54, %v665_v52 }
  0x6b   : > { %605 = vadd.xlane.f32.xlu0 %v604_v13 }
  0xf0   : > { %v601_v14 = vpop.xlane.xlu0 %600 }
  0xf1   : > { %v608_v15 = vmul.f32 0.001953125, %v601_v14 }
  0xf3   : > { %v610_v16 = vsub.f32 %v587_v0, %v608_v15  ;;  %v611_v17 = vsub.f32 %v588_v1, %v608_v15  ;;  %v612_v18 = vsub.f32 %v589_v2, %v608_v15  ;;  %v613_v20 = vsub.f32 %v590_v6, %v608_v15 }
  0xf4   : > { %v606_v19 = vpop.xlane.xlu0 %605 }
  0xf5   : > { %v609_v21 = vmul.f32 0.001953125, %v606_v19  ;;  %v618_v22 = vmul.f32 %v610_v16, %v610_v16  ;;  %v619_v23 = vmul.f32 %v611_v17, %v611_v17  ;;  %v620_v24 = vmul.f32 %v612_v18, %v612_v18 }
  0xf6   : > { %v621_v29 = vmul.f32 %v613_v20, %v613_v20 }
  0xf7   : > { %v3936_v25 = vsub.f32 %v591_v4, %v609_v21  ;;  %v3938_v26 = vsub.f32 %v592_v5, %v609_v21  ;;  %v626_v27 = vadd.f32 %v619_v23, %v618_v22  ;;  %v3940_v28 = vsub.f32 %v593_v7, %v609_v21 }
  0xf8   : > { %v617_v31 = vsub.f32 %v594_v10, %v609_v21 }
  0xf9   : > { %v627_v30 = vadd.f32 %v626_v27, %v620_v24  ;;  %v622_v32 = vmul.f32 %v3936_v25, %v3936_v25  ;;  %v623_v33 = vmul.f32 %v3938_v26, %v3938_v26  ;;  %v624_v35 = vmul.f32 %v3940_v28, %v3940_v28 }
  0xfa   : > { %v625_v37 = vmul.f32 %v617_v31, %v617_v31 }
  0xfb   : > { %v628_v34 = vadd.f32 %v627_v30, %v621_v29  ;;  %v631_v36 = vadd.f32 %v623_v33, %v622_v32 }
  0xfd   : > { %629 = vadd.xlane.f32.xlu1 %v628_v34  ;;  %v632_v38 = vadd.f32 %v631_v36, %v624_v35 }
  0xff   : > { %v633_v39 = vadd.f32 %v632_v38, %v625_v37 }
 0x101   : > { %634 = vadd.xlane.f32.xlu1 %v633_v39 }
 0x186   : > { %v630_v41 = vpop.xlane.xlu1 %629 }
 0x187   : > { %v636_v42 = vmul.f32 0.001953125, %v630_v41 }
 0x189   : > { %v638_v43 = vadd.f32 1e-05, %v636_v42 }
 0x18a   : > { %v635_v44 = vpop.xlane.xlu1 %634 }
 0x18b   : > { %3138 = vrsqrt.f32 %v638_v43  ;;  %v637_v46 = vmul.f32 0.001953125, %v635_v44 }
 0x18d   : > { %v639_v47 = vadd.f32 1e-05, %v637_v46 }
 0x18f   : > { %3140 = vrsqrt.f32 %v639_v47 }
 0x198   : > { %v3139_v59 = vpop.eup %3138 }
 0x199   : > { %v642_v0 = vmul.f32 %v3139_v59, %v610_v16  ;;  %v643_v1 = vmul.f32 %v3139_v59, %v611_v17  ;;  %v644_v2 = vmul.f32 %v3139_v59, %v612_v18  ;;  %v645_v3 = vmul.f32 %v3139_v59, %v613_v20 }
 0x19b   : > { %v671_v4 = vmul.f32 %v654_v55, %v642_v0  ;;  %v672_v5 = vmul.f32 %v658_v56, %v643_v1  ;;  %v673_v6 = vmul.f32 %v662_v57, %v644_v2  ;;  %v674_v7 = vmul.f32 %v666_v58, %v645_v3 }
 0x19c   : > { %v3141_v8 = vpop.eup %3140 }
 0x19d   : > { %v700_v9 = vadd.f32 %v683_v60, %v671_v4  ;;  %v701_v10 = vadd.f32 %v687_v61, %v672_v5  ;;  %v702_v11 = vadd.f32 %v691_v62, %v673_v6  ;;  %v703_v12 = vadd.f32 %v695_v63, %v674_v7 }
 0x19e   : > { %v646_v13 = vmul.f32 %v3141_v8, %v3936_v25  ;;  %v647_v14 = vmul.f32 %v3141_v8, %v3938_v26  ;;  %v648_v15 = vmul.f32 %v3141_v8, %v3940_v28  ;;  %v649_v19 = vmul.f32 %v3141_v8, %v617_v31 }
 0x19f   : > { %v3109_v16 = vpack.c.bf16 %v701_v10, %v700_v9  ;;  %v3110_v17 = vpack.c.bf16 %v703_v12, %v702_v11 }
 0x1a0   : > { %v675_v18 = vmul.f32 %v654_v55, %v646_v13  ;;  %v676_v20 = vmul.f32 %v658_v56, %v647_v14  ;;  %v677_v21 = vmul.f32 %v662_v57, %v648_v15  ;;  %v678_v22 = vmul.f32 %v666_v58, %v649_v19 }
 0x1a1   : > { %732 = vst [vmem:[#allocation2 + $0x10] sm:$0xff] %v3109_v16  ;;  %733 = vst [vmem:[#allocation2] sm:$0xff] %v3110_v17 }
 0x1a2   : > { %v704_v23 = vadd.f32 %v683_v60, %v675_v18  ;;  %v705_v24 = vadd.f32 %v687_v61, %v676_v20  ;;  %v706_v27 = vadd.f32 %v691_v62, %v677_v21  ;;  %v707_v29 = vadd.f32 %v695_v63, %v678_v22 }
 0x1a4   : > { %v3111_v30 = vpack.c.bf16 %v705_v24, %v704_v23  ;;  %v3112_v32 = vpack.c.bf16 %v707_v29, %v706_v27 }
 0x1a6   : > { %734 = vst [vmem:[#allocation2 + $0x18] sm:$0xff] %v3111_v30  ;;  %735 = vst [vmem:[#allocation2 + $0x8] sm:$0xff] %v3112_v32 }
 0x1a7 PF: > { %v3142_v25 = vld [vmem:[%s3909_s24 + $0xe4] ss:$16 sps:$4 sm:$0xff]   ;;  %v3146_v28 = vld [vmem:[%s3909_s24 + $0xe0] ss:$16 sps:$4 sm:$0xff]   ;;  %p3104_p11 = scmp.ne.s32.totalorder %s3613_s27, 3 }
 0x1a8   : > { %v3144_v26 = vld [vmem:[%s3909_s24 + $0x2e4] ss:$16 sps:$4 sm:$0xff]   ;;  %1558 = vmatprep.subr.bf16.mxu0 %v3142_v25  ;;  %v3147_v31 = vld [vmem:[%s3909_s24 + $0x2e0] ss:$16 sps:$4 sm:$0xff]  }
 0x1a9   : > { %1601 = vmatprep.subr.bf16.mxu1 %v3144_v26  ;;  %v3148_v33 = vld [vmem:[%s3909_s24 + $0xc4] ss:$16 sps:$4 sm:$0xff]   ;;  %1559 = vmatpush1.bf16.msra.mxu0 %v3146_v28  ;;  %v3152_v35 = vld [vmem:[%s3909_s24 + $0xc0] ss:$16 sps:$4 sm:$0xff]   ;;  %v3246_v28 = vld [vmem:[%s3909_s24 + $0xec] ss:$16 sps:$4 sm:$0xff]  }
 0x1aa   : > { %1602 = vmatpush1.bf16.msra.mxu1 %v3147_v31  ;;  %v3150_v34 = vld [vmem:[%s3909_s24 + $0x2c4] ss:$16 sps:$4 sm:$0xff]   ;;  %1560 = vmatprep.subr.bf16.mxu0 %v3148_v33  ;;  %v3153_v36 = vld [vmem:[%s3909_s24 + $0x2c0] ss:$16 sps:$4 sm:$0xff]   ;;  %v3249_v31 = vld [vmem:[%s3909_s24 + $0x2ec] ss:$16 sps:$4 sm:$0xff]  }
 0x1ab   : > { %1603 = vmatprep.subr.bf16.mxu1 %v3150_v34  ;;  %v3154_v37 = vld [vmem:[%s3909_s24 + $0xa4] ss:$16 sps:$4 sm:$0xff]   ;;  %v3158_v39 = vld [vmem:[%s3909_s24 + $0xa0] ss:$16 sps:$4 sm:$0xff]  }
 0x1ac   : > { %v3156_v38 = vld [vmem:[%s3909_s24 + $0x2a4] ss:$16 sps:$4 sm:$0xff]   ;;  %v3159_v40 = vld [vmem:[%s3909_s24 + $0x2a0] ss:$16 sps:$4 sm:$0xff]  }
 0x1ad   : > { %1561 = vmatpush1.bf16.msra.mxu0 %v3152_v35  ;;  %v3160_v41 = vld [vmem:[%s3909_s24 + $0x84] ss:$16 sps:$4 sm:$0xff]   ;;  %v3164_v43 = vld [vmem:[%s3909_s24 + $0x80] ss:$16 sps:$4 sm:$0xff]   ;;  %v3244_v35 = vld [vmem:[%s3909_s24 + $0xe8] ss:$16 sps:$4 sm:$0xff]  }
 0x1ae   : > { %1604 = vmatpush1.bf16.msra.mxu1 %v3153_v36  ;;  %1562 = vmatprep.subr.bf16.mxu0 %v3154_v37  ;;  %v3162_v42 = vld [vmem:[%s3909_s24 + $0x284] ss:$16 sps:$4 sm:$0xff]   ;;  %v3165_v44 = vld [vmem:[%s3909_s24 + $0x280] ss:$16 sps:$4 sm:$0xff]   ;;  %v3247_v36 = vld [vmem:[%s3909_s24 + $0x2e8] ss:$16 sps:$4 sm:$0xff]  }
 0x1af   : > { %1605 = vmatprep.subr.bf16.mxu1 %v3156_v38  ;;  %v3166_v45 = vld [vmem:[%s3909_s24 + $0x64] ss:$16 sps:$4 sm:$0xff]   ;;  %v3170_v47 = vld [vmem:[%s3909_s24 + $0x60] ss:$16 sps:$4 sm:$0xff]   ;;  %v3252_v37 = vld [vmem:[%s3909_s24 + $0xcc] ss:$16 sps:$4 sm:$0xff]  }
 0x1b0   : > { %v3168_v46 = vld [vmem:[%s3909_s24 + $0x264] ss:$16 sps:$4 sm:$0xff]   ;;  %v3171_v48 = vld [vmem:[%s3909_s24 + $0x260] ss:$16 sps:$4 sm:$0xff]   ;;  %v3255_v38 = vld [vmem:[%s3909_s24 + $0x2cc] ss:$16 sps:$4 sm:$0xff]  }
 0x1b1   : > { %1563 = vmatpush1.bf16.msra.mxu0 %v3158_v39  ;;  %v3172_v49 = vld [vmem:[%s3909_s24 + $0x44] ss:$16 sps:$4 sm:$0xff]   ;;  %v3176_v51 = vld [vmem:[%s3909_s24 + $0x40] ss:$16 sps:$4 sm:$0xff]   ;;  %v3250_v39 = vld [vmem:[%s3909_s24 + $0xc8] ss:$16 sps:$4 sm:$0xff]  }
 0x1b2   : > { %1606 = vmatpush1.bf16.msra.mxu1 %v3159_v40  ;;  %1564 = vmatprep.subr.bf16.mxu0 %v3160_v41  ;;  %v3174_v50 = vld [vmem:[%s3909_s24 + $0x244] ss:$16 sps:$4 sm:$0xff]   ;;  %v3177_v52 = vld [vmem:[%s3909_s24 + $0x240] ss:$16 sps:$4 sm:$0xff]   ;;  %v3253_v40 = vld [vmem:[%s3909_s24 + $0x2c8] ss:$16 sps:$4 sm:$0xff]  }
 0x1b3   : > { %1607 = vmatprep.subr.bf16.mxu1 %v3162_v42  ;;  %v3178_v53 = vld [vmem:[%s3909_s24 + $0x24] ss:$16 sps:$4 sm:$0xff]   ;;  %v3182_v55 = vld [vmem:[%s3909_s24 + $0x20] ss:$16 sps:$4 sm:$0xff]   ;;  %v3258_v41 = vld [vmem:[%s3909_s24 + $0xac] ss:$16 sps:$4 sm:$0xff]  }
 0x1b4   : > { %v3180_v54 = vld [vmem:[%s3909_s24 + $0x224] ss:$16 sps:$4 sm:$0xff]   ;;  %v3183_v56 = vld [vmem:[%s3909_s24 + $0x220] ss:$16 sps:$4 sm:$0xff]   ;;  %v3261_v42 = vld [vmem:[%s3909_s24 + $0x2ac] ss:$16 sps:$4 sm:$0xff]  }
 0x1b5   : > { %1565 = vmatpush1.bf16.msra.mxu0 %v3164_v43  ;;  %v3184_v57 = vld [vmem:[%s3909_s24 + $0x4] ss:$16 sps:$4 sm:$0xff]   ;;  %v3188_v59 = vld [vmem:[%s3909_s24] ss:$16 sps:$4 sm:$0xff]   ;;  %v3256_v43 = vld [vmem:[%s3909_s24 + $0xa8] ss:$16 sps:$4 sm:$0xff]  }
 0x1b6   : > { %1608 = vmatpush1.bf16.msra.mxu1 %v3165_v44  ;;  %1566 = vmatprep.subr.bf16.mxu0 %v3166_v45  ;;  %v3186_v58 = vld [vmem:[%s3909_s24 + $0x204] ss:$16 sps:$4 sm:$0xff]   ;;  %v3189_v60 = vld [vmem:[%s3909_s24 + $0x200] ss:$16 sps:$4 sm:$0xff]   ;;  %v3259_v44 = vld [vmem:[%s3909_s24 + $0x2a8] ss:$16 sps:$4 sm:$0xff]  }
 0x1b7   : > { %1609 = vmatprep.subr.bf16.mxu1 %v3168_v46  ;;  %v3190_v61 = vld [vmem:[%s3909_s24 + $0x1e4] ss:$16 sps:$4 sm:$0xff]   ;;  %v3194_v63 = vld [vmem:[%s3909_s24 + $0x1e0] ss:$16 sps:$4 sm:$0xff]   ;;  %v3264_v45 = vld [vmem:[%s3909_s24 + $0x8c] ss:$16 sps:$4 sm:$0xff]  }
 0x1b8   : > { %v3192_v62 = vld [vmem:[%s3909_s24 + $0x3e4] ss:$16 sps:$4 sm:$0xff]   ;;  %v3195_v0 = vld [vmem:[%s3909_s24 + $0x3e0] ss:$16 sps:$4 sm:$0xff]   ;;  %v3267_v46 = vld [vmem:[%s3909_s24 + $0x28c] ss:$16 sps:$4 sm:$0xff]  }
 0x1b9   : > { %1567 = vmatpush1.bf16.msra.mxu0 %v3170_v47  ;;  %v3196_v1 = vld [vmem:[%s3909_s24 + $0x1c4] ss:$16 sps:$4 sm:$0xff]   ;;  %v3200_v3 = vld [vmem:[%s3909_s24 + $0x1c0] ss:$16 sps:$4 sm:$0xff]   ;;  %v3262_v47 = vld [vmem:[%s3909_s24 + $0x88] ss:$16 sps:$4 sm:$0xff]  }
 0x1ba   : > { %1610 = vmatpush1.bf16.msra.mxu1 %v3171_v48  ;;  %1568 = vmatprep.subr.bf16.mxu0 %v3172_v49  ;;  %v3198_v2 = vld [vmem:[%s3909_s24 + $0x3c4] ss:$16 sps:$4 sm:$0xff]   ;;  %v3201_v4 = vld [vmem:[%s3909_s24 + $0x3c0] ss:$16 sps:$4 sm:$0xff]   ;;  %v3265_v48 = vld [vmem:[%s3909_s24 + $0x288] ss:$16 sps:$4 sm:$0xff]  }
 0x1bb   : > { %1611 = vmatprep.subr.bf16.mxu1 %v3174_v50  ;;  %v3202_v5 = vld [vmem:[%s3909_s24 + $0x1a4] ss:$16 sps:$4 sm:$0xff]   ;;  %v3206_v7 = vld [vmem:[%s3909_s24 + $0x1a0] ss:$16 sps:$4 sm:$0xff]   ;;  %v3270_v49 = vld [vmem:[%s3909_s24 + $0x6c] ss:$16 sps:$4 sm:$0xff]  }
 0x1bc   : > { %v3204_v6 = vld [vmem:[%s3909_s24 + $0x3a4] ss:$16 sps:$4 sm:$0xff]   ;;  %v3207_v8 = vld [vmem:[%s3909_s24 + $0x3a0] ss:$16 sps:$4 sm:$0xff]   ;;  %v3273_v50 = vld [vmem:[%s3909_s24 + $0x26c] ss:$16 sps:$4 sm:$0xff]  }
 0x1bd   : > { %1569 = vmatpush1.bf16.msra.mxu0 %v3176_v51  ;;  %v3208_v9 = vld [vmem:[%s3909_s24 + $0x184] ss:$16 sps:$4 sm:$0xff]   ;;  %v3212_v11 = vld [vmem:[%s3909_s24 + $0x180] ss:$16 sps:$4 sm:$0xff]   ;;  %v3268_v51 = vld [vmem:[%s3909_s24 + $0x68] ss:$16 sps:$4 sm:$0xff]  }
 0x1be   : > { %1612 = vmatpush1.bf16.msra.mxu1 %v3177_v52  ;;  %1570 = vmatprep.subr.bf16.mxu0 %v3178_v53  ;;  %v3210_v10 = vld [vmem:[%s3909_s24 + $0x384] ss:$16 sps:$4 sm:$0xff]   ;;  %v3213_v12 = vld [vmem:[%s3909_s24 + $0x380] ss:$16 sps:$4 sm:$0xff]   ;;  %v3271_v52 = vld [vmem:[%s3909_s24 + $0x268] ss:$16 sps:$4 sm:$0xff]  }
 0x1bf   : > { %1613 = vmatprep.subr.bf16.mxu1 %v3180_v54  ;;  %v3214_v13 = vld [vmem:[%s3909_s24 + $0x164] ss:$16 sps:$4 sm:$0xff]   ;;  %v3218_v16 = vld [vmem:[%s3909_s24 + $0x160] ss:$16 sps:$4 sm:$0xff]   ;;  %v3276_v53 = vld [vmem:[%s3909_s24 + $0x4c] ss:$16 sps:$4 sm:$0xff]  }
 0x1c0   : > { %v3240_v14 = vld [vmem:[#allocation2 + $0x14] ss:$8 sps:$4 sm:$0xff]   ;;  %v3243_v19 = vld [vmem:[#allocation2 + $0x4] ss:$8 sps:$4 sm:$0xff]   ;;  %v3219_v17 = vld [vmem:[%s3909_s24 + $0x360] ss:$16 sps:$4 sm:$0xff]  }
 0x1c1   : > { %1571 = vmatpush1.bf16.msra.mxu0 %v3182_v55  ;;  %v3216_v15 = vld [vmem:[%s3909_s24 + $0x364] ss:$16 sps:$4 sm:$0xff]   ;;  %1590 = vmatprep.mubr.bf16.mxu0 %v3240_v14  ;;  %v3224_v21 = vld [vmem:[%s3909_s24 + $0x140] ss:$16 sps:$4 sm:$0xff]   ;;  %v3279_v54 = vld [vmem:[%s3909_s24 + $0x24c] ss:$16 sps:$4 sm:$0xff]  }
 0x1c2   : > { %1614 = vmatpush1.bf16.msra.mxu1 %v3183_v56  ;;  %1572 = vmatprep.subr.bf16.mxu0 %v3184_v57  ;;  %v3220_v18 = vld [vmem:[%s3909_s24 + $0x144] ss:$16 sps:$4 sm:$0xff]   ;;  %v3225_v22 = vld [vmem:[%s3909_s24 + $0x340] ss:$16 sps:$4 sm:$0xff]   ;;  %v3274_v55 = vld [vmem:[%s3909_s24 + $0x48] ss:$16 sps:$4 sm:$0xff]  }
 0x1c3   : > { %1615 = vmatprep.subr.bf16.mxu1 %v3186_v58  ;;  %1633 = vmatprep.mubr.bf16.mxu1 %v3243_v19  ;;  %v3222_v20 = vld [vmem:[%s3909_s24 + $0x344] ss:$16 sps:$4 sm:$0xff]   ;;  %v3230_v27 = vld [vmem:[%s3909_s24 + $0x120] ss:$16 sps:$4 sm:$0xff]   ;;  %v3277_v56 = vld [vmem:[%s3909_s24 + $0x248] ss:$16 sps:$4 sm:$0xff]  }
 0x1c4   : > { %v3226_v23 = vld [vmem:[%s3909_s24 + $0x124] ss:$16 sps:$4 sm:$0xff]   ;;  %v3231_v29 = vld [vmem:[%s3909_s24 + $0x320] ss:$16 sps:$4 sm:$0xff]   ;;  %v3282_v57 = vld [vmem:[%s3909_s24 + $0x2c] ss:$16 sps:$4 sm:$0xff]  }
 0x1c5   : > { %1573 = vmatpush1.bf16.msra.mxu0 %v3188_v59  ;;  %v3228_v24 = vld [vmem:[%s3909_s24 + $0x324] ss:$16 sps:$4 sm:$0xff]   ;;  %v3236_v25 = vld [vmem:[%s3909_s24 + $0x100] ss:$16 sps:$4 sm:$0xff]   ;;  %v3285_v58 = vld [vmem:[%s3909_s24 + $0x22c] ss:$16 sps:$4 sm:$0xff]  }
 0x1c6   : > { %1616 = vmatpush1.bf16.msra.mxu1 %v3189_v60  ;;  %1574 = vmatprep.subr.bf16.mxu0 %v3190_v61  ;;  %v3232_v30 = vld [vmem:[%s3909_s24 + $0x104] ss:$16 sps:$4 sm:$0xff]   ;;  %v3237_v26 = vld [vmem:[%s3909_s24 + $0x300] ss:$16 sps:$4 sm:$0xff]   ;;  %v3280_v59 = vld [vmem:[%s3909_s24 + $0x28] ss:$16 sps:$4 sm:$0xff]  }
 0x1c7   : > { %1617 = vmatprep.subr.bf16.mxu1 %v3192_v62  ;;  %v3234_v32 = vld [vmem:[%s3909_s24 + $0x304] ss:$16 sps:$4 sm:$0xff]   ;;  %v4023_v33 = vld [vmem:[#allocation2 + $0x10] ss:$8 sps:$4 sm:$0xff]   ;;  %v4025_v34 = vld [vmem:[#allocation2] ss:$8 sps:$4 sm:$0xff]  }
 0x1c8   : > { %v3283_v60 = vld [vmem:[%s3909_s24 + $0x228] ss:$16 sps:$4 sm:$0xff]   ;;  %v3288_v61 = vld [vmem:[%s3909_s24 + $0xc] ss:$16 sps:$4 sm:$0xff]  }
 0x1c9   : > { %1575 = vmatpush2.bf16.msra.mxu0 %v3194_v63  ;;  %v3291_v62 = vld [vmem:[%s3909_s24 + $0x20c] ss:$16 sps:$4 sm:$0xff]   ;;  %v3286_v63 = vld [vmem:[%s3909_s24 + $0x8] ss:$16 sps:$4 sm:$0xff]  }
 0x1ca   : > { %1618 = vmatpush2.bf16.msra.mxu1 %v3195_v0  ;;  %1576 = vmatprep.subr.bf16.mxu0 %v3196_v1  ;;  %v3289_v0 = vld [vmem:[%s3909_s24 + $0x208] ss:$16 sps:$4 sm:$0xff]   ;;  %v3294_v1 = vld [vmem:[%s3909_s24 + $0x1ec] ss:$16 sps:$4 sm:$0xff]  }
 0x1cb   : > { %1619 = vmatprep.subr.bf16.mxu1 %v3198_v2  ;;  %v3297_v2 = vld [vmem:[%s3909_s24 + $0x3ec] ss:$16 sps:$4 sm:$0xff]  }
 0x1cd   : > { %1577 = vmatpush2.bf16.msra.mxu0 %v3200_v3  ;;  %v3292_v3 = vld [vmem:[%s3909_s24 + $0x1e8] ss:$16 sps:$4 sm:$0xff]  }
 0x1ce   : > { %1620 = vmatpush2.bf16.msra.mxu1 %v3201_v4  ;;  %1578 = vmatprep.subr.bf16.mxu0 %v3202_v5  ;;  %v3295_v4 = vld [vmem:[%s3909_s24 + $0x3e8] ss:$16 sps:$4 sm:$0xff]   ;;  %v3300_v5 = vld [vmem:[%s3909_s24 + $0x1cc] ss:$16 sps:$4 sm:$0xff]  }
 0x1cf   : > { %1621 = vmatprep.subr.bf16.mxu1 %v3204_v6  ;;  %v3303_v6 = vld [vmem:[%s3909_s24 + $0x3cc] ss:$16 sps:$4 sm:$0xff]  }
 0x1d1   : > { %1579 = vmatpush2.bf16.msra.mxu0 %v3206_v7  ;;  %v3298_v7 = vld [vmem:[%s3909_s24 + $0x1c8] ss:$16 sps:$4 sm:$0xff]  }
 0x1d2   : > { %1622 = vmatpush2.bf16.msra.mxu1 %v3207_v8  ;;  %1580 = vmatprep.subr.bf16.mxu0 %v3208_v9  ;;  %v3301_v8 = vld [vmem:[%s3909_s24 + $0x3c8] ss:$16 sps:$4 sm:$0xff]   ;;  %v3306_v9 = vld [vmem:[%s3909_s24 + $0x1ac] ss:$16 sps:$4 sm:$0xff]  }
 0x1d3   : > { %1623 = vmatprep.subr.bf16.mxu1 %v3210_v10  ;;  %v3309_v10 = vld [vmem:[%s3909_s24 + $0x3ac] ss:$16 sps:$4 sm:$0xff]  }
 0x1d5   : > { %1581 = vmatpush2.bf16.msra.mxu0 %v3212_v11  ;;  %v3304_v11 = vld [vmem:[%s3909_s24 + $0x1a8] ss:$16 sps:$4 sm:$0xff]  }
 0x1d6   : > { %1624 = vmatpush2.bf16.msra.mxu1 %v3213_v12  ;;  %1582 = vmatprep.subr.bf16.mxu0 %v3214_v13  ;;  %v3307_v12 = vld [vmem:[%s3909_s24 + $0x3a8] ss:$16 sps:$4 sm:$0xff]   ;;  %v3312_v13 = vld [vmem:[%s3909_s24 + $0x18c] ss:$16 sps:$4 sm:$0xff]  }
 0x1d7   : > { %1625 = vmatprep.subr.bf16.mxu1 %v3216_v15  ;;  %v3310_v15 = vld [vmem:[%s3909_s24 + $0x188] ss:$16 sps:$4 sm:$0xff]  }
 0x1d9   : > { %1583 = vmatpush2.bf16.msra.mxu0 %v3218_v16  ;;  %v3318_v16 = vld [vmem:[%s3909_s24 + $0x16c] ss:$16 sps:$4 sm:$0xff]  }
 0x1da   : > { %1626 = vmatpush2.bf16.msra.mxu1 %v3219_v17  ;;  %1584 = vmatprep.subr.bf16.mxu0 %v3220_v18  ;;  %v3321_v17 = vld [vmem:[%s3909_s24 + $0x36c] ss:$16 sps:$4 sm:$0xff]   ;;  %v3316_v18 = vld [vmem:[%s3909_s24 + $0x168] ss:$16 sps:$4 sm:$0xff]  }
 0x1db   : > { %1627 = vmatprep.subr.bf16.mxu1 %v3222_v20  ;;  %v3319_v20 = vld [vmem:[%s3909_s24 + $0x368] ss:$16 sps:$4 sm:$0xff]  }
 0x1dd   : > { %1585 = vmatpush2.bf16.msra.mxu0 %v3224_v21  ;;  %v3324_v21 = vld [vmem:[%s3909_s24 + $0x14c] ss:$16 sps:$4 sm:$0xff]  }
 0x1de   : > { %1628 = vmatpush2.bf16.msra.mxu1 %v3225_v22  ;;  %1586 = vmatprep.subr.bf16.mxu0 %v3226_v23  ;;  %v3327_v22 = vld [vmem:[%s3909_s24 + $0x34c] ss:$16 sps:$4 sm:$0xff]   ;;  %v3322_v23 = vld [vmem:[%s3909_s24 + $0x148] ss:$16 sps:$4 sm:$0xff]  }
 0x1df   : > { %1629 = vmatprep.subr.bf16.mxu1 %v3228_v24  ;;  %v3325_v24 = vld [vmem:[%s3909_s24 + $0x348] ss:$16 sps:$4 sm:$0xff]  }
 0x1e1   : > { %1587 = vmatpush2.bf16.msra.mxu0 %v3230_v27  ;;  %v3330_v27 = vld [vmem:[%s3909_s24 + $0x12c] ss:$16 sps:$4 sm:$0xff]  }
 0x1e2   : > { %1630 = vmatpush2.bf16.msra.mxu1 %v3231_v29  ;;  %1588 = vmatprep.subr.bf16.mxu0 %v3232_v30  ;;  %v3333_v29 = vld [vmem:[%s3909_s24 + $0x32c] ss:$16 sps:$4 sm:$0xff]   ;;  %v3328_v30 = vld [vmem:[%s3909_s24 + $0x128] ss:$16 sps:$4 sm:$0xff]  }
 0x1e3   : > { %1631 = vmatprep.subr.bf16.mxu1 %v3234_v32  ;;  %v3331_v32 = vld [vmem:[%s3909_s24 + $0x328] ss:$16 sps:$4 sm:$0xff]  }
 0x1e5   : > { %1589 = vmatpush2.bf16.msra.mxu0 %v3236_v25  ;;  %v3336_v25 = vld [vmem:[%s3909_s24 + $0x10c] ss:$16 sps:$4 sm:$0xff]  }
 0x1e6   : > { %1632 = vmatpush2.bf16.msra.mxu1 %v3237_v26  ;;  %1644 = vmatprep.subr.bf16.mxu0 %v3246_v28  ;;  %v3339_v26 = vld [vmem:[%s3909_s24 + $0x30c] ss:$16 sps:$4 sm:$0xff]   ;;  %v3334_v28 = vld [vmem:[%s3909_s24 + $0x108] ss:$16 sps:$4 sm:$0xff]  }
 0x1e7   : > { %1687 = vmatprep.subr.bf16.mxu1 %v3249_v31  ;;  %v3337_v31 = vld [vmem:[%s3909_s24 + $0x308] ss:$16 sps:$4 sm:$0xff]  }
 0x1e8   : > { %1591 = vmatmul.mubr.bf16.vlgmr.msra.gmra.mxu0 %v4023_v33 }
 0x1e9   : > { %1634 = vmatmul.mubr.bf16.vlgmr.msra.gmra.mxu1 %v4025_v34  ;;  %1645 = vmatpush1.bf16.msra.mxu0 %v3244_v35  ;;  %v3342_v35 = vld [vmem:[%s3907_s30 + $0xe4] ss:$16 sps:$4 sm:$0xff]  }
 0x1ea   : > { %1688 = vmatpush1.bf16.msra.mxu1 %v3247_v36  ;;  %1646 = vmatprep.subr.bf16.mxu0 %v3252_v37  ;;  %v3340_v36 = vld [vmem:[%s3907_s30 + $0xe0] ss:$16 sps:$4 sm:$0xff]   ;;  %v3345_v37 = vld [vmem:[%s3907_s30 + $0xc4] ss:$16 sps:$4 sm:$0xff]  }
 0x1eb   : > { %1689 = vmatprep.subr.bf16.mxu1 %v3255_v38  ;;  %1676 = vmatprep.mubr.bf16.mxu0 %v3240_v14  ;;  %v3315_v14 = vld [vmem:[%s3909_s24 + $0x38c] ss:$16 sps:$4 sm:$0xff]   ;;  %v3343_v38 = vld [vmem:[%s3907_s30 + $0xc0] ss:$16 sps:$4 sm:$0xff]  }
 0x1ec   : > { %1719 = vmatprep.mubr.bf16.mxu1 %v3243_v19  ;;  %v3313_v19 = vld [vmem:[%s3909_s24 + $0x388] ss:$16 sps:$4 sm:$0xff]  }
 0x1ed   : > { %1647 = vmatpush1.bf16.msra.mxu0 %v3250_v39  ;;  %v3348_v39 = vld [vmem:[%s3907_s30 + $0xa4] ss:$16 sps:$4 sm:$0xff]  }
 0x1ee   : > { %1690 = vmatpush1.bf16.msra.mxu1 %v3253_v40  ;;  %1648 = vmatprep.subr.bf16.mxu0 %v3258_v41  ;;  %v3346_v40 = vld [vmem:[%s3907_s30 + $0xa0] ss:$16 sps:$4 sm:$0xff]   ;;  %v3351_v41 = vld [vmem:[%s3907_s30 + $0x84] ss:$16 sps:$4 sm:$0xff]  }
 0x1ef   : > { %1691 = vmatprep.subr.bf16.mxu1 %v3261_v42  ;;  %v3349_v42 = vld [vmem:[%s3907_s30 + $0x80] ss:$16 sps:$4 sm:$0xff]  }
 0x1f1   : > { %1649 = vmatpush1.bf16.msra.mxu0 %v3256_v43  ;;  %v3390_v43 = vld [vmem:[%s3907_s30 + $0x2e4] ss:$16 sps:$4 sm:$0xff]  }
 0x1f2   : > { %1692 = vmatpush1.bf16.msra.mxu1 %v3259_v44  ;;  %1650 = vmatprep.subr.bf16.mxu0 %v3264_v45  ;;  %v3357_v44 = vld [vmem:[%s3907_s30 + $0x44] ss:$16 sps:$4 sm:$0xff]   ;;  %v3388_v45 = vld [vmem:[%s3907_s30 + $0x2e0] ss:$16 sps:$4 sm:$0xff]  }
 0x1f3   : > { %1693 = vmatprep.subr.bf16.mxu1 %v3267_v46  ;;  %v3355_v46 = vld [vmem:[%s3907_s30 + $0x40] ss:$16 sps:$4 sm:$0xff]  }
 0x1f5   : > { %1651 = vmatpush1.bf16.msra.mxu0 %v3262_v47  ;;  %v3394_v47 = vld [vmem:[%s3907_s30 + $0x2c0] ss:$16 sps:$4 sm:$0xff]  }
 0x1f6   : > { %1694 = vmatpush1.bf16.msra.mxu1 %v3265_v48  ;;  %1652 = vmatprep.subr.bf16.mxu0 %v3270_v49  ;;  %v3396_v48 = vld [vmem:[%s3907_s30 + $0x2c4] ss:$16 sps:$4 sm:$0xff]  }
 0x1f7   : > { %1695 = vmatprep.subr.bf16.mxu1 %v3273_v50  ;;  %v3360_v49 = vld [vmem:[%s3907_s30 + $0x24] ss:$16 sps:$4 sm:$0xff]   ;;  %v3358_v50 = vld [vmem:[%s3907_s30 + $0x20] ss:$16 sps:$4 sm:$0xff]  }
 0x1f9   : > { %1653 = vmatpush1.bf16.msra.mxu0 %v3268_v51  ;;  %v3400_v51 = vld [vmem:[%s3907_s30 + $0x2a0] ss:$16 sps:$4 sm:$0xff]  }
 0x1fa   : > { %1696 = vmatpush1.bf16.msra.mxu1 %v3271_v52  ;;  %1654 = vmatprep.subr.bf16.mxu0 %v3276_v53  ;;  %v3402_v52 = vld [vmem:[%s3907_s30 + $0x2a4] ss:$16 sps:$4 sm:$0xff]  }
 0x1fb   : > { %1697 = vmatprep.subr.bf16.mxu1 %v3279_v54  ;;  %v3363_v53 = vld [vmem:[%s3907_s30 + $0x4] ss:$16 sps:$4 sm:$0xff]   ;;  %v3361_v54 = vld [vmem:[%s3907_s30] ss:$16 sps:$4 sm:$0xff]  }
 0x1fd   : > { %1655 = vmatpush1.bf16.msra.mxu0 %v3274_v55  ;;  %v3406_v55 = vld [vmem:[%s3907_s30 + $0x280] ss:$16 sps:$4 sm:$0xff]  }
 0x1fe   : > { %1698 = vmatpush1.bf16.msra.mxu1 %v3277_v56  ;;  %1656 = vmatprep.subr.bf16.mxu0 %v3282_v57  ;;  %v3408_v56 = vld [vmem:[%s3907_s30 + $0x284] ss:$16 sps:$4 sm:$0xff]  }
 0x1ff   : > { %1699 = vmatprep.subr.bf16.mxu1 %v3285_v58  ;;  %v3366_v57 = vld [vmem:[%s3907_s30 + $0x1e4] ss:$16 sps:$4 sm:$0xff]   ;;  %v3364_v58 = vld [vmem:[%s3907_s30 + $0x1e0] ss:$16 sps:$4 sm:$0xff]  }
 0x201   : > { %1657 = vmatpush1.bf16.msra.mxu0 %v3280_v59  ;;  %v3412_v59 = vld [vmem:[%s3907_s30 + $0x260] ss:$16 sps:$4 sm:$0xff]  }
 0x202   : > { %1700 = vmatpush1.bf16.msra.mxu1 %v3283_v60  ;;  %1658 = vmatprep.subr.bf16.mxu0 %v3288_v61  ;;  %v3414_v60 = vld [vmem:[%s3907_s30 + $0x264] ss:$16 sps:$4 sm:$0xff]  }
 0x203   : > { %1701 = vmatprep.subr.bf16.mxu1 %v3291_v62  ;;  %v3369_v61 = vld [vmem:[%s3907_s30 + $0x1c4] ss:$16 sps:$4 sm:$0xff]   ;;  %v3367_v62 = vld [vmem:[%s3907_s30 + $0x1c0] ss:$16 sps:$4 sm:$0xff]  }
 0x205   : > { %1659 = vmatpush1.bf16.msra.mxu0 %v3286_v63  ;;  %v3418_v63 = vld [vmem:[%s3907_s30 + $0x240] ss:$16 sps:$4 sm:$0xff]  }
 0x206   : > { %1702 = vmatpush1.bf16.msra.mxu1 %v3289_v0  ;;  %1660 = vmatprep.subr.bf16.mxu0 %v3294_v1  ;;  %v3420_v0 = vld [vmem:[%s3907_s30 + $0x244] ss:$16 sps:$4 sm:$0xff]  }
 0x207   : > { %1703 = vmatprep.subr.bf16.mxu1 %v3297_v2  ;;  %v3372_v1 = vld [vmem:[%s3907_s30 + $0x1a4] ss:$16 sps:$4 sm:$0xff]   ;;  %v3370_v2 = vld [vmem:[%s3907_s30 + $0x1a0] ss:$16 sps:$4 sm:$0xff]  }
 0x209   : > { %1661 = vmatpush2.bf16.msra.mxu0 %v3292_v3  ;;  %v3424_v3 = vld [vmem:[%s3907_s30 + $0x220] ss:$16 sps:$4 sm:$0xff]  }
 0x20a   : > { %1704 = vmatpush2.bf16.msra.mxu1 %v3295_v4  ;;  %1662 = vmatprep.subr.bf16.mxu0 %v3300_v5  ;;  %v3426_v4 = vld [vmem:[%s3907_s30 + $0x224] ss:$16 sps:$4 sm:$0xff]  }
 0x20b   : > { %1705 = vmatprep.subr.bf16.mxu1 %v3303_v6  ;;  %v3375_v5 = vld [vmem:[%s3907_s30 + $0x184] ss:$16 sps:$4 sm:$0xff]   ;;  %v3373_v6 = vld [vmem:[%s3907_s30 + $0x180] ss:$16 sps:$4 sm:$0xff]  }
 0x20d   : > { %1663 = vmatpush2.bf16.msra.mxu0 %v3298_v7  ;;  %v3430_v7 = vld [vmem:[%s3907_s30 + $0x200] ss:$16 sps:$4 sm:$0xff]  }
 0x20e   : > { %1706 = vmatpush2.bf16.msra.mxu1 %v3301_v8  ;;  %1664 = vmatprep.subr.bf16.mxu0 %v3306_v9  ;;  %v3432_v8 = vld [vmem:[%s3907_s30 + $0x204] ss:$16 sps:$4 sm:$0xff]  }
 0x20f   : > { %1707 = vmatprep.subr.bf16.mxu1 %v3309_v10  ;;  %v3378_v9 = vld [vmem:[%s3907_s30 + $0x164] ss:$16 sps:$4 sm:$0xff]   ;;  %v3376_v10 = vld [vmem:[%s3907_s30 + $0x160] ss:$16 sps:$4 sm:$0xff]  }
 0x211   : > { %1665 = vmatpush2.bf16.msra.mxu0 %v3304_v11  ;;  %v3436_v11 = vld [vmem:[%s3907_s30 + $0x3e0] ss:$16 sps:$4 sm:$0xff]  }
 0x212   : > { %1708 = vmatpush2.bf16.msra.mxu1 %v3307_v12  ;;  %1666 = vmatprep.subr.bf16.mxu0 %v3312_v13  ;;  %v3438_v12 = vld [vmem:[%s3907_s30 + $0x3e4] ss:$16 sps:$4 sm:$0xff]  }
 0x213   : > { %1709 = vmatprep.subr.bf16.mxu1 %v3315_v14  ;;  %v3381_v13 = vld [vmem:[%s3907_s30 + $0x144] ss:$16 sps:$4 sm:$0xff]   ;;  %v3379_v14 = vld [vmem:[%s3907_s30 + $0x140] ss:$16 sps:$4 sm:$0xff]  }
 0x215   : > { %1667 = vmatpush2.bf16.msra.mxu0 %v3310_v15  ;;  %v3442_v15 = vld [vmem:[%s3907_s30 + $0x3c0] ss:$16 sps:$4 sm:$0xff]  }
 0x216   : > { %1710 = vmatpush2.bf16.msra.mxu1 %v3313_v19  ;;  %1668 = vmatprep.subr.bf16.mxu0 %v3318_v16  ;;  %v3444_v19 = vld [vmem:[%s3907_s30 + $0x3c4] ss:$16 sps:$4 sm:$0xff]  }
 0x217   : > { %1711 = vmatprep.subr.bf16.mxu1 %v3321_v17  ;;  %v3384_v16 = vld [vmem:[%s3907_s30 + $0x124] ss:$16 sps:$4 sm:$0xff]   ;;  %v3382_v17 = vld [vmem:[%s3907_s30 + $0x120] ss:$16 sps:$4 sm:$0xff]  }
 0x219   : > { %1669 = vmatpush2.bf16.msra.mxu0 %v3316_v18  ;;  %v3448_v18 = vld [vmem:[%s3907_s30 + $0x3a0] ss:$16 sps:$4 sm:$0xff]  }
 0x21a   : > { %1712 = vmatpush2.bf16.msra.mxu1 %v3319_v20  ;;  %1670 = vmatprep.subr.bf16.mxu0 %v3324_v21  ;;  %v3450_v20 = vld [vmem:[%s3907_s30 + $0x3a4] ss:$16 sps:$4 sm:$0xff]  }
 0x21b   : > { %1713 = vmatprep.subr.bf16.mxu1 %v3327_v22  ;;  %v3387_v21 = vld [vmem:[%s3907_s30 + $0x104] ss:$16 sps:$4 sm:$0xff]   ;;  %v3385_v22 = vld [vmem:[%s3907_s30 + $0x100] ss:$16 sps:$4 sm:$0xff]  }
 0x21d   : > { %1671 = vmatpush2.bf16.msra.mxu0 %v3322_v23  ;;  %v3454_v23 = vld [vmem:[%s3907_s30 + $0x380] ss:$16 sps:$4 sm:$0xff]  }
 0x21e   : > { %1714 = vmatpush2.bf16.msra.mxu1 %v3325_v24  ;;  %1672 = vmatprep.subr.bf16.mxu0 %v3330_v27  ;;  %v3456_v24 = vld [vmem:[%s3907_s30 + $0x384] ss:$16 sps:$4 sm:$0xff]   ;;  %v3393_v27 = vld [vmem:[%s3907_s30 + $0xec] ss:$16 sps:$4 sm:$0xff]  }
 0x21f   : > { %1715 = vmatprep.subr.bf16.mxu1 %v3333_v29  ;;  %v3460_v29 = vld [vmem:[%s3907_s30 + $0x360] ss:$16 sps:$4 sm:$0xff]  }
 0x221   : > { %1673 = vmatpush2.bf16.msra.mxu0 %v3328_v30  ;;  %v3462_v30 = vld [vmem:[%s3907_s30 + $0x364] ss:$16 sps:$4 sm:$0xff]  }
 0x222   : > { %1716 = vmatpush2.bf16.msra.mxu1 %v3331_v32  ;;  %1674 = vmatprep.subr.bf16.mxu0 %v3336_v25  ;;  %v3468_v32 = vld [vmem:[%s3907_s30 + $0x344] ss:$16 sps:$4 sm:$0xff]   ;;  %v3466_v25 = vld [vmem:[%s3907_s30 + $0x340] ss:$16 sps:$4 sm:$0xff]  }
 0x223   : > { %1717 = vmatprep.subr.bf16.mxu1 %v3339_v26  ;;  %v3474_v26 = vld [vmem:[%s3907_s30 + $0x324] ss:$16 sps:$4 sm:$0xff]  }
 0x225   : > { %1675 = vmatpush2.bf16.msra.mxu0 %v3334_v28  ;;  %v3472_v28 = vld [vmem:[%s3907_s30 + $0x320] ss:$16 sps:$4 sm:$0xff]  }
 0x226   : > { %1718 = vmatpush2.bf16.msra.mxu1 %v3337_v31  ;;  %2518 = vmatprep.subr.bf16.mxu0 %v3342_v35  ;;  %v3480_v31 = vld [vmem:[%s3907_s30 + $0x304] ss:$16 sps:$4 sm:$0xff]   ;;  %v3478_v35 = vld [vmem:[%s3907_s30 + $0x300] ss:$16 sps:$4 sm:$0xff]  }
 0x227   : > { %2561 = vmatprep.subr.bf16.mxu1 %v3390_v43 }
 0x228   : > { %1677 = vmatmul.mubr.bf16.vlgmr.msra.gmra.mxu0 %v4023_v33  ;;  %v3354_v33 = vld [vmem:[%s3907_s30 + $0x64] ss:$16 sps:$4 sm:$0xff]  }
 0x229   : > { %1720 = vmatmul.mubr.bf16.vlgmr.msra.gmra.mxu1 %v4025_v34  ;;  %2519 = vmatpush1.bf16.msra.mxu0 %v3340_v36  ;;  %v3352_v34 = vld [vmem:[%s3907_s30 + $0x60] ss:$16 sps:$4 sm:$0xff]   ;;  %v3486_v36 = vld [vmem:[%s3907_s30 + $0x2ec] ss:$16 sps:$4 sm:$0xff]  }
 0x22a   : > { %2520 = vmatprep.subr.bf16.mxu0 %v3345_v37  ;;  %2562 = vmatpush1.bf16.msra.mxu1 %v3388_v45  ;;  %v878_v37 = vlaneseq }
 0x22b   : > { %2563 = vmatprep.subr.bf16.mxu1 %v3396_v48 }
 0x22d   : > { %2521 = vmatpush1.bf16.msra.mxu0 %v3343_v38  ;;  %v4159_v38 = vshrl.u32 %v878_v37, 7  ;;  %v3477_v37 = vld [vmem:[%s3907_s30 + $0x12c] ss:$16 sps:$4 sm:$0xff]  }
 0x22e   : > { %2522 = vmatprep.subr.bf16.mxu0 %v3348_v39  ;;  %2564 = vmatpush1.bf16.msra.mxu1 %v3394_v47 }
 0x22f   : > { %2565 = vmatprep.subr.bf16.mxu1 %v3402_v52  ;;  %v884_v39 = vsub.s32 1, %v4159_v38 }
 0x231   : > { %2523 = vmatpush1.bf16.msra.mxu0 %v3346_v40  ;;  %v4167_v40 = vld [vmem:[%s574_s22] sm:$0xf] }
 0x232   : > { %2524 = vmatprep.subr.bf16.mxu0 %v3351_v41  ;;  %2566 = vmatpush1.bf16.msra.mxu1 %v3400_v51  ;;  %v880_v41 = vsub.s32 0, %v4159_v38 }
 0x233   : > { %2567 = vmatprep.subr.bf16.mxu1 %v3408_v56 }
 0x235   : > { %2525 = vmatpush1.bf16.msra.mxu0 %v3349_v42  ;;  %v885_v42 = vrot.slane %v4167_v40, %v884_v39 }
 0x236   : > { %2526 = vmatprep.subr.bf16.mxu0 %v3354_v33  ;;  %2568 = vmatpush1.bf16.msra.mxu1 %v3406_v55  ;;  %v881_v33 = vrot.slane %v4167_v40, %v880_v41 }
 0x237   : > { %2569 = vmatprep.subr.bf16.mxu1 %v3414_v60 }
 0x239   : > { %2527 = vmatpush1.bf16.msra.mxu0 %v3352_v34 }
 0x23a   : > { %2528 = vmatprep.subr.bf16.mxu0 %v3357_v44  ;;  %2570 = vmatpush1.bf16.msra.mxu1 %v3412_v59 }
 0x23b   : > { %2571 = vmatprep.subr.bf16.mxu1 %v3420_v0 }
 0x23d   : > { %2529 = vmatpush1.bf16.msra.mxu0 %v3355_v46 }
 0x23e   : > { %2530 = vmatprep.subr.bf16.mxu0 %v3360_v49  ;;  %2572 = vmatpush1.bf16.msra.mxu1 %v3418_v63  ;;  %v3391_v63 = vld [vmem:[%s3907_s30 + $0xe8] ss:$16 sps:$4 sm:$0xff]  }
 0x23f   : > { %2573 = vmatprep.subr.bf16.mxu1 %v3426_v4  ;;  %v3403_v4 = vld [vmem:[%s3907_s30 + $0xa8] ss:$16 sps:$4 sm:$0xff]  }
 0x241   : > { %2531 = vmatpush1.bf16.msra.mxu0 %v3358_v50 }
 0x242   : > { %2532 = vmatprep.subr.bf16.mxu0 %v3363_v53  ;;  %2574 = vmatpush1.bf16.msra.mxu1 %v3424_v3  ;;  %v3405_v3 = vld [vmem:[%s3907_s30 + $0xac] ss:$16 sps:$4 sm:$0xff]  }
 0x243   : > { %2575 = vmatprep.subr.bf16.mxu1 %v3432_v8  ;;  %v3415_v8 = vld [vmem:[%s3907_s30 + $0x68] ss:$16 sps:$4 sm:$0xff]  }
 0x245   : > { %2533 = vmatpush1.bf16.msra.mxu0 %v3361_v54 }
 0x246   : > { %2534 = vmatprep.subr.bf16.mxu0 %v3366_v57  ;;  %2576 = vmatpush1.bf16.msra.mxu1 %v3430_v7  ;;  %v3417_v7 = vld [vmem:[%s3907_s30 + $0x6c] ss:$16 sps:$4 sm:$0xff]  }
 0x247   : > { %2577 = vmatprep.subr.bf16.mxu1 %v3438_v12  ;;  %v3427_v12 = vld [vmem:[%s3907_s30 + $0x28] ss:$16 sps:$4 sm:$0xff]  }
 0x249   : > { %2535 = vmatpush2.bf16.msra.mxu0 %v3364_v58 }
 0x24a   : > { %2536 = vmatprep.subr.bf16.mxu0 %v3369_v61  ;;  %2578 = vmatpush2.bf16.msra.mxu1 %v3436_v11  ;;  %v3429_v11 = vld [vmem:[%s3907_s30 + $0x2c] ss:$16 sps:$4 sm:$0xff]  }
 0x24b   : > { %2579 = vmatprep.subr.bf16.mxu1 %v3444_v19  ;;  %v3439_v19 = vld [vmem:[%s3907_s30 + $0x1e8] ss:$16 sps:$4 sm:$0xff]  }
 0x24d   : > { %2537 = vmatpush2.bf16.msra.mxu0 %v3367_v62 }
 0x24e   : > { %2538 = vmatprep.subr.bf16.mxu0 %v3372_v1  ;;  %2580 = vmatpush2.bf16.msra.mxu1 %v3442_v15  ;;  %v3399_v1 = vld [vmem:[%s3907_s30 + $0xcc] ss:$16 sps:$4 sm:$0xff]  }
 0x24f   : > { %2581 = vmatprep.subr.bf16.mxu1 %v3450_v20  ;;  %v3441_v15 = vld [vmem:[%s3907_s30 + $0x1ec] ss:$16 sps:$4 sm:$0xff]   ;;  %v3451_v20 = vld [vmem:[%s3907_s30 + $0x1a8] ss:$16 sps:$4 sm:$0xff]  }
 0x251   : > { %2539 = vmatpush2.bf16.msra.mxu0 %v3370_v2  ;;  %v3397_v2 = vld [vmem:[%s3907_s30 + $0xc8] ss:$16 sps:$4 sm:$0xff]  }
 0x252   : > { %2540 = vmatprep.subr.bf16.mxu0 %v3375_v5  ;;  %2582 = vmatpush2.bf16.msra.mxu1 %v3448_v18  ;;  %v3411_v5 = vld [vmem:[%s3907_s30 + $0x8c] ss:$16 sps:$4 sm:$0xff]  }
 0x253   : > { %2583 = vmatprep.subr.bf16.mxu1 %v3456_v24  ;;  %v3453_v18 = vld [vmem:[%s3907_s30 + $0x1ac] ss:$16 sps:$4 sm:$0xff]   ;;  %v892_v24 = vsub.s32 3, %v4159_v38 }
 0x255   : > { %2541 = vmatpush2.bf16.msra.mxu0 %v3373_v6  ;;  %v3409_v6 = vld [vmem:[%s3907_s30 + $0x88] ss:$16 sps:$4 sm:$0xff]  }
 0x256   : > { %2542 = vmatprep.subr.bf16.mxu0 %v3378_v9  ;;  %2584 = vmatpush2.bf16.msra.mxu1 %v3454_v23  ;;  %v3423_v9 = vld [vmem:[%s3907_s30 + $0x4c] ss:$16 sps:$4 sm:$0xff]  }
 0x257   : > { %2585 = vmatprep.subr.bf16.mxu1 %v3462_v30  ;;  %v3465_v23 = vld [vmem:[%s3907_s30 + $0x16c] ss:$16 sps:$4 sm:$0xff]  }
 0x258   : > { %v3471_v30 = vld [vmem:[%s3907_s30 + $0x14c] ss:$16 sps:$4 sm:$0xff]  }
 0x259   : > { %2543 = vmatpush2.bf16.msra.mxu0 %v3376_v10  ;;  %v3421_v10 = vld [vmem:[%s3907_s30 + $0x48] ss:$16 sps:$4 sm:$0xff]  }
 0x25a   : > { %2544 = vmatprep.subr.bf16.mxu0 %v3381_v13  ;;  %2586 = vmatpush2.bf16.msra.mxu1 %v3460_v29  ;;  %v3435_v13 = vld [vmem:[%s3907_s30 + $0xc] ss:$16 sps:$4 sm:$0xff]   ;;  %v3463_v29 = vld [vmem:[%s3907_s30 + $0x168] ss:$16 sps:$4 sm:$0xff]  }
 0x25b   : > { %2587 = vmatprep.subr.bf16.mxu1 %v3468_v32  ;;  %v893_v32 = vrot.slane %v4167_v40, %v892_v24 }
 0x25d   : > { %2545 = vmatpush2.bf16.msra.mxu0 %v3379_v14  ;;  %v3433_v14 = vld [vmem:[%s3907_s30 + $0x8] ss:$16 sps:$4 sm:$0xff]  }
 0x25e   : > { %2546 = vmatprep.subr.bf16.mxu0 %v3384_v16  ;;  %2588 = vmatpush2.bf16.msra.mxu1 %v3466_v25  ;;  %v3447_v16 = vld [vmem:[%s3907_s30 + $0x1cc] ss:$16 sps:$4 sm:$0xff]  }
 0x25f   : > { %2589 = vmatprep.subr.bf16.mxu1 %v3474_v26 }
 0x261   : > { %2547 = vmatpush2.bf16.msra.mxu0 %v3382_v17  ;;  %v3445_v17 = vld [vmem:[%s3907_s30 + $0x1c8] ss:$16 sps:$4 sm:$0xff]  }
 0x262   : > { %2548 = vmatprep.subr.bf16.mxu0 %v3387_v21  ;;  %2590 = vmatpush2.bf16.msra.mxu1 %v3472_v28  ;;  %v3459_v21 = vld [vmem:[%s3907_s30 + $0x18c] ss:$16 sps:$4 sm:$0xff]  }
 0x263   : > { %2591 = vmatprep.subr.bf16.mxu1 %v3480_v31  ;;  %v3469_v31 = vld [vmem:[%s3907_s30 + $0x148] ss:$16 sps:$4 sm:$0xff]  }
 0x265   : > { %2549 = vmatpush2.bf16.msra.mxu0 %v3385_v22  ;;  %v3457_v22 = vld [vmem:[%s3907_s30 + $0x188] ss:$16 sps:$4 sm:$0xff]  }
 0x266   : > { %2604 = vmatprep.subr.bf16.mxu0 %v3393_v27  ;;  %2592 = vmatpush2.bf16.msra.mxu1 %v3478_v35  ;;  %v888_v27 = vsub.s32 2, %v4159_v38 }
 0x267   : > { %2647 = vmatprep.subr.bf16.mxu1 %v3486_v36 }
 0x268   : > { %v889_v25 = vrot.slane %v4167_v40, %v888_v27  ;;  %v3483_v40 = vld [vmem:[%s3907_s30 + $0x10c] ss:$16 sps:$4 sm:$0xff]  }
 0x2a8   : > { %v1592_v34 = vpop.f32.mrf.mxu0 }
 0x2a9   : > { %v1635_v43 = vpop.f32.mrf.mxu1  ;;  %v1593_v47 = vadd.f32 %v1592_v34, %v881_v33 }
 0x2aa   : > { %v1594_v44 = vpop.f32.mrf.mxu0 }
 0x2ab   : > { %v1637_v45 = vpop.f32.mrf.mxu1  ;;  %v1595_v46 = vadd.f32 %v1594_v44, %v885_v42  ;;  %v1636_v55 = vadd.f32 %v1635_v43, %v1593_v47 }
 0x2ac   : > { %v1596_v48 = vpop.f32.mrf.mxu0 }
 0x2ad   : > { %v1639_v49 = vpop.f32.mrf.mxu1  ;;  %v1597_v50 = vadd.f32 %v1596_v48, %v881_v33  ;;  %v1638_v52 = vadd.f32 %v1637_v45, %v1595_v46  ;;  %v1730_v61 = vmax.f32 %v1636_v55, 0.0  ;;  %v3475_v45 = vld [vmem:[%s3907_s30 + $0x128] ss:$16 sps:$4 sm:$0xff]  }
 0x2ae   : > { %v1598_v51 = vpop.f32.mrf.mxu0 }
 0x2af   : > { %v1640_v53 = vadd.f32 %v1639_v49, %v1597_v50  ;;  %v1599_v54 = vadd.f32 %v1598_v51, %v885_v42  ;;  %v1641_v56 = vpop.f32.mrf.mxu1  ;;  %v1731_v59 = vmax.f32 %v1638_v52, 0.0 }
 0x2b1   : > { %v1642_v57 = vadd.f32 %v1641_v56, %v1599_v54  ;;  %v1734_v58 = vmax.f32 %v1640_v53, 0.0  ;;  %v3481_v53 = vld [vmem:[%s3907_s30 + $0x108] ss:$16 sps:$4 sm:$0xff]  }
 0x2b3   : > { %v1735_v60 = vmax.f32 %v1642_v57, 0.0  ;;  %v4177_v0 = vpack.c.bf16 %v1734_v58, %v1730_v61  ;;  %v3489_v61 = vld [vmem:[%s3907_s30 + $0x2cc] ss:$16 sps:$4 sm:$0xff]  }
 0x2b5   : > { %v1747_v62 = vpack.c.bf16 %v1735_v60, %v1731_v59  ;;  %v3484_v59 = vld [vmem:[%s3907_s30 + $0x2e8] ss:$16 sps:$4 sm:$0xff]  }
 0x2b7   : > { %2550 = vmatprep.mubr.bf16.mxu0 %v1747_v62 }
 0x2b8   : > { %2551 = vmatmul.mubr.bf16.vlgmr.msra.gmra.mxu0 %v4177_v0 }
 0x2b9   : > { %2605 = vmatpush1.bf16.msra.mxu0 %v3391_v63  ;;  %2636 = vmatprep.mubr.bf16.mxu0 %v1747_v62  ;;  %v3487_v62 = vld [vmem:[%s3907_s30 + $0x2c8] ss:$16 sps:$4 sm:$0xff]   ;;  %v3492_v63 = vld [vmem:[%s3907_s30 + $0x2ac] ss:$16 sps:$4 sm:$0xff]  }
 0x2ba   : > { %2606 = vmatprep.subr.bf16.mxu0 %v3399_v1  ;;  %v3490_v1 = vld [vmem:[%s3907_s30 + $0x2a8] ss:$16 sps:$4 sm:$0xff]  }
 0x2bd   : > { %2607 = vmatpush1.bf16.msra.mxu0 %v3397_v2  ;;  %v3495_v2 = vld [vmem:[%s3907_s30 + $0x28c] ss:$16 sps:$4 sm:$0xff]  }
 0x2be   : > { %2608 = vmatprep.subr.bf16.mxu0 %v3405_v3  ;;  %v3493_v3 = vld [vmem:[%s3907_s30 + $0x288] ss:$16 sps:$4 sm:$0xff]  }
 0x2c1   : > { %2609 = vmatpush1.bf16.msra.mxu0 %v3403_v4  ;;  %v3496_v4 = vld [vmem:[%s3907_s30 + $0x268] ss:$16 sps:$4 sm:$0xff]  }
 0x2c2   : > { %2610 = vmatprep.subr.bf16.mxu0 %v3411_v5  ;;  %v3501_v5 = vld [vmem:[%s3907_s30 + $0x24c] ss:$16 sps:$4 sm:$0xff]  }
 0x2c5   : > { %2611 = vmatpush1.bf16.msra.mxu0 %v3409_v6  ;;  %v3499_v6 = vld [vmem:[%s3907_s30 + $0x248] ss:$16 sps:$4 sm:$0xff]  }
 0x2c6   : > { %2612 = vmatprep.subr.bf16.mxu0 %v3417_v7  ;;  %v3504_v7 = vld [vmem:[%s3907_s30 + $0x22c] ss:$16 sps:$4 sm:$0xff]  }
 0x2c9   : > { %2613 = vmatpush1.bf16.msra.mxu0 %v3415_v8  ;;  %v3502_v8 = vld [vmem:[%s3907_s30 + $0x228] ss:$16 sps:$4 sm:$0xff]  }
 0x2ca   : > { %2614 = vmatprep.subr.bf16.mxu0 %v3423_v9  ;;  %v3507_v9 = vld [vmem:[%s3907_s30 + $0x20c] ss:$16 sps:$4 sm:$0xff]  }
 0x2cd   : > { %2615 = vmatpush1.bf16.msra.mxu0 %v3421_v10  ;;  %v3505_v10 = vld [vmem:[%s3907_s30 + $0x208] ss:$16 sps:$4 sm:$0xff]  }
 0x2ce   : > { %2616 = vmatprep.subr.bf16.mxu0 %v3429_v11  ;;  %v3510_v11 = vld [vmem:[%s3907_s30 + $0x3ec] ss:$16 sps:$4 sm:$0xff]  }
 0x2d1   : > { %2617 = vmatpush1.bf16.msra.mxu0 %v3427_v12  ;;  %v3508_v12 = vld [vmem:[%s3907_s30 + $0x3e8] ss:$16 sps:$4 sm:$0xff]  }
 0x2d2   : > { %2618 = vmatprep.subr.bf16.mxu0 %v3435_v13  ;;  %v3513_v13 = vld [vmem:[%s3907_s30 + $0x3cc] ss:$16 sps:$4 sm:$0xff]  }
 0x2d5   : > { %2619 = vmatpush1.bf16.msra.mxu0 %v3433_v14  ;;  %v3511_v14 = vld [vmem:[%s3907_s30 + $0x3c8] ss:$16 sps:$4 sm:$0xff]  }
 0x2d6   : > { %2620 = vmatprep.subr.bf16.mxu0 %v3441_v15  ;;  %v3516_v15 = vld [vmem:[%s3907_s30 + $0x3ac] ss:$16 sps:$4 sm:$0xff]  }
 0x2d9   : > { %2621 = vmatpush2.bf16.msra.mxu0 %v3439_v19  ;;  %v3514_v19 = vld [vmem:[%s3907_s30 + $0x3a8] ss:$16 sps:$4 sm:$0xff]  }
 0x2da   : > { %2622 = vmatprep.subr.bf16.mxu0 %v3447_v16  ;;  %v3519_v16 = vld [vmem:[%s3907_s30 + $0x38c] ss:$16 sps:$4 sm:$0xff]  }
 0x2dd   : > { %2623 = vmatpush2.bf16.msra.mxu0 %v3445_v17  ;;  %v3517_v17 = vld [vmem:[%s3907_s30 + $0x388] ss:$16 sps:$4 sm:$0xff]  }
 0x2de   : > { %2624 = vmatprep.subr.bf16.mxu0 %v3453_v18  ;;  %v3522_v18 = vld [vmem:[%s3907_s30 + $0x36c] ss:$16 sps:$4 sm:$0xff]  }
 0x2e1   : > { %2625 = vmatpush2.bf16.msra.mxu0 %v3451_v20  ;;  %v3520_v20 = vld [vmem:[%s3907_s30 + $0x368] ss:$16 sps:$4 sm:$0xff]  }
 0x2e2   : > { %2626 = vmatprep.subr.bf16.mxu0 %v3459_v21  ;;  %v3525_v21 = vld [vmem:[%s3907_s30 + $0x34c] ss:$16 sps:$4 sm:$0xff]  }
 0x2e5   : > { %2627 = vmatpush2.bf16.msra.mxu0 %v3457_v22  ;;  %v3523_v22 = vld [vmem:[%s3907_s30 + $0x348] ss:$16 sps:$4 sm:$0xff]  }
 0x2e6   : > { %2628 = vmatprep.subr.bf16.mxu0 %v3465_v23  ;;  %v3528_v23 = vld [vmem:[%s3907_s30 + $0x32c] ss:$16 sps:$4 sm:$0xff]  }
 0x2e8   : > { %v1678_v26 = vpop.f32.mrf.mxu0 }
 0x2e9   : > { %v1721_v28 = vpop.f32.mrf.mxu1  ;;  %2629 = vmatpush2.bf16.msra.mxu0 %v3463_v29  ;;  %v1679_v33 = vadd.f32 %v1678_v26, %v889_v25  ;;  %v3526_v29 = vld [vmem:[%s3907_s30 + $0x328] ss:$16 sps:$4 sm:$0xff]  }
 0x2ea   : > { %v1680_v35 = vpop.f32.mrf.mxu0  ;;  %2630 = vmatprep.subr.bf16.mxu0 %v3471_v30  ;;  %v3531_v30 = vld [vmem:[%s3907_s30 + $0x30c] ss:$16 sps:$4 sm:$0xff]  }
 0x2eb   : > { %v1723_v36 = vpop.f32.mrf.mxu1  ;;  %v1681_v42 = vadd.f32 %v1680_v35, %v893_v32  ;;  %v1722_v50 = vadd.f32 %v1721_v28, %v1679_v33  ;;  %v1738_v28 = vld [vmem:[#allocation3] sm:$0xff] }
 0x2ec   : > { %v1682_v34 = vpop.f32.mrf.mxu0 }
 0x2ed   : > { %v1725_v43 = vpop.f32.mrf.mxu1  ;;  %v1683_v44 = vadd.f32 %v1682_v34, %v889_v25  ;;  %2631 = vmatpush2.bf16.msra.mxu0 %v3469_v31  ;;  %v1724_v47 = vadd.f32 %v1723_v36, %v1681_v42  ;;  %v1732_v57 = vmax.f32 %v1722_v50, 0.0 }
 0x2ee   : > { %v1684_v46 = vpop.f32.mrf.mxu0  ;;  %2632 = vmatprep.subr.bf16.mxu0 %v3477_v37  ;;  %v1739_v37 = vld [vmem:[#allocation3 + $0x38] sm:$0xff] }
 0x2ef   : > { %v1726_v48 = vadd.f32 %v1725_v43, %v1683_v44  ;;  %v1685_v49 = vadd.f32 %v1684_v46, %v893_v32  ;;  %v1727_v51 = vpop.f32.mrf.mxu1  ;;  %v1733_v55 = vmax.f32 %v1724_v47, 0.0  ;;  %v3529_v32 = vld [vmem:[%s3907_s30 + $0x308] ss:$16 sps:$4 sm:$0xff]   ;;  %v1742_v43 = vld [vmem:[#allocation3 + $0x20] sm:$0xff]  ;;  %v1743_v47 = vld [vmem:[#allocation3 + $0x10] sm:$0xff] }
 0x2f1   : > { %v1728_v52 = vadd.f32 %v1727_v51, %v1685_v49  ;;  %2633 = vmatpush2.bf16.msra.mxu0 %v3475_v45  ;;  %v1736_v54 = vmax.f32 %v1726_v48, 0.0 }
 0x2f2   : > { %2634 = vmatprep.subr.bf16.mxu0 %v3483_v40 }
 0x2f3   : > { %v1737_v56 = vmax.f32 %v1728_v52, 0.0  ;;  %v4219_v60 = vpack.c.bf16 %v1736_v54, %v1732_v57  ;;  %v1740_v54 = vld [vmem:[#allocation3 + $0x8] sm:$0xff] }
 0x2f5   : > { %v1749_v58 = vpack.c.bf16 %v1737_v56, %v1733_v55  ;;  %2635 = vmatpush2.bf16.msra.mxu0 %v3481_v53 }
 0x2f7   : > { %2593 = vmatprep.mubr.bf16.mxu1 %v1749_v58 }
 0x2f8   : > { %2637 = vmatmul.mubr.bf16.vlgmr.msra.gmra.mxu0 %v4177_v0  ;;  %2594 = vmatmul.mubr.bf16.vlgmr.msra.gmra.mxu1 %v4219_v60  ;;  %v3498_v0 = vld [vmem:[%s3907_s30 + $0x26c] ss:$16 sps:$4 sm:$0xff]  }
 0x2f9   : > { %2648 = vmatpush1.bf16.msra.mxu1 %v3484_v59  ;;  %2679 = vmatprep.mubr.bf16.mxu1 %v1749_v58  ;;  %v1741_v58 = vld [vmem:[#allocation3 + $0x18] sm:$0xff] }
 0x2fa   : > { %2649 = vmatprep.subr.bf16.mxu1 %v3489_v61 }
 0x2fd   : > { %2650 = vmatpush1.bf16.msra.mxu1 %v3487_v62  ;;  %v1744_v62 = vld [vmem:[#allocation3 + $0x30] sm:$0xff] }
 0x2fe   : > { %2651 = vmatprep.subr.bf16.mxu1 %v3492_v63 }
 0x301   : > { %2652 = vmatpush1.bf16.msra.mxu1 %v3490_v1 }
 0x302   : > { %2653 = vmatprep.subr.bf16.mxu1 %v3495_v2 }
 0x305   : > { %2654 = vmatpush1.bf16.msra.mxu1 %v3493_v3 }
 0x306   : > { %2655 = vmatprep.subr.bf16.mxu1 %v3498_v0  ;;  %v1745_v0 = vld [vmem:[#allocation3 + $0x28] sm:$0xff] }
 0x309   : > { %2656 = vmatpush1.bf16.msra.mxu1 %v3496_v4 }
 0x30a   : > { %2657 = vmatprep.subr.bf16.mxu1 %v3501_v5 }
 0x30d   : > { %2658 = vmatpush1.bf16.msra.mxu1 %v3499_v6 }
 0x30e   : > { %2659 = vmatprep.subr.bf16.mxu1 %v3504_v7 }
 0x311   : > { %2660 = vmatpush1.bf16.msra.mxu1 %v3502_v8 }
 0x312   : > { %2661 = vmatprep.subr.bf16.mxu1 %v3507_v9 }
 0x315   : > { %2662 = vmatpush1.bf16.msra.mxu1 %v3505_v10 }
 0x316   : > { %2663 = vmatprep.subr.bf16.mxu1 %v3510_v11 }
 0x319   : > { %2664 = vmatpush2.bf16.msra.mxu1 %v3508_v12 }
 0x31a   : > { %2665 = vmatprep.subr.bf16.mxu1 %v3513_v13 }
 0x31d   : > { %2666 = vmatpush2.bf16.msra.mxu1 %v3511_v14 }
 0x31e   : > { %2667 = vmatprep.subr.bf16.mxu1 %v3516_v15 }
 0x321   : > { %2668 = vmatpush2.bf16.msra.mxu1 %v3514_v19 }
 0x322   : > { %2669 = vmatprep.subr.bf16.mxu1 %v3519_v16 }
 0x325   : > { %2670 = vmatpush2.bf16.msra.mxu1 %v3517_v17 }
 0x326   : > { %2671 = vmatprep.subr.bf16.mxu1 %v3522_v18 }
 0x329   : > { %2672 = vmatpush2.bf16.msra.mxu1 %v3520_v20 }
 0x32a   : > { %2673 = vmatprep.subr.bf16.mxu1 %v3525_v21 }
 0x32d   : > { %2674 = vmatpush2.bf16.msra.mxu1 %v3523_v22 }
 0x32e   : > { %2675 = vmatprep.subr.bf16.mxu1 %v3528_v23 }
 0x331   : > { %2676 = vmatpush2.bf16.msra.mxu1 %v3526_v29 }
 0x332   : > { %2677 = vmatprep.subr.bf16.mxu1 %v3531_v30 }
 0x335   : > { %2678 = vmatpush2.bf16.msra.mxu1 %v3529_v32 }
 0x338   : > { %2680 = vmatmul.mubr.bf16.vlgmr.msra.gmra.mxu1 %v4219_v60 }
 0x378   : > { %v2552_v25 = vpop.f32.mrf.mxu0 }
 0x37a   : > { %v2554_v26 = vpop.f32.mrf.mxu0 }
 0x37c   : > { %v2556_v36 = vpop.f32.mrf.mxu0 }
 0x37e   : > { %v2558_v40 = vpop.f32.mrf.mxu0 }
 0x3b8   : > { %v2595_v31 = vpop.f32.mrf.mxu1  ;;  %v2638_v52 = vpop.f32.mrf.mxu0 }
 0x3b9   : > { %v2596_v35 = vadd.f32 %v2595_v31, %v2552_v25 }
 0x3ba   : > { %v2597_v42 = vpop.f32.mrf.mxu1  ;;  %v2640_v53 = vpop.f32.mrf.mxu0 }
 0x3bb   : > { %v2690_v33 = vadd.f32 %v2596_v35, %v1738_v28  ;;  %v2598_v34 = vadd.f32 %v2597_v42, %v2554_v26 }
 0x3bc   : > { %v2599_v44 = vpop.f32.mrf.mxu1  ;;  %v2642_v57 = vpop.f32.mrf.mxu0 }
 0x3bd   : > { %2698 = vst [vmem:[#allocation3] sm:$0xff] %v2690_v33  ;;  %v2691_v45 = vadd.f32 %v2598_v34, %v1739_v37  ;;  %v2600_v46 = vadd.f32 %v2599_v44, %v2556_v36 }
 0x3be   : > { %v2601_v48 = vpop.f32.mrf.mxu1  ;;  %v2644_v3 = vpop.f32.mrf.mxu0 }
 0x3bf   : > { %2699 = vst [vmem:[#allocation3 + $0x38] sm:$0xff] %v2691_v45  ;;  %v2694_v49 = vadd.f32 %v2600_v46, %v1742_v43  ;;  %v2602_v50 = vadd.f32 %v2601_v48, %v2558_v40 }
 0x3c1   : > { %2702 = vst [vmem:[#allocation3 + $0x20] sm:$0xff] %v2694_v49  ;;  %v2695_v51 = vadd.f32 %v2602_v50, %v1743_v47 }
 0x3c3   : > { %2703 = vst [vmem:[#allocation3 + $0x10] sm:$0xff] %v2695_v51 }
 0x3f8   : > { %v2681_v55 = vpop.f32.mrf.mxu1 }
 0x3f9   : > { %v2682_v56 = vadd.f32 %v2681_v55, %v2638_v52 }
 0x3fa   : > { %v2683_v59 = vpop.f32.mrf.mxu1 }
 0x3fb   : > { %v2692_v60 = vadd.f32 %v2682_v56, %v1740_v54  ;;  %v2684_v61 = vadd.f32 %v2683_v59, %v2640_v53 }
 0x3fc   : > { %v2685_v63 = vpop.f32.mrf.mxu1 }
 0x3fd   : > { %2700 = vst [vmem:[#allocation3 + $0x8] sm:$0xff] %v2692_v60  ;;  %v2693_v1 = vadd.f32 %v2684_v61, %v1741_v58  ;;  %v2686_v2 = vadd.f32 %v2685_v63, %v2642_v57 }
 0x3fe   : > { %v2687_v4 = vpop.f32.mrf.mxu1 }
 0x3ff   : > { %2701 = vst [vmem:[#allocation3 + $0x18] sm:$0xff] %v2693_v1  ;;  %v2696_v5 = vadd.f32 %v2686_v2, %v1744_v62  ;;  %v2688_v6 = vadd.f32 %v2687_v4, %v2644_v3  ;;  %2709 = sbr.rel (%p3104_p11) target bundleno = 1040 (0x410), region = 79 }
 0x401   : > { %2704 = vst [vmem:[#allocation3 + $0x30] sm:$0xff] %v2696_v5  ;;  %v2697_v7 = vadd.f32 %v2688_v6, %v1745_v0 }
 0x403   : > { %2705 = vst [vmem:[#allocation3 + $0x28] sm:$0xff] %v2697_v7 }
 0x404   : > { %v2710_v8 = vld [vmem:[%s4324_s0] sm:$0xff]  ;;  %v2711_v13 = vld [vmem:[%s4324_s0 + $0x8] sm:$0xff]  ;;  %v2719_v14 = vld [vmem:[#allocation3 + $0x38] sm:$0xff] }
 0x405   : > { %v2718_v9 = vld [vmem:[#allocation3] sm:$0xff]  ;;  %v2712_v19 = vld [vmem:[%s4324_s0 + $0x10] sm:$0xff]  ;;  %v2727_v17 = vadd.f32 %v2719_v14, %v2711_v13  ;;  %v2720_v18 = vld [vmem:[#allocation3 + $0x8] sm:$0xff] }
 0x406   : > { %v2734_v10 = vld [vmem:[%s4330_s6] sm:$0xf]  ;;  %v2726_v11 = vadd.f32 %v2718_v9, %v2710_v8  ;;  %v2721_v20 = vld [vmem:[#allocation3 + $0x18] sm:$0xff]  ;;  %v2728_v23 = vadd.f32 %v2720_v18, %v2712_v19  ;;  %v2723_v26 = vld [vmem:[#allocation3 + $0x10] sm:$0xff] }
 0x407   : > { %v2739_v12 = vrot.slane %v2734_v10, %v880_v41  ;;  %v2743_v15 = vrot.slane %v2734_v10, %v884_v39  ;;  %v2747_v16 = vrot.slane %v2734_v10, %v888_v27  ;;  %v2713_v41 = vld [vmem:[%s4324_s0 + $0x18] sm:$0xff]  ;;  %v2751_v21 = vrot.slane %v2734_v10, %v892_v24  ;;  %v2714_v29 = vld [vmem:[%s4324_s0 + $0x20] sm:$0xff]  ;;  %v2715_v27 = vld [vmem:[%s4324_s0 + $0x28] sm:$0xff] }
 0x408   : > { %v2729_v39 = vadd.f32 %v2721_v20, %v2713_v41  ;;  %v2722_v30 = vld [vmem:[#allocation3 + $0x20] sm:$0xff]  ;;  %v2716_v38 = vld [vmem:[%s4324_s0 + $0x30] sm:$0xff]  ;;  %v2731_v35 = vadd.f32 %v2723_v26, %v2715_v27  ;;  %v2717_v37 = vld [vmem:[%s4324_s0 + $0x38] sm:$0xff] }
 0x409   : > { %v2756_v22 = vadd.f32 %v2739_v12, %v2726_v11  ;;  %v2757_v32 = vadd.f32 %v2743_v15, %v2727_v17  ;;  %v2730_v25 = vadd.f32 %v2722_v30, %v2714_v29  ;;  %v2724_v24 = vld [vmem:[#allocation3 + $0x30] sm:$0xff]  ;;  %v2758_v28 = vadd.f32 %v2747_v16, %v2728_v23 }
 0x40a   : > { %v2759_v31 = vadd.f32 %v2751_v21, %v2729_v39  ;;  %v2732_v36 = vadd.f32 %v2724_v24, %v2716_v38  ;;  %v2725_v42 = vld [vmem:[#allocation3 + $0x28] sm:$0xff]  ;;  %v2761_v43 = vadd.f32 %v2743_v15, %v2731_v35 }
 0x40b   : > { %2764 = vst [vmem:[%s4331_s7] sm:$0xff] %v2756_v22  ;;  %2765 = vst [vmem:[%s4331_s7 + $0x8] sm:$0xff] %v2757_v32  ;;  %v2760_v33 = vadd.f32 %v2739_v12, %v2730_v25  ;;  %v2733_v34 = vadd.f32 %v2725_v42, %v2717_v37 }
 0x40c   : > { %2766 = vst [vmem:[%s4331_s7 + $0x10] sm:$0xff] %v2758_v28  ;;  %2767 = vst [vmem:[%s4331_s7 + $0x18] sm:$0xff] %v2759_v31  ;;  %v2762_v44 = vadd.f32 %v2747_v16, %v2732_v36 }
 0x40d   : > { %2768 = vst [vmem:[%s4331_s7 + $0x20] sm:$0xff] %v2760_v33  ;;  %v2763_v45 = vadd.f32 %v2751_v21, %v2733_v34  ;;  %2769 = vst [vmem:[%s4331_s7 + $0x28] sm:$0xff] %v2761_v43 }
 0x40e   : > { %2770 = vst [vmem:[%s4331_s7 + $0x30] sm:$0xff] %v2762_v44 }
 0x40f   : > { %2771 = vst [vmem:[%s4331_s7 + $0x38] sm:$0xff] %v2763_v45 }
 0x410 PF: > { %p14_p12 = scmp.ge.s32.totalorder %s3616_s28, 6   ;;  %s4332_s24 = smov %s3550_s25 }
 0x411   : > { %s4333_s25 = smov %s3625_s8  ;;  %s4334_s26 = smov %s3616_s28 }
 0x412   :  { %16 = sbr.rel (!%p14_p12) target bundleno = 2 (0x2), region = 116 }

// kernel: transformer2_forward.147
= control target key start
LH: loop header
LB: loop body
LE: loop exit
PB: predicated region body
PF: predicated region fallthrough
CT: control target
= control target key end

     0   :  { %s815_s0 = inlined_call_operand.vmem [shape: f32[16,512], index: 0, kind: input, shape index: {}]   ;;  %s816_s3 = inlined_call_operand.vmem [shape: bf16[512,128], index: 3, kind: input, shape index: {}]   ;;  %s817_s1 = inlined_call_operand.vmem [shape: f32[1,512], index: 1, kind: input, shape index: {}]   ;;  %s818_s2 = inlined_call_operand.vmem [shape: f32[1,512], index: 2, kind: input, shape index: {}]   ;;  %s819_s4 = inlined_call_operand.vmem [shape: f32[1,128], index: 4, kind: input, shape index: {}]   ;;  %s820_s5 = inlined_call_operand.vmem [shape: f32[16,128], index: 5, kind: output, shape index: {}]  }
   0x1   :  { %v21_v0 = vld [vmem:[%s815_s0] sm:$0xff]  ;;  %v22_v1 = vld [vmem:[%s815_s0 + $0x8] sm:$0xff]  ;;  %v23_v2 = vld [vmem:[%s815_s0 + $0x10] sm:$0xff] }
   0x2   :  { %v31_v3 = vadd.f32 %v22_v1, %v21_v0  ;;  %v25_v4 = vld [vmem:[%s815_s0 + $0x20] sm:$0xff]  ;;  %v26_v5 = vld [vmem:[%s815_s0 + $0x28] sm:$0xff]  ;;  %v24_v6 = vld [vmem:[%s815_s0 + $0x18] sm:$0xff] }
   0x3   :  { %v27_v7 = vld [vmem:[%s815_s0 + $0x30] sm:$0xff]  ;;  %v36_v8 = vadd.f32 %v26_v5, %v25_v4  ;;  %v28_v10 = vld [vmem:[%s815_s0 + $0x38] sm:$0xff]  ;;  %v582_v48 = vld [vmem:[%s816_s3 + $0x68] sm:$0xff]  }
   0x4   :  { %v32_v9 = vadd.f32 %v31_v3, %v23_v2  ;;  %v574_v14 = vld [vmem:[%s816_s3 + $0x78] sm:$0xff]   ;;  %v578_v44 = vld [vmem:[%s816_s3 + $0x70] sm:$0xff]   ;;  %v583_v49 = vld [vmem:[%s816_s3 + $0xe8] sm:$0xff]  }
   0x5   :  { %v37_v11 = vadd.f32 %v36_v8, %v27_v7  ;;  %v575_v15 = vld [vmem:[%s816_s3 + $0xf8] sm:$0xff]   ;;  %530 = vmatprep.subr.bf16.mxu0 %v574_v14  ;;  %v579_v45 = vld [vmem:[%s816_s3 + $0xf0] sm:$0xff]   ;;  %v584_v50 = vld [vmem:[%s816_s3 + $0x28] sm:$0xff]   ;;  %v85_v14 = vlaneseq }
   0x6   :  { %v33_v12 = vadd.f32 %v32_v9, %v24_v6  ;;  %552 = vmatprep.subr.bf16.mxu1 %v575_v15  ;;  %v576_v42 = vld [vmem:[%s816_s3 + $0x38] sm:$0xff]   ;;  %v580_v46 = vld [vmem:[%s816_s3 + $0x30] sm:$0xff]   ;;  %v585_v51 = vld [vmem:[%s816_s3 + $0xa8] sm:$0xff]  }
   0x7   :  { %v38_v13 = vadd.f32 %v37_v11, %v28_v10  ;;  %v577_v43 = vld [vmem:[%s816_s3 + $0xb8] sm:$0xff]   ;;  %531 = vmatpush3.bf16.msra.mxu0 %v576_v42  ;;  %v581_v47 = vld [vmem:[%s816_s3 + $0xb0] sm:$0xff]   ;;  %v586_v52 = vld [vmem:[%s816_s3 + $0x60] sm:$0xff]   ;;  %v86_v15 = vshrl.u32 %v85_v14, 7 }
   0x8   :  { %34 = vadd.xlane.f32.xlu0 %v33_v12  ;;  %553 = vmatpush3.bf16.msra.mxu1 %v577_v43  ;;  %v587_v53 = vld [vmem:[%s816_s3 + $0xe0] sm:$0xff]   ;;  %v590_v56 = vld [vmem:[%s816_s3 + $0x58] sm:$0xff]   ;;  %v594_v60 = vld [vmem:[%s816_s3 + $0x50] sm:$0xff]  }
   0x9   :  { %532 = vmatprep.subr.bf16.mxu0 %v578_v44  ;;  %554 = vmatprep.subr.bf16.mxu1 %v579_v45  ;;  %v588_v54 = vld [vmem:[%s816_s3 + $0x20] sm:$0xff]   ;;  %v591_v57 = vld [vmem:[%s816_s3 + $0xd8] sm:$0xff]   ;;  %v595_v61 = vld [vmem:[%s816_s3 + $0xd0] sm:$0xff]  }
   0xa   :  { %v589_v55 = vld [vmem:[%s816_s3 + $0xa0] sm:$0xff]   ;;  %v592_v58 = vld [vmem:[%s816_s3 + $0x18] sm:$0xff]   ;;  %v596_v62 = vld [vmem:[%s816_s3 + $0x10] sm:$0xff]  }
   0xb   :  { %533 = vmatpush3.bf16.msra.mxu0 %v580_v46  ;;  %v593_v59 = vld [vmem:[%s816_s3 + $0x98] sm:$0xff]   ;;  %v597_v63 = vld [vmem:[%s816_s3 + $0x90] sm:$0xff]   ;;  %v601_v3 = vld [vmem:[%s816_s3 + $0x88] sm:$0xff]  }
   0xc   :  { %39 = vadd.xlane.f32.xlu0 %v38_v13  ;;  %555 = vmatpush3.bf16.msra.mxu1 %v581_v47 }
   0xd   :  { %534 = vmatprep.subr.bf16.mxu0 %v582_v48  ;;  %556 = vmatprep.subr.bf16.mxu1 %v583_v49 }
   0xf   :  { %535 = vmatpush3.bf16.msra.mxu0 %v584_v50 }
  0x10   :  { %557 = vmatpush3.bf16.msra.mxu1 %v585_v51  ;;  %536 = vmatprep.subr.bf16.mxu0 %v586_v52 }
  0x11   :  { %558 = vmatprep.subr.bf16.mxu1 %v587_v53 }
  0x13   :  { %537 = vmatpush3.bf16.msra.mxu0 %v588_v54 }
  0x14   :  { %559 = vmatpush3.bf16.msra.mxu1 %v589_v55  ;;  %538 = vmatprep.subr.bf16.mxu0 %v590_v56 }
  0x15   :  { %560 = vmatprep.subr.bf16.mxu1 %v591_v57 }
  0x17   :  { %539 = vmatpush3.bf16.msra.mxu0 %v592_v58 }
  0x18   :  { %561 = vmatpush3.bf16.msra.mxu1 %v593_v59  ;;  %540 = vmatprep.subr.bf16.mxu0 %v594_v60 }
  0x19   :  { %562 = vmatprep.subr.bf16.mxu1 %v595_v61 }
  0x1b   :  { %541 = vmatpush3.bf16.msra.mxu0 %v596_v62  ;;  %v497_v62 = vld [vmem:[%s819_s4] ss:$0 sm:$0xff] }
  0x1c   :  { %563 = vmatpush3.bf16.msra.mxu1 %v597_v63 }
  0x91   :  { %v35_v16 = vpop.xlane.xlu0 %34 }
  0x92   :  { %v42_v17 = vmul.f32 0.001953125, %v35_v16  ;;  %v91_v16 = vsub.s32 1, %v86_v15 }
  0x94   :  { %v670_v18 = vsub.f32 %v21_v0, %v42_v17  ;;  %v672_v19 = vsub.f32 %v22_v1, %v42_v17  ;;  %v674_v20 = vsub.f32 %v23_v2, %v42_v17  ;;  %v676_v22 = vsub.f32 %v24_v6, %v42_v17  ;;  %v598_v0 = vld [vmem:[%s816_s3 + $0x48] sm:$0xff]   ;;  %v604_v6 = vld [vmem:[%s816_s3] sm:$0xff]  }
  0x95   :  { %v40_v21 = vpop.xlane.xlu0 %39  ;;  %v599_v1 = vld [vmem:[%s816_s3 + $0xc8] sm:$0xff]   ;;  %542 = vmatprep.subr.bf16.mxu0 %v598_v0  ;;  %v99_v17 = vsub.s32 3, %v86_v15 }
  0x96   :  { %v43_v23 = vmul.f32 0.001953125, %v40_v21  ;;  %v52_v24 = vmul.f32 %v670_v18, %v670_v18  ;;  %v53_v25 = vmul.f32 %v672_v19, %v672_v19  ;;  %v54_v26 = vmul.f32 %v674_v20, %v674_v20  ;;  %v600_v2 = vld [vmem:[%s816_s3 + $0x8] sm:$0xff]   ;;  %564 = vmatprep.subr.bf16.mxu1 %v599_v1  ;;  %v29_v21 = vld [vmem:[%s817_s1] sm:$0xf] }
  0x97   :  { %v55_v31 = vmul.f32 %v676_v22, %v676_v22  ;;  %543 = vmatpush3.bf16.msra.mxu0 %v600_v2  ;;  %565 = vmatpush3.bf16.msra.mxu1 %v601_v3 }
  0x98   :  { %v684_v27 = vsub.f32 %v25_v4, %v43_v23  ;;  %v686_v28 = vsub.f32 %v26_v5, %v43_v23  ;;  %v60_v29 = vadd.f32 %v53_v25, %v52_v24  ;;  %v688_v30 = vsub.f32 %v27_v7, %v43_v23  ;;  %v602_v4 = vld [vmem:[%s816_s3 + $0x40] sm:$0xff]  }
  0x99   :  { %v692_v33 = vsub.f32 %v28_v10, %v43_v23  ;;  %v603_v5 = vld [vmem:[%s816_s3 + $0xc0] sm:$0xff]   ;;  %544 = vmatprep.subr.bf16.mxu0 %v602_v4  ;;  %v87_v23 = vsub.s32 0, %v86_v15  ;;  %v95_v24 = vsub.s32 2, %v86_v15 }
  0x9a   :  { %v61_v32 = vadd.f32 %v60_v29, %v54_v26  ;;  %v56_v34 = vmul.f32 %v684_v27, %v684_v27  ;;  %v57_v35 = vmul.f32 %v686_v28, %v686_v28  ;;  %v58_v37 = vmul.f32 %v688_v30, %v688_v30  ;;  %v605_v7 = vld [vmem:[%s816_s3 + $0x80] sm:$0xff]   ;;  %566 = vmatprep.subr.bf16.mxu1 %v603_v5 }
  0x9b   :  { %v59_v39 = vmul.f32 %v692_v33, %v692_v33  ;;  %545 = vmatpush3.bf16.msra.mxu0 %v604_v6  ;;  %567 = vmatpush3.bf16.msra.mxu1 %v605_v7  ;;  %v30_v26 = vld [vmem:[%s818_s2] sm:$0xf] }
  0x9c   :  { %v62_v36 = vadd.f32 %v61_v32, %v55_v31  ;;  %v65_v38 = vadd.f32 %v57_v35, %v56_v34  ;;  %v92_v31 = vrot.slane %v29_v21, %v91_v16  ;;  %v100_v34 = vrot.slane %v29_v21, %v99_v17 }
  0x9d   :  { %v117_v42 = vrot.slane %v30_v26, %v87_v23  ;;  %v125_v43 = vrot.slane %v30_v26, %v95_v24 }
  0x9e   :  { %63 = vadd.xlane.f32.xlu1 %v62_v36  ;;  %v66_v40 = vadd.f32 %v65_v38, %v58_v37  ;;  %v88_v36 = vrot.slane %v29_v21, %v87_v23  ;;  %v96_v38 = vrot.slane %v29_v21, %v95_v24 }
  0xa0   :  { %v67_v41 = vadd.f32 %v66_v40, %v59_v39  ;;  %v121_v40 = vrot.slane %v30_v26, %v91_v16 }
  0xa2   :  { %68 = vadd.xlane.f32.xlu1 %v67_v41  ;;  %v129_v41 = vrot.slane %v30_v26, %v99_v17 }
 0x127   :  { %v64_v8 = vpop.xlane.xlu1 %63 }
 0x128   :  { %v70_v9 = vmul.f32 0.001953125, %v64_v8 }
 0x12a   :  { %v72_v10 = vadd.f32 1e-05, %v70_v9 }
 0x12b   :  { %v69_v11 = vpop.xlane.xlu1 %68 }
 0x12c   :  { %606 = vrsqrt.f32 %v72_v10  ;;  %v71_v12 = vmul.f32 0.001953125, %v69_v11 }
 0x12e   :  { %v73_v13 = vadd.f32 1e-05, %v71_v12 }
 0x130   :  { %608 = vrsqrt.f32 %v73_v13 }
 0x139   :  { %v607_v25 = vpop.eup %606 }
 0x13a   :  { %v77_v29 = vmul.f32 %v607_v25, %v672_v19  ;;  %v79_v32 = vmul.f32 %v607_v25, %v676_v22  ;;  %v76_v35 = vmul.f32 %v607_v25, %v670_v18  ;;  %v78_v37 = vmul.f32 %v607_v25, %v674_v20 }
 0x13c   :  { %v106_v45 = vmul.f32 %v92_v31, %v77_v29  ;;  %v108_v46 = vmul.f32 %v100_v34, %v79_v32  ;;  %v105_v47 = vmul.f32 %v88_v36, %v76_v35  ;;  %v107_v48 = vmul.f32 %v96_v38, %v78_v37 }
 0x13d   :  { %v609_v39 = vpop.eup %608 }
 0x13e   :  { %v81_v44 = vmul.f32 %v609_v39, %v686_v28  ;;  %v83_v19 = vmul.f32 %v609_v39, %v692_v33  ;;  %v80_v22 = vmul.f32 %v609_v39, %v684_v27  ;;  %v82_v18 = vmul.f32 %v609_v39, %v688_v30 }
 0x13f   :  { %v135_v52 = vadd.f32 %v121_v40, %v106_v45  ;;  %v137_v54 = vadd.f32 %v129_v41, %v108_v46  ;;  %v134_v56 = vadd.f32 %v117_v42, %v105_v47  ;;  %v136_v57 = vadd.f32 %v125_v43, %v107_v48 }
 0x140   :  { %v110_v49 = vmul.f32 %v92_v31, %v81_v44  ;;  %v112_v20 = vmul.f32 %v100_v34, %v83_v19  ;;  %v109_v50 = vmul.f32 %v88_v36, %v80_v22  ;;  %v111_v51 = vmul.f32 %v96_v38, %v82_v18 }
 0x142   :  { %v139_v53 = vadd.f32 %v121_v40, %v110_v49  ;;  %v141_v55 = vadd.f32 %v129_v41, %v112_v20  ;;  %v138_v28 = vadd.f32 %v117_v42, %v109_v50  ;;  %v140_v58 = vadd.f32 %v125_v43, %v111_v51 }
 0x144   :  { %v143_v33 = vpack.c.bf16 %v139_v53, %v135_v52  ;;  %v145_v59 = vpack.c.bf16 %v141_v55, %v137_v54  ;;  %v142_v60 = vpack.c.bf16 %v138_v28, %v134_v56  ;;  %v144_v27 = vpack.c.bf16 %v140_v58, %v136_v57 }
 0x146   :  { %441 = vmatprep.mubr.bf16.mxu0 %v143_v33  ;;  %482 = vmatprep.mubr.bf16.mxu1 %v145_v59 }
 0x147   :  { %442 = vmatmul.mubr.bf16.vlgmr.msra.gmra.mxu0 %v142_v60  ;;  %483 = vmatmul.mubr.bf16.vlgmr.msra.gmra.mxu1 %v144_v27 }
 0x207   :  { %v546_v30 = vpop.f32.mrf.mxu0  ;;  %v568_v61 = vpop.f32.mrf.mxu1 }
 0x209   :  { %v547_v63 = vpop.f32.mrf.mxu0  ;;  %v569_v0 = vpop.f32.mrf.mxu1 }
 0x20a   :  { %v548_v1 = vadd.f32 %v547_v63, %v546_v30  ;;  %v570_v5 = vadd.f32 %v569_v0, %v568_v61 }
 0x20b   :  { %v549_v2 = vpop.f32.mrf.mxu0  ;;  %v571_v3 = vpop.f32.mrf.mxu1 }
 0x20c   :  { %v444_v4 = vadd.f32 %v548_v1, %v497_v62 }
 0x20d   :  { %v550_v6 = vpop.f32.mrf.mxu0  ;;  %v572_v7 = vpop.f32.mrf.mxu1 }
 0x20e   :  { %v485_v8 = vadd.f32 %v570_v5, %v444_v4  ;;  %v551_v9 = vadd.f32 %v550_v6, %v549_v2  ;;  %v573_v11 = vadd.f32 %v572_v7, %v571_v3 }
 0x210   :  { %491 = vst [vmem:[%s820_s5] sm:$0xff] %v485_v8  ;;  %v447_v10 = vadd.f32 %v551_v9, %v497_v62 }
 0x212   :  { %v488_v12 = vadd.f32 %v573_v11, %v447_v10 }
 0x214   :  { %492 = vst [vmem:[%s820_s5 + $0x8] sm:$0xff] %v488_v12 }

</bundles_post_ra>
